<compile_context>
chip_gen: v7x
topology: tpu7x:2x2x1
jax: 0.10.0
libtpu: 0.0.40
codegen_flags: <defaults>
</compile_context>

<pallas_src>
import functools

import jax
import jax.numpy as jnp
from jax import lax
from jax.experimental import pallas as pl
from jax.experimental.pallas import tpu as pltpu

EMBED = 100
HIDDEN = 100
BN_EPS = 1e-5

# lane-aligned padded sizes
HP = 128          # padded hidden / embedding width
GP = 4 * HP       # padded gate width (i, f, g, o are each one 128-lane slice)
NEG_BIG = -1e30   # pad bias for decoder vocab columns (keeps softmax exact)


# ----------------------------------------------------------------------------
# Fused forward kernel: everything lives in VMEM for the whole forward pass.
# Activation layout inside the kernel: 2D (T*BP, C), row index = t*BP + b.
# ----------------------------------------------------------------------------
def _fused_g2p_kernel(
    x_ref,                                   # (T*BP, HP) embedded tokens (bf16)
    wih1_ref, whh1_ref, b1_ref,
    wih2_ref, whh2_ref, b2_ref,
    wih3_ref, whh3_ref, b3_ref,
    wih4_ref, whh4_ref, b4_ref,
    wih5_ref, whh5_ref, b5_ref,
    wdec_ref, bdec_ref,
    o_ref,                                   # (T*BP, VP) log-probs (f32)
    act_scr,                                 # (T*BP, HP) inter-layer activations (f32)
    gx_scr,                                  # (T*BP, GP) hoisted input projections (f32)
    *, seq_len, batch_p, unroll,
):
    T, BP = seq_len, batch_p
    Hp = act_scr.shape[-1]

    def cell(gates, c):
        # f32 VPU/EUP cell math; lane-aligned gate slices; PyTorch order (i,f,g,o).
        i = jax.nn.sigmoid(gates[:, 0 * Hp:1 * Hp])
        f = jax.nn.sigmoid(gates[:, 1 * Hp:2 * Hp])
        g = jnp.tanh(gates[:, 2 * Hp:3 * Hp])
        o = jax.nn.sigmoid(gates[:, 3 * Hp:4 * Hp])
        c_new = f * c + i * g
        h_new = o * jnp.tanh(c_new)
        return h_new, c_new

    zeros_bh = jnp.zeros((BP, Hp), jnp.float32)

    def run_lstm(x2d_bf16, wih_ref, whh_ref, b_ref):
        # Hoisted input projection: single bf16 matmul over the whole sequence,
        # f32 accumulation + f32 bias.
        gx_scr[...] = (
            jnp.dot(x2d_bf16, wih_ref[...], preferred_element_type=jnp.float32)
            + b_ref[...]
        )

        def step(t, carry):
            h, c, s = carry
            gates = gx_scr[pl.ds(t * BP, BP), :] + jnp.dot(
                h.astype(jnp.bfloat16), whh_ref[...],
                preferred_element_type=jnp.float32)
            h, c = cell(gates, c)
            act_scr[pl.ds(t * BP, BP), :] = h
            return (h, c, s + h)        # running time-sum (cheap VPU filler)

        _, _, s = lax.fori_loop(0, T, step, (zeros_bh, zeros_bh, zeros_bh),
                                unroll=unroll)
        return s

    # ---- encoder (BN_e2 / BN_e3 already folded into wih2/b2, wih3/b3) ----
    run_lstm(x_ref[...], wih1_ref, whh1_ref, b1_ref)
    run_lstm(act_scr[...].astype(jnp.bfloat16), wih2_ref, whh2_ref, b2_ref)
    sum_h3 = run_lstm(act_scr[...].astype(jnp.bfloat16), wih3_ref, whh3_ref, b3_ref)

    # ---- AvgPool1d(T) over time + concat T copies == time-mean, broadcast.
    #      Accumulated in the enc_lstm3 recurrence; just scale here. ----
    mean_h = sum_h3 * jnp.float32(1.0 / T)                         # (BP, HP)

    # ---- decoder LSTM 1 (BN_d1 folded): input constant in time, so the input
    #      projection is computed ONCE and reused for all T steps. ----
    gx_const = (
        jnp.dot(mean_h.astype(jnp.bfloat16), wih4_ref[...],
                preferred_element_type=jnp.float32)
        + b4_ref[...]
    )

    def step_dec1(t, hc):
        h, c = hc
        gates = gx_const + jnp.dot(
            h.astype(jnp.bfloat16), whh4_ref[...],
            preferred_element_type=jnp.float32)
        h, c = cell(gates, c)
        act_scr[pl.ds(t * BP, BP), :] = h
        return (h, c)

    lax.fori_loop(0, T, step_dec1, (zeros_bh, zeros_bh), unroll=unroll)

    # ---- decoder LSTM 2 (BN_d2 folded) ----
    run_lstm(act_scr[...].astype(jnp.bfloat16), wih5_ref, whh5_ref, b5_ref)

    # ---- decoder linear + log_softmax (lane-dense padded vocab, f32 logits) --
    logits = (
        jnp.dot(act_scr[...].astype(jnp.bfloat16), wdec_ref[...],
                preferred_element_type=jnp.float32)
        + bdec_ref[...]
    )
    m = jnp.max(logits, axis=-1, keepdims=True)
    z = logits - m
    lse = jnp.log(jnp.sum(jnp.exp(z), axis=-1, keepdims=True))
    o_ref[...] = (z - lse).astype(o_ref.dtype)


# ----------------------------------------------------------------------------
# Parameter init (deterministic, PyTorch-like uniform(-1/sqrt(H), 1/sqrt(H)))
# ----------------------------------------------------------------------------
def _lstm_params(key, d, h):
    k1, k2, k3, k4 = jax.random.split(key, 4)
    s = 1.0 / jnp.sqrt(jnp.float32(h))
    w_ih = jax.random.uniform(k1, (d, 4 * h), jnp.float32, -s, s)
    w_hh = jax.random.uniform(k2, (h, 4 * h), jnp.float32, -s, s)
    b = (jax.random.uniform(k3, (4 * h,), jnp.float32, -s, s)
         + jax.random.uniform(k4, (4 * h,), jnp.float32, -s, s))
    return dict(w_ih=w_ih, w_hh=w_hh, b=b)


def _bn_params(c):
    return dict(
        gamma=jnp.ones((c,), jnp.float32),
        beta=jnp.zeros((c,), jnp.float32),
        mean=jnp.zeros((c,), jnp.float32),
        var=jnp.ones((c,), jnp.float32),
    )


def init_params(key, graphemes_vocab, phonemes_vocab):
    ks = jax.random.split(key, 8)
    s = 1.0 / jnp.sqrt(jnp.float32(HIDDEN))
    return dict(
        embedding=jax.random.normal(ks[0], (graphemes_vocab, EMBED), jnp.float32),
        enc_lstm1=_lstm_params(ks[1], EMBED, HIDDEN),
        bn_e2=_bn_params(HIDDEN),
        enc_lstm2=_lstm_params(ks[2], HIDDEN, HIDDEN),
        bn_e3=_bn_params(HIDDEN),
        enc_lstm3=_lstm_params(ks[3], HIDDEN, HIDDEN),
        bn_d1=_bn_params(HIDDEN),
        dec_lstm1=_lstm_params(ks[4], HIDDEN, HIDDEN),
        bn_d2=_bn_params(HIDDEN),
        dec_lstm2=_lstm_params(ks[5], HIDDEN, HIDDEN),
        linear_w=jax.random.uniform(ks[6], (HIDDEN, phonemes_vocab), jnp.float32, -s, s),
        linear_b=jax.random.uniform(ks[7], (phonemes_vocab,), jnp.float32, -s, s),
    )


# ----------------------------------------------------------------------------
# Param prep: fold eval-mode BN affines (in f32) into the next LSTM's input
# weights, pad everything to lane-aligned shapes (zero pad => padded lanes
# stay exactly 0), cast MXU operands to bf16 (biases stay f32).
# ----------------------------------------------------------------------------
def _fold_bn(wih, b, bn):
    scale = bn["gamma"] / jnp.sqrt(bn["var"] + BN_EPS)
    shift = bn["beta"] - bn["mean"] * scale
    return wih * scale[:, None], b + shift @ wih


def _pad_lstm(wih, whh, b):
    wih_p = jnp.pad(wih, ((0, HP - wih.shape[0]), (0, GP - wih.shape[1])))
    whh_p = jnp.pad(whh, ((0, HP - whh.shape[0]), (0, GP - whh.shape[1])))
    b_p = jnp.pad(b.reshape(1, -1), ((0, 0), (0, GP - b.shape[0])))
    return (wih_p.astype(jnp.bfloat16),
            whh_p.astype(jnp.bfloat16),
            b_p.astype(jnp.float32))


def prepare_fused_params(params):
    def prep(lstm, bn=None):
        wih, whh, b = lstm["w_ih"], lstm["w_hh"], lstm["b"]
        if bn is not None:
            wih, b = _fold_bn(wih, b, bn)
        return _pad_lstm(wih, whh, b)

    flat = []
    flat += prep(params["enc_lstm1"])
    flat += prep(params["enc_lstm2"], params["bn_e2"])
    flat += prep(params["enc_lstm3"], params["bn_e3"])
    flat += prep(params["dec_lstm1"], params["bn_d1"])
    flat += prep(params["dec_lstm2"], params["bn_d2"])

    V = params["linear_w"].shape[1]
    VP = ((V + 127) // 128) * 128
    wdec = jnp.pad(params["linear_w"],
                   ((0, HP - params["linear_w"].shape[0]), (0, VP - V))
                   ).astype(jnp.bfloat16)
    # pad bias stays f32 / -1e30 so the padded-vocab masking & log_softmax stay exact
    bdec = jnp.full((1, VP), NEG_BIG, jnp.float32).at[0, :V].set(params["linear_b"])
    emb = jnp.pad(params["embedding"],
                  ((0, 0), (0, HP - params["embedding"].shape[1])))
    return emb, tuple(flat) + (wdec, bdec), VP


# ----------------------------------------------------------------------------
# Full forward pass (mode == 'dropout', eval semantics for Dropout/BatchNorm)
# ----------------------------------------------------------------------------
def model_forward(params, x_tokens, seq_length):
    B, T = x_tokens.shape
    assert T == seq_length
    V = params["linear_w"].shape[1]

    emb_p, weight_args, VP = prepare_fused_params(params)

    # Pad batch to a multiple of 8 sublanes: per-step slices / stores become
    # whole-tile, unmasked accesses inside the kernel.
    BP = max(8, ((B + 7) // 8) * 8)

    # Embedding gather (glue, plain JAX); time-major layout: row = t*BP + b.
    ids_tm = jnp.transpose(x_tokens)                              # (T, B)
    x_emb = jnp.take(emb_p, ids_tm, axis=0)                       # (T, B, HP)
    x_emb = jnp.pad(x_emb, ((0, 0), (0, BP - B), (0, 0)))         # (T, BP, HP)
    x_emb = x_emb.reshape(T * BP, HP).astype(jnp.bfloat16)        # bf16 MXU LHS

    unroll = True if T <= 8 else 8

    # Explicit scoped-VMEM budget from the actual footprint (weights + in/out +
    # activation & gate scratch), with headroom; capped at v7x physical VMEM.
    bytes_w = sum(int(a.size) * a.dtype.itemsize for a in weight_args)
    bytes_io = x_emb.size * 2 + T * BP * VP * 4
    bytes_scr = T * BP * HP * 4 + T * BP * GP * 4
    vmem_limit = int(min(max(2 * (bytes_w + bytes_io + bytes_scr) + (8 << 20),
                             16 << 20), 64 << 20))

    kernel = functools.partial(_fused_g2p_kernel, seq_len=T, batch_p=BP,
                               unroll=unroll)
    out_flat = pl.pallas_call(
        kernel,
        out_shape=jax.ShapeDtypeStruct((T * BP, VP), jnp.float32),
        scratch_shapes=[
            pltpu.VMEM((T * BP, HP), jnp.float32),
            pltpu.VMEM((T * BP, GP), jnp.float32),
        ],
        compiler_params=pltpu.CompilerParams(vmem_limit_bytes=vmem_limit),
    )(x_emb, *weight_args)

    # (T*BP, VP) -> (B, T, V); tiny host-side reshuffle of the final output only.
    out = out_flat.reshape(T, BP, VP)[:, :B, :V]
    return jnp.transpose(out, (1, 0, 2))


if __name__ == "__main__":
    B, T = 2, 8                      # batch, seq_length
    graphemes_vocab, phonemes_vocab = 30, 40

    key = jax.random.PRNGKey(0)
    pkey, dkey = jax.random.split(key)
    params = init_params(pkey, graphemes_vocab, phonemes_vocab)
    x = jax.random.randint(dkey, (B, T), 0, graphemes_vocab, dtype=jnp.int32)

    fwd = jax.jit(functools.partial(model_forward, seq_length=T))
    out = jax.block_until_ready(fwd(params, x))

    assert out.shape == (B, T, phonemes_vocab), out.shape
    assert bool(jnp.all(jnp.isfinite(out)))
    # log_softmax rows must sum to ~1 in prob space
    assert bool(jnp.allclose(jnp.sum(jnp.exp(out), axis=-1), 1.0, atol=1e-3))
    print("KERNEL_OK")
</pallas_src>

<mosaic_0001>
module attributes {stable_mosaic.version = 11 : i64} {
  func.func @_fused_g2p_kernel(%arg0: memref<64x128xbf16, #tpu.memory_space<vmem>>, %arg1: memref<128x512xbf16, #tpu.memory_space<vmem>>, %arg2: memref<128x512xbf16, #tpu.memory_space<vmem>>, %arg3: memref<1x512xf32, #tpu.memory_space<vmem>>, %arg4: memref<128x512xbf16, #tpu.memory_space<vmem>>, %arg5: memref<128x512xbf16, #tpu.memory_space<vmem>>, %arg6: memref<1x512xf32, #tpu.memory_space<vmem>>, %arg7: memref<128x512xbf16, #tpu.memory_space<vmem>>, %arg8: memref<128x512xbf16, #tpu.memory_space<vmem>>, %arg9: memref<1x512xf32, #tpu.memory_space<vmem>>, %arg10: memref<128x512xbf16, #tpu.memory_space<vmem>>, %arg11: memref<128x512xbf16, #tpu.memory_space<vmem>>, %arg12: memref<1x512xf32, #tpu.memory_space<vmem>>, %arg13: memref<128x512xbf16, #tpu.memory_space<vmem>>, %arg14: memref<128x512xbf16, #tpu.memory_space<vmem>>, %arg15: memref<1x512xf32, #tpu.memory_space<vmem>>, %arg16: memref<128x128xbf16, #tpu.memory_space<vmem>>, %arg17: memref<1x128xf32, #tpu.memory_space<vmem>>, %arg18: memref<64x128xf32, #tpu.memory_space<vmem>>, %arg19: memref<64x128xf32, #tpu.memory_space<vmem>>, %arg20: memref<64x512xf32, #tpu.memory_space<vmem>>) attributes {dimension_semantics = [], scalar_prefetch = 0 : i64, scratch_operands = 2 : i64, tpu.core_type = #tpu.core_type<tc>} {
    %cst = arith.constant 0.000000e+00 : f32
    %0 = vector.broadcast %cst : f32 to vector<8x128xf32>
    %c0 = arith.constant 0 : index
    %c0_0 = arith.constant 0 : index
    %1 = vector.load %arg0[%c0, %c0_0] : memref<64x128xbf16, #tpu.memory_space<vmem>>, vector<64x128xbf16>
    %c0_1 = arith.constant 0 : index
    %c0_2 = arith.constant 0 : index
    %2 = vector.load %arg1[%c0_1, %c0_2] : memref<128x512xbf16, #tpu.memory_space<vmem>>, vector<128x512xbf16>
    %cst_3 = arith.constant dense<0.000000e+00> : vector<64x512xf32>
    %3 = tpu.matmul %1, %2, %cst_3 {dimension_numbers = #tpu.dot_dimension_numbers<[1], [0], [0], [1], [0, 0, 1, 1], [], []>} : vector<64x128xbf16>, vector<128x512xbf16>, vector<64x512xf32> -> vector<64x512xf32>
    %c0_4 = arith.constant 0 : index
    %c0_5 = arith.constant 0 : index
    %4 = vector.load %arg3[%c0_4, %c0_5] : memref<1x512xf32, #tpu.memory_space<vmem>>, vector<1x512xf32>
    %5 = vector.broadcast %4 : vector<1x512xf32> to vector<64x512xf32>
    %6 = arith.addf %3, %5 : vector<64x512xf32>
    %c0_6 = arith.constant 0 : index
    %c0_7 = arith.constant 0 : index
    %7 = vector.load %arg20[%c0_6, %c0_7] : memref<64x512xf32, #tpu.memory_space<vmem>>, vector<64x512xf32>
    tpu.vector_store %arg20[%c0_6, %c0_7], %6 {strides = array<i32>} : memref<64x512xf32, #tpu.memory_space<vmem>>, vector<64x512xf32>,
    %c0_i32 = arith.constant 0 : i32
    %c8_i32 = arith.constant 8 : i32
    %8 = arith.muli %c0_i32, %c8_i32 : i32
    %9 = arith.index_cast %8 : i32 to index
    %c0_8 = arith.constant 0 : index
    %10 = vector.load %arg20[%9, %c0_8] : memref<64x512xf32, #tpu.memory_space<vmem>>, vector<8x512xf32>
    %11 = arith.truncf %0 : vector<8x128xf32> to vector<8x128xbf16>
    %c0_9 = arith.constant 0 : index
    %c0_10 = arith.constant 0 : index
    %12 = vector.load %arg2[%c0_9, %c0_10] : memref<128x512xbf16, #tpu.memory_space<vmem>>, vector<128x512xbf16>
    %cst_11 = arith.constant dense<0.000000e+00> : vector<8x512xf32>
    %13 = tpu.matmul %11, %12, %cst_11 {dimension_numbers = #tpu.dot_dimension_numbers<[1], [0], [0], [1], [0, 0, 1, 1], [], []>} : vector<8x128xbf16>, vector<128x512xbf16>, vector<8x512xf32> -> vector<8x512xf32>
    %14 = arith.addf %10, %13 : vector<8x512xf32>
    %15 = vector.extract_strided_slice %14 {offsets = [0, 0], sizes = [8, 128], strides = [1, 1]} : vector<8x512xf32> to vector<8x128xf32>
    %16 = arith.negf %15 : vector<8x128xf32>
    %17 = math.exp %16 : vector<8x128xf32>
    %cst_12 = arith.constant 1.000000e+00 : f32
    %18 = vector.broadcast %cst_12 : f32 to vector<8x128xf32>
    %19 = arith.addf %18, %17 : vector<8x128xf32>
    %20 = arith.divf %18, %19 : vector<8x128xf32>
    %21 = vector.extract_strided_slice %14 {offsets = [0, 128], sizes = [8, 128], strides = [1, 1]} : vector<8x512xf32> to vector<8x128xf32>
    %22 = arith.negf %21 : vector<8x128xf32>
    %23 = math.exp %22 : vector<8x128xf32>
    %cst_13 = arith.constant 1.000000e+00 : f32
    %24 = vector.broadcast %cst_13 : f32 to vector<8x128xf32>
    %25 = arith.addf %24, %23 : vector<8x128xf32>
    %26 = arith.divf %24, %25 : vector<8x128xf32>
    %27 = vector.extract_strided_slice %14 {offsets = [0, 256], sizes = [8, 128], strides = [1, 1]} : vector<8x512xf32> to vector<8x128xf32>
    %28 = math.tanh %27 : vector<8x128xf32>
    %29 = vector.extract_strided_slice %14 {offsets = [0, 384], sizes = [8, 128], strides = [1, 1]} : vector<8x512xf32> to vector<8x128xf32>
    %30 = arith.negf %29 : vector<8x128xf32>
    %31 = math.exp %30 : vector<8x128xf32>
    %cst_14 = arith.constant 1.000000e+00 : f32
    %32 = vector.broadcast %cst_14 : f32 to vector<8x128xf32>
    %33 = arith.addf %32, %31 : vector<8x128xf32>
    %34 = arith.divf %32, %33 : vector<8x128xf32>
    %35 = arith.mulf %26, %0 : vector<8x128xf32>
    %36 = arith.mulf %20, %28 : vector<8x128xf32>
    %37 = arith.addf %35, %36 : vector<8x128xf32>
    %38 = math.tanh %37 : vector<8x128xf32>
    %39 = arith.mulf %34, %38 : vector<8x128xf32>
    %c8_i32_15 = arith.constant 8 : i32
    %40 = arith.muli %c0_i32, %c8_i32_15 : i32
    %41 = arith.index_cast %40 : i32 to index
    %c0_16 = arith.constant 0 : index
    %42 = vector.load %arg19[%41, %c0_16] : memref<64x128xf32, #tpu.memory_space<vmem>>, vector<8x128xf32>
    tpu.vector_store %arg19[%41, %c0_16], %39 {strides = array<i32>} : memref<64x128xf32, #tpu.memory_space<vmem>>, vector<8x128xf32>,
    %c1_i32 = arith.constant 1 : i32
    %c8_i32_17 = arith.constant 8 : i32
    %43 = arith.muli %c1_i32, %c8_i32_17 : i32
    %44 = arith.index_cast %43 : i32 to index
    %c0_18 = arith.constant 0 : index
    %45 = vector.load %arg20[%44, %c0_18] : memref<64x512xf32, #tpu.memory_space<vmem>>, vector<8x512xf32>
    %46 = arith.truncf %39 : vector<8x128xf32> to vector<8x128xbf16>
    %c0_19 = arith.constant 0 : index
    %c0_20 = arith.constant 0 : index
    %47 = vector.load %arg2[%c0_19, %c0_20] : memref<128x512xbf16, #tpu.memory_space<vmem>>, vector<128x512xbf16>
    %cst_21 = arith.constant dense<0.000000e+00> : vector<8x512xf32>
    %48 = tpu.matmul %46, %47, %cst_21 {dimension_numbers = #tpu.dot_dimension_numbers<[1], [0], [0], [1], [0, 0, 1, 1], [], []>} : vector<8x128xbf16>, vector<128x512xbf16>, vector<8x512xf32> -> vector<8x512xf32>
    %49 = arith.addf %45, %48 : vector<8x512xf32>
    %50 = vector.extract_strided_slice %49 {offsets = [0, 0], sizes = [8, 128], strides = [1, 1]} : vector<8x512xf32> to vector<8x128xf32>
    %51 = arith.negf %50 : vector<8x128xf32>
    %52 = math.exp %51 : vector<8x128xf32>
    %cst_22 = arith.constant 1.000000e+00 : f32
    %53 = vector.broadcast %cst_22 : f32 to vector<8x128xf32>
    %54 = arith.addf %53, %52 : vector<8x128xf32>
    %55 = arith.divf %53, %54 : vector<8x128xf32>
    %56 = vector.extract_strided_slice %49 {offsets = [0, 128], sizes = [8, 128], strides = [1, 1]} : vector<8x512xf32> to vector<8x128xf32>
    %57 = arith.negf %56 : vector<8x128xf32>
    %58 = math.exp %57 : vector<8x128xf32>
    %cst_23 = arith.constant 1.000000e+00 : f32
    %59 = vector.broadcast %cst_23 : f32 to vector<8x128xf32>
    %60 = arith.addf %59, %58 : vector<8x128xf32>
    %61 = arith.divf %59, %60 : vector<8x128xf32>
    %62 = vector.extract_strided_slice %49 {offsets = [0, 256], sizes = [8, 128], strides = [1, 1]} : vector<8x512xf32> to vector<8x128xf32>
    %63 = math.tanh %62 : vector<8x128xf32>
    %64 = vector.extract_strided_slice %49 {offsets = [0, 384], sizes = [8, 128], strides = [1, 1]} : vector<8x512xf32> to vector<8x128xf32>
    %65 = arith.negf %64 : vector<8x128xf32>
    %66 = math.exp %65 : vector<8x128xf32>
    %cst_24 = arith.constant 1.000000e+00 : f32
    %67 = vector.broadcast %cst_24 : f32 to vector<8x128xf32>
    %68 = arith.addf %67, %66 : vector<8x128xf32>
    %69 = arith.divf %67, %68 : vector<8x128xf32>
    %70 = arith.mulf %61, %37 : vector<8x128xf32>
    %71 = arith.mulf %55, %63 : vector<8x128xf32>
    %72 = arith.addf %70, %71 : vector<8x128xf32>
    %73 = math.tanh %72 : vector<8x128xf32>
    %74 = arith.mulf %69, %73 : vector<8x128xf32>
    %c8_i32_25 = arith.constant 8 : i32
    %75 = arith.muli %c1_i32, %c8_i32_25 : i32
    %76 = arith.index_cast %75 : i32 to index
    %c0_26 = arith.constant 0 : index
    %77 = vector.load %arg19[%76, %c0_26] : memref<64x128xf32, #tpu.memory_space<vmem>>, vector<8x128xf32>
    tpu.vector_store %arg19[%76, %c0_26], %74 {strides = array<i32>} : memref<64x128xf32, #tpu.memory_space<vmem>>, vector<8x128xf32>,
    %c2_i32 = arith.constant 2 : i32
    %c8_i32_27 = arith.constant 8 : i32
    %78 = arith.muli %c2_i32, %c8_i32_27 : i32
    %79 = arith.index_cast %78 : i32 to index
    %c0_28 = arith.constant 0 : index
    %80 = vector.load %arg20[%79, %c0_28] : memref<64x512xf32, #tpu.memory_space<vmem>>, vector<8x512xf32>
    %81 = arith.truncf %74 : vector<8x128xf32> to vector<8x128xbf16>
    %c0_29 = arith.constant 0 : index
    %c0_30 = arith.constant 0 : index
    %82 = vector.load %arg2[%c0_29, %c0_30] : memref<128x512xbf16, #tpu.memory_space<vmem>>, vector<128x512xbf16>
    %cst_31 = arith.constant dense<0.000000e+00> : vector<8x512xf32>
    %83 = tpu.matmul %81, %82, %cst_31 {dimension_numbers = #tpu.dot_dimension_numbers<[1], [0], [0], [1], [0, 0, 1, 1], [], []>} : vector<8x128xbf16>, vector<128x512xbf16>, vector<8x512xf32> -> vector<8x512xf32>
    %84 = arith.addf %80, %83 : vector<8x512xf32>
    %85 = vector.extract_strided_slice %84 {offsets = [0, 0], sizes = [8, 128], strides = [1, 1]} : vector<8x512xf32> to vector<8x128xf32>
    %86 = arith.negf %85 : vector<8x128xf32>
    %87 = math.exp %86 : vector<8x128xf32>
    %cst_32 = arith.constant 1.000000e+00 : f32
    %88 = vector.broadcast %cst_32 : f32 to vector<8x128xf32>
    %89 = arith.addf %88, %87 : vector<8x128xf32>
    %90 = arith.divf %88, %89 : vector<8x128xf32>
    %91 = vector.extract_strided_slice %84 {offsets = [0, 128], sizes = [8, 128], strides = [1, 1]} : vector<8x512xf32> to vector<8x128xf32>
    %92 = arith.negf %91 : vector<8x128xf32>
    %93 = math.exp %92 : vector<8x128xf32>
    %cst_33 = arith.constant 1.000000e+00 : f32
    %94 = vector.broadcast %cst_33 : f32 to vector<8x128xf32>
    %95 = arith.addf %94, %93 : vector<8x128xf32>
    %96 = arith.divf %94, %95 : vector<8x128xf32>
    %97 = vector.extract_strided_slice %84 {offsets = [0, 256], sizes = [8, 128], strides = [1, 1]} : vector<8x512xf32> to vector<8x128xf32>
    %98 = math.tanh %97 : vector<8x128xf32>
    %99 = vector.extract_strided_slice %84 {offsets = [0, 384], sizes = [8, 128], strides = [1, 1]} : vector<8x512xf32> to vector<8x128xf32>
    %100 = arith.negf %99 : vector<8x128xf32>
    %101 = math.exp %100 : vector<8x128xf32>
    %cst_34 = arith.constant 1.000000e+00 : f32
    %102 = vector.broadcast %cst_34 : f32 to vector<8x128xf32>
    %103 = arith.addf %102, %101 : vector<8x128xf32>
    %104 = arith.divf %102, %103 : vector<8x128xf32>
    %105 = arith.mulf %96, %72 : vector<8x128xf32>
    %106 = arith.mulf %90, %98 : vector<8x128xf32>
    %107 = arith.addf %105, %106 : vector<8x128xf32>
    %108 = math.tanh %107 : vector<8x128xf32>
    %109 = arith.mulf %104, %108 : vector<8x128xf32>
    %c8_i32_35 = arith.constant 8 : i32
    %110 = arith.muli %c2_i32, %c8_i32_35 : i32
    %111 = arith.index_cast %110 : i32 to index
    %c0_36 = arith.constant 0 : index
    %112 = vector.load %arg19[%111, %c0_36] : memref<64x128xf32, #tpu.memory_space<vmem>>, vector<8x128xf32>
    tpu.vector_store %arg19[%111, %c0_36], %109 {strides = array<i32>} : memref<64x128xf32, #tpu.memory_space<vmem>>, vector<8x128xf32>,
    %c3_i32 = arith.constant 3 : i32
    %c8_i32_37 = arith.constant 8 : i32
    %113 = arith.muli %c3_i32, %c8_i32_37 : i32
    %114 = arith.index_cast %113 : i32 to index
    %c0_38 = arith.constant 0 : index
    %115 = vector.load %arg20[%114, %c0_38] : memref<64x512xf32, #tpu.memory_space<vmem>>, vector<8x512xf32>
    %116 = arith.truncf %109 : vector<8x128xf32> to vector<8x128xbf16>
    %c0_39 = arith.constant 0 : index
    %c0_40 = arith.constant 0 : index
    %117 = vector.load %arg2[%c0_39, %c0_40] : memref<128x512xbf16, #tpu.memory_space<vmem>>, vector<128x512xbf16>
    %cst_41 = arith.constant dense<0.000000e+00> : vector<8x512xf32>
    %118 = tpu.matmul %116, %117, %cst_41 {dimension_numbers = #tpu.dot_dimension_numbers<[1], [0], [0], [1], [0, 0, 1, 1], [], []>} : vector<8x128xbf16>, vector<128x512xbf16>, vector<8x512xf32> -> vector<8x512xf32>
    %119 = arith.addf %115, %118 : vector<8x512xf32>
    %120 = vector.extract_strided_slice %119 {offsets = [0, 0], sizes = [8, 128], strides = [1, 1]} : vector<8x512xf32> to vector<8x128xf32>
    %121 = arith.negf %120 : vector<8x128xf32>
    %122 = math.exp %121 : vector<8x128xf32>
    %cst_42 = arith.constant 1.000000e+00 : f32
    %123 = vector.broadcast %cst_42 : f32 to vector<8x128xf32>
    %124 = arith.addf %123, %122 : vector<8x128xf32>
    %125 = arith.divf %123, %124 : vector<8x128xf32>
    %126 = vector.extract_strided_slice %119 {offsets = [0, 128], sizes = [8, 128], strides = [1, 1]} : vector<8x512xf32> to vector<8x128xf32>
    %127 = arith.negf %126 : vector<8x128xf32>
    %128 = math.exp %127 : vector<8x128xf32>
    %cst_43 = arith.constant 1.000000e+00 : f32
    %129 = vector.broadcast %cst_43 : f32 to vector<8x128xf32>
    %130 = arith.addf %129, %128 : vector<8x128xf32>
    %131 = arith.divf %129, %130 : vector<8x128xf32>
    %132 = vector.extract_strided_slice %119 {offsets = [0, 256], sizes = [8, 128], strides = [1, 1]} : vector<8x512xf32> to vector<8x128xf32>
    %133 = math.tanh %132 : vector<8x128xf32>
    %134 = vector.extract_strided_slice %119 {offsets = [0, 384], sizes = [8, 128], strides = [1, 1]} : vector<8x512xf32> to vector<8x128xf32>
    %135 = arith.negf %134 : vector<8x128xf32>
    %136 = math.exp %135 : vector<8x128xf32>
    %cst_44 = arith.constant 1.000000e+00 : f32
    %137 = vector.broadcast %cst_44 : f32 to vector<8x128xf32>
    %138 = arith.addf %137, %136 : vector<8x128xf32>
    %139 = arith.divf %137, %138 : vector<8x128xf32>
    %140 = arith.mulf %131, %107 : vector<8x128xf32>
    %141 = arith.mulf %125, %133 : vector<8x128xf32>
    %142 = arith.addf %140, %141 : vector<8x128xf32>
    %143 = math.tanh %142 : vector<8x128xf32>
    %144 = arith.mulf %139, %143 : vector<8x128xf32>
    %c8_i32_45 = arith.constant 8 : i32
    %145 = arith.muli %c3_i32, %c8_i32_45 : i32
    %146 = arith.index_cast %145 : i32 to index
    %c0_46 = arith.constant 0 : index
    %147 = vector.load %arg19[%146, %c0_46] : memref<64x128xf32, #tpu.memory_space<vmem>>, vector<8x128xf32>
    tpu.vector_store %arg19[%146, %c0_46], %144 {strides = array<i32>} : memref<64x128xf32, #tpu.memory_space<vmem>>, vector<8x128xf32>,
    %c4_i32 = arith.constant 4 : i32
    %c8_i32_47 = arith.constant 8 : i32
    %148 = arith.muli %c4_i32, %c8_i32_47 : i32
    %149 = arith.index_cast %148 : i32 to index
    %c0_48 = arith.constant 0 : index
    %150 = vector.load %arg20[%149, %c0_48] : memref<64x512xf32, #tpu.memory_space<vmem>>, vector<8x512xf32>
    %151 = arith.truncf %144 : vector<8x128xf32> to vector<8x128xbf16>
    %c0_49 = arith.constant 0 : index
    %c0_50 = arith.constant 0 : index
    %152 = vector.load %arg2[%c0_49, %c0_50] : memref<128x512xbf16, #tpu.memory_space<vmem>>, vector<128x512xbf16>
    %cst_51 = arith.constant dense<0.000000e+00> : vector<8x512xf32>
    %153 = tpu.matmul %151, %152, %cst_51 {dimension_numbers = #tpu.dot_dimension_numbers<[1], [0], [0], [1], [0, 0, 1, 1], [], []>} : vector<8x128xbf16>, vector<128x512xbf16>, vector<8x512xf32> -> vector<8x512xf32>
    %154 = arith.addf %150, %153 : vector<8x512xf32>
    %155 = vector.extract_strided_slice %154 {offsets = [0, 0], sizes = [8, 128], strides = [1, 1]} : vector<8x512xf32> to vector<8x128xf32>
    %156 = arith.negf %155 : vector<8x128xf32>
    %157 = math.exp %156 : vector<8x128xf32>
    %cst_52 = arith.constant 1.000000e+00 : f32
    %158 = vector.broadcast %cst_52 : f32 to vector<8x128xf32>
    %159 = arith.addf %158, %157 : vector<8x128xf32>
    %160 = arith.divf %158, %159 : vector<8x128xf32>
    %161 = vector.extract_strided_slice %154 {offsets = [0, 128], sizes = [8, 128], strides = [1, 1]} : vector<8x512xf32> to vector<8x128xf32>
    %162 = arith.negf %161 : vector<8x128xf32>
    %163 = math.exp %162 : vector<8x128xf32>
    %cst_53 = arith.constant 1.000000e+00 : f32
    %164 = vector.broadcast %cst_53 : f32 to vector<8x128xf32>
    %165 = arith.addf %164, %163 : vector<8x128xf32>
    %166 = arith.divf %164, %165 : vector<8x128xf32>
    %167 = vector.extract_strided_slice %154 {offsets = [0, 256], sizes = [8, 128], strides = [1, 1]} : vector<8x512xf32> to vector<8x128xf32>
    %168 = math.tanh %167 : vector<8x128xf32>
    %169 = vector.extract_strided_slice %154 {offsets = [0, 384], sizes = [8, 128], strides = [1, 1]} : vector<8x512xf32> to vector<8x128xf32>
    %170 = arith.negf %169 : vector<8x128xf32>
    %171 = math.exp %170 : vector<8x128xf32>
    %cst_54 = arith.constant 1.000000e+00 : f32
    %172 = vector.broadcast %cst_54 : f32 to vector<8x128xf32>
    %173 = arith.addf %172, %171 : vector<8x128xf32>
    %174 = arith.divf %172, %173 : vector<8x128xf32>
    %175 = arith.mulf %166, %142 : vector<8x128xf32>
    %176 = arith.mulf %160, %168 : vector<8x128xf32>
    %177 = arith.addf %175, %176 : vector<8x128xf32>
    %178 = math.tanh %177 : vector<8x128xf32>
    %179 = arith.mulf %174, %178 : vector<8x128xf32>
    %c8_i32_55 = arith.constant 8 : i32
    %180 = arith.muli %c4_i32, %c8_i32_55 : i32
    %181 = arith.index_cast %180 : i32 to index
    %c0_56 = arith.constant 0 : index
    %182 = vector.load %arg19[%181, %c0_56] : memref<64x128xf32, #tpu.memory_space<vmem>>, vector<8x128xf32>
    tpu.vector_store %arg19[%181, %c0_56], %179 {strides = array<i32>} : memref<64x128xf32, #tpu.memory_space<vmem>>, vector<8x128xf32>,
    %c5_i32 = arith.constant 5 : i32
    %c8_i32_57 = arith.constant 8 : i32
    %183 = arith.muli %c5_i32, %c8_i32_57 : i32
    %184 = arith.index_cast %183 : i32 to index
    %c0_58 = arith.constant 0 : index
    %185 = vector.load %arg20[%184, %c0_58] : memref<64x512xf32, #tpu.memory_space<vmem>>, vector<8x512xf32>
    %186 = arith.truncf %179 : vector<8x128xf32> to vector<8x128xbf16>
    %c0_59 = arith.constant 0 : index
    %c0_60 = arith.constant 0 : index
    %187 = vector.load %arg2[%c0_59, %c0_60] : memref<128x512xbf16, #tpu.memory_space<vmem>>, vector<128x512xbf16>
    %cst_61 = arith.constant dense<0.000000e+00> : vector<8x512xf32>
    %188 = tpu.matmul %186, %187, %cst_61 {dimension_numbers = #tpu.dot_dimension_numbers<[1], [0], [0], [1], [0, 0, 1, 1], [], []>} : vector<8x128xbf16>, vector<128x512xbf16>, vector<8x512xf32> -> vector<8x512xf32>
    %189 = arith.addf %185, %188 : vector<8x512xf32>
    %190 = vector.extract_strided_slice %189 {offsets = [0, 0], sizes = [8, 128], strides = [1, 1]} : vector<8x512xf32> to vector<8x128xf32>
    %191 = arith.negf %190 : vector<8x128xf32>
    %192 = math.exp %191 : vector<8x128xf32>
    %cst_62 = arith.constant 1.000000e+00 : f32
    %193 = vector.broadcast %cst_62 : f32 to vector<8x128xf32>
    %194 = arith.addf %193, %192 : vector<8x128xf32>
    %195 = arith.divf %193, %194 : vector<8x128xf32>
    %196 = vector.extract_strided_slice %189 {offsets = [0, 128], sizes = [8, 128], strides = [1, 1]} : vector<8x512xf32> to vector<8x128xf32>
    %197 = arith.negf %196 : vector<8x128xf32>
    %198 = math.exp %197 : vector<8x128xf32>
    %cst_63 = arith.constant 1.000000e+00 : f32
    %199 = vector.broadcast %cst_63 : f32 to vector<8x128xf32>
    %200 = arith.addf %199, %198 : vector<8x128xf32>
    %201 = arith.divf %199, %200 : vector<8x128xf32>
    %202 = vector.extract_strided_slice %189 {offsets = [0, 256], sizes = [8, 128], strides = [1, 1]} : vector<8x512xf32> to vector<8x128xf32>
    %203 = math.tanh %202 : vector<8x128xf32>
    %204 = vector.extract_strided_slice %189 {offsets = [0, 384], sizes = [8, 128], strides = [1, 1]} : vector<8x512xf32> to vector<8x128xf32>
    %205 = arith.negf %204 : vector<8x128xf32>
    %206 = math.exp %205 : vector<8x128xf32>
    %cst_64 = arith.constant 1.000000e+00 : f32
    %207 = vector.broadcast %cst_64 : f32 to vector<8x128xf32>
    %208 = arith.addf %207, %206 : vector<8x128xf32>
    %209 = arith.divf %207, %208 : vector<8x128xf32>
    %210 = arith.mulf %201, %177 : vector<8x128xf32>
    %211 = arith.mulf %195, %203 : vector<8x128xf32>
    %212 = arith.addf %210, %211 : vector<8x128xf32>
    %213 = math.tanh %212 : vector<8x128xf32>
    %214 = arith.mulf %209, %213 : vector<8x128xf32>
    %c8_i32_65 = arith.constant 8 : i32
    %215 = arith.muli %c5_i32, %c8_i32_65 : i32
    %216 = arith.index_cast %215 : i32 to index
    %c0_66 = arith.constant 0 : index
    %217 = vector.load %arg19[%216, %c0_66] : memref<64x128xf32, #tpu.memory_space<vmem>>, vector<8x128xf32>
    tpu.vector_store %arg19[%216, %c0_66], %214 {strides = array<i32>} : memref<64x128xf32, #tpu.memory_space<vmem>>, vector<8x128xf32>,
    %c6_i32 = arith.constant 6 : i32
    %c8_i32_67 = arith.constant 8 : i32
    %218 = arith.muli %c6_i32, %c8_i32_67 : i32
    %219 = arith.index_cast %218 : i32 to index
    %c0_68 = arith.constant 0 : index
    %220 = vector.load %arg20[%219, %c0_68] : memref<64x512xf32, #tpu.memory_space<vmem>>, vector<8x512xf32>
    %221 = arith.truncf %214 : vector<8x128xf32> to vector<8x128xbf16>
    %c0_69 = arith.constant 0 : index
    %c0_70 = arith.constant 0 : index
    %222 = vector.load %arg2[%c0_69, %c0_70] : memref<128x512xbf16, #tpu.memory_space<vmem>>, vector<128x512xbf16>
    %cst_71 = arith.constant dense<0.000000e+00> : vector<8x512xf32>
    %223 = tpu.matmul %221, %222, %cst_71 {dimension_numbers = #tpu.dot_dimension_numbers<[1], [0], [0], [1], [0, 0, 1, 1], [], []>} : vector<8x128xbf16>, vector<128x512xbf16>, vector<8x512xf32> -> vector<8x512xf32>
    %224 = arith.addf %220, %223 : vector<8x512xf32>
    %225 = vector.extract_strided_slice %224 {offsets = [0, 0], sizes = [8, 128], strides = [1, 1]} : vector<8x512xf32> to vector<8x128xf32>
    %226 = arith.negf %225 : vector<8x128xf32>
    %227 = math.exp %226 : vector<8x128xf32>
    %cst_72 = arith.constant 1.000000e+00 : f32
    %228 = vector.broadcast %cst_72 : f32 to vector<8x128xf32>
    %229 = arith.addf %228, %227 : vector<8x128xf32>
    %230 = arith.divf %228, %229 : vector<8x128xf32>
    %231 = vector.extract_strided_slice %224 {offsets = [0, 128], sizes = [8, 128], strides = [1, 1]} : vector<8x512xf32> to vector<8x128xf32>
    %232 = arith.negf %231 : vector<8x128xf32>
    %233 = math.exp %232 : vector<8x128xf32>
    %cst_73 = arith.constant 1.000000e+00 : f32
    %234 = vector.broadcast %cst_73 : f32 to vector<8x128xf32>
    %235 = arith.addf %234, %233 : vector<8x128xf32>
    %236 = arith.divf %234, %235 : vector<8x128xf32>
    %237 = vector.extract_strided_slice %224 {offsets = [0, 256], sizes = [8, 128], strides = [1, 1]} : vector<8x512xf32> to vector<8x128xf32>
    %238 = math.tanh %237 : vector<8x128xf32>
    %239 = vector.extract_strided_slice %224 {offsets = [0, 384], sizes = [8, 128], strides = [1, 1]} : vector<8x512xf32> to vector<8x128xf32>
    %240 = arith.negf %239 : vector<8x128xf32>
    %241 = math.exp %240 : vector<8x128xf32>
    %cst_74 = arith.constant 1.000000e+00 : f32
    %242 = vector.broadcast %cst_74 : f32 to vector<8x128xf32>
    %243 = arith.addf %242, %241 : vector<8x128xf32>
    %244 = arith.divf %242, %243 : vector<8x128xf32>
    %245 = arith.mulf %236, %212 : vector<8x128xf32>
    %246 = arith.mulf %230, %238 : vector<8x128xf32>
    %247 = arith.addf %245, %246 : vector<8x128xf32>
    %248 = math.tanh %247 : vector<8x128xf32>
    %249 = arith.mulf %244, %248 : vector<8x128xf32>
    %c8_i32_75 = arith.constant 8 : i32
    %250 = arith.muli %c6_i32, %c8_i32_75 : i32
    %251 = arith.index_cast %250 : i32 to index
    %c0_76 = arith.constant 0 : index
    %252 = vector.load %arg19[%251, %c0_76] : memref<64x128xf32, #tpu.memory_space<vmem>>, vector<8x128xf32>
    tpu.vector_store %arg19[%251, %c0_76], %249 {strides = array<i32>} : memref<64x128xf32, #tpu.memory_space<vmem>>, vector<8x128xf32>,
    %c7_i32 = arith.constant 7 : i32
    %c8_i32_77 = arith.constant 8 : i32
    %253 = arith.muli %c7_i32, %c8_i32_77 : i32
    %254 = arith.index_cast %253 : i32 to index
    %c0_78 = arith.constant 0 : index
    %255 = vector.load %arg20[%254, %c0_78] : memref<64x512xf32, #tpu.memory_space<vmem>>, vector<8x512xf32>
    %256 = arith.truncf %249 : vector<8x128xf32> to vector<8x128xbf16>
    %c0_79 = arith.constant 0 : index
    %c0_80 = arith.constant 0 : index
    %257 = vector.load %arg2[%c0_79, %c0_80] : memref<128x512xbf16, #tpu.memory_space<vmem>>, vector<128x512xbf16>
    %cst_81 = arith.constant dense<0.000000e+00> : vector<8x512xf32>
    %258 = tpu.matmul %256, %257, %cst_81 {dimension_numbers = #tpu.dot_dimension_numbers<[1], [0], [0], [1], [0, 0, 1, 1], [], []>} : vector<8x128xbf16>, vector<128x512xbf16>, vector<8x512xf32> -> vector<8x512xf32>
    %259 = arith.addf %255, %258 : vector<8x512xf32>
    %260 = vector.extract_strided_slice %259 {offsets = [0, 0], sizes = [8, 128], strides = [1, 1]} : vector<8x512xf32> to vector<8x128xf32>
    %261 = arith.negf %260 : vector<8x128xf32>
    %262 = math.exp %261 : vector<8x128xf32>
    %cst_82 = arith.constant 1.000000e+00 : f32
    %263 = vector.broadcast %cst_82 : f32 to vector<8x128xf32>
    %264 = arith.addf %263, %262 : vector<8x128xf32>
    %265 = arith.divf %263, %264 : vector<8x128xf32>
    %266 = vector.extract_strided_slice %259 {offsets = [0, 128], sizes = [8, 128], strides = [1, 1]} : vector<8x512xf32> to vector<8x128xf32>
    %267 = arith.negf %266 : vector<8x128xf32>
    %268 = math.exp %267 : vector<8x128xf32>
    %cst_83 = arith.constant 1.000000e+00 : f32
    %269 = vector.broadcast %cst_83 : f32 to vector<8x128xf32>
    %270 = arith.addf %269, %268 : vector<8x128xf32>
    %271 = arith.divf %269, %270 : vector<8x128xf32>
    %272 = vector.extract_strided_slice %259 {offsets = [0, 256], sizes = [8, 128], strides = [1, 1]} : vector<8x512xf32> to vector<8x128xf32>
    %273 = math.tanh %272 : vector<8x128xf32>
    %274 = vector.extract_strided_slice %259 {offsets = [0, 384], sizes = [8, 128], strides = [1, 1]} : vector<8x512xf32> to vector<8x128xf32>
    %275 = arith.negf %274 : vector<8x128xf32>
    %276 = math.exp %275 : vector<8x128xf32>
    %cst_84 = arith.constant 1.000000e+00 : f32
    %277 = vector.broadcast %cst_84 : f32 to vector<8x128xf32>
    %278 = arith.addf %277, %276 : vector<8x128xf32>
    %279 = arith.divf %277, %278 : vector<8x128xf32>
    %280 = arith.mulf %271, %247 : vector<8x128xf32>
    %281 = arith.mulf %265, %273 : vector<8x128xf32>
    %282 = arith.addf %280, %281 : vector<8x128xf32>
    %283 = math.tanh %282 : vector<8x128xf32>
    %284 = arith.mulf %279, %283 : vector<8x128xf32>
    %c8_i32_85 = arith.constant 8 : i32
    %285 = arith.muli %c7_i32, %c8_i32_85 : i32
    %286 = arith.index_cast %285 : i32 to index
    %c0_86 = arith.constant 0 : index
    %287 = vector.load %arg19[%286, %c0_86] : memref<64x128xf32, #tpu.memory_space<vmem>>, vector<8x128xf32>
    tpu.vector_store %arg19[%286, %c0_86], %284 {strides = array<i32>} : memref<64x128xf32, #tpu.memory_space<vmem>>, vector<8x128xf32>,
    %c8_i32_87 = arith.constant 8 : i32
    %c0_88 = arith.constant 0 : index
    %c0_89 = arith.constant 0 : index
    %288 = vector.load %arg19[%c0_88, %c0_89] : memref<64x128xf32, #tpu.memory_space<vmem>>, vector<64x128xf32>
    %289 = arith.truncf %288 : vector<64x128xf32> to vector<64x128xbf16>
    %c0_90 = arith.constant 0 : index
    %c0_91 = arith.constant 0 : index
    %290 = vector.load %arg4[%c0_90, %c0_91] : memref<128x512xbf16, #tpu.memory_space<vmem>>, vector<128x512xbf16>
    %cst_92 = arith.constant dense<0.000000e+00> : vector<64x512xf32>
    %291 = tpu.matmul %289, %290, %cst_92 {dimension_numbers = #tpu.dot_dimension_numbers<[1], [0], [0], [1], [0, 0, 1, 1], [], []>} : vector<64x128xbf16>, vector<128x512xbf16>, vector<64x512xf32> -> vector<64x512xf32>
    %c0_93 = arith.constant 0 : index
    %c0_94 = arith.constant 0 : index
    %292 = vector.load %arg6[%c0_93, %c0_94] : memref<1x512xf32, #tpu.memory_space<vmem>>, vector<1x512xf32>
    %293 = vector.broadcast %292 : vector<1x512xf32> to vector<64x512xf32>
    %294 = arith.addf %291, %293 : vector<64x512xf32>
    %c0_95 = arith.constant 0 : index
    %c0_96 = arith.constant 0 : index
    %295 = vector.load %arg20[%c0_95, %c0_96] : memref<64x512xf32, #tpu.memory_space<vmem>>, vector<64x512xf32>
    tpu.vector_store %arg20[%c0_95, %c0_96], %294 {strides = array<i32>} : memref<64x512xf32, #tpu.memory_space<vmem>>, vector<64x512xf32>,
    %c0_i32_97 = arith.constant 0 : i32
    %c8_i32_98 = arith.constant 8 : i32
    %296 = arith.muli %c0_i32_97, %c8_i32_98 : i32
    %297 = arith.index_cast %296 : i32 to index
    %c0_99 = arith.constant 0 : index
    %298 = vector.load %arg20[%297, %c0_99] : memref<64x512xf32, #tpu.memory_space<vmem>>, vector<8x512xf32>
    %299 = arith.truncf %0 : vector<8x128xf32> to vector<8x128xbf16>
    %c0_100 = arith.constant 0 : index
    %c0_101 = arith.constant 0 : index
    %300 = vector.load %arg5[%c0_100, %c0_101] : memref<128x512xbf16, #tpu.memory_space<vmem>>, vector<128x512xbf16>
    %cst_102 = arith.constant dense<0.000000e+00> : vector<8x512xf32>
    %301 = tpu.matmul %299, %300, %cst_102 {dimension_numbers = #tpu.dot_dimension_numbers<[1], [0], [0], [1], [0, 0, 1, 1], [], []>} : vector<8x128xbf16>, vector<128x512xbf16>, vector<8x512xf32> -> vector<8x512xf32>
    %302 = arith.addf %298, %301 : vector<8x512xf32>
    %303 = vector.extract_strided_slice %302 {offsets = [0, 0], sizes = [8, 128], strides = [1, 1]} : vector<8x512xf32> to vector<8x128xf32>
    %304 = arith.negf %303 : vector<8x128xf32>
    %305 = math.exp %304 : vector<8x128xf32>
    %cst_103 = arith.constant 1.000000e+00 : f32
    %306 = vector.broadcast %cst_103 : f32 to vector<8x128xf32>
    %307 = arith.addf %306, %305 : vector<8x128xf32>
    %308 = arith.divf %306, %307 : vector<8x128xf32>
    %309 = vector.extract_strided_slice %302 {offsets = [0, 128], sizes = [8, 128], strides = [1, 1]} : vector<8x512xf32> to vector<8x128xf32>
    %310 = arith.negf %309 : vector<8x128xf32>
    %311 = math.exp %310 : vector<8x128xf32>
    %cst_104 = arith.constant 1.000000e+00 : f32
    %312 = vector.broadcast %cst_104 : f32 to vector<8x128xf32>
    %313 = arith.addf %312, %311 : vector<8x128xf32>
    %314 = arith.divf %312, %313 : vector<8x128xf32>
    %315 = vector.extract_strided_slice %302 {offsets = [0, 256], sizes = [8, 128], strides = [1, 1]} : vector<8x512xf32> to vector<8x128xf32>
    %316 = math.tanh %315 : vector<8x128xf32>
    %317 = vector.extract_strided_slice %302 {offsets = [0, 384], sizes = [8, 128], strides = [1, 1]} : vector<8x512xf32> to vector<8x128xf32>
    %318 = arith.negf %317 : vector<8x128xf32>
    %319 = math.exp %318 : vector<8x128xf32>
    %cst_105 = arith.constant 1.000000e+00 : f32
    %320 = vector.broadcast %cst_105 : f32 to vector<8x128xf32>
    %321 = arith.addf %320, %319 : vector<8x128xf32>
    %322 = arith.divf %320, %321 : vector<8x128xf32>
    %323 = arith.mulf %314, %0 : vector<8x128xf32>
    %324 = arith.mulf %308, %316 : vector<8x128xf32>
    %325 = arith.addf %323, %324 : vector<8x128xf32>
    %326 = math.tanh %325 : vector<8x128xf32>
    %327 = arith.mulf %322, %326 : vector<8x128xf32>
    %c8_i32_106 = arith.constant 8 : i32
    %328 = arith.muli %c0_i32_97, %c8_i32_106 : i32
    %329 = arith.index_cast %328 : i32 to index
    %c0_107 = arith.constant 0 : index
    %330 = vector.load %arg19[%329, %c0_107] : memref<64x128xf32, #tpu.memory_space<vmem>>, vector<8x128xf32>
    tpu.vector_store %arg19[%329, %c0_107], %327 {strides = array<i32>} : memref<64x128xf32, #tpu.memory_space<vmem>>, vector<8x128xf32>,
    %c1_i32_108 = arith.constant 1 : i32
    %c8_i32_109 = arith.constant 8 : i32
    %331 = arith.muli %c1_i32_108, %c8_i32_109 : i32
    %332 = arith.index_cast %331 : i32 to index
    %c0_110 = arith.constant 0 : index
    %333 = vector.load %arg20[%332, %c0_110] : memref<64x512xf32, #tpu.memory_space<vmem>>, vector<8x512xf32>
    %334 = arith.truncf %327 : vector<8x128xf32> to vector<8x128xbf16>
    %c0_111 = arith.constant 0 : index
    %c0_112 = arith.constant 0 : index
    %335 = vector.load %arg5[%c0_111, %c0_112] : memref<128x512xbf16, #tpu.memory_space<vmem>>, vector<128x512xbf16>
    %cst_113 = arith.constant dense<0.000000e+00> : vector<8x512xf32>
    %336 = tpu.matmul %334, %335, %cst_113 {dimension_numbers = #tpu.dot_dimension_numbers<[1], [0], [0], [1], [0, 0, 1, 1], [], []>} : vector<8x128xbf16>, vector<128x512xbf16>, vector<8x512xf32> -> vector<8x512xf32>
    %337 = arith.addf %333, %336 : vector<8x512xf32>
    %338 = vector.extract_strided_slice %337 {offsets = [0, 0], sizes = [8, 128], strides = [1, 1]} : vector<8x512xf32> to vector<8x128xf32>
    %339 = arith.negf %338 : vector<8x128xf32>
    %340 = math.exp %339 : vector<8x128xf32>
    %cst_114 = arith.constant 1.000000e+00 : f32
    %341 = vector.broadcast %cst_114 : f32 to vector<8x128xf32>
    %342 = arith.addf %341, %340 : vector<8x128xf32>
    %343 = arith.divf %341, %342 : vector<8x128xf32>
    %344 = vector.extract_strided_slice %337 {offsets = [0, 128], sizes = [8, 128], strides = [1, 1]} : vector<8x512xf32> to vector<8x128xf32>
    %345 = arith.negf %344 : vector<8x128xf32>
    %346 = math.exp %345 : vector<8x128xf32>
    %cst_115 = arith.constant 1.000000e+00 : f32
    %347 = vector.broadcast %cst_115 : f32 to vector<8x128xf32>
    %348 = arith.addf %347, %346 : vector<8x128xf32>
    %349 = arith.divf %347, %348 : vector<8x128xf32>
    %350 = vector.extract_strided_slice %337 {offsets = [0, 256], sizes = [8, 128], strides = [1, 1]} : vector<8x512xf32> to vector<8x128xf32>
    %351 = math.tanh %350 : vector<8x128xf32>
    %352 = vector.extract_strided_slice %337 {offsets = [0, 384], sizes = [8, 128], strides = [1, 1]} : vector<8x512xf32> to vector<8x128xf32>
    %353 = arith.negf %352 : vector<8x128xf32>
    %354 = math.exp %353 : vector<8x128xf32>
    %cst_116 = arith.constant 1.000000e+00 : f32
    %355 = vector.broadcast %cst_116 : f32 to vector<8x128xf32>
    %356 = arith.addf %355, %354 : vector<8x128xf32>
    %357 = arith.divf %355, %356 : vector<8x128xf32>
    %358 = arith.mulf %349, %325 : vector<8x128xf32>
    %359 = arith.mulf %343, %351 : vector<8x128xf32>
    %360 = arith.addf %358, %359 : vector<8x128xf32>
    %361 = math.tanh %360 : vector<8x128xf32>
    %362 = arith.mulf %357, %361 : vector<8x128xf32>
    %c8_i32_117 = arith.constant 8 : i32
    %363 = arith.muli %c1_i32_108, %c8_i32_117 : i32
    %364 = arith.index_cast %363 : i32 to index
    %c0_118 = arith.constant 0 : index
    %365 = vector.load %arg19[%364, %c0_118] : memref<64x128xf32, #tpu.memory_space<vmem>>, vector<8x128xf32>
    tpu.vector_store %arg19[%364, %c0_118], %362 {strides = array<i32>} : memref<64x128xf32, #tpu.memory_space<vmem>>, vector<8x128xf32>,
    %c2_i32_119 = arith.constant 2 : i32
    %c8_i32_120 = arith.constant 8 : i32
    %366 = arith.muli %c2_i32_119, %c8_i32_120 : i32
    %367 = arith.index_cast %366 : i32 to index
    %c0_121 = arith.constant 0 : index
    %368 = vector.load %arg20[%367, %c0_121] : memref<64x512xf32, #tpu.memory_space<vmem>>, vector<8x512xf32>
    %369 = arith.truncf %362 : vector<8x128xf32> to vector<8x128xbf16>
    %c0_122 = arith.constant 0 : index
    %c0_123 = arith.constant 0 : index
    %370 = vector.load %arg5[%c0_122, %c0_123] : memref<128x512xbf16, #tpu.memory_space<vmem>>, vector<128x512xbf16>
    %cst_124 = arith.constant dense<0.000000e+00> : vector<8x512xf32>
    %371 = tpu.matmul %369, %370, %cst_124 {dimension_numbers = #tpu.dot_dimension_numbers<[1], [0], [0], [1], [0, 0, 1, 1], [], []>} : vector<8x128xbf16>, vector<128x512xbf16>, vector<8x512xf32> -> vector<8x512xf32>
    %372 = arith.addf %368, %371 : vector<8x512xf32>
    %373 = vector.extract_strided_slice %372 {offsets = [0, 0], sizes = [8, 128], strides = [1, 1]} : vector<8x512xf32> to vector<8x128xf32>
    %374 = arith.negf %373 : vector<8x128xf32>
    %375 = math.exp %374 : vector<8x128xf32>
    %cst_125 = arith.constant 1.000000e+00 : f32
    %376 = vector.broadcast %cst_125 : f32 to vector<8x128xf32>
    %377 = arith.addf %376, %375 : vector<8x128xf32>
    %378 = arith.divf %376, %377 : vector<8x128xf32>
    %379 = vector.extract_strided_slice %372 {offsets = [0, 128], sizes = [8, 128], strides = [1, 1]} : vector<8x512xf32> to vector<8x128xf32>
    %380 = arith.negf %379 : vector<8x128xf32>
    %381 = math.exp %380 : vector<8x128xf32>
    %cst_126 = arith.constant 1.000000e+00 : f32
    %382 = vector.broadcast %cst_126 : f32 to vector<8x128xf32>
    %383 = arith.addf %382, %381 : vector<8x128xf32>
    %384 = arith.divf %382, %383 : vector<8x128xf32>
    %385 = vector.extract_strided_slice %372 {offsets = [0, 256], sizes = [8, 128], strides = [1, 1]} : vector<8x512xf32> to vector<8x128xf32>
    %386 = math.tanh %385 : vector<8x128xf32>
    %387 = vector.extract_strided_slice %372 {offsets = [0, 384], sizes = [8, 128], strides = [1, 1]} : vector<8x512xf32> to vector<8x128xf32>
    %388 = arith.negf %387 : vector<8x128xf32>
    %389 = math.exp %388 : vector<8x128xf32>
    %cst_127 = arith.constant 1.000000e+00 : f32
    %390 = vector.broadcast %cst_127 : f32 to vector<8x128xf32>
    %391 = arith.addf %390, %389 : vector<8x128xf32>
    %392 = arith.divf %390, %391 : vector<8x128xf32>
    %393 = arith.mulf %384, %360 : vector<8x128xf32>
    %394 = arith.mulf %378, %386 : vector<8x128xf32>
    %395 = arith.addf %393, %394 : vector<8x128xf32>
    %396 = math.tanh %395 : vector<8x128xf32>
    %397 = arith.mulf %392, %396 : vector<8x128xf32>
    %c8_i32_128 = arith.constant 8 : i32
    %398 = arith.muli %c2_i32_119, %c8_i32_128 : i32
    %399 = arith.index_cast %398 : i32 to index
    %c0_129 = arith.constant 0 : index
    %400 = vector.load %arg19[%399, %c0_129] : memref<64x128xf32, #tpu.memory_space<vmem>>, vector<8x128xf32>
    tpu.vector_store %arg19[%399, %c0_129], %397 {strides = array<i32>} : memref<64x128xf32, #tpu.memory_space<vmem>>, vector<8x128xf32>,
    %c3_i32_130 = arith.constant 3 : i32
    %c8_i32_131 = arith.constant 8 : i32
    %401 = arith.muli %c3_i32_130, %c8_i32_131 : i32
    %402 = arith.index_cast %401 : i32 to index
    %c0_132 = arith.constant 0 : index
    %403 = vector.load %arg20[%402, %c0_132] : memref<64x512xf32, #tpu.memory_space<vmem>>, vector<8x512xf32>
    %404 = arith.truncf %397 : vector<8x128xf32> to vector<8x128xbf16>
    %c0_133 = arith.constant 0 : index
    %c0_134 = arith.constant 0 : index
    %405 = vector.load %arg5[%c0_133, %c0_134] : memref<128x512xbf16, #tpu.memory_space<vmem>>, vector<128x512xbf16>
    %cst_135 = arith.constant dense<0.000000e+00> : vector<8x512xf32>
    %406 = tpu.matmul %404, %405, %cst_135 {dimension_numbers = #tpu.dot_dimension_numbers<[1], [0], [0], [1], [0, 0, 1, 1], [], []>} : vector<8x128xbf16>, vector<128x512xbf16>, vector<8x512xf32> -> vector<8x512xf32>
    %407 = arith.addf %403, %406 : vector<8x512xf32>
    %408 = vector.extract_strided_slice %407 {offsets = [0, 0], sizes = [8, 128], strides = [1, 1]} : vector<8x512xf32> to vector<8x128xf32>
    %409 = arith.negf %408 : vector<8x128xf32>
    %410 = math.exp %409 : vector<8x128xf32>
    %cst_136 = arith.constant 1.000000e+00 : f32
    %411 = vector.broadcast %cst_136 : f32 to vector<8x128xf32>
    %412 = arith.addf %411, %410 : vector<8x128xf32>
    %413 = arith.divf %411, %412 : vector<8x128xf32>
    %414 = vector.extract_strided_slice %407 {offsets = [0, 128], sizes = [8, 128], strides = [1, 1]} : vector<8x512xf32> to vector<8x128xf32>
    %415 = arith.negf %414 : vector<8x128xf32>
    %416 = math.exp %415 : vector<8x128xf32>
    %cst_137 = arith.constant 1.000000e+00 : f32
    %417 = vector.broadcast %cst_137 : f32 to vector<8x128xf32>
    %418 = arith.addf %417, %416 : vector<8x128xf32>
    %419 = arith.divf %417, %418 : vector<8x128xf32>
    %420 = vector.extract_strided_slice %407 {offsets = [0, 256], sizes = [8, 128], strides = [1, 1]} : vector<8x512xf32> to vector<8x128xf32>
    %421 = math.tanh %420 : vector<8x128xf32>
    %422 = vector.extract_strided_slice %407 {offsets = [0, 384], sizes = [8, 128], strides = [1, 1]} : vector<8x512xf32> to vector<8x128xf32>
    %423 = arith.negf %422 : vector<8x128xf32>
    %424 = math.exp %423 : vector<8x128xf32>
    %cst_138 = arith.constant 1.000000e+00 : f32
    %425 = vector.broadcast %cst_138 : f32 to vector<8x128xf32>
    %426 = arith.addf %425, %424 : vector<8x128xf32>
    %427 = arith.divf %425, %426 : vector<8x128xf32>
    %428 = arith.mulf %419, %395 : vector<8x128xf32>
    %429 = arith.mulf %413, %421 : vector<8x128xf32>
    %430 = arith.addf %428, %429 : vector<8x128xf32>
    %431 = math.tanh %430 : vector<8x128xf32>
    %432 = arith.mulf %427, %431 : vector<8x128xf32>
    %c8_i32_139 = arith.constant 8 : i32
    %433 = arith.muli %c3_i32_130, %c8_i32_139 : i32
    %434 = arith.index_cast %433 : i32 to index
    %c0_140 = arith.constant 0 : index
    %435 = vector.load %arg19[%434, %c0_140] : memref<64x128xf32, #tpu.memory_space<vmem>>, vector<8x128xf32>
    tpu.vector_store %arg19[%434, %c0_140], %432 {strides = array<i32>} : memref<64x128xf32, #tpu.memory_space<vmem>>, vector<8x128xf32>,
    %c4_i32_141 = arith.constant 4 : i32
    %c8_i32_142 = arith.constant 8 : i32
    %436 = arith.muli %c4_i32_141, %c8_i32_142 : i32
    %437 = arith.index_cast %436 : i32 to index
    %c0_143 = arith.constant 0 : index
    %438 = vector.load %arg20[%437, %c0_143] : memref<64x512xf32, #tpu.memory_space<vmem>>, vector<8x512xf32>
    %439 = arith.truncf %432 : vector<8x128xf32> to vector<8x128xbf16>
    %c0_144 = arith.constant 0 : index
    %c0_145 = arith.constant 0 : index
    %440 = vector.load %arg5[%c0_144, %c0_145] : memref<128x512xbf16, #tpu.memory_space<vmem>>, vector<128x512xbf16>
    %cst_146 = arith.constant dense<0.000000e+00> : vector<8x512xf32>
    %441 = tpu.matmul %439, %440, %cst_146 {dimension_numbers = #tpu.dot_dimension_numbers<[1], [0], [0], [1], [0, 0, 1, 1], [], []>} : vector<8x128xbf16>, vector<128x512xbf16>, vector<8x512xf32> -> vector<8x512xf32>
    %442 = arith.addf %438, %441 : vector<8x512xf32>
    %443 = vector.extract_strided_slice %442 {offsets = [0, 0], sizes = [8, 128], strides = [1, 1]} : vector<8x512xf32> to vector<8x128xf32>
    %444 = arith.negf %443 : vector<8x128xf32>
    %445 = math.exp %444 : vector<8x128xf32>
    %cst_147 = arith.constant 1.000000e+00 : f32
    %446 = vector.broadcast %cst_147 : f32 to vector<8x128xf32>
    %447 = arith.addf %446, %445 : vector<8x128xf32>
    %448 = arith.divf %446, %447 : vector<8x128xf32>
    %449 = vector.extract_strided_slice %442 {offsets = [0, 128], sizes = [8, 128], strides = [1, 1]} : vector<8x512xf32> to vector<8x128xf32>
    %450 = arith.negf %449 : vector<8x128xf32>
    %451 = math.exp %450 : vector<8x128xf32>
    %cst_148 = arith.constant 1.000000e+00 : f32
    %452 = vector.broadcast %cst_148 : f32 to vector<8x128xf32>
    %453 = arith.addf %452, %451 : vector<8x128xf32>
    %454 = arith.divf %452, %453 : vector<8x128xf32>
    %455 = vector.extract_strided_slice %442 {offsets = [0, 256], sizes = [8, 128], strides = [1, 1]} : vector<8x512xf32> to vector<8x128xf32>
    %456 = math.tanh %455 : vector<8x128xf32>
    %457 = vector.extract_strided_slice %442 {offsets = [0, 384], sizes = [8, 128], strides = [1, 1]} : vector<8x512xf32> to vector<8x128xf32>
    %458 = arith.negf %457 : vector<8x128xf32>
    %459 = math.exp %458 : vector<8x128xf32>
    %cst_149 = arith.constant 1.000000e+00 : f32
    %460 = vector.broadcast %cst_149 : f32 to vector<8x128xf32>
    %461 = arith.addf %460, %459 : vector<8x128xf32>
    %462 = arith.divf %460, %461 : vector<8x128xf32>
    %463 = arith.mulf %454, %430 : vector<8x128xf32>
    %464 = arith.mulf %448, %456 : vector<8x128xf32>
    %465 = arith.addf %463, %464 : vector<8x128xf32>
    %466 = math.tanh %465 : vector<8x128xf32>
    %467 = arith.mulf %462, %466 : vector<8x128xf32>
    %c8_i32_150 = arith.constant 8 : i32
    %468 = arith.muli %c4_i32_141, %c8_i32_150 : i32
    %469 = arith.index_cast %468 : i32 to index
    %c0_151 = arith.constant 0 : index
    %470 = vector.load %arg19[%469, %c0_151] : memref<64x128xf32, #tpu.memory_space<vmem>>, vector<8x128xf32>
    tpu.vector_store %arg19[%469, %c0_151], %467 {strides = array<i32>} : memref<64x128xf32, #tpu.memory_space<vmem>>, vector<8x128xf32>,
    %c5_i32_152 = arith.constant 5 : i32
    %c8_i32_153 = arith.constant 8 : i32
    %471 = arith.muli %c5_i32_152, %c8_i32_153 : i32
    %472 = arith.index_cast %471 : i32 to index
    %c0_154 = arith.constant 0 : index
    %473 = vector.load %arg20[%472, %c0_154] : memref<64x512xf32, #tpu.memory_space<vmem>>, vector<8x512xf32>
    %474 = arith.truncf %467 : vector<8x128xf32> to vector<8x128xbf16>
    %c0_155 = arith.constant 0 : index
    %c0_156 = arith.constant 0 : index
    %475 = vector.load %arg5[%c0_155, %c0_156] : memref<128x512xbf16, #tpu.memory_space<vmem>>, vector<128x512xbf16>
    %cst_157 = arith.constant dense<0.000000e+00> : vector<8x512xf32>
    %476 = tpu.matmul %474, %475, %cst_157 {dimension_numbers = #tpu.dot_dimension_numbers<[1], [0], [0], [1], [0, 0, 1, 1], [], []>} : vector<8x128xbf16>, vector<128x512xbf16>, vector<8x512xf32> -> vector<8x512xf32>
    %477 = arith.addf %473, %476 : vector<8x512xf32>
    %478 = vector.extract_strided_slice %477 {offsets = [0, 0], sizes = [8, 128], strides = [1, 1]} : vector<8x512xf32> to vector<8x128xf32>
    %479 = arith.negf %478 : vector<8x128xf32>
    %480 = math.exp %479 : vector<8x128xf32>
    %cst_158 = arith.constant 1.000000e+00 : f32
    %481 = vector.broadcast %cst_158 : f32 to vector<8x128xf32>
    %482 = arith.addf %481, %480 : vector<8x128xf32>
    %483 = arith.divf %481, %482 : vector<8x128xf32>
    %484 = vector.extract_strided_slice %477 {offsets = [0, 128], sizes = [8, 128], strides = [1, 1]} : vector<8x512xf32> to vector<8x128xf32>
    %485 = arith.negf %484 : vector<8x128xf32>
    %486 = math.exp %485 : vector<8x128xf32>
    %cst_159 = arith.constant 1.000000e+00 : f32
    %487 = vector.broadcast %cst_159 : f32 to vector<8x128xf32>
    %488 = arith.addf %487, %486 : vector<8x128xf32>
    %489 = arith.divf %487, %488 : vector<8x128xf32>
    %490 = vector.extract_strided_slice %477 {offsets = [0, 256], sizes = [8, 128], strides = [1, 1]} : vector<8x512xf32> to vector<8x128xf32>
    %491 = math.tanh %490 : vector<8x128xf32>
    %492 = vector.extract_strided_slice %477 {offsets = [0, 384], sizes = [8, 128], strides = [1, 1]} : vector<8x512xf32> to vector<8x128xf32>
    %493 = arith.negf %492 : vector<8x128xf32>
    %494 = math.exp %493 : vector<8x128xf32>
    %cst_160 = arith.constant 1.000000e+00 : f32
    %495 = vector.broadcast %cst_160 : f32 to vector<8x128xf32>
    %496 = arith.addf %495, %494 : vector<8x128xf32>
    %497 = arith.divf %495, %496 : vector<8x128xf32>
    %498 = arith.mulf %489, %465 : vector<8x128xf32>
    %499 = arith.mulf %483, %491 : vector<8x128xf32>
    %500 = arith.addf %498, %499 : vector<8x128xf32>
    %501 = math.tanh %500 : vector<8x128xf32>
    %502 = arith.mulf %497, %501 : vector<8x128xf32>
    %c8_i32_161 = arith.constant 8 : i32
    %503 = arith.muli %c5_i32_152, %c8_i32_161 : i32
    %504 = arith.index_cast %503 : i32 to index
    %c0_162 = arith.constant 0 : index
    %505 = vector.load %arg19[%504, %c0_162] : memref<64x128xf32, #tpu.memory_space<vmem>>, vector<8x128xf32>
    tpu.vector_store %arg19[%504, %c0_162], %502 {strides = array<i32>} : memref<64x128xf32, #tpu.memory_space<vmem>>, vector<8x128xf32>,
    %c6_i32_163 = arith.constant 6 : i32
    %c8_i32_164 = arith.constant 8 : i32
    %506 = arith.muli %c6_i32_163, %c8_i32_164 : i32
    %507 = arith.index_cast %506 : i32 to index
    %c0_165 = arith.constant 0 : index
    %508 = vector.load %arg20[%507, %c0_165] : memref<64x512xf32, #tpu.memory_space<vmem>>, vector<8x512xf32>
    %509 = arith.truncf %502 : vector<8x128xf32> to vector<8x128xbf16>
    %c0_166 = arith.constant 0 : index
    %c0_167 = arith.constant 0 : index
    %510 = vector.load %arg5[%c0_166, %c0_167] : memref<128x512xbf16, #tpu.memory_space<vmem>>, vector<128x512xbf16>
    %cst_168 = arith.constant dense<0.000000e+00> : vector<8x512xf32>
    %511 = tpu.matmul %509, %510, %cst_168 {dimension_numbers = #tpu.dot_dimension_numbers<[1], [0], [0], [1], [0, 0, 1, 1], [], []>} : vector<8x128xbf16>, vector<128x512xbf16>, vector<8x512xf32> -> vector<8x512xf32>
    %512 = arith.addf %508, %511 : vector<8x512xf32>
    %513 = vector.extract_strided_slice %512 {offsets = [0, 0], sizes = [8, 128], strides = [1, 1]} : vector<8x512xf32> to vector<8x128xf32>
    %514 = arith.negf %513 : vector<8x128xf32>
    %515 = math.exp %514 : vector<8x128xf32>
    %cst_169 = arith.constant 1.000000e+00 : f32
    %516 = vector.broadcast %cst_169 : f32 to vector<8x128xf32>
    %517 = arith.addf %516, %515 : vector<8x128xf32>
    %518 = arith.divf %516, %517 : vector<8x128xf32>
    %519 = vector.extract_strided_slice %512 {offsets = [0, 128], sizes = [8, 128], strides = [1, 1]} : vector<8x512xf32> to vector<8x128xf32>
    %520 = arith.negf %519 : vector<8x128xf32>
    %521 = math.exp %520 : vector<8x128xf32>
    %cst_170 = arith.constant 1.000000e+00 : f32
    %522 = vector.broadcast %cst_170 : f32 to vector<8x128xf32>
    %523 = arith.addf %522, %521 : vector<8x128xf32>
    %524 = arith.divf %522, %523 : vector<8x128xf32>
    %525 = vector.extract_strided_slice %512 {offsets = [0, 256], sizes = [8, 128], strides = [1, 1]} : vector<8x512xf32> to vector<8x128xf32>
    %526 = math.tanh %525 : vector<8x128xf32>
    %527 = vector.extract_strided_slice %512 {offsets = [0, 384], sizes = [8, 128], strides = [1, 1]} : vector<8x512xf32> to vector<8x128xf32>
    %528 = arith.negf %527 : vector<8x128xf32>
    %529 = math.exp %528 : vector<8x128xf32>
    %cst_171 = arith.constant 1.000000e+00 : f32
    %530 = vector.broadcast %cst_171 : f32 to vector<8x128xf32>
    %531 = arith.addf %530, %529 : vector<8x128xf32>
    %532 = arith.divf %530, %531 : vector<8x128xf32>
    %533 = arith.mulf %524, %500 : vector<8x128xf32>
    %534 = arith.mulf %518, %526 : vector<8x128xf32>
    %535 = arith.addf %533, %534 : vector<8x128xf32>
    %536 = math.tanh %535 : vector<8x128xf32>
    %537 = arith.mulf %532, %536 : vector<8x128xf32>
    %c8_i32_172 = arith.constant 8 : i32
    %538 = arith.muli %c6_i32_163, %c8_i32_172 : i32
    %539 = arith.index_cast %538 : i32 to index
    %c0_173 = arith.constant 0 : index
    %540 = vector.load %arg19[%539, %c0_173] : memref<64x128xf32, #tpu.memory_space<vmem>>, vector<8x128xf32>
    tpu.vector_store %arg19[%539, %c0_173], %537 {strides = array<i32>} : memref<64x128xf32, #tpu.memory_space<vmem>>, vector<8x128xf32>,
    %c7_i32_174 = arith.constant 7 : i32
    %c8_i32_175 = arith.constant 8 : i32
    %541 = arith.muli %c7_i32_174, %c8_i32_175 : i32
    %542 = arith.index_cast %541 : i32 to index
    %c0_176 = arith.constant 0 : index
    %543 = vector.load %arg20[%542, %c0_176] : memref<64x512xf32, #tpu.memory_space<vmem>>, vector<8x512xf32>
    %544 = arith.truncf %537 : vector<8x128xf32> to vector<8x128xbf16>
    %c0_177 = arith.constant 0 : index
    %c0_178 = arith.constant 0 : index
    %545 = vector.load %arg5[%c0_177, %c0_178] : memref<128x512xbf16, #tpu.memory_space<vmem>>, vector<128x512xbf16>
    %cst_179 = arith.constant dense<0.000000e+00> : vector<8x512xf32>
    %546 = tpu.matmul %544, %545, %cst_179 {dimension_numbers = #tpu.dot_dimension_numbers<[1], [0], [0], [1], [0, 0, 1, 1], [], []>} : vector<8x128xbf16>, vector<128x512xbf16>, vector<8x512xf32> -> vector<8x512xf32>
    %547 = arith.addf %543, %546 : vector<8x512xf32>
    %548 = vector.extract_strided_slice %547 {offsets = [0, 0], sizes = [8, 128], strides = [1, 1]} : vector<8x512xf32> to vector<8x128xf32>
    %549 = arith.negf %548 : vector<8x128xf32>
    %550 = math.exp %549 : vector<8x128xf32>
    %cst_180 = arith.constant 1.000000e+00 : f32
    %551 = vector.broadcast %cst_180 : f32 to vector<8x128xf32>
    %552 = arith.addf %551, %550 : vector<8x128xf32>
    %553 = arith.divf %551, %552 : vector<8x128xf32>
    %554 = vector.extract_strided_slice %547 {offsets = [0, 128], sizes = [8, 128], strides = [1, 1]} : vector<8x512xf32> to vector<8x128xf32>
    %555 = arith.negf %554 : vector<8x128xf32>
    %556 = math.exp %555 : vector<8x128xf32>
    %cst_181 = arith.constant 1.000000e+00 : f32
    %557 = vector.broadcast %cst_181 : f32 to vector<8x128xf32>
    %558 = arith.addf %557, %556 : vector<8x128xf32>
    %559 = arith.divf %557, %558 : vector<8x128xf32>
    %560 = vector.extract_strided_slice %547 {offsets = [0, 256], sizes = [8, 128], strides = [1, 1]} : vector<8x512xf32> to vector<8x128xf32>
    %561 = math.tanh %560 : vector<8x128xf32>
    %562 = vector.extract_strided_slice %547 {offsets = [0, 384], sizes = [8, 128], strides = [1, 1]} : vector<8x512xf32> to vector<8x128xf32>
    %563 = arith.negf %562 : vector<8x128xf32>
    %564 = math.exp %563 : vector<8x128xf32>
    %cst_182 = arith.constant 1.000000e+00 : f32
    %565 = vector.broadcast %cst_182 : f32 to vector<8x128xf32>
    %566 = arith.addf %565, %564 : vector<8x128xf32>
    %567 = arith.divf %565, %566 : vector<8x128xf32>
    %568 = arith.mulf %559, %535 : vector<8x128xf32>
    %569 = arith.mulf %553, %561 : vector<8x128xf32>
    %570 = arith.addf %568, %569 : vector<8x128xf32>
    %571 = math.tanh %570 : vector<8x128xf32>
    %572 = arith.mulf %567, %571 : vector<8x128xf32>
    %c8_i32_183 = arith.constant 8 : i32
    %573 = arith.muli %c7_i32_174, %c8_i32_183 : i32
    %574 = arith.index_cast %573 : i32 to index
    %c0_184 = arith.constant 0 : index
    %575 = vector.load %arg19[%574, %c0_184] : memref<64x128xf32, #tpu.memory_space<vmem>>, vector<8x128xf32>
    tpu.vector_store %arg19[%574, %c0_184], %572 {strides = array<i32>} : memref<64x128xf32, #tpu.memory_space<vmem>>, vector<8x128xf32>,
    %c8_i32_185 = arith.constant 8 : i32
    %c0_186 = arith.constant 0 : index
    %c0_187 = arith.constant 0 : index
    %576 = vector.load %arg19[%c0_186, %c0_187] : memref<64x128xf32, #tpu.memory_space<vmem>>, vector<64x128xf32>
    %577 = arith.truncf %576 : vector<64x128xf32> to vector<64x128xbf16>
    %c0_188 = arith.constant 0 : index
    %c0_189 = arith.constant 0 : index
    %578 = vector.load %arg7[%c0_188, %c0_189] : memref<128x512xbf16, #tpu.memory_space<vmem>>, vector<128x512xbf16>
    %cst_190 = arith.constant dense<0.000000e+00> : vector<64x512xf32>
    %579 = tpu.matmul %577, %578, %cst_190 {dimension_numbers = #tpu.dot_dimension_numbers<[1], [0], [0], [1], [0, 0, 1, 1], [], []>} : vector<64x128xbf16>, vector<128x512xbf16>, vector<64x512xf32> -> vector<64x512xf32>
    %c0_191 = arith.constant 0 : index
    %c0_192 = arith.constant 0 : index
    %580 = vector.load %arg9[%c0_191, %c0_192] : memref<1x512xf32, #tpu.memory_space<vmem>>, vector<1x512xf32>
    %581 = vector.broadcast %580 : vector<1x512xf32> to vector<64x512xf32>
    %582 = arith.addf %579, %581 : vector<64x512xf32>
    %c0_193 = arith.constant 0 : index
    %c0_194 = arith.constant 0 : index
    %583 = vector.load %arg20[%c0_193, %c0_194] : memref<64x512xf32, #tpu.memory_space<vmem>>, vector<64x512xf32>
    tpu.vector_store %arg20[%c0_193, %c0_194], %582 {strides = array<i32>} : memref<64x512xf32, #tpu.memory_space<vmem>>, vector<64x512xf32>,
    %c0_i32_195 = arith.constant 0 : i32
    %c8_i32_196 = arith.constant 8 : i32
    %584 = arith.muli %c0_i32_195, %c8_i32_196 : i32
    %585 = arith.index_cast %584 : i32 to index
    %c0_197 = arith.constant 0 : index
    %586 = vector.load %arg20[%585, %c0_197] : memref<64x512xf32, #tpu.memory_space<vmem>>, vector<8x512xf32>
    %587 = arith.truncf %0 : vector<8x128xf32> to vector<8x128xbf16>
    %c0_198 = arith.constant 0 : index
    %c0_199 = arith.constant 0 : index
    %588 = vector.load %arg8[%c0_198, %c0_199] : memref<128x512xbf16, #tpu.memory_space<vmem>>, vector<128x512xbf16>
    %cst_200 = arith.constant dense<0.000000e+00> : vector<8x512xf32>
    %589 = tpu.matmul %587, %588, %cst_200 {dimension_numbers = #tpu.dot_dimension_numbers<[1], [0], [0], [1], [0, 0, 1, 1], [], []>} : vector<8x128xbf16>, vector<128x512xbf16>, vector<8x512xf32> -> vector<8x512xf32>
    %590 = arith.addf %586, %589 : vector<8x512xf32>
    %591 = vector.extract_strided_slice %590 {offsets = [0, 0], sizes = [8, 128], strides = [1, 1]} : vector<8x512xf32> to vector<8x128xf32>
    %592 = arith.negf %591 : vector<8x128xf32>
    %593 = math.exp %592 : vector<8x128xf32>
    %cst_201 = arith.constant 1.000000e+00 : f32
    %594 = vector.broadcast %cst_201 : f32 to vector<8x128xf32>
    %595 = arith.addf %594, %593 : vector<8x128xf32>
    %596 = arith.divf %594, %595 : vector<8x128xf32>
    %597 = vector.extract_strided_slice %590 {offsets = [0, 128], sizes = [8, 128], strides = [1, 1]} : vector<8x512xf32> to vector<8x128xf32>
    %598 = arith.negf %597 : vector<8x128xf32>
    %599 = math.exp %598 : vector<8x128xf32>
    %cst_202 = arith.constant 1.000000e+00 : f32
    %600 = vector.broadcast %cst_202 : f32 to vector<8x128xf32>
    %601 = arith.addf %600, %599 : vector<8x128xf32>
    %602 = arith.divf %600, %601 : vector<8x128xf32>
    %603 = vector.extract_strided_slice %590 {offsets = [0, 256], sizes = [8, 128], strides = [1, 1]} : vector<8x512xf32> to vector<8x128xf32>
    %604 = math.tanh %603 : vector<8x128xf32>
    %605 = vector.extract_strided_slice %590 {offsets = [0, 384], sizes = [8, 128], strides = [1, 1]} : vector<8x512xf32> to vector<8x128xf32>
    %606 = arith.negf %605 : vector<8x128xf32>
    %607 = math.exp %606 : vector<8x128xf32>
    %cst_203 = arith.constant 1.000000e+00 : f32
    %608 = vector.broadcast %cst_203 : f32 to vector<8x128xf32>
    %609 = arith.addf %608, %607 : vector<8x128xf32>
    %610 = arith.divf %608, %609 : vector<8x128xf32>
    %611 = arith.mulf %602, %0 : vector<8x128xf32>
    %612 = arith.mulf %596, %604 : vector<8x128xf32>
    %613 = arith.addf %611, %612 : vector<8x128xf32>
    %614 = math.tanh %613 : vector<8x128xf32>
    %615 = arith.mulf %610, %614 : vector<8x128xf32>
    %c8_i32_204 = arith.constant 8 : i32
    %616 = arith.muli %c0_i32_195, %c8_i32_204 : i32
    %617 = arith.index_cast %616 : i32 to index
    %c0_205 = arith.constant 0 : index
    %618 = vector.load %arg19[%617, %c0_205] : memref<64x128xf32, #tpu.memory_space<vmem>>, vector<8x128xf32>
    tpu.vector_store %arg19[%617, %c0_205], %615 {strides = array<i32>} : memref<64x128xf32, #tpu.memory_space<vmem>>, vector<8x128xf32>,
    %619 = arith.addf %0, %615 : vector<8x128xf32>
    %c1_i32_206 = arith.constant 1 : i32
    %c8_i32_207 = arith.constant 8 : i32
    %620 = arith.muli %c1_i32_206, %c8_i32_207 : i32
    %621 = arith.index_cast %620 : i32 to index
    %c0_208 = arith.constant 0 : index
    %622 = vector.load %arg20[%621, %c0_208] : memref<64x512xf32, #tpu.memory_space<vmem>>, vector<8x512xf32>
    %623 = arith.truncf %615 : vector<8x128xf32> to vector<8x128xbf16>
    %c0_209 = arith.constant 0 : index
    %c0_210 = arith.constant 0 : index
    %624 = vector.load %arg8[%c0_209, %c0_210] : memref<128x512xbf16, #tpu.memory_space<vmem>>, vector<128x512xbf16>
    %cst_211 = arith.constant dense<0.000000e+00> : vector<8x512xf32>
    %625 = tpu.matmul %623, %624, %cst_211 {dimension_numbers = #tpu.dot_dimension_numbers<[1], [0], [0], [1], [0, 0, 1, 1], [], []>} : vector<8x128xbf16>, vector<128x512xbf16>, vector<8x512xf32> -> vector<8x512xf32>
    %626 = arith.addf %622, %625 : vector<8x512xf32>
    %627 = vector.extract_strided_slice %626 {offsets = [0, 0], sizes = [8, 128], strides = [1, 1]} : vector<8x512xf32> to vector<8x128xf32>
    %628 = arith.negf %627 : vector<8x128xf32>
    %629 = math.exp %628 : vector<8x128xf32>
    %cst_212 = arith.constant 1.000000e+00 : f32
    %630 = vector.broadcast %cst_212 : f32 to vector<8x128xf32>
    %631 = arith.addf %630, %629 : vector<8x128xf32>
    %632 = arith.divf %630, %631 : vector<8x128xf32>
    %633 = vector.extract_strided_slice %626 {offsets = [0, 128], sizes = [8, 128], strides = [1, 1]} : vector<8x512xf32> to vector<8x128xf32>
    %634 = arith.negf %633 : vector<8x128xf32>
    %635 = math.exp %634 : vector<8x128xf32>
    %cst_213 = arith.constant 1.000000e+00 : f32
    %636 = vector.broadcast %cst_213 : f32 to vector<8x128xf32>
    %637 = arith.addf %636, %635 : vector<8x128xf32>
    %638 = arith.divf %636, %637 : vector<8x128xf32>
    %639 = vector.extract_strided_slice %626 {offsets = [0, 256], sizes = [8, 128], strides = [1, 1]} : vector<8x512xf32> to vector<8x128xf32>
    %640 = math.tanh %639 : vector<8x128xf32>
    %641 = vector.extract_strided_slice %626 {offsets = [0, 384], sizes = [8, 128], strides = [1, 1]} : vector<8x512xf32> to vector<8x128xf32>
    %642 = arith.negf %641 : vector<8x128xf32>
    %643 = math.exp %642 : vector<8x128xf32>
    %cst_214 = arith.constant 1.000000e+00 : f32
    %644 = vector.broadcast %cst_214 : f32 to vector<8x128xf32>
    %645 = arith.addf %644, %643 : vector<8x128xf32>
    %646 = arith.divf %644, %645 : vector<8x128xf32>
    %647 = arith.mulf %638, %613 : vector<8x128xf32>
    %648 = arith.mulf %632, %640 : vector<8x128xf32>
    %649 = arith.addf %647, %648 : vector<8x128xf32>
    %650 = math.tanh %649 : vector<8x128xf32>
    %651 = arith.mulf %646, %650 : vector<8x128xf32>
    %c8_i32_215 = arith.constant 8 : i32
    %652 = arith.muli %c1_i32_206, %c8_i32_215 : i32
    %653 = arith.index_cast %652 : i32 to index
    %c0_216 = arith.constant 0 : index
    %654 = vector.load %arg19[%653, %c0_216] : memref<64x128xf32, #tpu.memory_space<vmem>>, vector<8x128xf32>
    tpu.vector_store %arg19[%653, %c0_216], %651 {strides = array<i32>} : memref<64x128xf32, #tpu.memory_space<vmem>>, vector<8x128xf32>,
    %655 = arith.addf %619, %651 : vector<8x128xf32>
    %c2_i32_217 = arith.constant 2 : i32
    %c8_i32_218 = arith.constant 8 : i32
    %656 = arith.muli %c2_i32_217, %c8_i32_218 : i32
    %657 = arith.index_cast %656 : i32 to index
    %c0_219 = arith.constant 0 : index
    %658 = vector.load %arg20[%657, %c0_219] : memref<64x512xf32, #tpu.memory_space<vmem>>, vector<8x512xf32>
    %659 = arith.truncf %651 : vector<8x128xf32> to vector<8x128xbf16>
    %c0_220 = arith.constant 0 : index
    %c0_221 = arith.constant 0 : index
    %660 = vector.load %arg8[%c0_220, %c0_221] : memref<128x512xbf16, #tpu.memory_space<vmem>>, vector<128x512xbf16>
    %cst_222 = arith.constant dense<0.000000e+00> : vector<8x512xf32>
    %661 = tpu.matmul %659, %660, %cst_222 {dimension_numbers = #tpu.dot_dimension_numbers<[1], [0], [0], [1], [0, 0, 1, 1], [], []>} : vector<8x128xbf16>, vector<128x512xbf16>, vector<8x512xf32> -> vector<8x512xf32>
    %662 = arith.addf %658, %661 : vector<8x512xf32>
    %663 = vector.extract_strided_slice %662 {offsets = [0, 0], sizes = [8, 128], strides = [1, 1]} : vector<8x512xf32> to vector<8x128xf32>
    %664 = arith.negf %663 : vector<8x128xf32>
    %665 = math.exp %664 : vector<8x128xf32>
    %cst_223 = arith.constant 1.000000e+00 : f32
    %666 = vector.broadcast %cst_223 : f32 to vector<8x128xf32>
    %667 = arith.addf %666, %665 : vector<8x128xf32>
    %668 = arith.divf %666, %667 : vector<8x128xf32>
    %669 = vector.extract_strided_slice %662 {offsets = [0, 128], sizes = [8, 128], strides = [1, 1]} : vector<8x512xf32> to vector<8x128xf32>
    %670 = arith.negf %669 : vector<8x128xf32>
    %671 = math.exp %670 : vector<8x128xf32>
    %cst_224 = arith.constant 1.000000e+00 : f32
    %672 = vector.broadcast %cst_224 : f32 to vector<8x128xf32>
    %673 = arith.addf %672, %671 : vector<8x128xf32>
    %674 = arith.divf %672, %673 : vector<8x128xf32>
    %675 = vector.extract_strided_slice %662 {offsets = [0, 256], sizes = [8, 128], strides = [1, 1]} : vector<8x512xf32> to vector<8x128xf32>
    %676 = math.tanh %675 : vector<8x128xf32>
    %677 = vector.extract_strided_slice %662 {offsets = [0, 384], sizes = [8, 128], strides = [1, 1]} : vector<8x512xf32> to vector<8x128xf32>
    %678 = arith.negf %677 : vector<8x128xf32>
    %679 = math.exp %678 : vector<8x128xf32>
    %cst_225 = arith.constant 1.000000e+00 : f32
    %680 = vector.broadcast %cst_225 : f32 to vector<8x128xf32>
    %681 = arith.addf %680, %679 : vector<8x128xf32>
    %682 = arith.divf %680, %681 : vector<8x128xf32>
    %683 = arith.mulf %674, %649 : vector<8x128xf32>
    %684 = arith.mulf %668, %676 : vector<8x128xf32>
    %685 = arith.addf %683, %684 : vector<8x128xf32>
    %686 = math.tanh %685 : vector<8x128xf32>
    %687 = arith.mulf %682, %686 : vector<8x128xf32>
    %c8_i32_226 = arith.constant 8 : i32
    %688 = arith.muli %c2_i32_217, %c8_i32_226 : i32
    %689 = arith.index_cast %688 : i32 to index
    %c0_227 = arith.constant 0 : index
    %690 = vector.load %arg19[%689, %c0_227] : memref<64x128xf32, #tpu.memory_space<vmem>>, vector<8x128xf32>
    tpu.vector_store %arg19[%689, %c0_227], %687 {strides = array<i32>} : memref<64x128xf32, #tpu.memory_space<vmem>>, vector<8x128xf32>,
    %691 = arith.addf %655, %687 : vector<8x128xf32>
    %c3_i32_228 = arith.constant 3 : i32
    %c8_i32_229 = arith.constant 8 : i32
    %692 = arith.muli %c3_i32_228, %c8_i32_229 : i32
    %693 = arith.index_cast %692 : i32 to index
    %c0_230 = arith.constant 0 : index
    %694 = vector.load %arg20[%693, %c0_230] : memref<64x512xf32, #tpu.memory_space<vmem>>, vector<8x512xf32>
    %695 = arith.truncf %687 : vector<8x128xf32> to vector<8x128xbf16>
    %c0_231 = arith.constant 0 : index
    %c0_232 = arith.constant 0 : index
    %696 = vector.load %arg8[%c0_231, %c0_232] : memref<128x512xbf16, #tpu.memory_space<vmem>>, vector<128x512xbf16>
    %cst_233 = arith.constant dense<0.000000e+00> : vector<8x512xf32>
    %697 = tpu.matmul %695, %696, %cst_233 {dimension_numbers = #tpu.dot_dimension_numbers<[1], [0], [0], [1], [0, 0, 1, 1], [], []>} : vector<8x128xbf16>, vector<128x512xbf16>, vector<8x512xf32> -> vector<8x512xf32>
    %698 = arith.addf %694, %697 : vector<8x512xf32>
    %699 = vector.extract_strided_slice %698 {offsets = [0, 0], sizes = [8, 128], strides = [1, 1]} : vector<8x512xf32> to vector<8x128xf32>
    %700 = arith.negf %699 : vector<8x128xf32>
    %701 = math.exp %700 : vector<8x128xf32>
    %cst_234 = arith.constant 1.000000e+00 : f32
    %702 = vector.broadcast %cst_234 : f32 to vector<8x128xf32>
    %703 = arith.addf %702, %701 : vector<8x128xf32>
    %704 = arith.divf %702, %703 : vector<8x128xf32>
    %705 = vector.extract_strided_slice %698 {offsets = [0, 128], sizes = [8, 128], strides = [1, 1]} : vector<8x512xf32> to vector<8x128xf32>
    %706 = arith.negf %705 : vector<8x128xf32>
    %707 = math.exp %706 : vector<8x128xf32>
    %cst_235 = arith.constant 1.000000e+00 : f32
    %708 = vector.broadcast %cst_235 : f32 to vector<8x128xf32>
    %709 = arith.addf %708, %707 : vector<8x128xf32>
    %710 = arith.divf %708, %709 : vector<8x128xf32>
    %711 = vector.extract_strided_slice %698 {offsets = [0, 256], sizes = [8, 128], strides = [1, 1]} : vector<8x512xf32> to vector<8x128xf32>
    %712 = math.tanh %711 : vector<8x128xf32>
    %713 = vector.extract_strided_slice %698 {offsets = [0, 384], sizes = [8, 128], strides = [1, 1]} : vector<8x512xf32> to vector<8x128xf32>
    %714 = arith.negf %713 : vector<8x128xf32>
    %715 = math.exp %714 : vector<8x128xf32>
    %cst_236 = arith.constant 1.000000e+00 : f32
    %716 = vector.broadcast %cst_236 : f32 to vector<8x128xf32>
    %717 = arith.addf %716, %715 : vector<8x128xf32>
    %718 = arith.divf %716, %717 : vector<8x128xf32>
    %719 = arith.mulf %710, %685 : vector<8x128xf32>
    %720 = arith.mulf %704, %712 : vector<8x128xf32>
    %721 = arith.addf %719, %720 : vector<8x128xf32>
    %722 = math.tanh %721 : vector<8x128xf32>
    %723 = arith.mulf %718, %722 : vector<8x128xf32>
    %c8_i32_237 = arith.constant 8 : i32
    %724 = arith.muli %c3_i32_228, %c8_i32_237 : i32
    %725 = arith.index_cast %724 : i32 to index
    %c0_238 = arith.constant 0 : index
    %726 = vector.load %arg19[%725, %c0_238] : memref<64x128xf32, #tpu.memory_space<vmem>>, vector<8x128xf32>
    tpu.vector_store %arg19[%725, %c0_238], %723 {strides = array<i32>} : memref<64x128xf32, #tpu.memory_space<vmem>>, vector<8x128xf32>,
    %727 = arith.addf %691, %723 : vector<8x128xf32>
    %c4_i32_239 = arith.constant 4 : i32
    %c8_i32_240 = arith.constant 8 : i32
    %728 = arith.muli %c4_i32_239, %c8_i32_240 : i32
    %729 = arith.index_cast %728 : i32 to index
    %c0_241 = arith.constant 0 : index
    %730 = vector.load %arg20[%729, %c0_241] : memref<64x512xf32, #tpu.memory_space<vmem>>, vector<8x512xf32>
    %731 = arith.truncf %723 : vector<8x128xf32> to vector<8x128xbf16>
    %c0_242 = arith.constant 0 : index
    %c0_243 = arith.constant 0 : index
    %732 = vector.load %arg8[%c0_242, %c0_243] : memref<128x512xbf16, #tpu.memory_space<vmem>>, vector<128x512xbf16>
    %cst_244 = arith.constant dense<0.000000e+00> : vector<8x512xf32>
    %733 = tpu.matmul %731, %732, %cst_244 {dimension_numbers = #tpu.dot_dimension_numbers<[1], [0], [0], [1], [0, 0, 1, 1], [], []>} : vector<8x128xbf16>, vector<128x512xbf16>, vector<8x512xf32> -> vector<8x512xf32>
    %734 = arith.addf %730, %733 : vector<8x512xf32>
    %735 = vector.extract_strided_slice %734 {offsets = [0, 0], sizes = [8, 128], strides = [1, 1]} : vector<8x512xf32> to vector<8x128xf32>
    %736 = arith.negf %735 : vector<8x128xf32>
    %737 = math.exp %736 : vector<8x128xf32>
    %cst_245 = arith.constant 1.000000e+00 : f32
    %738 = vector.broadcast %cst_245 : f32 to vector<8x128xf32>
    %739 = arith.addf %738, %737 : vector<8x128xf32>
    %740 = arith.divf %738, %739 : vector<8x128xf32>
    %741 = vector.extract_strided_slice %734 {offsets = [0, 128], sizes = [8, 128], strides = [1, 1]} : vector<8x512xf32> to vector<8x128xf32>
    %742 = arith.negf %741 : vector<8x128xf32>
    %743 = math.exp %742 : vector<8x128xf32>
    %cst_246 = arith.constant 1.000000e+00 : f32
    %744 = vector.broadcast %cst_246 : f32 to vector<8x128xf32>
    %745 = arith.addf %744, %743 : vector<8x128xf32>
    %746 = arith.divf %744, %745 : vector<8x128xf32>
    %747 = vector.extract_strided_slice %734 {offsets = [0, 256], sizes = [8, 128], strides = [1, 1]} : vector<8x512xf32> to vector<8x128xf32>
    %748 = math.tanh %747 : vector<8x128xf32>
    %749 = vector.extract_strided_slice %734 {offsets = [0, 384], sizes = [8, 128], strides = [1, 1]} : vector<8x512xf32> to vector<8x128xf32>
    %750 = arith.negf %749 : vector<8x128xf32>
    %751 = math.exp %750 : vector<8x128xf32>
    %cst_247 = arith.constant 1.000000e+00 : f32
    %752 = vector.broadcast %cst_247 : f32 to vector<8x128xf32>
    %753 = arith.addf %752, %751 : vector<8x128xf32>
    %754 = arith.divf %752, %753 : vector<8x128xf32>
    %755 = arith.mulf %746, %721 : vector<8x128xf32>
    %756 = arith.mulf %740, %748 : vector<8x128xf32>
    %757 = arith.addf %755, %756 : vector<8x128xf32>
    %758 = math.tanh %757 : vector<8x128xf32>
    %759 = arith.mulf %754, %758 : vector<8x128xf32>
    %c8_i32_248 = arith.constant 8 : i32
    %760 = arith.muli %c4_i32_239, %c8_i32_248 : i32
    %761 = arith.index_cast %760 : i32 to index
    %c0_249 = arith.constant 0 : index
    %762 = vector.load %arg19[%761, %c0_249] : memref<64x128xf32, #tpu.memory_space<vmem>>, vector<8x128xf32>
    tpu.vector_store %arg19[%761, %c0_249], %759 {strides = array<i32>} : memref<64x128xf32, #tpu.memory_space<vmem>>, vector<8x128xf32>,
    %763 = arith.addf %727, %759 : vector<8x128xf32>
    %c5_i32_250 = arith.constant 5 : i32
    %c8_i32_251 = arith.constant 8 : i32
    %764 = arith.muli %c5_i32_250, %c8_i32_251 : i32
    %765 = arith.index_cast %764 : i32 to index
    %c0_252 = arith.constant 0 : index
    %766 = vector.load %arg20[%765, %c0_252] : memref<64x512xf32, #tpu.memory_space<vmem>>, vector<8x512xf32>
    %767 = arith.truncf %759 : vector<8x128xf32> to vector<8x128xbf16>
    %c0_253 = arith.constant 0 : index
    %c0_254 = arith.constant 0 : index
    %768 = vector.load %arg8[%c0_253, %c0_254] : memref<128x512xbf16, #tpu.memory_space<vmem>>, vector<128x512xbf16>
    %cst_255 = arith.constant dense<0.000000e+00> : vector<8x512xf32>
    %769 = tpu.matmul %767, %768, %cst_255 {dimension_numbers = #tpu.dot_dimension_numbers<[1], [0], [0], [1], [0, 0, 1, 1], [], []>} : vector<8x128xbf16>, vector<128x512xbf16>, vector<8x512xf32> -> vector<8x512xf32>
    %770 = arith.addf %766, %769 : vector<8x512xf32>
    %771 = vector.extract_strided_slice %770 {offsets = [0, 0], sizes = [8, 128], strides = [1, 1]} : vector<8x512xf32> to vector<8x128xf32>
    %772 = arith.negf %771 : vector<8x128xf32>
    %773 = math.exp %772 : vector<8x128xf32>
    %cst_256 = arith.constant 1.000000e+00 : f32
    %774 = vector.broadcast %cst_256 : f32 to vector<8x128xf32>
    %775 = arith.addf %774, %773 : vector<8x128xf32>
    %776 = arith.divf %774, %775 : vector<8x128xf32>
    %777 = vector.extract_strided_slice %770 {offsets = [0, 128], sizes = [8, 128], strides = [1, 1]} : vector<8x512xf32> to vector<8x128xf32>
    %778 = arith.negf %777 : vector<8x128xf32>
    %779 = math.exp %778 : vector<8x128xf32>
    %cst_257 = arith.constant 1.000000e+00 : f32
    %780 = vector.broadcast %cst_257 : f32 to vector<8x128xf32>
    %781 = arith.addf %780, %779 : vector<8x128xf32>
    %782 = arith.divf %780, %781 : vector<8x128xf32>
    %783 = vector.extract_strided_slice %770 {offsets = [0, 256], sizes = [8, 128], strides = [1, 1]} : vector<8x512xf32> to vector<8x128xf32>
    %784 = math.tanh %783 : vector<8x128xf32>
    %785 = vector.extract_strided_slice %770 {offsets = [0, 384], sizes = [8, 128], strides = [1, 1]} : vector<8x512xf32> to vector<8x128xf32>
    %786 = arith.negf %785 : vector<8x128xf32>
    %787 = math.exp %786 : vector<8x128xf32>
    %cst_258 = arith.constant 1.000000e+00 : f32
    %788 = vector.broadcast %cst_258 : f32 to vector<8x128xf32>
    %789 = arith.addf %788, %787 : vector<8x128xf32>
    %790 = arith.divf %788, %789 : vector<8x128xf32>
    %791 = arith.mulf %782, %757 : vector<8x128xf32>
    %792 = arith.mulf %776, %784 : vector<8x128xf32>
    %793 = arith.addf %791, %792 : vector<8x128xf32>
    %794 = math.tanh %793 : vector<8x128xf32>
    %795 = arith.mulf %790, %794 : vector<8x128xf32>
    %c8_i32_259 = arith.constant 8 : i32
    %796 = arith.muli %c5_i32_250, %c8_i32_259 : i32
    %797 = arith.index_cast %796 : i32 to index
    %c0_260 = arith.constant 0 : index
    %798 = vector.load %arg19[%797, %c0_260] : memref<64x128xf32, #tpu.memory_space<vmem>>, vector<8x128xf32>
    tpu.vector_store %arg19[%797, %c0_260], %795 {strides = array<i32>} : memref<64x128xf32, #tpu.memory_space<vmem>>, vector<8x128xf32>,
    %799 = arith.addf %763, %795 : vector<8x128xf32>
    %c6_i32_261 = arith.constant 6 : i32
    %c8_i32_262 = arith.constant 8 : i32
    %800 = arith.muli %c6_i32_261, %c8_i32_262 : i32
    %801 = arith.index_cast %800 : i32 to index
    %c0_263 = arith.constant 0 : index
    %802 = vector.load %arg20[%801, %c0_263] : memref<64x512xf32, #tpu.memory_space<vmem>>, vector<8x512xf32>
    %803 = arith.truncf %795 : vector<8x128xf32> to vector<8x128xbf16>
    %c0_264 = arith.constant 0 : index
    %c0_265 = arith.constant 0 : index
    %804 = vector.load %arg8[%c0_264, %c0_265] : memref<128x512xbf16, #tpu.memory_space<vmem>>, vector<128x512xbf16>
    %cst_266 = arith.constant dense<0.000000e+00> : vector<8x512xf32>
    %805 = tpu.matmul %803, %804, %cst_266 {dimension_numbers = #tpu.dot_dimension_numbers<[1], [0], [0], [1], [0, 0, 1, 1], [], []>} : vector<8x128xbf16>, vector<128x512xbf16>, vector<8x512xf32> -> vector<8x512xf32>
    %806 = arith.addf %802, %805 : vector<8x512xf32>
    %807 = vector.extract_strided_slice %806 {offsets = [0, 0], sizes = [8, 128], strides = [1, 1]} : vector<8x512xf32> to vector<8x128xf32>
    %808 = arith.negf %807 : vector<8x128xf32>
    %809 = math.exp %808 : vector<8x128xf32>
    %cst_267 = arith.constant 1.000000e+00 : f32
    %810 = vector.broadcast %cst_267 : f32 to vector<8x128xf32>
    %811 = arith.addf %810, %809 : vector<8x128xf32>
    %812 = arith.divf %810, %811 : vector<8x128xf32>
    %813 = vector.extract_strided_slice %806 {offsets = [0, 128], sizes = [8, 128], strides = [1, 1]} : vector<8x512xf32> to vector<8x128xf32>
    %814 = arith.negf %813 : vector<8x128xf32>
    %815 = math.exp %814 : vector<8x128xf32>
    %cst_268 = arith.constant 1.000000e+00 : f32
    %816 = vector.broadcast %cst_268 : f32 to vector<8x128xf32>
    %817 = arith.addf %816, %815 : vector<8x128xf32>
    %818 = arith.divf %816, %817 : vector<8x128xf32>
    %819 = vector.extract_strided_slice %806 {offsets = [0, 256], sizes = [8, 128], strides = [1, 1]} : vector<8x512xf32> to vector<8x128xf32>
    %820 = math.tanh %819 : vector<8x128xf32>
    %821 = vector.extract_strided_slice %806 {offsets = [0, 384], sizes = [8, 128], strides = [1, 1]} : vector<8x512xf32> to vector<8x128xf32>
    %822 = arith.negf %821 : vector<8x128xf32>
    %823 = math.exp %822 : vector<8x128xf32>
    %cst_269 = arith.constant 1.000000e+00 : f32
    %824 = vector.broadcast %cst_269 : f32 to vector<8x128xf32>
    %825 = arith.addf %824, %823 : vector<8x128xf32>
    %826 = arith.divf %824, %825 : vector<8x128xf32>
    %827 = arith.mulf %818, %793 : vector<8x128xf32>
    %828 = arith.mulf %812, %820 : vector<8x128xf32>
    %829 = arith.addf %827, %828 : vector<8x128xf32>
    %830 = math.tanh %829 : vector<8x128xf32>
    %831 = arith.mulf %826, %830 : vector<8x128xf32>
    %c8_i32_270 = arith.constant 8 : i32
    %832 = arith.muli %c6_i32_261, %c8_i32_270 : i32
    %833 = arith.index_cast %832 : i32 to index
    %c0_271 = arith.constant 0 : index
    %834 = vector.load %arg19[%833, %c0_271] : memref<64x128xf32, #tpu.memory_space<vmem>>, vector<8x128xf32>
    tpu.vector_store %arg19[%833, %c0_271], %831 {strides = array<i32>} : memref<64x128xf32, #tpu.memory_space<vmem>>, vector<8x128xf32>,
    %835 = arith.addf %799, %831 : vector<8x128xf32>
    %c7_i32_272 = arith.constant 7 : i32
    %c8_i32_273 = arith.constant 8 : i32
    %836 = arith.muli %c7_i32_272, %c8_i32_273 : i32
    %837 = arith.index_cast %836 : i32 to index
    %c0_274 = arith.constant 0 : index
    %838 = vector.load %arg20[%837, %c0_274] : memref<64x512xf32, #tpu.memory_space<vmem>>, vector<8x512xf32>
    %839 = arith.truncf %831 : vector<8x128xf32> to vector<8x128xbf16>
    %c0_275 = arith.constant 0 : index
    %c0_276 = arith.constant 0 : index
    %840 = vector.load %arg8[%c0_275, %c0_276] : memref<128x512xbf16, #tpu.memory_space<vmem>>, vector<128x512xbf16>
    %cst_277 = arith.constant dense<0.000000e+00> : vector<8x512xf32>
    %841 = tpu.matmul %839, %840, %cst_277 {dimension_numbers = #tpu.dot_dimension_numbers<[1], [0], [0], [1], [0, 0, 1, 1], [], []>} : vector<8x128xbf16>, vector<128x512xbf16>, vector<8x512xf32> -> vector<8x512xf32>
    %842 = arith.addf %838, %841 : vector<8x512xf32>
    %843 = vector.extract_strided_slice %842 {offsets = [0, 0], sizes = [8, 128], strides = [1, 1]} : vector<8x512xf32> to vector<8x128xf32>
    %844 = arith.negf %843 : vector<8x128xf32>
    %845 = math.exp %844 : vector<8x128xf32>
    %cst_278 = arith.constant 1.000000e+00 : f32
    %846 = vector.broadcast %cst_278 : f32 to vector<8x128xf32>
    %847 = arith.addf %846, %845 : vector<8x128xf32>
    %848 = arith.divf %846, %847 : vector<8x128xf32>
    %849 = vector.extract_strided_slice %842 {offsets = [0, 128], sizes = [8, 128], strides = [1, 1]} : vector<8x512xf32> to vector<8x128xf32>
    %850 = arith.negf %849 : vector<8x128xf32>
    %851 = math.exp %850 : vector<8x128xf32>
    %cst_279 = arith.constant 1.000000e+00 : f32
    %852 = vector.broadcast %cst_279 : f32 to vector<8x128xf32>
    %853 = arith.addf %852, %851 : vector<8x128xf32>
    %854 = arith.divf %852, %853 : vector<8x128xf32>
    %855 = vector.extract_strided_slice %842 {offsets = [0, 256], sizes = [8, 128], strides = [1, 1]} : vector<8x512xf32> to vector<8x128xf32>
    %856 = math.tanh %855 : vector<8x128xf32>
    %857 = vector.extract_strided_slice %842 {offsets = [0, 384], sizes = [8, 128], strides = [1, 1]} : vector<8x512xf32> to vector<8x128xf32>
    %858 = arith.negf %857 : vector<8x128xf32>
    %859 = math.exp %858 : vector<8x128xf32>
    %cst_280 = arith.constant 1.000000e+00 : f32
    %860 = vector.broadcast %cst_280 : f32 to vector<8x128xf32>
    %861 = arith.addf %860, %859 : vector<8x128xf32>
    %862 = arith.divf %860, %861 : vector<8x128xf32>
    %863 = arith.mulf %854, %829 : vector<8x128xf32>
    %864 = arith.mulf %848, %856 : vector<8x128xf32>
    %865 = arith.addf %863, %864 : vector<8x128xf32>
    %866 = math.tanh %865 : vector<8x128xf32>
    %867 = arith.mulf %862, %866 : vector<8x128xf32>
    %c8_i32_281 = arith.constant 8 : i32
    %868 = arith.muli %c7_i32_272, %c8_i32_281 : i32
    %869 = arith.index_cast %868 : i32 to index
    %c0_282 = arith.constant 0 : index
    %870 = vector.load %arg19[%869, %c0_282] : memref<64x128xf32, #tpu.memory_space<vmem>>, vector<8x128xf32>
    tpu.vector_store %arg19[%869, %c0_282], %867 {strides = array<i32>} : memref<64x128xf32, #tpu.memory_space<vmem>>, vector<8x128xf32>,
    %871 = arith.addf %835, %867 : vector<8x128xf32>
    %c8_i32_283 = arith.constant 8 : i32
    %cst_284 = arith.constant 1.250000e-01 : f32
    %872 = vector.broadcast %cst_284 : f32 to vector<8x128xf32>
    %873 = arith.mulf %871, %872 : vector<8x128xf32>
    %874 = arith.truncf %873 : vector<8x128xf32> to vector<8x128xbf16>
    %c0_285 = arith.constant 0 : index
    %c0_286 = arith.constant 0 : index
    %875 = vector.load %arg10[%c0_285, %c0_286] : memref<128x512xbf16, #tpu.memory_space<vmem>>, vector<128x512xbf16>
    %cst_287 = arith.constant dense<0.000000e+00> : vector<8x512xf32>
    %876 = tpu.matmul %874, %875, %cst_287 {dimension_numbers = #tpu.dot_dimension_numbers<[1], [0], [0], [1], [0, 0, 1, 1], [], []>} : vector<8x128xbf16>, vector<128x512xbf16>, vector<8x512xf32> -> vector<8x512xf32>
    %c0_288 = arith.constant 0 : index
    %c0_289 = arith.constant 0 : index
    %877 = vector.load %arg12[%c0_288, %c0_289] : memref<1x512xf32, #tpu.memory_space<vmem>>, vector<1x512xf32>
    %878 = vector.broadcast %877 : vector<1x512xf32> to vector<8x512xf32>
    %879 = arith.addf %876, %878 : vector<8x512xf32>
    %c0_i32_290 = arith.constant 0 : i32
    %880 = arith.truncf %0 : vector<8x128xf32> to vector<8x128xbf16>
    %c0_291 = arith.constant 0 : index
    %c0_292 = arith.constant 0 : index
    %881 = vector.load %arg11[%c0_291, %c0_292] : memref<128x512xbf16, #tpu.memory_space<vmem>>, vector<128x512xbf16>
    %cst_293 = arith.constant dense<0.000000e+00> : vector<8x512xf32>
    %882 = tpu.matmul %880, %881, %cst_293 {dimension_numbers = #tpu.dot_dimension_numbers<[1], [0], [0], [1], [0, 0, 1, 1], [], []>} : vector<8x128xbf16>, vector<128x512xbf16>, vector<8x512xf32> -> vector<8x512xf32>
    %883 = arith.addf %879, %882 : vector<8x512xf32>
    %884 = vector.extract_strided_slice %883 {offsets = [0, 0], sizes = [8, 128], strides = [1, 1]} : vector<8x512xf32> to vector<8x128xf32>
    %885 = arith.negf %884 : vector<8x128xf32>
    %886 = math.exp %885 : vector<8x128xf32>
    %cst_294 = arith.constant 1.000000e+00 : f32
    %887 = vector.broadcast %cst_294 : f32 to vector<8x128xf32>
    %888 = arith.addf %887, %886 : vector<8x128xf32>
    %889 = arith.divf %887, %888 : vector<8x128xf32>
    %890 = vector.extract_strided_slice %883 {offsets = [0, 128], sizes = [8, 128], strides = [1, 1]} : vector<8x512xf32> to vector<8x128xf32>
    %891 = arith.negf %890 : vector<8x128xf32>
    %892 = math.exp %891 : vector<8x128xf32>
    %cst_295 = arith.constant 1.000000e+00 : f32
    %893 = vector.broadcast %cst_295 : f32 to vector<8x128xf32>
    %894 = arith.addf %893, %892 : vector<8x128xf32>
    %895 = arith.divf %893, %894 : vector<8x128xf32>
    %896 = vector.extract_strided_slice %883 {offsets = [0, 256], sizes = [8, 128], strides = [1, 1]} : vector<8x512xf32> to vector<8x128xf32>
    %897 = math.tanh %896 : vector<8x128xf32>
    %898 = vector.extract_strided_slice %883 {offsets = [0, 384], sizes = [8, 128], strides = [1, 1]} : vector<8x512xf32> to vector<8x128xf32>
    %899 = arith.negf %898 : vector<8x128xf32>
    %900 = math.exp %899 : vector<8x128xf32>
    %cst_296 = arith.constant 1.000000e+00 : f32
    %901 = vector.broadcast %cst_296 : f32 to vector<8x128xf32>
    %902 = arith.addf %901, %900 : vector<8x128xf32>
    %903 = arith.divf %901, %902 : vector<8x128xf32>
    %904 = arith.mulf %895, %0 : vector<8x128xf32>
    %905 = arith.mulf %889, %897 : vector<8x128xf32>
    %906 = arith.addf %904, %905 : vector<8x128xf32>
    %907 = math.tanh %906 : vector<8x128xf32>
    %908 = arith.mulf %903, %907 : vector<8x128xf32>
    %c8_i32_297 = arith.constant 8 : i32
    %909 = arith.muli %c0_i32_290, %c8_i32_297 : i32
    %910 = arith.index_cast %909 : i32 to index
    %c0_298 = arith.constant 0 : index
    %911 = vector.load %arg19[%910, %c0_298] : memref<64x128xf32, #tpu.memory_space<vmem>>, vector<8x128xf32>
    tpu.vector_store %arg19[%910, %c0_298], %908 {strides = array<i32>} : memref<64x128xf32, #tpu.memory_space<vmem>>, vector<8x128xf32>,
    %c1_i32_299 = arith.constant 1 : i32
    %912 = arith.truncf %908 : vector<8x128xf32> to vector<8x128xbf16>
    %c0_300 = arith.constant 0 : index
    %c0_301 = arith.constant 0 : index
    %913 = vector.load %arg11[%c0_300, %c0_301] : memref<128x512xbf16, #tpu.memory_space<vmem>>, vector<128x512xbf16>
    %cst_302 = arith.constant dense<0.000000e+00> : vector<8x512xf32>
    %914 = tpu.matmul %912, %913, %cst_302 {dimension_numbers = #tpu.dot_dimension_numbers<[1], [0], [0], [1], [0, 0, 1, 1], [], []>} : vector<8x128xbf16>, vector<128x512xbf16>, vector<8x512xf32> -> vector<8x512xf32>
    %915 = arith.addf %879, %914 : vector<8x512xf32>
    %916 = vector.extract_strided_slice %915 {offsets = [0, 0], sizes = [8, 128], strides = [1, 1]} : vector<8x512xf32> to vector<8x128xf32>
    %917 = arith.negf %916 : vector<8x128xf32>
    %918 = math.exp %917 : vector<8x128xf32>
    %cst_303 = arith.constant 1.000000e+00 : f32
    %919 = vector.broadcast %cst_303 : f32 to vector<8x128xf32>
    %920 = arith.addf %919, %918 : vector<8x128xf32>
    %921 = arith.divf %919, %920 : vector<8x128xf32>
    %922 = vector.extract_strided_slice %915 {offsets = [0, 128], sizes = [8, 128], strides = [1, 1]} : vector<8x512xf32> to vector<8x128xf32>
    %923 = arith.negf %922 : vector<8x128xf32>
    %924 = math.exp %923 : vector<8x128xf32>
    %cst_304 = arith.constant 1.000000e+00 : f32
    %925 = vector.broadcast %cst_304 : f32 to vector<8x128xf32>
    %926 = arith.addf %925, %924 : vector<8x128xf32>
    %927 = arith.divf %925, %926 : vector<8x128xf32>
    %928 = vector.extract_strided_slice %915 {offsets = [0, 256], sizes = [8, 128], strides = [1, 1]} : vector<8x512xf32> to vector<8x128xf32>
    %929 = math.tanh %928 : vector<8x128xf32>
    %930 = vector.extract_strided_slice %915 {offsets = [0, 384], sizes = [8, 128], strides = [1, 1]} : vector<8x512xf32> to vector<8x128xf32>
    %931 = arith.negf %930 : vector<8x128xf32>
    %932 = math.exp %931 : vector<8x128xf32>
    %cst_305 = arith.constant 1.000000e+00 : f32
    %933 = vector.broadcast %cst_305 : f32 to vector<8x128xf32>
    %934 = arith.addf %933, %932 : vector<8x128xf32>
    %935 = arith.divf %933, %934 : vector<8x128xf32>
    %936 = arith.mulf %927, %906 : vector<8x128xf32>
    %937 = arith.mulf %921, %929 : vector<8x128xf32>
    %938 = arith.addf %936, %937 : vector<8x128xf32>
    %939 = math.tanh %938 : vector<8x128xf32>
    %940 = arith.mulf %935, %939 : vector<8x128xf32>
    %c8_i32_306 = arith.constant 8 : i32
    %941 = arith.muli %c1_i32_299, %c8_i32_306 : i32
    %942 = arith.index_cast %941 : i32 to index
    %c0_307 = arith.constant 0 : index
    %943 = vector.load %arg19[%942, %c0_307] : memref<64x128xf32, #tpu.memory_space<vmem>>, vector<8x128xf32>
    tpu.vector_store %arg19[%942, %c0_307], %940 {strides = array<i32>} : memref<64x128xf32, #tpu.memory_space<vmem>>, vector<8x128xf32>,
    %c2_i32_308 = arith.constant 2 : i32
    %944 = arith.truncf %940 : vector<8x128xf32> to vector<8x128xbf16>
    %c0_309 = arith.constant 0 : index
    %c0_310 = arith.constant 0 : index
    %945 = vector.load %arg11[%c0_309, %c0_310] : memref<128x512xbf16, #tpu.memory_space<vmem>>, vector<128x512xbf16>
    %cst_311 = arith.constant dense<0.000000e+00> : vector<8x512xf32>
    %946 = tpu.matmul %944, %945, %cst_311 {dimension_numbers = #tpu.dot_dimension_numbers<[1], [0], [0], [1], [0, 0, 1, 1], [], []>} : vector<8x128xbf16>, vector<128x512xbf16>, vector<8x512xf32> -> vector<8x512xf32>
    %947 = arith.addf %879, %946 : vector<8x512xf32>
    %948 = vector.extract_strided_slice %947 {offsets = [0, 0], sizes = [8, 128], strides = [1, 1]} : vector<8x512xf32> to vector<8x128xf32>
    %949 = arith.negf %948 : vector<8x128xf32>
    %950 = math.exp %949 : vector<8x128xf32>
    %cst_312 = arith.constant 1.000000e+00 : f32
    %951 = vector.broadcast %cst_312 : f32 to vector<8x128xf32>
    %952 = arith.addf %951, %950 : vector<8x128xf32>
    %953 = arith.divf %951, %952 : vector<8x128xf32>
    %954 = vector.extract_strided_slice %947 {offsets = [0, 128], sizes = [8, 128], strides = [1, 1]} : vector<8x512xf32> to vector<8x128xf32>
    %955 = arith.negf %954 : vector<8x128xf32>
    %956 = math.exp %955 : vector<8x128xf32>
    %cst_313 = arith.constant 1.000000e+00 : f32
    %957 = vector.broadcast %cst_313 : f32 to vector<8x128xf32>
    %958 = arith.addf %957, %956 : vector<8x128xf32>
    %959 = arith.divf %957, %958 : vector<8x128xf32>
    %960 = vector.extract_strided_slice %947 {offsets = [0, 256], sizes = [8, 128], strides = [1, 1]} : vector<8x512xf32> to vector<8x128xf32>
    %961 = math.tanh %960 : vector<8x128xf32>
    %962 = vector.extract_strided_slice %947 {offsets = [0, 384], sizes = [8, 128], strides = [1, 1]} : vector<8x512xf32> to vector<8x128xf32>
    %963 = arith.negf %962 : vector<8x128xf32>
    %964 = math.exp %963 : vector<8x128xf32>
    %cst_314 = arith.constant 1.000000e+00 : f32
    %965 = vector.broadcast %cst_314 : f32 to vector<8x128xf32>
    %966 = arith.addf %965, %964 : vector<8x128xf32>
    %967 = arith.divf %965, %966 : vector<8x128xf32>
    %968 = arith.mulf %959, %938 : vector<8x128xf32>
    %969 = arith.mulf %953, %961 : vector<8x128xf32>
    %970 = arith.addf %968, %969 : vector<8x128xf32>
    %971 = math.tanh %970 : vector<8x128xf32>
    %972 = arith.mulf %967, %971 : vector<8x128xf32>
    %c8_i32_315 = arith.constant 8 : i32
    %973 = arith.muli %c2_i32_308, %c8_i32_315 : i32
    %974 = arith.index_cast %973 : i32 to index
    %c0_316 = arith.constant 0 : index
    %975 = vector.load %arg19[%974, %c0_316] : memref<64x128xf32, #tpu.memory_space<vmem>>, vector<8x128xf32>
    tpu.vector_store %arg19[%974, %c0_316], %972 {strides = array<i32>} : memref<64x128xf32, #tpu.memory_space<vmem>>, vector<8x128xf32>,
    %c3_i32_317 = arith.constant 3 : i32
    %976 = arith.truncf %972 : vector<8x128xf32> to vector<8x128xbf16>
    %c0_318 = arith.constant 0 : index
    %c0_319 = arith.constant 0 : index
    %977 = vector.load %arg11[%c0_318, %c0_319] : memref<128x512xbf16, #tpu.memory_space<vmem>>, vector<128x512xbf16>
    %cst_320 = arith.constant dense<0.000000e+00> : vector<8x512xf32>
    %978 = tpu.matmul %976, %977, %cst_320 {dimension_numbers = #tpu.dot_dimension_numbers<[1], [0], [0], [1], [0, 0, 1, 1], [], []>} : vector<8x128xbf16>, vector<128x512xbf16>, vector<8x512xf32> -> vector<8x512xf32>
    %979 = arith.addf %879, %978 : vector<8x512xf32>
    %980 = vector.extract_strided_slice %979 {offsets = [0, 0], sizes = [8, 128], strides = [1, 1]} : vector<8x512xf32> to vector<8x128xf32>
    %981 = arith.negf %980 : vector<8x128xf32>
    %982 = math.exp %981 : vector<8x128xf32>
    %cst_321 = arith.constant 1.000000e+00 : f32
    %983 = vector.broadcast %cst_321 : f32 to vector<8x128xf32>
    %984 = arith.addf %983, %982 : vector<8x128xf32>
    %985 = arith.divf %983, %984 : vector<8x128xf32>
    %986 = vector.extract_strided_slice %979 {offsets = [0, 128], sizes = [8, 128], strides = [1, 1]} : vector<8x512xf32> to vector<8x128xf32>
    %987 = arith.negf %986 : vector<8x128xf32>
    %988 = math.exp %987 : vector<8x128xf32>
    %cst_322 = arith.constant 1.000000e+00 : f32
    %989 = vector.broadcast %cst_322 : f32 to vector<8x128xf32>
    %990 = arith.addf %989, %988 : vector<8x128xf32>
    %991 = arith.divf %989, %990 : vector<8x128xf32>
    %992 = vector.extract_strided_slice %979 {offsets = [0, 256], sizes = [8, 128], strides = [1, 1]} : vector<8x512xf32> to vector<8x128xf32>
    %993 = math.tanh %992 : vector<8x128xf32>
    %994 = vector.extract_strided_slice %979 {offsets = [0, 384], sizes = [8, 128], strides = [1, 1]} : vector<8x512xf32> to vector<8x128xf32>
    %995 = arith.negf %994 : vector<8x128xf32>
    %996 = math.exp %995 : vector<8x128xf32>
    %cst_323 = arith.constant 1.000000e+00 : f32
    %997 = vector.broadcast %cst_323 : f32 to vector<8x128xf32>
    %998 = arith.addf %997, %996 : vector<8x128xf32>
    %999 = arith.divf %997, %998 : vector<8x128xf32>
    %1000 = arith.mulf %991, %970 : vector<8x128xf32>
    %1001 = arith.mulf %985, %993 : vector<8x128xf32>
    %1002 = arith.addf %1000, %1001 : vector<8x128xf32>
    %1003 = math.tanh %1002 : vector<8x128xf32>
    %1004 = arith.mulf %999, %1003 : vector<8x128xf32>
    %c8_i32_324 = arith.constant 8 : i32
    %1005 = arith.muli %c3_i32_317, %c8_i32_324 : i32
    %1006 = arith.index_cast %1005 : i32 to index
    %c0_325 = arith.constant 0 : index
    %1007 = vector.load %arg19[%1006, %c0_325] : memref<64x128xf32, #tpu.memory_space<vmem>>, vector<8x128xf32>
    tpu.vector_store %arg19[%1006, %c0_325], %1004 {strides = array<i32>} : memref<64x128xf32, #tpu.memory_space<vmem>>, vector<8x128xf32>,
    %c4_i32_326 = arith.constant 4 : i32
    %1008 = arith.truncf %1004 : vector<8x128xf32> to vector<8x128xbf16>
    %c0_327 = arith.constant 0 : index
    %c0_328 = arith.constant 0 : index
    %1009 = vector.load %arg11[%c0_327, %c0_328] : memref<128x512xbf16, #tpu.memory_space<vmem>>, vector<128x512xbf16>
    %cst_329 = arith.constant dense<0.000000e+00> : vector<8x512xf32>
    %1010 = tpu.matmul %1008, %1009, %cst_329 {dimension_numbers = #tpu.dot_dimension_numbers<[1], [0], [0], [1], [0, 0, 1, 1], [], []>} : vector<8x128xbf16>, vector<128x512xbf16>, vector<8x512xf32> -> vector<8x512xf32>
    %1011 = arith.addf %879, %1010 : vector<8x512xf32>
    %1012 = vector.extract_strided_slice %1011 {offsets = [0, 0], sizes = [8, 128], strides = [1, 1]} : vector<8x512xf32> to vector<8x128xf32>
    %1013 = arith.negf %1012 : vector<8x128xf32>
    %1014 = math.exp %1013 : vector<8x128xf32>
    %cst_330 = arith.constant 1.000000e+00 : f32
    %1015 = vector.broadcast %cst_330 : f32 to vector<8x128xf32>
    %1016 = arith.addf %1015, %1014 : vector<8x128xf32>
    %1017 = arith.divf %1015, %1016 : vector<8x128xf32>
    %1018 = vector.extract_strided_slice %1011 {offsets = [0, 128], sizes = [8, 128], strides = [1, 1]} : vector<8x512xf32> to vector<8x128xf32>
    %1019 = arith.negf %1018 : vector<8x128xf32>
    %1020 = math.exp %1019 : vector<8x128xf32>
    %cst_331 = arith.constant 1.000000e+00 : f32
    %1021 = vector.broadcast %cst_331 : f32 to vector<8x128xf32>
    %1022 = arith.addf %1021, %1020 : vector<8x128xf32>
    %1023 = arith.divf %1021, %1022 : vector<8x128xf32>
    %1024 = vector.extract_strided_slice %1011 {offsets = [0, 256], sizes = [8, 128], strides = [1, 1]} : vector<8x512xf32> to vector<8x128xf32>
    %1025 = math.tanh %1024 : vector<8x128xf32>
    %1026 = vector.extract_strided_slice %1011 {offsets = [0, 384], sizes = [8, 128], strides = [1, 1]} : vector<8x512xf32> to vector<8x128xf32>
    %1027 = arith.negf %1026 : vector<8x128xf32>
    %1028 = math.exp %1027 : vector<8x128xf32>
    %cst_332 = arith.constant 1.000000e+00 : f32
    %1029 = vector.broadcast %cst_332 : f32 to vector<8x128xf32>
    %1030 = arith.addf %1029, %1028 : vector<8x128xf32>
    %1031 = arith.divf %1029, %1030 : vector<8x128xf32>
    %1032 = arith.mulf %1023, %1002 : vector<8x128xf32>
    %1033 = arith.mulf %1017, %1025 : vector<8x128xf32>
    %1034 = arith.addf %1032, %1033 : vector<8x128xf32>
    %1035 = math.tanh %1034 : vector<8x128xf32>
    %1036 = arith.mulf %1031, %1035 : vector<8x128xf32>
    %c8_i32_333 = arith.constant 8 : i32
    %1037 = arith.muli %c4_i32_326, %c8_i32_333 : i32
    %1038 = arith.index_cast %1037 : i32 to index
    %c0_334 = arith.constant 0 : index
    %1039 = vector.load %arg19[%1038, %c0_334] : memref<64x128xf32, #tpu.memory_space<vmem>>, vector<8x128xf32>
    tpu.vector_store %arg19[%1038, %c0_334], %1036 {strides = array<i32>} : memref<64x128xf32, #tpu.memory_space<vmem>>, vector<8x128xf32>,
    %c5_i32_335 = arith.constant 5 : i32
    %1040 = arith.truncf %1036 : vector<8x128xf32> to vector<8x128xbf16>
    %c0_336 = arith.constant 0 : index
    %c0_337 = arith.constant 0 : index
    %1041 = vector.load %arg11[%c0_336, %c0_337] : memref<128x512xbf16, #tpu.memory_space<vmem>>, vector<128x512xbf16>
    %cst_338 = arith.constant dense<0.000000e+00> : vector<8x512xf32>
    %1042 = tpu.matmul %1040, %1041, %cst_338 {dimension_numbers = #tpu.dot_dimension_numbers<[1], [0], [0], [1], [0, 0, 1, 1], [], []>} : vector<8x128xbf16>, vector<128x512xbf16>, vector<8x512xf32> -> vector<8x512xf32>
    %1043 = arith.addf %879, %1042 : vector<8x512xf32>
    %1044 = vector.extract_strided_slice %1043 {offsets = [0, 0], sizes = [8, 128], strides = [1, 1]} : vector<8x512xf32> to vector<8x128xf32>
    %1045 = arith.negf %1044 : vector<8x128xf32>
    %1046 = math.exp %1045 : vector<8x128xf32>
    %cst_339 = arith.constant 1.000000e+00 : f32
    %1047 = vector.broadcast %cst_339 : f32 to vector<8x128xf32>
    %1048 = arith.addf %1047, %1046 : vector<8x128xf32>
    %1049 = arith.divf %1047, %1048 : vector<8x128xf32>
    %1050 = vector.extract_strided_slice %1043 {offsets = [0, 128], sizes = [8, 128], strides = [1, 1]} : vector<8x512xf32> to vector<8x128xf32>
    %1051 = arith.negf %1050 : vector<8x128xf32>
    %1052 = math.exp %1051 : vector<8x128xf32>
    %cst_340 = arith.constant 1.000000e+00 : f32
    %1053 = vector.broadcast %cst_340 : f32 to vector<8x128xf32>
    %1054 = arith.addf %1053, %1052 : vector<8x128xf32>
    %1055 = arith.divf %1053, %1054 : vector<8x128xf32>
    %1056 = vector.extract_strided_slice %1043 {offsets = [0, 256], sizes = [8, 128], strides = [1, 1]} : vector<8x512xf32> to vector<8x128xf32>
    %1057 = math.tanh %1056 : vector<8x128xf32>
    %1058 = vector.extract_strided_slice %1043 {offsets = [0, 384], sizes = [8, 128], strides = [1, 1]} : vector<8x512xf32> to vector<8x128xf32>
    %1059 = arith.negf %1058 : vector<8x128xf32>
    %1060 = math.exp %1059 : vector<8x128xf32>
    %cst_341 = arith.constant 1.000000e+00 : f32
    %1061 = vector.broadcast %cst_341 : f32 to vector<8x128xf32>
    %1062 = arith.addf %1061, %1060 : vector<8x128xf32>
    %1063 = arith.divf %1061, %1062 : vector<8x128xf32>
    %1064 = arith.mulf %1055, %1034 : vector<8x128xf32>
    %1065 = arith.mulf %1049, %1057 : vector<8x128xf32>
    %1066 = arith.addf %1064, %1065 : vector<8x128xf32>
    %1067 = math.tanh %1066 : vector<8x128xf32>
    %1068 = arith.mulf %1063, %1067 : vector<8x128xf32>
    %c8_i32_342 = arith.constant 8 : i32
    %1069 = arith.muli %c5_i32_335, %c8_i32_342 : i32
    %1070 = arith.index_cast %1069 : i32 to index
    %c0_343 = arith.constant 0 : index
    %1071 = vector.load %arg19[%1070, %c0_343] : memref<64x128xf32, #tpu.memory_space<vmem>>, vector<8x128xf32>
    tpu.vector_store %arg19[%1070, %c0_343], %1068 {strides = array<i32>} : memref<64x128xf32, #tpu.memory_space<vmem>>, vector<8x128xf32>,
    %c6_i32_344 = arith.constant 6 : i32
    %1072 = arith.truncf %1068 : vector<8x128xf32> to vector<8x128xbf16>
    %c0_345 = arith.constant 0 : index
    %c0_346 = arith.constant 0 : index
    %1073 = vector.load %arg11[%c0_345, %c0_346] : memref<128x512xbf16, #tpu.memory_space<vmem>>, vector<128x512xbf16>
    %cst_347 = arith.constant dense<0.000000e+00> : vector<8x512xf32>
    %1074 = tpu.matmul %1072, %1073, %cst_347 {dimension_numbers = #tpu.dot_dimension_numbers<[1], [0], [0], [1], [0, 0, 1, 1], [], []>} : vector<8x128xbf16>, vector<128x512xbf16>, vector<8x512xf32> -> vector<8x512xf32>
    %1075 = arith.addf %879, %1074 : vector<8x512xf32>
    %1076 = vector.extract_strided_slice %1075 {offsets = [0, 0], sizes = [8, 128], strides = [1, 1]} : vector<8x512xf32> to vector<8x128xf32>
    %1077 = arith.negf %1076 : vector<8x128xf32>
    %1078 = math.exp %1077 : vector<8x128xf32>
    %cst_348 = arith.constant 1.000000e+00 : f32
    %1079 = vector.broadcast %cst_348 : f32 to vector<8x128xf32>
    %1080 = arith.addf %1079, %1078 : vector<8x128xf32>
    %1081 = arith.divf %1079, %1080 : vector<8x128xf32>
    %1082 = vector.extract_strided_slice %1075 {offsets = [0, 128], sizes = [8, 128], strides = [1, 1]} : vector<8x512xf32> to vector<8x128xf32>
    %1083 = arith.negf %1082 : vector<8x128xf32>
    %1084 = math.exp %1083 : vector<8x128xf32>
    %cst_349 = arith.constant 1.000000e+00 : f32
    %1085 = vector.broadcast %cst_349 : f32 to vector<8x128xf32>
    %1086 = arith.addf %1085, %1084 : vector<8x128xf32>
    %1087 = arith.divf %1085, %1086 : vector<8x128xf32>
    %1088 = vector.extract_strided_slice %1075 {offsets = [0, 256], sizes = [8, 128], strides = [1, 1]} : vector<8x512xf32> to vector<8x128xf32>
    %1089 = math.tanh %1088 : vector<8x128xf32>
    %1090 = vector.extract_strided_slice %1075 {offsets = [0, 384], sizes = [8, 128], strides = [1, 1]} : vector<8x512xf32> to vector<8x128xf32>
    %1091 = arith.negf %1090 : vector<8x128xf32>
    %1092 = math.exp %1091 : vector<8x128xf32>
    %cst_350 = arith.constant 1.000000e+00 : f32
    %1093 = vector.broadcast %cst_350 : f32 to vector<8x128xf32>
    %1094 = arith.addf %1093, %1092 : vector<8x128xf32>
    %1095 = arith.divf %1093, %1094 : vector<8x128xf32>
    %1096 = arith.mulf %1087, %1066 : vector<8x128xf32>
    %1097 = arith.mulf %1081, %1089 : vector<8x128xf32>
    %1098 = arith.addf %1096, %1097 : vector<8x128xf32>
    %1099 = math.tanh %1098 : vector<8x128xf32>
    %1100 = arith.mulf %1095, %1099 : vector<8x128xf32>
    %c8_i32_351 = arith.constant 8 : i32
    %1101 = arith.muli %c6_i32_344, %c8_i32_351 : i32
    %1102 = arith.index_cast %1101 : i32 to index
    %c0_352 = arith.constant 0 : index
    %1103 = vector.load %arg19[%1102, %c0_352] : memref<64x128xf32, #tpu.memory_space<vmem>>, vector<8x128xf32>
    tpu.vector_store %arg19[%1102, %c0_352], %1100 {strides = array<i32>} : memref<64x128xf32, #tpu.memory_space<vmem>>, vector<8x128xf32>,
    %c7_i32_353 = arith.constant 7 : i32
    %1104 = arith.truncf %1100 : vector<8x128xf32> to vector<8x128xbf16>
    %c0_354 = arith.constant 0 : index
    %c0_355 = arith.constant 0 : index
    %1105 = vector.load %arg11[%c0_354, %c0_355] : memref<128x512xbf16, #tpu.memory_space<vmem>>, vector<128x512xbf16>
    %cst_356 = arith.constant dense<0.000000e+00> : vector<8x512xf32>
    %1106 = tpu.matmul %1104, %1105, %cst_356 {dimension_numbers = #tpu.dot_dimension_numbers<[1], [0], [0], [1], [0, 0, 1, 1], [], []>} : vector<8x128xbf16>, vector<128x512xbf16>, vector<8x512xf32> -> vector<8x512xf32>
    %1107 = arith.addf %879, %1106 : vector<8x512xf32>
    %1108 = vector.extract_strided_slice %1107 {offsets = [0, 0], sizes = [8, 128], strides = [1, 1]} : vector<8x512xf32> to vector<8x128xf32>
    %1109 = arith.negf %1108 : vector<8x128xf32>
    %1110 = math.exp %1109 : vector<8x128xf32>
    %cst_357 = arith.constant 1.000000e+00 : f32
    %1111 = vector.broadcast %cst_357 : f32 to vector<8x128xf32>
    %1112 = arith.addf %1111, %1110 : vector<8x128xf32>
    %1113 = arith.divf %1111, %1112 : vector<8x128xf32>
    %1114 = vector.extract_strided_slice %1107 {offsets = [0, 128], sizes = [8, 128], strides = [1, 1]} : vector<8x512xf32> to vector<8x128xf32>
    %1115 = arith.negf %1114 : vector<8x128xf32>
    %1116 = math.exp %1115 : vector<8x128xf32>
    %cst_358 = arith.constant 1.000000e+00 : f32
    %1117 = vector.broadcast %cst_358 : f32 to vector<8x128xf32>
    %1118 = arith.addf %1117, %1116 : vector<8x128xf32>
    %1119 = arith.divf %1117, %1118 : vector<8x128xf32>
    %1120 = vector.extract_strided_slice %1107 {offsets = [0, 256], sizes = [8, 128], strides = [1, 1]} : vector<8x512xf32> to vector<8x128xf32>
    %1121 = math.tanh %1120 : vector<8x128xf32>
    %1122 = vector.extract_strided_slice %1107 {offsets = [0, 384], sizes = [8, 128], strides = [1, 1]} : vector<8x512xf32> to vector<8x128xf32>
    %1123 = arith.negf %1122 : vector<8x128xf32>
    %1124 = math.exp %1123 : vector<8x128xf32>
    %cst_359 = arith.constant 1.000000e+00 : f32
    %1125 = vector.broadcast %cst_359 : f32 to vector<8x128xf32>
    %1126 = arith.addf %1125, %1124 : vector<8x128xf32>
    %1127 = arith.divf %1125, %1126 : vector<8x128xf32>
    %1128 = arith.mulf %1119, %1098 : vector<8x128xf32>
    %1129 = arith.mulf %1113, %1121 : vector<8x128xf32>
    %1130 = arith.addf %1128, %1129 : vector<8x128xf32>
    %1131 = math.tanh %1130 : vector<8x128xf32>
    %1132 = arith.mulf %1127, %1131 : vector<8x128xf32>
    %c8_i32_360 = arith.constant 8 : i32
    %1133 = arith.muli %c7_i32_353, %c8_i32_360 : i32
    %1134 = arith.index_cast %1133 : i32 to index
    %c0_361 = arith.constant 0 : index
    %1135 = vector.load %arg19[%1134, %c0_361] : memref<64x128xf32, #tpu.memory_space<vmem>>, vector<8x128xf32>
    tpu.vector_store %arg19[%1134, %c0_361], %1132 {strides = array<i32>} : memref<64x128xf32, #tpu.memory_space<vmem>>, vector<8x128xf32>,
    %c8_i32_362 = arith.constant 8 : i32
    %c0_363 = arith.constant 0 : index
    %c0_364 = arith.constant 0 : index
    %1136 = vector.load %arg19[%c0_363, %c0_364] : memref<64x128xf32, #tpu.memory_space<vmem>>, vector<64x128xf32>
    %1137 = arith.truncf %1136 : vector<64x128xf32> to vector<64x128xbf16>
    %c0_365 = arith.constant 0 : index
    %c0_366 = arith.constant 0 : index
    %1138 = vector.load %arg13[%c0_365, %c0_366] : memref<128x512xbf16, #tpu.memory_space<vmem>>, vector<128x512xbf16>
    %cst_367 = arith.constant dense<0.000000e+00> : vector<64x512xf32>
    %1139 = tpu.matmul %1137, %1138, %cst_367 {dimension_numbers = #tpu.dot_dimension_numbers<[1], [0], [0], [1], [0, 0, 1, 1], [], []>} : vector<64x128xbf16>, vector<128x512xbf16>, vector<64x512xf32> -> vector<64x512xf32>
    %c0_368 = arith.constant 0 : index
    %c0_369 = arith.constant 0 : index
    %1140 = vector.load %arg15[%c0_368, %c0_369] : memref<1x512xf32, #tpu.memory_space<vmem>>, vector<1x512xf32>
    %1141 = vector.broadcast %1140 : vector<1x512xf32> to vector<64x512xf32>
    %1142 = arith.addf %1139, %1141 : vector<64x512xf32>
    %c0_370 = arith.constant 0 : index
    %c0_371 = arith.constant 0 : index
    %1143 = vector.load %arg20[%c0_370, %c0_371] : memref<64x512xf32, #tpu.memory_space<vmem>>, vector<64x512xf32>
    tpu.vector_store %arg20[%c0_370, %c0_371], %1142 {strides = array<i32>} : memref<64x512xf32, #tpu.memory_space<vmem>>, vector<64x512xf32>,
    %c0_i32_372 = arith.constant 0 : i32
    %c8_i32_373 = arith.constant 8 : i32
    %1144 = arith.muli %c0_i32_372, %c8_i32_373 : i32
    %1145 = arith.index_cast %1144 : i32 to index
    %c0_374 = arith.constant 0 : index
    %1146 = vector.load %arg20[%1145, %c0_374] : memref<64x512xf32, #tpu.memory_space<vmem>>, vector<8x512xf32>
    %1147 = arith.truncf %0 : vector<8x128xf32> to vector<8x128xbf16>
    %c0_375 = arith.constant 0 : index
    %c0_376 = arith.constant 0 : index
    %1148 = vector.load %arg14[%c0_375, %c0_376] : memref<128x512xbf16, #tpu.memory_space<vmem>>, vector<128x512xbf16>
    %cst_377 = arith.constant dense<0.000000e+00> : vector<8x512xf32>
    %1149 = tpu.matmul %1147, %1148, %cst_377 {dimension_numbers = #tpu.dot_dimension_numbers<[1], [0], [0], [1], [0, 0, 1, 1], [], []>} : vector<8x128xbf16>, vector<128x512xbf16>, vector<8x512xf32> -> vector<8x512xf32>
    %1150 = arith.addf %1146, %1149 : vector<8x512xf32>
    %1151 = vector.extract_strided_slice %1150 {offsets = [0, 0], sizes = [8, 128], strides = [1, 1]} : vector<8x512xf32> to vector<8x128xf32>
    %1152 = arith.negf %1151 : vector<8x128xf32>
    %1153 = math.exp %1152 : vector<8x128xf32>
    %cst_378 = arith.constant 1.000000e+00 : f32
    %1154 = vector.broadcast %cst_378 : f32 to vector<8x128xf32>
    %1155 = arith.addf %1154, %1153 : vector<8x128xf32>
    %1156 = arith.divf %1154, %1155 : vector<8x128xf32>
    %1157 = vector.extract_strided_slice %1150 {offsets = [0, 128], sizes = [8, 128], strides = [1, 1]} : vector<8x512xf32> to vector<8x128xf32>
    %1158 = arith.negf %1157 : vector<8x128xf32>
    %1159 = math.exp %1158 : vector<8x128xf32>
    %cst_379 = arith.constant 1.000000e+00 : f32
    %1160 = vector.broadcast %cst_379 : f32 to vector<8x128xf32>
    %1161 = arith.addf %1160, %1159 : vector<8x128xf32>
    %1162 = arith.divf %1160, %1161 : vector<8x128xf32>
    %1163 = vector.extract_strided_slice %1150 {offsets = [0, 256], sizes = [8, 128], strides = [1, 1]} : vector<8x512xf32> to vector<8x128xf32>
    %1164 = math.tanh %1163 : vector<8x128xf32>
    %1165 = vector.extract_strided_slice %1150 {offsets = [0, 384], sizes = [8, 128], strides = [1, 1]} : vector<8x512xf32> to vector<8x128xf32>
    %1166 = arith.negf %1165 : vector<8x128xf32>
    %1167 = math.exp %1166 : vector<8x128xf32>
    %cst_380 = arith.constant 1.000000e+00 : f32
    %1168 = vector.broadcast %cst_380 : f32 to vector<8x128xf32>
    %1169 = arith.addf %1168, %1167 : vector<8x128xf32>
    %1170 = arith.divf %1168, %1169 : vector<8x128xf32>
    %1171 = arith.mulf %1162, %0 : vector<8x128xf32>
    %1172 = arith.mulf %1156, %1164 : vector<8x128xf32>
    %1173 = arith.addf %1171, %1172 : vector<8x128xf32>
    %1174 = math.tanh %1173 : vector<8x128xf32>
    %1175 = arith.mulf %1170, %1174 : vector<8x128xf32>
    %c8_i32_381 = arith.constant 8 : i32
    %1176 = arith.muli %c0_i32_372, %c8_i32_381 : i32
    %1177 = arith.index_cast %1176 : i32 to index
    %c0_382 = arith.constant 0 : index
    %1178 = vector.load %arg19[%1177, %c0_382] : memref<64x128xf32, #tpu.memory_space<vmem>>, vector<8x128xf32>
    tpu.vector_store %arg19[%1177, %c0_382], %1175 {strides = array<i32>} : memref<64x128xf32, #tpu.memory_space<vmem>>, vector<8x128xf32>,
    %c1_i32_383 = arith.constant 1 : i32
    %c8_i32_384 = arith.constant 8 : i32
    %1179 = arith.muli %c1_i32_383, %c8_i32_384 : i32
    %1180 = arith.index_cast %1179 : i32 to index
    %c0_385 = arith.constant 0 : index
    %1181 = vector.load %arg20[%1180, %c0_385] : memref<64x512xf32, #tpu.memory_space<vmem>>, vector<8x512xf32>
    %1182 = arith.truncf %1175 : vector<8x128xf32> to vector<8x128xbf16>
    %c0_386 = arith.constant 0 : index
    %c0_387 = arith.constant 0 : index
    %1183 = vector.load %arg14[%c0_386, %c0_387] : memref<128x512xbf16, #tpu.memory_space<vmem>>, vector<128x512xbf16>
    %cst_388 = arith.constant dense<0.000000e+00> : vector<8x512xf32>
    %1184 = tpu.matmul %1182, %1183, %cst_388 {dimension_numbers = #tpu.dot_dimension_numbers<[1], [0], [0], [1], [0, 0, 1, 1], [], []>} : vector<8x128xbf16>, vector<128x512xbf16>, vector<8x512xf32> -> vector<8x512xf32>
    %1185 = arith.addf %1181, %1184 : vector<8x512xf32>
    %1186 = vector.extract_strided_slice %1185 {offsets = [0, 0], sizes = [8, 128], strides = [1, 1]} : vector<8x512xf32> to vector<8x128xf32>
    %1187 = arith.negf %1186 : vector<8x128xf32>
    %1188 = math.exp %1187 : vector<8x128xf32>
    %cst_389 = arith.constant 1.000000e+00 : f32
    %1189 = vector.broadcast %cst_389 : f32 to vector<8x128xf32>
    %1190 = arith.addf %1189, %1188 : vector<8x128xf32>
    %1191 = arith.divf %1189, %1190 : vector<8x128xf32>
    %1192 = vector.extract_strided_slice %1185 {offsets = [0, 128], sizes = [8, 128], strides = [1, 1]} : vector<8x512xf32> to vector<8x128xf32>
    %1193 = arith.negf %1192 : vector<8x128xf32>
    %1194 = math.exp %1193 : vector<8x128xf32>
    %cst_390 = arith.constant 1.000000e+00 : f32
    %1195 = vector.broadcast %cst_390 : f32 to vector<8x128xf32>
    %1196 = arith.addf %1195, %1194 : vector<8x128xf32>
    %1197 = arith.divf %1195, %1196 : vector<8x128xf32>
    %1198 = vector.extract_strided_slice %1185 {offsets = [0, 256], sizes = [8, 128], strides = [1, 1]} : vector<8x512xf32> to vector<8x128xf32>
    %1199 = math.tanh %1198 : vector<8x128xf32>
    %1200 = vector.extract_strided_slice %1185 {offsets = [0, 384], sizes = [8, 128], strides = [1, 1]} : vector<8x512xf32> to vector<8x128xf32>
    %1201 = arith.negf %1200 : vector<8x128xf32>
    %1202 = math.exp %1201 : vector<8x128xf32>
    %cst_391 = arith.constant 1.000000e+00 : f32
    %1203 = vector.broadcast %cst_391 : f32 to vector<8x128xf32>
    %1204 = arith.addf %1203, %1202 : vector<8x128xf32>
    %1205 = arith.divf %1203, %1204 : vector<8x128xf32>
    %1206 = arith.mulf %1197, %1173 : vector<8x128xf32>
    %1207 = arith.mulf %1191, %1199 : vector<8x128xf32>
    %1208 = arith.addf %1206, %1207 : vector<8x128xf32>
    %1209 = math.tanh %1208 : vector<8x128xf32>
    %1210 = arith.mulf %1205, %1209 : vector<8x128xf32>
    %c8_i32_392 = arith.constant 8 : i32
    %1211 = arith.muli %c1_i32_383, %c8_i32_392 : i32
    %1212 = arith.index_cast %1211 : i32 to index
    %c0_393 = arith.constant 0 : index
    %1213 = vector.load %arg19[%1212, %c0_393] : memref<64x128xf32, #tpu.memory_space<vmem>>, vector<8x128xf32>
    tpu.vector_store %arg19[%1212, %c0_393], %1210 {strides = array<i32>} : memref<64x128xf32, #tpu.memory_space<vmem>>, vector<8x128xf32>,
    %c2_i32_394 = arith.constant 2 : i32
    %c8_i32_395 = arith.constant 8 : i32
    %1214 = arith.muli %c2_i32_394, %c8_i32_395 : i32
    %1215 = arith.index_cast %1214 : i32 to index
    %c0_396 = arith.constant 0 : index
    %1216 = vector.load %arg20[%1215, %c0_396] : memref<64x512xf32, #tpu.memory_space<vmem>>, vector<8x512xf32>
    %1217 = arith.truncf %1210 : vector<8x128xf32> to vector<8x128xbf16>
    %c0_397 = arith.constant 0 : index
    %c0_398 = arith.constant 0 : index
    %1218 = vector.load %arg14[%c0_397, %c0_398] : memref<128x512xbf16, #tpu.memory_space<vmem>>, vector<128x512xbf16>
    %cst_399 = arith.constant dense<0.000000e+00> : vector<8x512xf32>
    %1219 = tpu.matmul %1217, %1218, %cst_399 {dimension_numbers = #tpu.dot_dimension_numbers<[1], [0], [0], [1], [0, 0, 1, 1], [], []>} : vector<8x128xbf16>, vector<128x512xbf16>, vector<8x512xf32> -> vector<8x512xf32>
    %1220 = arith.addf %1216, %1219 : vector<8x512xf32>
    %1221 = vector.extract_strided_slice %1220 {offsets = [0, 0], sizes = [8, 128], strides = [1, 1]} : vector<8x512xf32> to vector<8x128xf32>
    %1222 = arith.negf %1221 : vector<8x128xf32>
    %1223 = math.exp %1222 : vector<8x128xf32>
    %cst_400 = arith.constant 1.000000e+00 : f32
    %1224 = vector.broadcast %cst_400 : f32 to vector<8x128xf32>
    %1225 = arith.addf %1224, %1223 : vector<8x128xf32>
    %1226 = arith.divf %1224, %1225 : vector<8x128xf32>
    %1227 = vector.extract_strided_slice %1220 {offsets = [0, 128], sizes = [8, 128], strides = [1, 1]} : vector<8x512xf32> to vector<8x128xf32>
    %1228 = arith.negf %1227 : vector<8x128xf32>
    %1229 = math.exp %1228 : vector<8x128xf32>
    %cst_401 = arith.constant 1.000000e+00 : f32
    %1230 = vector.broadcast %cst_401 : f32 to vector<8x128xf32>
    %1231 = arith.addf %1230, %1229 : vector<8x128xf32>
    %1232 = arith.divf %1230, %1231 : vector<8x128xf32>
    %1233 = vector.extract_strided_slice %1220 {offsets = [0, 256], sizes = [8, 128], strides = [1, 1]} : vector<8x512xf32> to vector<8x128xf32>
    %1234 = math.tanh %1233 : vector<8x128xf32>
    %1235 = vector.extract_strided_slice %1220 {offsets = [0, 384], sizes = [8, 128], strides = [1, 1]} : vector<8x512xf32> to vector<8x128xf32>
    %1236 = arith.negf %1235 : vector<8x128xf32>
    %1237 = math.exp %1236 : vector<8x128xf32>
    %cst_402 = arith.constant 1.000000e+00 : f32
    %1238 = vector.broadcast %cst_402 : f32 to vector<8x128xf32>
    %1239 = arith.addf %1238, %1237 : vector<8x128xf32>
    %1240 = arith.divf %1238, %1239 : vector<8x128xf32>
    %1241 = arith.mulf %1232, %1208 : vector<8x128xf32>
    %1242 = arith.mulf %1226, %1234 : vector<8x128xf32>
    %1243 = arith.addf %1241, %1242 : vector<8x128xf32>
    %1244 = math.tanh %1243 : vector<8x128xf32>
    %1245 = arith.mulf %1240, %1244 : vector<8x128xf32>
    %c8_i32_403 = arith.constant 8 : i32
    %1246 = arith.muli %c2_i32_394, %c8_i32_403 : i32
    %1247 = arith.index_cast %1246 : i32 to index
    %c0_404 = arith.constant 0 : index
    %1248 = vector.load %arg19[%1247, %c0_404] : memref<64x128xf32, #tpu.memory_space<vmem>>, vector<8x128xf32>
    tpu.vector_store %arg19[%1247, %c0_404], %1245 {strides = array<i32>} : memref<64x128xf32, #tpu.memory_space<vmem>>, vector<8x128xf32>,
    %c3_i32_405 = arith.constant 3 : i32
    %c8_i32_406 = arith.constant 8 : i32
    %1249 = arith.muli %c3_i32_405, %c8_i32_406 : i32
    %1250 = arith.index_cast %1249 : i32 to index
    %c0_407 = arith.constant 0 : index
    %1251 = vector.load %arg20[%1250, %c0_407] : memref<64x512xf32, #tpu.memory_space<vmem>>, vector<8x512xf32>
    %1252 = arith.truncf %1245 : vector<8x128xf32> to vector<8x128xbf16>
    %c0_408 = arith.constant 0 : index
    %c0_409 = arith.constant 0 : index
    %1253 = vector.load %arg14[%c0_408, %c0_409] : memref<128x512xbf16, #tpu.memory_space<vmem>>, vector<128x512xbf16>
    %cst_410 = arith.constant dense<0.000000e+00> : vector<8x512xf32>
    %1254 = tpu.matmul %1252, %1253, %cst_410 {dimension_numbers = #tpu.dot_dimension_numbers<[1], [0], [0], [1], [0, 0, 1, 1], [], []>} : vector<8x128xbf16>, vector<128x512xbf16>, vector<8x512xf32> -> vector<8x512xf32>
    %1255 = arith.addf %1251, %1254 : vector<8x512xf32>
    %1256 = vector.extract_strided_slice %1255 {offsets = [0, 0], sizes = [8, 128], strides = [1, 1]} : vector<8x512xf32> to vector<8x128xf32>
    %1257 = arith.negf %1256 : vector<8x128xf32>
    %1258 = math.exp %1257 : vector<8x128xf32>
    %cst_411 = arith.constant 1.000000e+00 : f32
    %1259 = vector.broadcast %cst_411 : f32 to vector<8x128xf32>
    %1260 = arith.addf %1259, %1258 : vector<8x128xf32>
    %1261 = arith.divf %1259, %1260 : vector<8x128xf32>
    %1262 = vector.extract_strided_slice %1255 {offsets = [0, 128], sizes = [8, 128], strides = [1, 1]} : vector<8x512xf32> to vector<8x128xf32>
    %1263 = arith.negf %1262 : vector<8x128xf32>
    %1264 = math.exp %1263 : vector<8x128xf32>
    %cst_412 = arith.constant 1.000000e+00 : f32
    %1265 = vector.broadcast %cst_412 : f32 to vector<8x128xf32>
    %1266 = arith.addf %1265, %1264 : vector<8x128xf32>
    %1267 = arith.divf %1265, %1266 : vector<8x128xf32>
    %1268 = vector.extract_strided_slice %1255 {offsets = [0, 256], sizes = [8, 128], strides = [1, 1]} : vector<8x512xf32> to vector<8x128xf32>
    %1269 = math.tanh %1268 : vector<8x128xf32>
    %1270 = vector.extract_strided_slice %1255 {offsets = [0, 384], sizes = [8, 128], strides = [1, 1]} : vector<8x512xf32> to vector<8x128xf32>
    %1271 = arith.negf %1270 : vector<8x128xf32>
    %1272 = math.exp %1271 : vector<8x128xf32>
    %cst_413 = arith.constant 1.000000e+00 : f32
    %1273 = vector.broadcast %cst_413 : f32 to vector<8x128xf32>
    %1274 = arith.addf %1273, %1272 : vector<8x128xf32>
    %1275 = arith.divf %1273, %1274 : vector<8x128xf32>
    %1276 = arith.mulf %1267, %1243 : vector<8x128xf32>
    %1277 = arith.mulf %1261, %1269 : vector<8x128xf32>
    %1278 = arith.addf %1276, %1277 : vector<8x128xf32>
    %1279 = math.tanh %1278 : vector<8x128xf32>
    %1280 = arith.mulf %1275, %1279 : vector<8x128xf32>
    %c8_i32_414 = arith.constant 8 : i32
    %1281 = arith.muli %c3_i32_405, %c8_i32_414 : i32
    %1282 = arith.index_cast %1281 : i32 to index
    %c0_415 = arith.constant 0 : index
    %1283 = vector.load %arg19[%1282, %c0_415] : memref<64x128xf32, #tpu.memory_space<vmem>>, vector<8x128xf32>
    tpu.vector_store %arg19[%1282, %c0_415], %1280 {strides = array<i32>} : memref<64x128xf32, #tpu.memory_space<vmem>>, vector<8x128xf32>,
    %c4_i32_416 = arith.constant 4 : i32
    %c8_i32_417 = arith.constant 8 : i32
    %1284 = arith.muli %c4_i32_416, %c8_i32_417 : i32
    %1285 = arith.index_cast %1284 : i32 to index
    %c0_418 = arith.constant 0 : index
    %1286 = vector.load %arg20[%1285, %c0_418] : memref<64x512xf32, #tpu.memory_space<vmem>>, vector<8x512xf32>
    %1287 = arith.truncf %1280 : vector<8x128xf32> to vector<8x128xbf16>
    %c0_419 = arith.constant 0 : index
    %c0_420 = arith.constant 0 : index
    %1288 = vector.load %arg14[%c0_419, %c0_420] : memref<128x512xbf16, #tpu.memory_space<vmem>>, vector<128x512xbf16>
    %cst_421 = arith.constant dense<0.000000e+00> : vector<8x512xf32>
    %1289 = tpu.matmul %1287, %1288, %cst_421 {dimension_numbers = #tpu.dot_dimension_numbers<[1], [0], [0], [1], [0, 0, 1, 1], [], []>} : vector<8x128xbf16>, vector<128x512xbf16>, vector<8x512xf32> -> vector<8x512xf32>
    %1290 = arith.addf %1286, %1289 : vector<8x512xf32>
    %1291 = vector.extract_strided_slice %1290 {offsets = [0, 0], sizes = [8, 128], strides = [1, 1]} : vector<8x512xf32> to vector<8x128xf32>
    %1292 = arith.negf %1291 : vector<8x128xf32>
    %1293 = math.exp %1292 : vector<8x128xf32>
    %cst_422 = arith.constant 1.000000e+00 : f32
    %1294 = vector.broadcast %cst_422 : f32 to vector<8x128xf32>
    %1295 = arith.addf %1294, %1293 : vector<8x128xf32>
    %1296 = arith.divf %1294, %1295 : vector<8x128xf32>
    %1297 = vector.extract_strided_slice %1290 {offsets = [0, 128], sizes = [8, 128], strides = [1, 1]} : vector<8x512xf32> to vector<8x128xf32>
    %1298 = arith.negf %1297 : vector<8x128xf32>
    %1299 = math.exp %1298 : vector<8x128xf32>
    %cst_423 = arith.constant 1.000000e+00 : f32
    %1300 = vector.broadcast %cst_423 : f32 to vector<8x128xf32>
    %1301 = arith.addf %1300, %1299 : vector<8x128xf32>
    %1302 = arith.divf %1300, %1301 : vector<8x128xf32>
    %1303 = vector.extract_strided_slice %1290 {offsets = [0, 256], sizes = [8, 128], strides = [1, 1]} : vector<8x512xf32> to vector<8x128xf32>
    %1304 = math.tanh %1303 : vector<8x128xf32>
    %1305 = vector.extract_strided_slice %1290 {offsets = [0, 384], sizes = [8, 128], strides = [1, 1]} : vector<8x512xf32> to vector<8x128xf32>
    %1306 = arith.negf %1305 : vector<8x128xf32>
    %1307 = math.exp %1306 : vector<8x128xf32>
    %cst_424 = arith.constant 1.000000e+00 : f32
    %1308 = vector.broadcast %cst_424 : f32 to vector<8x128xf32>
    %1309 = arith.addf %1308, %1307 : vector<8x128xf32>
    %1310 = arith.divf %1308, %1309 : vector<8x128xf32>
    %1311 = arith.mulf %1302, %1278 : vector<8x128xf32>
    %1312 = arith.mulf %1296, %1304 : vector<8x128xf32>
    %1313 = arith.addf %1311, %1312 : vector<8x128xf32>
    %1314 = math.tanh %1313 : vector<8x128xf32>
    %1315 = arith.mulf %1310, %1314 : vector<8x128xf32>
    %c8_i32_425 = arith.constant 8 : i32
    %1316 = arith.muli %c4_i32_416, %c8_i32_425 : i32
    %1317 = arith.index_cast %1316 : i32 to index
    %c0_426 = arith.constant 0 : index
    %1318 = vector.load %arg19[%1317, %c0_426] : memref<64x128xf32, #tpu.memory_space<vmem>>, vector<8x128xf32>
    tpu.vector_store %arg19[%1317, %c0_426], %1315 {strides = array<i32>} : memref<64x128xf32, #tpu.memory_space<vmem>>, vector<8x128xf32>,
    %c5_i32_427 = arith.constant 5 : i32
    %c8_i32_428 = arith.constant 8 : i32
    %1319 = arith.muli %c5_i32_427, %c8_i32_428 : i32
    %1320 = arith.index_cast %1319 : i32 to index
    %c0_429 = arith.constant 0 : index
    %1321 = vector.load %arg20[%1320, %c0_429] : memref<64x512xf32, #tpu.memory_space<vmem>>, vector<8x512xf32>
    %1322 = arith.truncf %1315 : vector<8x128xf32> to vector<8x128xbf16>
    %c0_430 = arith.constant 0 : index
    %c0_431 = arith.constant 0 : index
    %1323 = vector.load %arg14[%c0_430, %c0_431] : memref<128x512xbf16, #tpu.memory_space<vmem>>, vector<128x512xbf16>
    %cst_432 = arith.constant dense<0.000000e+00> : vector<8x512xf32>
    %1324 = tpu.matmul %1322, %1323, %cst_432 {dimension_numbers = #tpu.dot_dimension_numbers<[1], [0], [0], [1], [0, 0, 1, 1], [], []>} : vector<8x128xbf16>, vector<128x512xbf16>, vector<8x512xf32> -> vector<8x512xf32>
    %1325 = arith.addf %1321, %1324 : vector<8x512xf32>
    %1326 = vector.extract_strided_slice %1325 {offsets = [0, 0], sizes = [8, 128], strides = [1, 1]} : vector<8x512xf32> to vector<8x128xf32>
    %1327 = arith.negf %1326 : vector<8x128xf32>
    %1328 = math.exp %1327 : vector<8x128xf32>
    %cst_433 = arith.constant 1.000000e+00 : f32
    %1329 = vector.broadcast %cst_433 : f32 to vector<8x128xf32>
    %1330 = arith.addf %1329, %1328 : vector<8x128xf32>
    %1331 = arith.divf %1329, %1330 : vector<8x128xf32>
    %1332 = vector.extract_strided_slice %1325 {offsets = [0, 128], sizes = [8, 128], strides = [1, 1]} : vector<8x512xf32> to vector<8x128xf32>
    %1333 = arith.negf %1332 : vector<8x128xf32>
    %1334 = math.exp %1333 : vector<8x128xf32>
    %cst_434 = arith.constant 1.000000e+00 : f32
    %1335 = vector.broadcast %cst_434 : f32 to vector<8x128xf32>
    %1336 = arith.addf %1335, %1334 : vector<8x128xf32>
    %1337 = arith.divf %1335, %1336 : vector<8x128xf32>
    %1338 = vector.extract_strided_slice %1325 {offsets = [0, 256], sizes = [8, 128], strides = [1, 1]} : vector<8x512xf32> to vector<8x128xf32>
    %1339 = math.tanh %1338 : vector<8x128xf32>
    %1340 = vector.extract_strided_slice %1325 {offsets = [0, 384], sizes = [8, 128], strides = [1, 1]} : vector<8x512xf32> to vector<8x128xf32>
    %1341 = arith.negf %1340 : vector<8x128xf32>
    %1342 = math.exp %1341 : vector<8x128xf32>
    %cst_435 = arith.constant 1.000000e+00 : f32
    %1343 = vector.broadcast %cst_435 : f32 to vector<8x128xf32>
    %1344 = arith.addf %1343, %1342 : vector<8x128xf32>
    %1345 = arith.divf %1343, %1344 : vector<8x128xf32>
    %1346 = arith.mulf %1337, %1313 : vector<8x128xf32>
    %1347 = arith.mulf %1331, %1339 : vector<8x128xf32>
    %1348 = arith.addf %1346, %1347 : vector<8x128xf32>
    %1349 = math.tanh %1348 : vector<8x128xf32>
    %1350 = arith.mulf %1345, %1349 : vector<8x128xf32>
    %c8_i32_436 = arith.constant 8 : i32
    %1351 = arith.muli %c5_i32_427, %c8_i32_436 : i32
    %1352 = arith.index_cast %1351 : i32 to index
    %c0_437 = arith.constant 0 : index
    %1353 = vector.load %arg19[%1352, %c0_437] : memref<64x128xf32, #tpu.memory_space<vmem>>, vector<8x128xf32>
    tpu.vector_store %arg19[%1352, %c0_437], %1350 {strides = array<i32>} : memref<64x128xf32, #tpu.memory_space<vmem>>, vector<8x128xf32>,
    %c6_i32_438 = arith.constant 6 : i32
    %c8_i32_439 = arith.constant 8 : i32
    %1354 = arith.muli %c6_i32_438, %c8_i32_439 : i32
    %1355 = arith.index_cast %1354 : i32 to index
    %c0_440 = arith.constant 0 : index
    %1356 = vector.load %arg20[%1355, %c0_440] : memref<64x512xf32, #tpu.memory_space<vmem>>, vector<8x512xf32>
    %1357 = arith.truncf %1350 : vector<8x128xf32> to vector<8x128xbf16>
    %c0_441 = arith.constant 0 : index
    %c0_442 = arith.constant 0 : index
    %1358 = vector.load %arg14[%c0_441, %c0_442] : memref<128x512xbf16, #tpu.memory_space<vmem>>, vector<128x512xbf16>
    %cst_443 = arith.constant dense<0.000000e+00> : vector<8x512xf32>
    %1359 = tpu.matmul %1357, %1358, %cst_443 {dimension_numbers = #tpu.dot_dimension_numbers<[1], [0], [0], [1], [0, 0, 1, 1], [], []>} : vector<8x128xbf16>, vector<128x512xbf16>, vector<8x512xf32> -> vector<8x512xf32>
    %1360 = arith.addf %1356, %1359 : vector<8x512xf32>
    %1361 = vector.extract_strided_slice %1360 {offsets = [0, 0], sizes = [8, 128], strides = [1, 1]} : vector<8x512xf32> to vector<8x128xf32>
    %1362 = arith.negf %1361 : vector<8x128xf32>
    %1363 = math.exp %1362 : vector<8x128xf32>
    %cst_444 = arith.constant 1.000000e+00 : f32
    %1364 = vector.broadcast %cst_444 : f32 to vector<8x128xf32>
    %1365 = arith.addf %1364, %1363 : vector<8x128xf32>
    %1366 = arith.divf %1364, %1365 : vector<8x128xf32>
    %1367 = vector.extract_strided_slice %1360 {offsets = [0, 128], sizes = [8, 128], strides = [1, 1]} : vector<8x512xf32> to vector<8x128xf32>
    %1368 = arith.negf %1367 : vector<8x128xf32>
    %1369 = math.exp %1368 : vector<8x128xf32>
    %cst_445 = arith.constant 1.000000e+00 : f32
    %1370 = vector.broadcast %cst_445 : f32 to vector<8x128xf32>
    %1371 = arith.addf %1370, %1369 : vector<8x128xf32>
    %1372 = arith.divf %1370, %1371 : vector<8x128xf32>
    %1373 = vector.extract_strided_slice %1360 {offsets = [0, 256], sizes = [8, 128], strides = [1, 1]} : vector<8x512xf32> to vector<8x128xf32>
    %1374 = math.tanh %1373 : vector<8x128xf32>
    %1375 = vector.extract_strided_slice %1360 {offsets = [0, 384], sizes = [8, 128], strides = [1, 1]} : vector<8x512xf32> to vector<8x128xf32>
    %1376 = arith.negf %1375 : vector<8x128xf32>
    %1377 = math.exp %1376 : vector<8x128xf32>
    %cst_446 = arith.constant 1.000000e+00 : f32
    %1378 = vector.broadcast %cst_446 : f32 to vector<8x128xf32>
    %1379 = arith.addf %1378, %1377 : vector<8x128xf32>
    %1380 = arith.divf %1378, %1379 : vector<8x128xf32>
    %1381 = arith.mulf %1372, %1348 : vector<8x128xf32>
    %1382 = arith.mulf %1366, %1374 : vector<8x128xf32>
    %1383 = arith.addf %1381, %1382 : vector<8x128xf32>
    %1384 = math.tanh %1383 : vector<8x128xf32>
    %1385 = arith.mulf %1380, %1384 : vector<8x128xf32>
    %c8_i32_447 = arith.constant 8 : i32
    %1386 = arith.muli %c6_i32_438, %c8_i32_447 : i32
    %1387 = arith.index_cast %1386 : i32 to index
    %c0_448 = arith.constant 0 : index
    %1388 = vector.load %arg19[%1387, %c0_448] : memref<64x128xf32, #tpu.memory_space<vmem>>, vector<8x128xf32>
    tpu.vector_store %arg19[%1387, %c0_448], %1385 {strides = array<i32>} : memref<64x128xf32, #tpu.memory_space<vmem>>, vector<8x128xf32>,
    %c7_i32_449 = arith.constant 7 : i32
    %c8_i32_450 = arith.constant 8 : i32
    %1389 = arith.muli %c7_i32_449, %c8_i32_450 : i32
    %1390 = arith.index_cast %1389 : i32 to index
    %c0_451 = arith.constant 0 : index
    %1391 = vector.load %arg20[%1390, %c0_451] : memref<64x512xf32, #tpu.memory_space<vmem>>, vector<8x512xf32>
    %1392 = arith.truncf %1385 : vector<8x128xf32> to vector<8x128xbf16>
    %c0_452 = arith.constant 0 : index
    %c0_453 = arith.constant 0 : index
    %1393 = vector.load %arg14[%c0_452, %c0_453] : memref<128x512xbf16, #tpu.memory_space<vmem>>, vector<128x512xbf16>
    %cst_454 = arith.constant dense<0.000000e+00> : vector<8x512xf32>
    %1394 = tpu.matmul %1392, %1393, %cst_454 {dimension_numbers = #tpu.dot_dimension_numbers<[1], [0], [0], [1], [0, 0, 1, 1], [], []>} : vector<8x128xbf16>, vector<128x512xbf16>, vector<8x512xf32> -> vector<8x512xf32>
    %1395 = arith.addf %1391, %1394 : vector<8x512xf32>
    %1396 = vector.extract_strided_slice %1395 {offsets = [0, 0], sizes = [8, 128], strides = [1, 1]} : vector<8x512xf32> to vector<8x128xf32>
    %1397 = arith.negf %1396 : vector<8x128xf32>
    %1398 = math.exp %1397 : vector<8x128xf32>
    %cst_455 = arith.constant 1.000000e+00 : f32
    %1399 = vector.broadcast %cst_455 : f32 to vector<8x128xf32>
    %1400 = arith.addf %1399, %1398 : vector<8x128xf32>
    %1401 = arith.divf %1399, %1400 : vector<8x128xf32>
    %1402 = vector.extract_strided_slice %1395 {offsets = [0, 128], sizes = [8, 128], strides = [1, 1]} : vector<8x512xf32> to vector<8x128xf32>
    %1403 = arith.negf %1402 : vector<8x128xf32>
    %1404 = math.exp %1403 : vector<8x128xf32>
    %cst_456 = arith.constant 1.000000e+00 : f32
    %1405 = vector.broadcast %cst_456 : f32 to vector<8x128xf32>
    %1406 = arith.addf %1405, %1404 : vector<8x128xf32>
    %1407 = arith.divf %1405, %1406 : vector<8x128xf32>
    %1408 = vector.extract_strided_slice %1395 {offsets = [0, 256], sizes = [8, 128], strides = [1, 1]} : vector<8x512xf32> to vector<8x128xf32>
    %1409 = math.tanh %1408 : vector<8x128xf32>
    %1410 = vector.extract_strided_slice %1395 {offsets = [0, 384], sizes = [8, 128], strides = [1, 1]} : vector<8x512xf32> to vector<8x128xf32>
    %1411 = arith.negf %1410 : vector<8x128xf32>
    %1412 = math.exp %1411 : vector<8x128xf32>
    %cst_457 = arith.constant 1.000000e+00 : f32
    %1413 = vector.broadcast %cst_457 : f32 to vector<8x128xf32>
    %1414 = arith.addf %1413, %1412 : vector<8x128xf32>
    %1415 = arith.divf %1413, %1414 : vector<8x128xf32>
    %1416 = arith.mulf %1407, %1383 : vector<8x128xf32>
    %1417 = arith.mulf %1401, %1409 : vector<8x128xf32>
    %1418 = arith.addf %1416, %1417 : vector<8x128xf32>
    %1419 = math.tanh %1418 : vector<8x128xf32>
    %1420 = arith.mulf %1415, %1419 : vector<8x128xf32>
    %c8_i32_458 = arith.constant 8 : i32
    %1421 = arith.muli %c7_i32_449, %c8_i32_458 : i32
    %1422 = arith.index_cast %1421 : i32 to index
    %c0_459 = arith.constant 0 : index
    %1423 = vector.load %arg19[%1422, %c0_459] : memref<64x128xf32, #tpu.memory_space<vmem>>, vector<8x128xf32>
    tpu.vector_store %arg19[%1422, %c0_459], %1420 {strides = array<i32>} : memref<64x128xf32, #tpu.memory_space<vmem>>, vector<8x128xf32>,
    %c8_i32_460 = arith.constant 8 : i32
    %c0_461 = arith.constant 0 : index
    %c0_462 = arith.constant 0 : index
    %1424 = vector.load %arg19[%c0_461, %c0_462] : memref<64x128xf32, #tpu.memory_space<vmem>>, vector<64x128xf32>
    %1425 = arith.truncf %1424 : vector<64x128xf32> to vector<64x128xbf16>
    %c0_463 = arith.constant 0 : index
    %c0_464 = arith.constant 0 : index
    %1426 = vector.load %arg16[%c0_463, %c0_464] : memref<128x128xbf16, #tpu.memory_space<vmem>>, vector<128x128xbf16>
    %cst_465 = arith.constant dense<0.000000e+00> : vector<64x128xf32>
    %1427 = tpu.matmul %1425, %1426, %cst_465 {dimension_numbers = #tpu.dot_dimension_numbers<[1], [0], [0], [1], [0, 0, 1, 1], [], []>} : vector<64x128xbf16>, vector<128x128xbf16>, vector<64x128xf32> -> vector<64x128xf32>
    %c0_466 = arith.constant 0 : index
    %c0_467 = arith.constant 0 : index
    %1428 = vector.load %arg17[%c0_466, %c0_467] : memref<1x128xf32, #tpu.memory_space<vmem>>, vector<1x128xf32>
    %1429 = vector.broadcast %1428 : vector<1x128xf32> to vector<64x128xf32>
    %1430 = arith.addf %1427, %1429 : vector<64x128xf32>
    %cst_468 = arith.constant dense<0xFF800000> : vector<64xf32>
    %1431 = vector.multi_reduction <maximumf>, %1430, %cst_468 [1] : vector<64x128xf32> to vector<64xf32>
    %1432 = vector.shape_cast %1431 : vector<64xf32> to vector<64x1xf32>
    %1433 = vector.broadcast %1432 : vector<64x1xf32> to vector<64x128xf32>
    %1434 = arith.subf %1430, %1433 : vector<64x128xf32>
    %1435 = math.exp %1434 : vector<64x128xf32>
    %cst_469 = arith.constant dense<0.000000e+00> : vector<64xf32>
    %1436 = vector.multi_reduction <add>, %1435, %cst_469 [1] : vector<64x128xf32> to vector<64xf32>
    %1437 = vector.shape_cast %1436 : vector<64xf32> to vector<64x1xf32>
    %1438 = math.log %1437 : vector<64x1xf32>
    %1439 = vector.broadcast %1438 : vector<64x1xf32> to vector<64x128xf32>
    %1440 = arith.subf %1434, %1439 : vector<64x128xf32>
    %c0_470 = arith.constant 0 : index
    %c0_471 = arith.constant 0 : index
    %1441 = vector.load %arg18[%c0_470, %c0_471] : memref<64x128xf32, #tpu.memory_space<vmem>>, vector<64x128xf32>
    tpu.vector_store %arg18[%c0_470, %c0_471], %1440 {strides = array<i32>} : memref<64x128xf32, #tpu.memory_space<vmem>>, vector<64x128xf32>,
    return
  }
}

</mosaic_0001>

<bundles_post_ra>
// kernel: model_forward.1
= control target key start
LH: loop header
LB: loop body
LE: loop exit
PB: predicated region body
PF: predicated region fallthrough
CT: control target
= control target key end

     0   :  { %v22164_v1 = vmov 0   ;;  %s22142_s1 = inlined_call_operand.vmem [shape: bf16[128,512], index: 1, kind: input, shape index: {}]   ;;  %s22143_s2 = inlined_call_operand.vmem [shape: bf16[128,512], index: 2, kind: input, shape index: {}]   ;;  %s22144_s0 = inlined_call_operand.vmem [shape: bf16[64,128], index: 0, kind: input, shape index: {}]   ;;  %s22145_s3 = inlined_call_operand.vmem [shape: f32[1,512], index: 3, kind: input, shape index: {}]   ;;  %s22146_s4 = inlined_call_operand.vmem [shape: bf16[128,512], index: 4, kind: input, shape index: {}]   ;;  %s22147_s5 = inlined_call_operand.vmem [shape: bf16[128,512], index: 5, kind: input, shape index: {}]   ;;  %s22148_s6 = inlined_call_operand.vmem [shape: f32[1,512], index: 6, kind: input, shape index: {}]   ;;  %s22149_s7 = inlined_call_operand.vmem [shape: bf16[128,512], index: 7, kind: input, shape index: {}]   ;;  %s22150_s8 = inlined_call_operand.vmem [shape: bf16[128,512], index: 8, kind: input, shape index: {}]   ;;  %s22151_s9 = inlined_call_operand.vmem [shape: f32[1,512], index: 9, kind: input, shape index: {}]   ;;  %s22152_s10 = inlined_call_operand.vmem [shape: bf16[128,512], index: 10, kind: input, shape index: {}]   ;;  %s22153_s11 = inlined_call_operand.vmem [shape: bf16[128,512], index: 11, kind: input, shape index: {}]   ;;  %s22154_s12 = inlined_call_operand.vmem [shape: f32[1,512], index: 12, kind: input, shape index: {}]   ;;  %s22155_s13 = inlined_call_operand.vmem [shape: bf16[128,512], index: 13, kind: input, shape index: {}]   ;;  %s22156_s14 = inlined_call_operand.vmem [shape: bf16[128,512], index: 14, kind: input, shape index: {}]   ;;  %s22157_s15 = inlined_call_operand.vmem [shape: f32[1,512], index: 15, kind: input, shape index: {}]   ;;  %s22158_s16 = inlined_call_operand.vmem [shape: bf16[128,128], index: 16, kind: input, shape index: {}]   ;;  %s22159_s17 = inlined_call_operand.vmem [shape: f32[1,128], index: 17, kind: input, shape index: {}]   ;;  %s22160_s18 = inlined_call_operand.vmem [shape: f32[64,128], index: 18, kind: output, shape index: {}]  }
   0x1   :  { %22174 = sst [smem:[#allocation31_spill]] %s22142_s1  ;;  %338 = vmatprep.mubr.bf16.mxu1 %v22164_v1  ;;  %712 = vmatprep.mubr.bf16.mxu0 %v22164_v1 }
   0x2   :  { %22175 = sst [smem:[#allocation32_spill]] %s22143_s2  ;;  %s22177_s29 = sld [smem:[#allocation31_spill]] }
   0x3   :  { %22176 = sst [smem:[#allocation33_spill]] %s22144_s0  ;;  %s22178_s20 = sld [smem:[#allocation32_spill]] }
   0x4   :  { %s22179_s1 = sld [smem:[#allocation33_spill]] }
   0x8   :  { %v16135_v0 = vld [vmem:[%s22177_s29 + $0x4] ss:$16 sps:$4 sm:$0xff]   ;;  %v16137_v2 = vld [vmem:[%s22177_s29] ss:$16 sps:$4 sm:$0xff]   ;;  %v16186_v32 = vld [vmem:[%s22177_s29 + $0xc] ss:$16 sps:$4 sm:$0xff]  }
   0x9   :  { %306 = vmatprep.subr.bf16.mxu1 %v16135_v0  ;;  %v17670_v3 = vld [vmem:[%s22178_s20 + $0x4] ss:$16 sps:$4 sm:$0xff]   ;;  %v17675_v4 = vld [vmem:[%s22178_s20] ss:$16 sps:$4 sm:$0xff]   ;;  %v16184_v35 = vld [vmem:[%s22177_s29 + $0x8] ss:$16 sps:$4 sm:$0xff]  }
   0xa   :  { %307 = vmatpush1.bf16.msra.mxu1 %v16137_v2  ;;  %v16141_v5 = vld [vmem:[%s22177_s29 + $0x24] ss:$16 sps:$4 sm:$0xff]   ;;  %v16143_v6 = vld [vmem:[%s22177_s29 + $0x20] ss:$16 sps:$4 sm:$0xff]   ;;  %680 = vmatprep.subr.bf16.mxu0 %v17670_v3  ;;  %v16189_v36 = vld [vmem:[%s22177_s29 + $0x2c] ss:$16 sps:$4 sm:$0xff]  }
   0xb   :  { %v17687_v7 = vld [vmem:[%s22178_s20 + $0x24] ss:$16 sps:$4 sm:$0xff]   ;;  %681 = vmatpush1.bf16.msra.mxu0 %v17675_v4  ;;  %308 = vmatprep.subr.bf16.mxu1 %v16141_v5  ;;  %v17693_v8 = vld [vmem:[%s22178_s20 + $0x20] ss:$16 sps:$4 sm:$0xff]   ;;  %v16187_v37 = vld [vmem:[%s22177_s29 + $0x28] ss:$16 sps:$4 sm:$0xff]  }
   0xc   :  { %682 = vmatprep.subr.bf16.mxu0 %v17687_v7  ;;  %v16147_v9 = vld [vmem:[%s22177_s29 + $0x44] ss:$16 sps:$4 sm:$0xff]   ;;  %v16149_v10 = vld [vmem:[%s22177_s29 + $0x40] ss:$16 sps:$4 sm:$0xff]   ;;  %v16193_v38 = vld [vmem:[%s22177_s29 + $0x4c] ss:$16 sps:$4 sm:$0xff]  }
   0xd   :  { %v17705_v11 = vld [vmem:[%s22178_s20 + $0x44] ss:$16 sps:$4 sm:$0xff]   ;;  %v17714_v13 = vld [vmem:[%s22178_s20 + $0x40] ss:$16 sps:$4 sm:$0xff]   ;;  %v16190_v39 = vld [vmem:[%s22179_s1 + $0x8] sm:$0xff]  }
   0xe   :  { %309 = vmatpush1.bf16.msra.mxu1 %v16143_v6  ;;  %v16153_v12 = vld [vmem:[%s22177_s29 + $0x64] ss:$16 sps:$4 sm:$0xff]   ;;  %v16155_v15 = vld [vmem:[%s22177_s29 + $0x60] ss:$16 sps:$4 sm:$0xff]   ;;  %v16191_v40 = vld [vmem:[%s22177_s29 + $0x48] ss:$16 sps:$4 sm:$0xff]  }
   0xf   :  { %310 = vmatprep.subr.bf16.mxu1 %v16147_v9  ;;  %683 = vmatpush1.bf16.msra.mxu0 %v17693_v8  ;;  %v17720_v14 = vld [vmem:[%s22178_s20 + $0x64] ss:$16 sps:$4 sm:$0xff]   ;;  %v17732_v17 = vld [vmem:[%s22178_s20 + $0x60] ss:$16 sps:$4 sm:$0xff]   ;;  %v16196_v41 = vld [vmem:[%s22177_s29 + $0x6c] ss:$16 sps:$4 sm:$0xff]   ;;  %v102_v9 = vlaneseq }
  0x10   :  { %684 = vmatprep.subr.bf16.mxu0 %v17705_v11  ;;  %v16159_v16 = vld [vmem:[%s22177_s29 + $0x84] ss:$16 sps:$4 sm:$0xff]   ;;  %v16161_v19 = vld [vmem:[%s22177_s29 + $0x80] ss:$16 sps:$4 sm:$0xff]   ;;  %v16194_v42 = vld [vmem:[%s22177_s29 + $0x68] ss:$16 sps:$4 sm:$0xff]  }
  0x11   :  { %v17738_v18 = vld [vmem:[%s22178_s20 + $0x84] ss:$16 sps:$4 sm:$0xff]   ;;  %v17750_v21 = vld [vmem:[%s22178_s20 + $0x80] ss:$16 sps:$4 sm:$0xff]   ;;  %v16200_v43 = vld [vmem:[%s22177_s29 + $0x8c] ss:$16 sps:$4 sm:$0xff]  }
  0x12   :  { %311 = vmatpush1.bf16.msra.mxu1 %v16149_v10  ;;  %v16165_v20 = vld [vmem:[%s22177_s29 + $0xa4] ss:$16 sps:$4 sm:$0xff]   ;;  %v16167_v23 = vld [vmem:[%s22177_s29 + $0xa0] ss:$16 sps:$4 sm:$0xff]   ;;  %v16198_v45 = vld [vmem:[%s22177_s29 + $0x88] ss:$16 sps:$4 sm:$0xff]  }
  0x13   :  { %312 = vmatprep.subr.bf16.mxu1 %v16153_v12  ;;  %685 = vmatpush1.bf16.msra.mxu0 %v17714_v13  ;;  %v17756_v22 = vld [vmem:[%s22178_s20 + $0xa4] ss:$16 sps:$4 sm:$0xff]   ;;  %v17768_v25 = vld [vmem:[%s22178_s20 + $0xa0] ss:$16 sps:$4 sm:$0xff]   ;;  %v16203_v46 = vld [vmem:[%s22177_s29 + $0xac] ss:$16 sps:$4 sm:$0xff]  }
  0x14   :  { %686 = vmatprep.subr.bf16.mxu0 %v17720_v14  ;;  %v16171_v24 = vld [vmem:[%s22177_s29 + $0xc4] ss:$16 sps:$4 sm:$0xff]   ;;  %v16173_v27 = vld [vmem:[%s22177_s29 + $0xc0] ss:$16 sps:$4 sm:$0xff]   ;;  %v16201_v47 = vld [vmem:[%s22177_s29 + $0xa8] ss:$16 sps:$4 sm:$0xff]  }
  0x15   :  { %v17774_v26 = vld [vmem:[%s22178_s20 + $0xc4] ss:$16 sps:$4 sm:$0xff]   ;;  %v17786_v29 = vld [vmem:[%s22178_s20 + $0xc0] ss:$16 sps:$4 sm:$0xff]   ;;  %v16207_v48 = vld [vmem:[%s22177_s29 + $0xcc] ss:$16 sps:$4 sm:$0xff]  }
  0x16   :  { %313 = vmatpush1.bf16.msra.mxu1 %v16155_v15  ;;  %v16177_v28 = vld [vmem:[%s22177_s29 + $0xe4] ss:$16 sps:$4 sm:$0xff]   ;;  %v16179_v31 = vld [vmem:[%s22177_s29 + $0xe0] ss:$16 sps:$4 sm:$0xff]   ;;  %v16204_v49 = vld [vmem:[%s22179_s1 + $0x18] sm:$0xff]   ;;  %v103_v10 = vshrl.u32 %v102_v9, 7 }
  0x17   :  { %314 = vmatprep.subr.bf16.mxu1 %v16159_v16  ;;  %687 = vmatpush1.bf16.msra.mxu0 %v17732_v17  ;;  %v17792_v30 = vld [vmem:[%s22178_s20 + $0xe4] ss:$16 sps:$4 sm:$0xff]   ;;  %v17804_v33 = vld [vmem:[%s22178_s20 + $0xe0] ss:$16 sps:$4 sm:$0xff]   ;;  %v16205_v50 = vld [vmem:[%s22177_s29 + $0xc8] ss:$16 sps:$4 sm:$0xff]  }
  0x18   :  { %688 = vmatprep.subr.bf16.mxu0 %v17738_v18  ;;  %v17810_v34 = vld [vmem:[%s22179_s1] sm:$0xff]   ;;  %v16197_v44 = vld [vmem:[%s22179_s1 + $0x10] sm:$0xff]   ;;  %v16210_v51 = vld [vmem:[%s22177_s29 + $0xec] ss:$16 sps:$4 sm:$0xff]   ;;  %v18011_v12 = vsub.s32 0, %v103_v10  ;;  %v18016_v16 = vsub.s32 1, %v103_v10 }
  0x19   :  { %v16208_v52 = vld [vmem:[%s22177_s29 + $0xe8] ss:$16 sps:$4 sm:$0xff]   ;;  %v17888_v53 = vld [vmem:[%s22178_s20 + $0xc] ss:$16 sps:$4 sm:$0xff]   ;;  %v100_v15 = vld [vmem:[%s22145_s3] sm:$0xf] }
  0x1a   :  { %315 = vmatpush1.bf16.msra.mxu1 %v16161_v19  ;;  %v17897_v54 = vld [vmem:[%s22178_s20 + $0x8] ss:$16 sps:$4 sm:$0xff]   ;;  %v17903_v55 = vld [vmem:[%s22178_s20 + $0x2c] ss:$16 sps:$4 sm:$0xff]   ;;  %22180 = vst [vmem:[#allocation4_spill] sm:$0xff] %v18011_v12  ;;  %22181 = vst [vmem:[#allocation5_spill] sm:$0xff] %v18016_v16  ;;  %v105_v19 = vrot.slane %v100_v15, %v18011_v12 }
  0x1b   :  { %316 = vmatprep.subr.bf16.mxu1 %v16165_v20  ;;  %689 = vmatpush1.bf16.msra.mxu0 %v17750_v21  ;;  %v17912_v56 = vld [vmem:[%s22178_s20 + $0x28] ss:$16 sps:$4 sm:$0xff]   ;;  %v17919_v57 = vld [vmem:[%s22178_s20 + $0x4c] ss:$16 sps:$4 sm:$0xff]   ;;  %v109_v20 = vrot.slane %v100_v15, %v18016_v16 }
  0x1c   :  { %690 = vmatprep.subr.bf16.mxu0 %v17756_v22  ;;  %v17925_v58 = vld [vmem:[%s22178_s20 + $0x48] ss:$16 sps:$4 sm:$0xff]   ;;  %v17931_v59 = vld [vmem:[%s22178_s20 + $0x6c] ss:$16 sps:$4 sm:$0xff]  }
  0x1d   :  { %v17937_v60 = vld [vmem:[%s22178_s20 + $0x68] ss:$16 sps:$4 sm:$0xff]   ;;  %v17944_v61 = vld [vmem:[%s22178_s20 + $0x8c] ss:$16 sps:$4 sm:$0xff]  }
  0x1e   :  { %317 = vmatpush1.bf16.msra.mxu1 %v16167_v23  ;;  %v17950_v62 = vld [vmem:[%s22178_s20 + $0x88] ss:$16 sps:$4 sm:$0xff]   ;;  %v17956_v63 = vld [vmem:[%s22178_s20 + $0xac] ss:$16 sps:$4 sm:$0xff]  }
  0x1f   :  { %318 = vmatprep.subr.bf16.mxu1 %v16171_v24  ;;  %691 = vmatpush1.bf16.msra.mxu0 %v17768_v25  ;;  %v17962_v0 = vld [vmem:[%s22178_s20 + $0xa8] ss:$16 sps:$4 sm:$0xff]   ;;  %v17969_v2 = vld [vmem:[%s22178_s20 + $0xcc] ss:$16 sps:$4 sm:$0xff]  }
  0x20   :  { %692 = vmatprep.subr.bf16.mxu0 %v17774_v26  ;;  %v17981_v5 = vld [vmem:[%s22178_s20 + $0xec] ss:$16 sps:$4 sm:$0xff]   ;;  %v17987_v6 = vld [vmem:[%s22178_s20 + $0xe8] ss:$16 sps:$4 sm:$0xff]  }
  0x22   :  { %319 = vmatpush1.bf16.msra.mxu1 %v16173_v27 }
  0x23   :  { %320 = vmatprep.subr.bf16.mxu1 %v16177_v28  ;;  %693 = vmatpush1.bf16.msra.mxu0 %v17786_v29 }
  0x24   :  { %694 = vmatprep.subr.bf16.mxu0 %v17792_v30 }
  0x26   :  { %321 = vmatpush1.bf16.msra.mxu1 %v16179_v31 }
  0x27   :  { %379 = vmatprep.subr.bf16.mxu1 %v16186_v32  ;;  %695 = vmatpush1.bf16.msra.mxu0 %v17804_v33 }
  0x28   :  { %988 = vmatprep.subr.bf16.mxu0 %v17670_v3 }
  0x29   :  { %339 = vmatmul.mubr.bf16.vlgmr.msra.gmra.mrb[0].mxu1 %v17810_v34 }
  0x2a   :  { %380 = vmatpush1.bf16.msra.mxu1 %v16184_v35  ;;  %348 = vmatprep.mubr.bf16.mxu1 %v22164_v1 }
  0x2b   :  { %713 = vmatmul.mubr.bf16.vlgmr.msra.gmra.mrb[0].mxu0 %v22164_v1  ;;  %381 = vmatprep.subr.bf16.mxu1 %v16189_v36 }
  0x2c   :  { %989 = vmatpush1.bf16.msra.mxu0 %v17675_v4  ;;  %1020 = vmatprep.mubr.bf16.mxu0 %v22164_v1 }
  0x2d   :  { %990 = vmatprep.subr.bf16.mxu0 %v17687_v7 }
  0x2e   :  { %382 = vmatpush1.bf16.msra.mxu1 %v16187_v37 }
  0x2f   :  { %383 = vmatprep.subr.bf16.mxu1 %v16193_v38 }
  0x30   :  { %991 = vmatpush1.bf16.msra.mxu0 %v17693_v8 }
  0x31   :  { %349 = vmatmul.mubr.bf16.gmra.mrb[4].mxu1 %v16190_v39  ;;  %992 = vmatprep.subr.bf16.mxu0 %v17705_v11 }
  0x32   :  { %384 = vmatpush1.bf16.msra.mxu1 %v16191_v40  ;;  %358 = vmatprep.mubr.bf16.mxu1 %v22164_v1 }
  0x33   :  { %385 = vmatprep.subr.bf16.mxu1 %v16196_v41 }
  0x34   :  { %993 = vmatpush1.bf16.msra.mxu0 %v17714_v13 }
  0x35   :  { %994 = vmatprep.subr.bf16.mxu0 %v17720_v14 }
  0x36   :  { %386 = vmatpush1.bf16.msra.mxu1 %v16194_v42 }
  0x37   :  { %387 = vmatprep.subr.bf16.mxu1 %v16200_v43 }
  0x38   :  { %995 = vmatpush1.bf16.msra.mxu0 %v17732_v17 }
  0x39   :  { %359 = vmatmul.mubr.bf16.gmra.mrb[8].mxu1 %v16197_v44  ;;  %996 = vmatprep.subr.bf16.mxu0 %v17738_v18 }
  0x3a   :  { %388 = vmatpush1.bf16.msra.mxu1 %v16198_v45  ;;  %368 = vmatprep.mubr.bf16.mxu1 %v22164_v1 }
  0x3b   :  { %389 = vmatprep.subr.bf16.mxu1 %v16203_v46 }
  0x3c   :  { %997 = vmatpush1.bf16.msra.mxu0 %v17750_v21 }
  0x3d   :  { %998 = vmatprep.subr.bf16.mxu0 %v17756_v22 }
  0x3e   :  { %390 = vmatpush1.bf16.msra.mxu1 %v16201_v47 }
  0x3f   :  { %391 = vmatprep.subr.bf16.mxu1 %v16207_v48 }
  0x40   :  { %999 = vmatpush1.bf16.msra.mxu0 %v17768_v25 }
  0x41   :  { %369 = vmatmul.mubr.bf16.gmra.mrb[12].mxu1 %v16204_v49  ;;  %1000 = vmatprep.subr.bf16.mxu0 %v17774_v26 }
  0x42   :  { %392 = vmatpush1.bf16.msra.mxu1 %v16205_v50  ;;  %411 = vmatprep.mubr.bf16.mxu1 %v22164_v1 }
  0x43   :  { %393 = vmatprep.subr.bf16.mxu1 %v16210_v51 }
  0x44   :  { %1001 = vmatpush1.bf16.msra.mxu0 %v17786_v29 }
  0x45   :  { %1002 = vmatprep.subr.bf16.mxu0 %v17792_v30 }
  0x46   :  { %394 = vmatpush1.bf16.msra.mxu1 %v16208_v52 }
  0x47   :  { %721 = vmatprep.subr.bf16.mxu1 %v17888_v53 }
  0x48   :  { %1003 = vmatpush1.bf16.msra.mxu0 %v17804_v33 }
  0x49   :  { %412 = vmatmul.mubr.bf16.vlgmr.msra.gmra.mrb[16].mxu1 %v17810_v34  ;;  %1296 = vmatprep.subr.bf16.mxu0 %v17670_v3  ;;  %v17975_v3 = vld [vmem:[%s22178_s20 + $0xc8] ss:$16 sps:$4 sm:$0xff]  }
  0x4a   :  { %722 = vmatpush1.bf16.msra.mxu1 %v17897_v54  ;;  %421 = vmatprep.mubr.bf16.mxu1 %v22164_v1 }
  0x4b   :  { %723 = vmatprep.subr.bf16.mxu1 %v17903_v55 }
  0x4e   :  { %724 = vmatpush1.bf16.msra.mxu1 %v17912_v56 }
  0x4f   :  { %725 = vmatprep.subr.bf16.mxu1 %v17919_v57 }
  0x51   :  { %422 = vmatmul.mubr.bf16.gmra.mrb[20].mxu1 %v16190_v39 }
  0x52   :  { %726 = vmatpush1.bf16.msra.mxu1 %v17925_v58  ;;  %431 = vmatprep.mubr.bf16.mxu1 %v22164_v1 }
  0x53   :  { %727 = vmatprep.subr.bf16.mxu1 %v17931_v59 }
  0x56   :  { %728 = vmatpush1.bf16.msra.mxu1 %v17937_v60 }
  0x57   :  { %729 = vmatprep.subr.bf16.mxu1 %v17944_v61 }
  0x59   :  { %432 = vmatmul.mubr.bf16.gmra.mrb[24].mxu1 %v16197_v44 }
  0x5a   :  { %730 = vmatpush1.bf16.msra.mxu1 %v17950_v62  ;;  %441 = vmatprep.mubr.bf16.mxu1 %v22164_v1 }
  0x5b   :  { %731 = vmatprep.subr.bf16.mxu1 %v17956_v63 }
  0x5e   :  { %732 = vmatpush1.bf16.msra.mxu1 %v17962_v0 }
  0x5f   :  { %733 = vmatprep.subr.bf16.mxu1 %v17969_v2 }
  0x61   :  { %442 = vmatmul.mubr.bf16.gmra.mrb[28].mxu1 %v16204_v49 }
  0x62   :  { %734 = vmatpush1.bf16.msra.mxu1 %v17975_v3  ;;  %753 = vmatprep.mubr.bf16.mxu1 %v22164_v1 }
  0x63   :  { %735 = vmatprep.subr.bf16.mxu1 %v17981_v5 }
  0x66   :  { %736 = vmatpush1.bf16.msra.mxu1 %v17987_v6 }
  0x67   :  { %1029 = vmatprep.subr.bf16.mxu1 %v17888_v53 }
  0x69   :  { %754 = vmatmul.mubr.bf16.vlgmr.msra.gmra.mrb[32].mxu1 %v22164_v1 }
  0x6a   :  { %1030 = vmatpush1.bf16.msra.mxu1 %v17897_v54  ;;  %1061 = vmatprep.mubr.bf16.mxu1 %v22164_v1 }
  0x6b   :  { %1031 = vmatprep.subr.bf16.mxu1 %v17903_v55 }
  0x6e   :  { %1032 = vmatpush1.bf16.msra.mxu1 %v17912_v56 }
  0x6f   :  { %1033 = vmatprep.subr.bf16.mxu1 %v17919_v57 }
  0x72   :  { %1034 = vmatpush1.bf16.msra.mxu1 %v17925_v58 }
  0x73   :  { %1035 = vmatprep.subr.bf16.mxu1 %v17931_v59 }
  0x76   :  { %1036 = vmatpush1.bf16.msra.mxu1 %v17937_v60 }
  0x77   :  { %1037 = vmatprep.subr.bf16.mxu1 %v17944_v61 }
  0x7a   :  { %1038 = vmatpush1.bf16.msra.mxu1 %v17950_v62 }
  0x7b   :  { %1039 = vmatprep.subr.bf16.mxu1 %v17956_v63 }
  0x7e   :  { %1040 = vmatpush1.bf16.msra.mxu1 %v17962_v0 }
  0x7f   :  { %1041 = vmatprep.subr.bf16.mxu1 %v17969_v2 }
  0x82   :  { %1042 = vmatpush1.bf16.msra.mxu1 %v17975_v3 }
  0x83   :  { %1043 = vmatprep.subr.bf16.mxu1 %v17981_v5 }
  0x86   :  { %1044 = vmatpush1.bf16.msra.mxu1 %v17987_v6 }
  0x87   :  { %1337 = vmatprep.subr.bf16.mxu1 %v17888_v53 }
  0xfc   :  { %v340_v23 = vpop.f32.mrb[0].mxu1 }
  0xfd   :  { %v341_v24 = vadd.f32 %v340_v23, %v105_v19  ;;  %v342_v27 = vpop.f32.mrb[1].mxu1 }
  0xfe   :  { %v343_v28 = vadd.f32 %v342_v27, %v109_v20  ;;  %v344_v31 = vpop.f32.mrb[2].mxu1  ;;  %v714_v32 = vpop.f32.mrb[0].mxu0 }
  0xff   :  { %v18020_v34 = vadd.f32 %v344_v31, %v105_v19  ;;  %v762_v35 = vadd.f32 %v714_v32, %v341_v24  ;;  %v346_v36 = vpop.f32.mrb[3].mxu1  ;;  %v716_v37 = vpop.f32.mrb[1].mxu0 }
 0x100   :  { %v18022_v38 = vadd.f32 %v346_v36, %v109_v20  ;;  %v763_v39 = vadd.f32 %v716_v37, %v343_v28  ;;  %v718_v40 = vpop.f32.mrb[2].mxu0 }
 0x101   :  { %v719_v41 = vpop.f32.mrb[3].mxu0 }
 0x104   :  { %v350_v42 = vpop.f32.mrb[4].mxu1 }
 0x105   :  { %v18024_v43 = vadd.f32 %v350_v42, %v105_v19  ;;  %v352_v44 = vpop.f32.mrb[5].mxu1 }
 0x106   :  { %v18026_v45 = vadd.f32 %v352_v44, %v109_v20  ;;  %v354_v46 = vpop.f32.mrb[6].mxu1 }
 0x107   :  { %v18028_v47 = vadd.f32 %v354_v46, %v105_v19  ;;  %v356_v48 = vpop.f32.mrb[7].mxu1  ;;  %v18048_v46 = vsub.s32 2, %v103_v10 }
 0x108   :  { %v18030_v49 = vadd.f32 %v356_v48, %v109_v20  ;;  %v18050_v48 = vsub.s32 3, %v103_v10 }
 0x109   :  { %22190 = vst [vmem:[#allocation14_spill] sm:$0xff] %v18048_v46 }
 0x10a   :  { %22191 = vst [vmem:[#allocation15_spill] sm:$0xff] %v18050_v48 }
 0x10c   :  { %v360_v50 = vpop.f32.mrb[8].mxu1 }
 0x10d   :  { %v18032_v51 = vadd.f32 %v360_v50, %v105_v19  ;;  %v362_v52 = vpop.f32.mrb[9].mxu1 }
 0x10e   :  { %v18034_v9 = vadd.f32 %v362_v52, %v109_v20  ;;  %v364_v23 = vpop.f32.mrb[10].mxu1  ;;  %v113_v52 = vrot.slane %v100_v15, %v18048_v46  ;;  %v14594_v46 = vmul.f32 -1.442695, %v763_v39 }
 0x10f   :  { %22182 = vst [vmem:[#allocation6_spill] sm:$0xff] %v18032_v51  ;;  %v18036_v24 = vadd.f32 %v364_v23, %v105_v19  ;;  %v366_v27 = vpop.f32.mrb[11].mxu1 }
 0x110   :  { %22183 = vst [vmem:[#allocation7_spill] sm:$0xff] %v18034_v9  ;;  %v18038_v28 = vadd.f32 %v366_v27, %v109_v20  ;;  %v117_v27 = vrot.slane %v100_v15, %v18050_v48  ;;  %v14593_v15 = vmul.f32 -1.442695, %v762_v35  ;;  %16891 = vpow2.f32 %v14594_v46 }
 0x111   :  { %22184 = vst [vmem:[#allocation8_spill] sm:$0xff] %v18036_v24 }
 0x112   :  { %22185 = vst [vmem:[#allocation9_spill] sm:$0xff] %v18038_v28  ;;  %16893 = vpow2.f32 %v14593_v15 }
 0x114   :  { %v370_v31 = vpop.f32.mrb[12].mxu1 }
 0x115   :  { %v18040_v32 = vadd.f32 %v370_v31, %v105_v19  ;;  %v372_v36 = vpop.f32.mrb[13].mxu1 }
 0x116   :  { %v18042_v37 = vadd.f32 %v372_v36, %v109_v20  ;;  %v374_v40 = vpop.f32.mrb[14].mxu1 }
 0x117   :  { %22186 = vst [vmem:[#allocation10_spill] sm:$0xff] %v18040_v32  ;;  %v18044_v41 = vadd.f32 %v374_v40, %v105_v19  ;;  %v376_v42 = vpop.f32.mrb[15].mxu1 }
 0x118   :  { %22187 = vst [vmem:[#allocation11_spill] sm:$0xff] %v18042_v37  ;;  %v18046_v44 = vadd.f32 %v376_v42, %v109_v20 }
 0x119   :  { %22188 = vst [vmem:[#allocation12_spill] sm:$0xff] %v18044_v41 }
 0x11a   :  { %22189 = vst [vmem:[#allocation13_spill] sm:$0xff] %v18046_v44 }
 0x11c   :  { %v413_v50 = vpop.f32.mrb[16].mxu1 }
 0x11d   :  { %v415_v23 = vpop.f32.mrb[17].mxu1 }
 0x11e   :  { %v417_v31 = vpop.f32.mrb[18].mxu1 }
 0x11f   :  { %v18054_v1 = vadd.f32 %v417_v31, %v113_v52  ;;  %v419_v36 = vpop.f32.mrb[19].mxu1 }
 0x120   :  { %v18056_v16 = vadd.f32 %v419_v36, %v117_v27 }
 0x124   :  { %v423_v19 = vpop.f32.mrb[20].mxu1 }
 0x125   :  { %v18058_v40 = vadd.f32 %v423_v19, %v113_v52  ;;  %v425_v20 = vpop.f32.mrb[21].mxu1 }
 0x126   :  { %v18060_v42 = vadd.f32 %v425_v20, %v117_v27  ;;  %v427_v10 = vpop.f32.mrb[22].mxu1 }
 0x127   :  { %v18062_v12 = vadd.f32 %v427_v10, %v113_v52  ;;  %v429_v44 = vpop.f32.mrb[23].mxu1 }
 0x128   :  { %v18064_v41 = vadd.f32 %v429_v44, %v117_v27  ;;  %v16892_v44 = vpop.eup %16891 }
 0x129   :  { %v16894_v15 = vpop.eup %16893 }
 0x12a   :  { %22192 = vst [vmem:[#allocation16_spill] sm:$0xff] %v18064_v41 }
 0x12c   :  { %v433_v31 = vpop.f32.mrb[24].mxu1 }
 0x12d   :  { %v18066_v48 = vadd.f32 %v433_v31, %v113_v52  ;;  %v435_v36 = vpop.f32.mrb[25].mxu1 }
 0x12e   :  { %v18068_v37 = vadd.f32 %v435_v36, %v117_v27  ;;  %v437_v19 = vpop.f32.mrb[26].mxu1 }
 0x12f   :  { %22193 = vst [vmem:[#allocation17_spill] sm:$0xff] %v18066_v48  ;;  %v18070_v32 = vadd.f32 %v437_v19, %v113_v52  ;;  %v439_v20 = vpop.f32.mrb[27].mxu1  ;;  %v769_v19 = vadd.f32 1.0, %v16894_v15  ;;  %v416_v48 = vadd.f32 %v415_v23, %v117_v27 }
 0x130   :  { %22194 = vst [vmem:[#allocation18_spill] sm:$0xff] %v18068_v37  ;;  %v18072_v28 = vadd.f32 %v439_v20, %v117_v27  ;;  %v775_v37 = vadd.f32 1.0, %v16892_v44 }
 0x131   :  { %22195 = vst [vmem:[#allocation19_spill] sm:$0xff] %v18070_v32  ;;  %v414_v32 = vadd.f32 %v413_v50, %v113_v52 }
 0x132   :  { %22196 = vst [vmem:[#allocation20_spill] sm:$0xff] %v18072_v28  ;;  %16895 = vrcp.f32 %v775_v37 }
 0x133   :  { %16897 = vrcp.f32 %v769_v19 }
 0x134   :  { %v443_v10 = vpop.f32.mrb[28].mxu1 }
 0x135   :  { %v18074_v24 = vadd.f32 %v443_v10, %v113_v52  ;;  %v445_v39 = vpop.f32.mrb[29].mxu1 }
 0x136   :  { %v18076_v35 = vadd.f32 %v445_v39, %v117_v27  ;;  %v447_v46 = vpop.f32.mrb[30].mxu1 }
 0x137   :  { %22197 = vst [vmem:[#allocation21_spill] sm:$0xff] %v18074_v24  ;;  %v18078_v31 = vadd.f32 %v447_v46, %v113_v52  ;;  %v449_v9 = vpop.f32.mrb[31].mxu1 }
 0x138   :  { %22198 = vst [vmem:[#allocation22_spill] sm:$0xff] %v18076_v35  ;;  %v18080_v36 = vadd.f32 %v449_v9, %v117_v27 }
 0x139   :  { %22199 = vst [vmem:[#allocation23_spill] sm:$0xff] %v18078_v31 }
 0x13a   :  { %22200 = vst [vmem:[#allocation24_spill] sm:$0xff] %v18080_v36 }
 0x13c   :  { %v755_v20 = vpop.f32.mrb[32].mxu1  ;;  %v16896_v46 = vpop.eup %16895 }
 0x13d   :  { %v764_v28 = vadd.f32 %v755_v20, %v414_v32  ;;  %v757_v10 = vpop.f32.mrb[33].mxu1  ;;  %v16898_v31 = vpop.eup %16897  ;;  %v785_v9 = vmul.f32 0.0, %v16896_v46 }
 0x13e   :  { %v765_v24 = vadd.f32 %v757_v10, %v416_v48  ;;  %v759_v51 = vpop.f32.mrb[34].mxu1 }
 0x13f   :  { %16899 = vtanh.f32 %v764_v28  ;;  %v760_v39 = vpop.f32.mrb[35].mxu1 }
 0x140   :  { %v14595_v35 = vmul.f32 -1.442695, %v765_v24  ;;  %v22201_v24 = vmov 0   ;;  %v18243_v39 = vld [vmem:[%s22178_s20 + $0xe0] ss:$16 sps:$4 sm:$0xff]  }
 0x142   :  { %16901 = vpow2.f32 %v14595_v35 }
 0x149   :  { %v16900_v41 = vpop.eup %16899 }
 0x14a   :  { %v786_v36 = vmul.f32 %v16900_v41, %v16898_v31 }
 0x14c   :  { %v16902_v44 = vpop.eup %16901  ;;  %v18082_v15 = vadd.f32 %v786_v36, %v785_v9 }
 0x14d   :  { %v782_v50 = vadd.f32 1.0, %v16902_v44 }
 0x14e   :  { %16903 = vtanh.f32 %v18082_v15 }
 0x14f   :  { %16905 = vrcp.f32 %v782_v50 }
 0x158   :  { %v16904_v32 = vpop.eup %16903 }
 0x159   :  { %v16906_v37 = vpop.eup %16905 }
 0x15a   :  { %v18085_v48 = vmul.f32 %v16906_v37, %v16904_v32 }
 0x15c   :  { %v795_v51 = vpack.c.bf16 %v18085_v48, %v18085_v48 }
 0x15e   :  { %1021 = vmatmul.mubr.bf16.vlgmr.msra.gmra.mrb[4].mxu0 %v795_v51  ;;  %1062 = vmatmul.mubr.bf16.vlgmr.msra.gmra.mrb[36].mxu1 %v795_v51 }
 0x15f   :  { %1297 = vmatpush1.bf16.msra.mxu0 %v17675_v4  ;;  %1338 = vmatpush1.bf16.msra.mxu1 %v17897_v54 }
 0x160   :  { %1298 = vmatprep.subr.bf16.mxu0 %v17687_v7  ;;  %1339 = vmatprep.subr.bf16.mxu1 %v17903_v55 }
 0x161   :  { %1328 = vmatprep.mubr.bf16.mxu0 %v22201_v24  ;;  %1369 = vmatprep.mubr.bf16.mxu1 %v22201_v24 }
 0x163   :  { %1299 = vmatpush1.bf16.msra.mxu0 %v17693_v8  ;;  %1340 = vmatpush1.bf16.msra.mxu1 %v17912_v56 }
 0x164   :  { %1300 = vmatprep.subr.bf16.mxu0 %v17705_v11  ;;  %1341 = vmatprep.subr.bf16.mxu1 %v17919_v57 }
 0x167   :  { %1301 = vmatpush1.bf16.msra.mxu0 %v17714_v13  ;;  %1342 = vmatpush1.bf16.msra.mxu1 %v17925_v58 }
 0x168   :  { %1302 = vmatprep.subr.bf16.mxu0 %v17720_v14  ;;  %1343 = vmatprep.subr.bf16.mxu1 %v17931_v59 }
 0x16b   :  { %1303 = vmatpush1.bf16.msra.mxu0 %v17732_v17  ;;  %1344 = vmatpush1.bf16.msra.mxu1 %v17937_v60 }
 0x16c   :  { %1304 = vmatprep.subr.bf16.mxu0 %v17738_v18  ;;  %1345 = vmatprep.subr.bf16.mxu1 %v17944_v61 }
 0x16f   :  { %1305 = vmatpush1.bf16.msra.mxu0 %v17750_v21  ;;  %1346 = vmatpush1.bf16.msra.mxu1 %v17950_v62 }
 0x170   :  { %1306 = vmatprep.subr.bf16.mxu0 %v17756_v22  ;;  %1347 = vmatprep.subr.bf16.mxu1 %v17956_v63 }
 0x173   :  { %1307 = vmatpush1.bf16.msra.mxu0 %v17768_v25  ;;  %1348 = vmatpush1.bf16.msra.mxu1 %v17962_v0 }
 0x174   :  { %1308 = vmatprep.subr.bf16.mxu0 %v17774_v26  ;;  %1349 = vmatprep.subr.bf16.mxu1 %v17969_v2 }
 0x177   :  { %1309 = vmatpush1.bf16.msra.mxu0 %v17786_v29  ;;  %1350 = vmatpush1.bf16.msra.mxu1 %v17975_v3 }
 0x178   :  { %1310 = vmatprep.subr.bf16.mxu0 %v17792_v30  ;;  %1351 = vmatprep.subr.bf16.mxu1 %v17981_v5 }
 0x17b   :  { %1311 = vmatpush1.bf16.msra.mxu0 %v17804_v33  ;;  %1352 = vmatpush1.bf16.msra.mxu1 %v17987_v6 }
 0x17c   :  { %1645 = vmatprep.subr.bf16.mxu1 %v17888_v53 }
 0x231   :  { %v1022_v4 = vpop.f32.mrb[4].mxu0  ;;  %v1063_v7 = vpop.f32.mrb[36].mxu1 }
 0x232   :  { %v1070_v8 = vadd.f32 %v1022_v4, %v18020_v34  ;;  %v1072_v11 = vadd.f32 %v1063_v7, %v18054_v1  ;;  %v1024_v13 = vpop.f32.mrb[5].mxu0  ;;  %v1065_v14 = vpop.f32.mrb[37].mxu1 }
 0x233   :  { %v1071_v17 = vadd.f32 %v1024_v13, %v18022_v38  ;;  %v1073_v18 = vadd.f32 %v1065_v14, %v18056_v16  ;;  %v1026_v21 = vpop.f32.mrb[6].mxu0  ;;  %v1067_v22 = vpop.f32.mrb[38].mxu1 }
 0x234   :  { %v14628_v25 = vmul.f32 -1.442695, %v1070_v8  ;;  %v1027_v26 = vpop.f32.mrb[7].mxu0  ;;  %v1068_v29 = vpop.f32.mrb[39].mxu1 }
 0x235   :  { %v14629_v30 = vmul.f32 -1.442695, %v1071_v17  ;;  %v14630_v33 = vmul.f32 -1.442695, %v1073_v18 }
 0x236   :  { %16907 = vpow2.f32 %v14628_v25 }
 0x237   :  { %16909 = vpow2.f32 %v14629_v30 }
 0x238   :  { %16911 = vpow2.f32 %v14630_v33 }
 0x239   :  { %16913 = vtanh.f32 %v1072_v11 }
 0x240   :  { %v16908_v53 = vpop.eup %16907 }
 0x241   :  { %v16910_v28 = vpop.eup %16909  ;;  %v1077_v34 = vadd.f32 1.0, %v16908_v53 }
 0x242   :  { %v1083_v1 = vadd.f32 1.0, %v16910_v28  ;;  %v16912_v38 = vpop.eup %16911 }
 0x243   :  { %16915 = vrcp.f32 %v1077_v34  ;;  %v16914_v41 = vpop.eup %16913  ;;  %v1090_v27 = vadd.f32 1.0, %v16912_v38  ;;  %v18281_v38 = vld [vmem:[%s22178_s20 + $0xc] ss:$16 sps:$4 sm:$0xff]  }
 0x244   :  { %16917 = vrcp.f32 %v1083_v1 }
 0x245   :  { %16919 = vrcp.f32 %v1090_v27  ;;  %v18310_v27 = vld [vmem:[%s22178_s20 + $0x48] ss:$16 sps:$4 sm:$0xff]  }
 0x24d   :  { %v16916_v16 = vpop.eup %16915 }
 0x24e   :  { %v16918_v52 = vpop.eup %16917  ;;  %v1094_v23 = vmul.f32 %v16916_v16, %v16914_v41  ;;  %v18286_v41 = vld [vmem:[%s22178_s20 + $0x8] ss:$16 sps:$4 sm:$0xff]   ;;  %v18293_v16 = vld [vmem:[%s22178_s20 + $0x2c] ss:$16 sps:$4 sm:$0xff]  }
 0x24f   :  { %v1093_v35 = vmul.f32 %v16918_v52, %v18082_v15  ;;  %v16920_v36 = vpop.eup %16919  ;;  %v18298_v52 = vld [vmem:[%s22178_s20 + $0x28] ss:$16 sps:$4 sm:$0xff]  }
 0x251   :  { %v18127_v31 = vadd.f32 %v1094_v23, %v1093_v35  ;;  %v18305_v23 = vld [vmem:[%s22178_s20 + $0x4c] ss:$16 sps:$4 sm:$0xff]  }
 0x252   :  { %v18317_v35 = vld [vmem:[%s22178_s20 + $0x6c] ss:$16 sps:$4 sm:$0xff]  }
 0x253   :  { %16921 = vtanh.f32 %v18127_v31 }
 0x25d   :  { %v16922_v19 = vpop.eup %16921 }
 0x25e   :  { %v18130_v20 = vmul.f32 %v16922_v19, %v16920_v36  ;;  %v18329_v36 = vld [vmem:[%s22178_s20 + $0x8c] ss:$16 sps:$4 sm:$0xff]   ;;  %v18334_v19 = vld [vmem:[%s22178_s20 + $0x88] ss:$16 sps:$4 sm:$0xff]  }
 0x260   :  { %v1103_v10 = vpack.c.bf16 %v18130_v20, %v18130_v20 }
 0x262   :  { %1329 = vmatmul.mubr.bf16.vlgmr.msra.gmra.mrb[8].mxu0 %v1103_v10  ;;  %1370 = vmatmul.mubr.bf16.vlgmr.msra.gmra.mrb[40].mxu1 %v1103_v10  ;;  %v18340_v10 = vld [vmem:[%s22178_s20 + $0xac] ss:$16 sps:$4 sm:$0xff]  }
 0x263   :  { %1646 = vmatpush1.bf16.msra.mxu1 %v17897_v54  ;;  %1636 = vmatprep.mubr.bf16.mxu0 %v22201_v24  ;;  %v18154_v54 = vld [vmem:[%s22178_s20 + $0x4] ss:$16 sps:$4 sm:$0xff]  }
 0x264   :  { %1647 = vmatprep.subr.bf16.mxu1 %v17903_v55  ;;  %1677 = vmatprep.mubr.bf16.mxu1 %v22201_v24  ;;  %v18159_v55 = vld [vmem:[%s22178_s20] ss:$16 sps:$4 sm:$0xff]  }
 0x265   :  { %1604 = vmatprep.subr.bf16.mxu0 %v18154_v54 }
 0x266   :  { %1605 = vmatpush1.bf16.msra.mxu0 %v18159_v55 }
 0x267   :  { %1648 = vmatpush1.bf16.msra.mxu1 %v17912_v56  ;;  %v18166_v56 = vld [vmem:[%s22178_s20 + $0x24] ss:$16 sps:$4 sm:$0xff]  }
 0x268   :  { %1649 = vmatprep.subr.bf16.mxu1 %v17919_v57  ;;  %v18171_v57 = vld [vmem:[%s22178_s20 + $0x20] ss:$16 sps:$4 sm:$0xff]   ;;  %1606 = vmatprep.subr.bf16.mxu0 %v18166_v56 }
 0x26a   :  { %1607 = vmatpush1.bf16.msra.mxu0 %v18171_v57 }
 0x26b   :  { %1650 = vmatpush1.bf16.msra.mxu1 %v17925_v58  ;;  %v18178_v58 = vld [vmem:[%s22178_s20 + $0x44] ss:$16 sps:$4 sm:$0xff]  }
 0x26c   :  { %1651 = vmatprep.subr.bf16.mxu1 %v17931_v59  ;;  %v18183_v59 = vld [vmem:[%s22178_s20 + $0x40] ss:$16 sps:$4 sm:$0xff]   ;;  %1608 = vmatprep.subr.bf16.mxu0 %v18178_v58 }
 0x26e   :  { %1609 = vmatpush1.bf16.msra.mxu0 %v18183_v59 }
 0x26f   :  { %1652 = vmatpush1.bf16.msra.mxu1 %v17937_v60  ;;  %v18190_v60 = vld [vmem:[%s22178_s20 + $0x64] ss:$16 sps:$4 sm:$0xff]  }
 0x270   :  { %1653 = vmatprep.subr.bf16.mxu1 %v17944_v61  ;;  %v18195_v61 = vld [vmem:[%s22178_s20 + $0x60] ss:$16 sps:$4 sm:$0xff]   ;;  %1610 = vmatprep.subr.bf16.mxu0 %v18190_v60 }
 0x272   :  { %1611 = vmatpush1.bf16.msra.mxu0 %v18195_v61 }
 0x273   :  { %1654 = vmatpush1.bf16.msra.mxu1 %v17950_v62  ;;  %v18202_v62 = vld [vmem:[%s22178_s20 + $0x84] ss:$16 sps:$4 sm:$0xff]  }
 0x274   :  { %1655 = vmatprep.subr.bf16.mxu1 %v17956_v63  ;;  %v18207_v63 = vld [vmem:[%s22178_s20 + $0x80] ss:$16 sps:$4 sm:$0xff]   ;;  %1612 = vmatprep.subr.bf16.mxu0 %v18202_v62 }
 0x276   :  { %1613 = vmatpush1.bf16.msra.mxu0 %v18207_v63 }
 0x277   :  { %1656 = vmatpush1.bf16.msra.mxu1 %v17962_v0  ;;  %v18213_v0 = vld [vmem:[%s22178_s20 + $0xa4] ss:$16 sps:$4 sm:$0xff]  }
 0x278   :  { %1657 = vmatprep.subr.bf16.mxu1 %v17969_v2  ;;  %v18219_v2 = vld [vmem:[%s22178_s20 + $0xa0] ss:$16 sps:$4 sm:$0xff]   ;;  %1614 = vmatprep.subr.bf16.mxu0 %v18213_v0 }
 0x27a   :  { %1615 = vmatpush1.bf16.msra.mxu0 %v18219_v2 }
 0x27b   :  { %1658 = vmatpush1.bf16.msra.mxu1 %v17975_v3  ;;  %v18225_v3 = vld [vmem:[%s22178_s20 + $0xc4] ss:$16 sps:$4 sm:$0xff]  }
 0x27c   :  { %1659 = vmatprep.subr.bf16.mxu1 %v17981_v5  ;;  %v18231_v5 = vld [vmem:[%s22178_s20 + $0xc0] ss:$16 sps:$4 sm:$0xff]   ;;  %1616 = vmatprep.subr.bf16.mxu0 %v18225_v3 }
 0x27e   :  { %1617 = vmatpush1.bf16.msra.mxu0 %v18231_v5 }
 0x27f   :  { %1660 = vmatpush1.bf16.msra.mxu1 %v17987_v6  ;;  %v18237_v6 = vld [vmem:[%s22178_s20 + $0xe4] ss:$16 sps:$4 sm:$0xff]  }
 0x280   :  { %1618 = vmatprep.subr.bf16.mxu0 %v18237_v6  ;;  %1953 = vmatprep.subr.bf16.mxu1 %v18281_v38 }
 0x282   :  { %1619 = vmatpush1.bf16.msra.mxu0 %v18243_v39 }
 0x283   :  { %1912 = vmatprep.subr.bf16.mxu0 %v18154_v54 }
 0x335   :  { %v1330_v46 = vpop.f32.mrb[8].mxu0  ;;  %v1371_v9 = vpop.f32.mrb[40].mxu1 }
 0x336   :  { %v1378_v44 = vadd.f32 %v1330_v46, %v18024_v43  ;;  %v1380_v15 = vadd.f32 %v1371_v9, %v18058_v40  ;;  %v1332_v50 = vpop.f32.mrb[9].mxu0  ;;  %v1373_v32 = vpop.f32.mrb[41].mxu1  ;;  %v18346_v46 = vld [vmem:[%s22178_s20 + $0xa8] ss:$16 sps:$4 sm:$0xff]   ;;  %v18352_v9 = vld [vmem:[%s22178_s20 + $0xcc] ss:$16 sps:$4 sm:$0xff]  }
 0x337   :  { %v1379_v37 = vadd.f32 %v1332_v50, %v18026_v45  ;;  %v1381_v51 = vadd.f32 %v1373_v32, %v18060_v42  ;;  %v1334_v4 = vpop.f32.mrb[10].mxu0  ;;  %v1375_v7 = vpop.f32.mrb[42].mxu1  ;;  %v18370_v50 = vld [vmem:[%s22178_s20 + $0xe8] ss:$16 sps:$4 sm:$0xff]  }
 0x338   :  { %v14663_v8 = vmul.f32 -1.442695, %v1378_v44  ;;  %v1335_v11 = vpop.f32.mrb[11].mxu0  ;;  %v1376_v13 = vpop.f32.mrb[43].mxu1  ;;  %v18358_v44 = vld [vmem:[%s22178_s20 + $0xc8] ss:$16 sps:$4 sm:$0xff]  }
 0x339   :  { %v14664_v14 = vmul.f32 -1.442695, %v1379_v37  ;;  %v14665_v17 = vmul.f32 -1.442695, %v1381_v51  ;;  %v22202_v13 = vld [vmem:[#allocation16_spill] sm:$0xff] }
 0x33a   :  { %16923 = vpow2.f32 %v14663_v8 }
 0x33b   :  { %16925 = vpow2.f32 %v14664_v14 }
 0x33c   :  { %16927 = vpow2.f32 %v14665_v17 }
 0x33d   :  { %16929 = vtanh.f32 %v1380_v15  ;;  %v18364_v15 = vld [vmem:[%s22178_s20 + $0xec] ss:$16 sps:$4 sm:$0xff]  }
 0x344   :  { %v16924_v18 = vpop.eup %16923 }
 0x345   :  { %v16926_v21 = vpop.eup %16925  ;;  %v1385_v43 = vadd.f32 1.0, %v16924_v18 }
 0x346   :  { %v1391_v40 = vadd.f32 1.0, %v16926_v21  ;;  %v16928_v45 = vpop.eup %16927 }
 0x347   :  { %16931 = vrcp.f32 %v1385_v43  ;;  %v16930_v22 = vpop.eup %16929  ;;  %v1398_v29 = vadd.f32 1.0, %v16928_v45 }
 0x348   :  { %16933 = vrcp.f32 %v1391_v40 }
 0x349   :  { %16935 = vrcp.f32 %v1398_v29 }
 0x351   :  { %v16932_v42 = vpop.eup %16931 }
 0x352   :  { %v16934_v25 = vpop.eup %16933  ;;  %v1402_v26 = vmul.f32 %v16932_v42, %v16930_v22 }
 0x353   :  { %v1401_v30 = vmul.f32 %v16934_v25, %v18127_v31  ;;  %v16936_v53 = vpop.eup %16935  ;;  %v18322_v31 = vld [vmem:[%s22178_s20 + $0x68] ss:$16 sps:$4 sm:$0xff]  }
 0x355   :  { %v18253_v33 = vadd.f32 %v1402_v26, %v1401_v30 }
 0x357   :  { %16937 = vtanh.f32 %v18253_v33 }
 0x361   :  { %v16938_v28 = vpop.eup %16937 }
 0x362   :  { %v18256_v34 = vmul.f32 %v16938_v28, %v16936_v53 }
 0x364   :  { %v1411_v1 = vpack.c.bf16 %v18256_v34, %v18256_v34 }
 0x366   :  { %1637 = vmatmul.mubr.bf16.vlgmr.msra.gmra.mrb[12].mxu0 %v1411_v1  ;;  %1678 = vmatmul.mubr.bf16.vlgmr.msra.gmra.mrb[44].mxu1 %v1411_v1 }
 0x367   :  { %1913 = vmatpush1.bf16.msra.mxu0 %v18159_v55  ;;  %1944 = vmatprep.mubr.bf16.mxu0 %v22201_v24 }
 0x368   :  { %1914 = vmatprep.subr.bf16.mxu0 %v18166_v56  ;;  %1985 = vmatprep.mubr.bf16.mxu1 %v22201_v24 }
 0x369   :  { %1954 = vmatpush1.bf16.msra.mxu1 %v18286_v41 }
 0x36a   :  { %1955 = vmatprep.subr.bf16.mxu1 %v18293_v16 }
 0x36b   :  { %1915 = vmatpush1.bf16.msra.mxu0 %v18171_v57 }
 0x36c   :  { %1916 = vmatprep.subr.bf16.mxu0 %v18178_v58 }
 0x36d   :  { %1956 = vmatpush1.bf16.msra.mxu1 %v18298_v52 }
 0x36e   :  { %1957 = vmatprep.subr.bf16.mxu1 %v18305_v23 }
 0x36f   :  { %1917 = vmatpush1.bf16.msra.mxu0 %v18183_v59 }
 0x370   :  { %1918 = vmatprep.subr.bf16.mxu0 %v18190_v60 }
 0x371   :  { %1958 = vmatpush1.bf16.msra.mxu1 %v18310_v27 }
 0x372   :  { %1959 = vmatprep.subr.bf16.mxu1 %v18317_v35 }
 0x373   :  { %1919 = vmatpush1.bf16.msra.mxu0 %v18195_v61 }
 0x374   :  { %1920 = vmatprep.subr.bf16.mxu0 %v18202_v62 }
 0x375   :  { %1960 = vmatpush1.bf16.msra.mxu1 %v18322_v31 }
 0x376   :  { %1961 = vmatprep.subr.bf16.mxu1 %v18329_v36 }
 0x377   :  { %1921 = vmatpush1.bf16.msra.mxu0 %v18207_v63 }
 0x378   :  { %1922 = vmatprep.subr.bf16.mxu0 %v18213_v0 }
 0x379   :  { %1962 = vmatpush1.bf16.msra.mxu1 %v18334_v19 }
 0x37a   :  { %1963 = vmatprep.subr.bf16.mxu1 %v18340_v10 }
 0x37b   :  { %1923 = vmatpush1.bf16.msra.mxu0 %v18219_v2 }
 0x37c   :  { %1924 = vmatprep.subr.bf16.mxu0 %v18225_v3 }
 0x37d   :  { %1964 = vmatpush1.bf16.msra.mxu1 %v18346_v46 }
 0x37e   :  { %1965 = vmatprep.subr.bf16.mxu1 %v18352_v9 }
 0x37f   :  { %1925 = vmatpush1.bf16.msra.mxu0 %v18231_v5 }
 0x380   :  { %1926 = vmatprep.subr.bf16.mxu0 %v18237_v6 }
 0x381   :  { %1966 = vmatpush1.bf16.msra.mxu1 %v18358_v44 }
 0x382   :  { %1967 = vmatprep.subr.bf16.mxu1 %v18364_v15 }
 0x383   :  { %1927 = vmatpush1.bf16.msra.mxu0 %v18243_v39 }
 0x384   :  { %2220 = vmatprep.subr.bf16.mxu0 %v18154_v54 }
 0x385   :  { %1968 = vmatpush1.bf16.msra.mxu1 %v18370_v50 }
 0x386   :  { %2261 = vmatprep.subr.bf16.mxu1 %v18281_v38 }
 0x439   :  { %v1638_v32 = vpop.f32.mrb[12].mxu0  ;;  %v1679_v37 = vpop.f32.mrb[44].mxu1 }
 0x43a   :  { %v1686_v51 = vadd.f32 %v1638_v32, %v18028_v47  ;;  %v1688_v4 = vadd.f32 %v1679_v37, %v18062_v12  ;;  %v1640_v7 = vpop.f32.mrb[13].mxu0  ;;  %v1681_v8 = vpop.f32.mrb[45].mxu1 }
 0x43b   :  { %v1687_v11 = vadd.f32 %v1640_v7, %v18030_v49  ;;  %v1689_v14 = vadd.f32 %v1681_v8, %v22202_v13  ;;  %v1642_v17 = vpop.f32.mrb[14].mxu0  ;;  %v1683_v18 = vpop.f32.mrb[46].mxu1 }
 0x43c   :  { %v14698_v21 = vmul.f32 -1.442695, %v1686_v51  ;;  %v1643_v43 = vpop.f32.mrb[15].mxu0  ;;  %v1684_v40 = vpop.f32.mrb[47].mxu1 }
 0x43d   :  { %v14699_v45 = vmul.f32 -1.442695, %v1687_v11  ;;  %v14700_v22 = vmul.f32 -1.442695, %v1689_v14  ;;  %v22203_v11 = vld [vmem:[#allocation6_spill] sm:$0xff]  ;;  %v22204_v14 = vld [vmem:[#allocation17_spill] sm:$0xff] }
 0x43e   :  { %16939 = vpow2.f32 %v14698_v21  ;;  %v22205_v43 = vld [vmem:[#allocation7_spill] sm:$0xff] }
 0x43f   :  { %16941 = vpow2.f32 %v14699_v45  ;;  %v22206_v45 = vld [vmem:[#allocation18_spill] sm:$0xff] }
 0x440   :  { %16943 = vpow2.f32 %v14700_v22 }
 0x441   :  { %16945 = vtanh.f32 %v1688_v4 }
 0x448   :  { %v16940_v42 = vpop.eup %16939 }
 0x449   :  { %v16942_v25 = vpop.eup %16941  ;;  %v1693_v47 = vadd.f32 1.0, %v16940_v42 }
 0x44a   :  { %v1699_v12 = vadd.f32 1.0, %v16942_v25  ;;  %v16944_v49 = vpop.eup %16943 }
 0x44b   :  { %16947 = vrcp.f32 %v1693_v47  ;;  %v16946_v26 = vpop.eup %16945  ;;  %v1706_v28 = vadd.f32 1.0, %v16944_v49 }
 0x44c   :  { %16949 = vrcp.f32 %v1699_v12 }
 0x44d   :  { %16951 = vrcp.f32 %v1706_v28 }
 0x455   :  { %v16948_v29 = vpop.eup %16947 }
 0x456   :  { %v16950_v30 = vpop.eup %16949  ;;  %v1710_v53 = vmul.f32 %v16948_v29, %v16946_v26 }
 0x457   :  { %v1709_v1 = vmul.f32 %v16950_v30, %v18253_v33  ;;  %v16952_v37 = vpop.eup %16951 }
 0x459   :  { %v18380_v32 = vadd.f32 %v1710_v53, %v1709_v1 }
 0x45b   :  { %16953 = vtanh.f32 %v18380_v32 }
 0x465   :  { %v16954_v51 = vpop.eup %16953 }
 0x466   :  { %v18383_v7 = vmul.f32 %v16954_v51, %v16952_v37 }
 0x468   :  { %v1719_v4 = vpack.c.bf16 %v18383_v7, %v18383_v7 }
 0x46a   :  { %1945 = vmatmul.mubr.bf16.vlgmr.msra.gmra.mrb[16].mxu0 %v1719_v4  ;;  %1986 = vmatmul.mubr.bf16.vlgmr.msra.gmra.mrb[48].mxu1 %v1719_v4 }
 0x46b   :  { %2221 = vmatpush1.bf16.msra.mxu0 %v18159_v55  ;;  %2262 = vmatpush1.bf16.msra.mxu1 %v18286_v41 }
 0x46c   :  { %2222 = vmatprep.subr.bf16.mxu0 %v18166_v56  ;;  %2263 = vmatprep.subr.bf16.mxu1 %v18293_v16 }
 0x46d   :  { %2252 = vmatprep.mubr.bf16.mxu0 %v22201_v24  ;;  %2293 = vmatprep.mubr.bf16.mxu1 %v22201_v24 }
 0x46f   :  { %2223 = vmatpush1.bf16.msra.mxu0 %v18171_v57  ;;  %2264 = vmatpush1.bf16.msra.mxu1 %v18298_v52 }
 0x470   :  { %2224 = vmatprep.subr.bf16.mxu0 %v18178_v58  ;;  %2265 = vmatprep.subr.bf16.mxu1 %v18305_v23 }
 0x473   :  { %2225 = vmatpush1.bf16.msra.mxu0 %v18183_v59  ;;  %2266 = vmatpush1.bf16.msra.mxu1 %v18310_v27 }
 0x474   :  { %2226 = vmatprep.subr.bf16.mxu0 %v18190_v60  ;;  %2267 = vmatprep.subr.bf16.mxu1 %v18317_v35 }
 0x477   :  { %2227 = vmatpush1.bf16.msra.mxu0 %v18195_v61  ;;  %2268 = vmatpush1.bf16.msra.mxu1 %v18322_v31 }
 0x478   :  { %2228 = vmatprep.subr.bf16.mxu0 %v18202_v62  ;;  %2269 = vmatprep.subr.bf16.mxu1 %v18329_v36 }
 0x47b   :  { %2229 = vmatpush1.bf16.msra.mxu0 %v18207_v63  ;;  %2270 = vmatpush1.bf16.msra.mxu1 %v18334_v19 }
 0x47c   :  { %2230 = vmatprep.subr.bf16.mxu0 %v18213_v0  ;;  %2271 = vmatprep.subr.bf16.mxu1 %v18340_v10 }
 0x47f   :  { %2231 = vmatpush1.bf16.msra.mxu0 %v18219_v2  ;;  %2272 = vmatpush1.bf16.msra.mxu1 %v18346_v46 }
 0x480   :  { %2232 = vmatprep.subr.bf16.mxu0 %v18225_v3  ;;  %2273 = vmatprep.subr.bf16.mxu1 %v18352_v9 }
 0x483   :  { %2233 = vmatpush1.bf16.msra.mxu0 %v18231_v5  ;;  %2274 = vmatpush1.bf16.msra.mxu1 %v18358_v44 }
 0x484   :  { %2234 = vmatprep.subr.bf16.mxu0 %v18237_v6  ;;  %2275 = vmatprep.subr.bf16.mxu1 %v18364_v15 }
 0x487   :  { %2235 = vmatpush1.bf16.msra.mxu0 %v18243_v39  ;;  %2276 = vmatpush1.bf16.msra.mxu1 %v18370_v50 }
 0x488   :  { %2528 = vmatprep.subr.bf16.mxu0 %v18154_v54  ;;  %2569 = vmatprep.subr.bf16.mxu1 %v18281_v38 }
 0x53d   :  { %v1946_v33 = vpop.f32.mrb[16].mxu0  ;;  %v1987_v8 = vpop.f32.mrb[48].mxu1 }
 0x53e   :  { %v1994_v13 = vadd.f32 %v1946_v33, %v22203_v11  ;;  %v1996_v17 = vadd.f32 %v1987_v8, %v22204_v14  ;;  %v1948_v18 = vpop.f32.mrb[17].mxu0  ;;  %v1989_v21 = vpop.f32.mrb[49].mxu1 }
 0x53f   :  { %v1995_v40 = vadd.f32 %v1948_v18, %v22205_v43  ;;  %v1997_v22 = vadd.f32 %v1989_v21, %v22206_v45  ;;  %v1950_v42 = vpop.f32.mrb[18].mxu0  ;;  %v1991_v25 = vpop.f32.mrb[50].mxu1 }
 0x540   :  { %v14733_v47 = vmul.f32 -1.442695, %v1994_v13  ;;  %v1951_v12 = vpop.f32.mrb[19].mxu0  ;;  %v1992_v49 = vpop.f32.mrb[51].mxu1 }
 0x541   :  { %v14734_v54 = vmul.f32 -1.442695, %v1995_v40  ;;  %v14735_v26 = vmul.f32 -1.442695, %v1997_v22 }
 0x542   :  { %16955 = vpow2.f32 %v14733_v47 }
 0x543   :  { %16957 = vpow2.f32 %v14734_v54 }
 0x544   :  { %16959 = vpow2.f32 %v14735_v26 }
 0x545   :  { %16961 = vtanh.f32 %v1996_v17 }
 0x54c   :  { %v16956_v29 = vpop.eup %16955 }
 0x54d   :  { %v16958_v30 = vpop.eup %16957  ;;  %v2001_v53 = vadd.f32 1.0, %v16956_v29 }
 0x54e   :  { %v2007_v28 = vadd.f32 1.0, %v16958_v30  ;;  %v16960_v1 = vpop.eup %16959 }
 0x54f   :  { %16963 = vrcp.f32 %v2001_v53  ;;  %v16962_v37 = vpop.eup %16961  ;;  %v2014_v8 = vadd.f32 1.0, %v16960_v1 }
 0x550   :  { %16965 = vrcp.f32 %v2007_v28 }
 0x551   :  { %16967 = vrcp.f32 %v2014_v8  ;;  %v16309_v8 = vld [vmem:[%s22146_s4 + $0x4] ss:$16 sps:$4 sm:$0xff]  }
 0x559   :  { %v16964_v51 = vpop.eup %16963 }
 0x55a   :  { %v16966_v4 = vpop.eup %16965  ;;  %v2018_v33 = vmul.f32 %v16964_v51, %v16962_v37 }
 0x55b   :  { %v2017_v11 = vmul.f32 %v16966_v4, %v18380_v32  ;;  %v16968_v14 = vpop.eup %16967  ;;  %v16312_v4 = vld [vmem:[%s22146_s4 + $0xc] ss:$16 sps:$4 sm:$0xff]  }
 0x55d   :  { %v18426_v13 = vadd.f32 %v2018_v33, %v2017_v11  ;;  %v16304_v33 = vld [vmem:[%s22178_s20 + $0xe0] ss:$16 sps:$4 sm:$0xff]  }
 0x55f   :  { %16969 = vtanh.f32 %v18426_v13 }
 0x569   :  { %v16970_v18 = vpop.eup %16969 }
 0x56a   :  { %v18429_v21 = vmul.f32 %v16970_v18, %v16968_v14  ;;  %v22211_v14 = vld [vmem:[#allocation10_spill] sm:$0xff] }
 0x56c   :  { %v2027_v17 = vpack.c.bf16 %v18429_v21, %v18429_v21 }
 0x56e   :  { %2253 = vmatmul.mubr.bf16.vlgmr.msra.gmra.mrb[20].mxu0 %v2027_v17  ;;  %2294 = vmatmul.mubr.bf16.vlgmr.msra.gmra.mrb[52].mxu1 %v2027_v17  ;;  %v22212_v17 = vld [vmem:[#allocation21_spill] sm:$0xff] }
 0x56f   :  { %2529 = vmatpush1.bf16.msra.mxu0 %v18159_v55  ;;  %2570 = vmatpush1.bf16.msra.mxu1 %v18286_v41 }
 0x570   :  { %2530 = vmatprep.subr.bf16.mxu0 %v18166_v56  ;;  %2571 = vmatprep.subr.bf16.mxu1 %v18293_v16 }
 0x571   :  { %2560 = vmatprep.mubr.bf16.mxu0 %v22201_v24  ;;  %2601 = vmatprep.mubr.bf16.mxu1 %v22201_v24 }
 0x573   :  { %2531 = vmatpush1.bf16.msra.mxu0 %v18171_v57  ;;  %2572 = vmatpush1.bf16.msra.mxu1 %v18298_v52  ;;  %v22207_v57 = vld [vmem:[#allocation8_spill] sm:$0xff] }
 0x574   :  { %2532 = vmatprep.subr.bf16.mxu0 %v18178_v58  ;;  %2573 = vmatprep.subr.bf16.mxu1 %v18305_v23 }
 0x577   :  { %2533 = vmatpush1.bf16.msra.mxu0 %v18183_v59  ;;  %2574 = vmatpush1.bf16.msra.mxu1 %v18310_v27  ;;  %v22208_v59 = vld [vmem:[#allocation19_spill] sm:$0xff] }
 0x578   :  { %2534 = vmatprep.subr.bf16.mxu0 %v18190_v60  ;;  %2575 = vmatprep.subr.bf16.mxu1 %v18317_v35 }
 0x57b   :  { %2535 = vmatpush1.bf16.msra.mxu0 %v18195_v61  ;;  %2576 = vmatpush1.bf16.msra.mxu1 %v18322_v31 }
 0x57c   :  { %2536 = vmatprep.subr.bf16.mxu0 %v18202_v62  ;;  %2577 = vmatprep.subr.bf16.mxu1 %v18329_v36 }
 0x57f   :  { %2537 = vmatpush1.bf16.msra.mxu0 %v18207_v63  ;;  %2578 = vmatpush1.bf16.msra.mxu1 %v18334_v19  ;;  %v22209_v63 = vld [vmem:[#allocation9_spill] sm:$0xff] }
 0x580   :  { %2538 = vmatprep.subr.bf16.mxu0 %v18213_v0  ;;  %2579 = vmatprep.subr.bf16.mxu1 %v18340_v10 }
 0x583   :  { %2539 = vmatpush1.bf16.msra.mxu0 %v18219_v2  ;;  %2580 = vmatpush1.bf16.msra.mxu1 %v18346_v46  ;;  %v22210_v2 = vld [vmem:[#allocation20_spill] sm:$0xff] }
 0x584   :  { %2540 = vmatprep.subr.bf16.mxu0 %v18225_v3  ;;  %2581 = vmatprep.subr.bf16.mxu1 %v18352_v9 }
 0x587   :  { %2541 = vmatpush1.bf16.msra.mxu0 %v18231_v5  ;;  %2582 = vmatpush1.bf16.msra.mxu1 %v18358_v44 }
 0x588   :  { %2542 = vmatprep.subr.bf16.mxu0 %v18237_v6  ;;  %2583 = vmatprep.subr.bf16.mxu1 %v18364_v15 }
 0x58b   :  { %2543 = vmatpush1.bf16.msra.mxu0 %v18243_v39  ;;  %2584 = vmatpush1.bf16.msra.mxu1 %v18370_v50 }
 0x58c   :  { %2877 = vmatprep.subr.bf16.mxu1 %v18281_v38 }
 0x641   :  { %v2254_v55 = vpop.f32.mrb[20].mxu0  ;;  %v2295_v56 = vpop.f32.mrb[52].mxu1 }
 0x642   :  { %v2302_v58 = vadd.f32 %v2254_v55, %v22207_v57  ;;  %v2304_v60 = vadd.f32 %v2295_v56, %v22208_v59  ;;  %v2256_v61 = vpop.f32.mrb[21].mxu0  ;;  %v2297_v62 = vpop.f32.mrb[53].mxu1 }
 0x643   :  { %v2303_v0 = vadd.f32 %v2256_v61, %v22209_v63  ;;  %v2305_v3 = vadd.f32 %v2297_v62, %v22210_v2  ;;  %v2258_v5 = vpop.f32.mrb[22].mxu0  ;;  %v2299_v6 = vpop.f32.mrb[54].mxu1 }
 0x644   :  { %v14768_v32 = vmul.f32 -1.442695, %v2302_v58  ;;  %v2259_v39 = vpop.f32.mrb[23].mxu0  ;;  %v2300_v43 = vpop.f32.mrb[55].mxu1  ;;  %v22213_v58 = vld [vmem:[#allocation11_spill] sm:$0xff] }
 0x645   :  { %v14769_v40 = vmul.f32 -1.442695, %v2303_v0  ;;  %v14770_v38 = vmul.f32 -1.442695, %v2305_v3 }
 0x646   :  { %16971 = vpow2.f32 %v14768_v32 }
 0x647   :  { %16973 = vpow2.f32 %v14769_v40 }
 0x648   :  { %16975 = vpow2.f32 %v14770_v38 }
 0x649   :  { %16977 = vtanh.f32 %v2304_v60  ;;  %v22214_v60 = vld [vmem:[#allocation22_spill] sm:$0xff] }
 0x650   :  { %v16972_v45 = vpop.eup %16971 }
 0x651   :  { %v16974_v22 = vpop.eup %16973  ;;  %v2309_v42 = vadd.f32 1.0, %v16972_v45 }
 0x652   :  { %v2315_v25 = vadd.f32 1.0, %v16974_v22  ;;  %v16976_v47 = vpop.eup %16975 }
 0x653   :  { %16979 = vrcp.f32 %v2309_v42  ;;  %v16978_v12 = vpop.eup %16977  ;;  %v2322_v29 = vadd.f32 1.0, %v16976_v47 }
 0x654   :  { %16981 = vrcp.f32 %v2315_v25 }
 0x655   :  { %16983 = vrcp.f32 %v2322_v29 }
 0x65d   :  { %v16980_v49 = vpop.eup %16979 }
 0x65e   :  { %v16982_v54 = vpop.eup %16981  ;;  %v2326_v26 = vmul.f32 %v16980_v49, %v16978_v12 }
 0x65f   :  { %v2325_v30 = vmul.f32 %v16982_v54, %v18426_v13  ;;  %v16984_v28 = vpop.eup %16983 }
 0x661   :  { %v18471_v53 = vadd.f32 %v2326_v26, %v2325_v30  ;;  %v16307_v30 = vld [vmem:[%s22146_s4] ss:$16 sps:$4 sm:$0xff]  }
 0x663   :  { %16985 = vtanh.f32 %v18471_v53 }
 0x66d   :  { %v16986_v1 = vpop.eup %16985 }
 0x66e   :  { %v18474_v37 = vmul.f32 %v16986_v1, %v16984_v28  ;;  %v16310_v28 = vld [vmem:[%s22146_s4 + $0x8] ss:$16 sps:$4 sm:$0xff]   ;;  %v16315_v1 = vld [vmem:[%s22146_s4 + $0x24] ss:$16 sps:$4 sm:$0xff]  }
 0x670   :  { %v2335_v51 = vpack.c.bf16 %v18474_v37, %v18474_v37 }
 0x672   :  { %2561 = vmatmul.mubr.bf16.vlgmr.msra.gmra.mrb[24].mxu0 %v2335_v51  ;;  %2602 = vmatmul.mubr.bf16.vlgmr.msra.gmra.mrb[56].mxu1 %v2335_v51  ;;  %v16318_v51 = vld [vmem:[%s22146_s4 + $0x2c] ss:$16 sps:$4 sm:$0xff]  }
 0x673   :  { %2878 = vmatpush1.bf16.msra.mxu1 %v18286_v41  ;;  %2868 = vmatprep.mubr.bf16.mxu0 %v22201_v24  ;;  %v16285_v41 = vld [vmem:[%s22178_s20 + $0x4] ss:$16 sps:$4 sm:$0xff]  }
 0x674   :  { %2879 = vmatprep.subr.bf16.mxu1 %v18293_v16  ;;  %2909 = vmatprep.mubr.bf16.mxu1 %v22201_v24  ;;  %v16283_v16 = vld [vmem:[%s22178_s20] ss:$16 sps:$4 sm:$0xff]  }
 0x675   :  { %2836 = vmatprep.subr.bf16.mxu0 %v16285_v41  ;;  %v16313_v41 = vld [vmem:[%s22146_s4 + $0x20] ss:$16 sps:$4 sm:$0xff]  }
 0x676   :  { %2837 = vmatpush1.bf16.msra.mxu0 %v16283_v16  ;;  %v16316_v16 = vld [vmem:[%s22146_s4 + $0x28] ss:$16 sps:$4 sm:$0xff]  }
 0x677   :  { %2880 = vmatpush1.bf16.msra.mxu1 %v18298_v52  ;;  %v16288_v52 = vld [vmem:[%s22178_s20 + $0x24] ss:$16 sps:$4 sm:$0xff]  }
 0x678   :  { %2881 = vmatprep.subr.bf16.mxu1 %v18305_v23  ;;  %v16286_v23 = vld [vmem:[%s22178_s20 + $0x20] ss:$16 sps:$4 sm:$0xff]   ;;  %2838 = vmatprep.subr.bf16.mxu0 %v16288_v52  ;;  %v16321_v52 = vld [vmem:[%s22146_s4 + $0x44] ss:$16 sps:$4 sm:$0xff]  }
 0x67a   :  { %2839 = vmatpush1.bf16.msra.mxu0 %v16286_v23  ;;  %v16324_v23 = vld [vmem:[%s22146_s4 + $0x4c] ss:$16 sps:$4 sm:$0xff]  }
 0x67b   :  { %2882 = vmatpush1.bf16.msra.mxu1 %v18310_v27  ;;  %v16291_v27 = vld [vmem:[%s22178_s20 + $0x44] ss:$16 sps:$4 sm:$0xff]  }
 0x67c   :  { %2883 = vmatprep.subr.bf16.mxu1 %v18317_v35  ;;  %v16289_v35 = vld [vmem:[%s22178_s20 + $0x40] ss:$16 sps:$4 sm:$0xff]   ;;  %2840 = vmatprep.subr.bf16.mxu0 %v16291_v27 }
 0x67d   :  { %v16319_v27 = vld [vmem:[%s22146_s4 + $0x40] ss:$16 sps:$4 sm:$0xff]  }
 0x67e   :  { %2841 = vmatpush1.bf16.msra.mxu0 %v16289_v35  ;;  %v16322_v35 = vld [vmem:[%s22146_s4 + $0x48] ss:$16 sps:$4 sm:$0xff]  }
 0x67f   :  { %2884 = vmatpush1.bf16.msra.mxu1 %v18322_v31  ;;  %v16294_v31 = vld [vmem:[%s22178_s20 + $0x64] ss:$16 sps:$4 sm:$0xff]  }
 0x680   :  { %2885 = vmatprep.subr.bf16.mxu1 %v18329_v36  ;;  %v16292_v36 = vld [vmem:[%s22178_s20 + $0x60] ss:$16 sps:$4 sm:$0xff]   ;;  %2842 = vmatprep.subr.bf16.mxu0 %v16294_v31  ;;  %v16327_v31 = vld [vmem:[%s22146_s4 + $0x64] ss:$16 sps:$4 sm:$0xff]  }
 0x682   :  { %2843 = vmatpush1.bf16.msra.mxu0 %v16292_v36  ;;  %v16330_v36 = vld [vmem:[%s22146_s4 + $0x6c] ss:$16 sps:$4 sm:$0xff]  }
 0x683   :  { %2886 = vmatpush1.bf16.msra.mxu1 %v18334_v19  ;;  %v16297_v19 = vld [vmem:[%s22178_s20 + $0x84] ss:$16 sps:$4 sm:$0xff]  }
 0x684   :  { %2887 = vmatprep.subr.bf16.mxu1 %v18340_v10  ;;  %v16295_v10 = vld [vmem:[%s22178_s20 + $0x80] ss:$16 sps:$4 sm:$0xff]   ;;  %2844 = vmatprep.subr.bf16.mxu0 %v16297_v19 }
 0x685   :  { %v16325_v19 = vld [vmem:[%s22146_s4 + $0x60] ss:$16 sps:$4 sm:$0xff]  }
 0x686   :  { %2845 = vmatpush1.bf16.msra.mxu0 %v16295_v10  ;;  %v16328_v10 = vld [vmem:[%s22146_s4 + $0x68] ss:$16 sps:$4 sm:$0xff]  }
 0x687   :  { %2888 = vmatpush1.bf16.msra.mxu1 %v18346_v46  ;;  %v16298_v46 = vld [vmem:[%s22178_s20 + $0xa0] ss:$16 sps:$4 sm:$0xff]  }
 0x688   :  { %2889 = vmatprep.subr.bf16.mxu1 %v18352_v9  ;;  %v16300_v9 = vld [vmem:[%s22178_s20 + $0xa4] ss:$16 sps:$4 sm:$0xff]  }
 0x689   :  { %2846 = vmatprep.subr.bf16.mxu0 %v16300_v9  ;;  %v16336_v9 = vld [vmem:[%s22146_s4 + $0x8c] ss:$16 sps:$4 sm:$0xff]  }
 0x68a   :  { %2847 = vmatpush1.bf16.msra.mxu0 %v16298_v46  ;;  %v16333_v46 = vld [vmem:[%s22146_s4 + $0x84] ss:$16 sps:$4 sm:$0xff]  }
 0x68b   :  { %2890 = vmatpush1.bf16.msra.mxu1 %v18358_v44  ;;  %v16303_v44 = vld [vmem:[%s22178_s20 + $0xc4] ss:$16 sps:$4 sm:$0xff]  }
 0x68c   :  { %2891 = vmatprep.subr.bf16.mxu1 %v18364_v15  ;;  %v16301_v15 = vld [vmem:[%s22178_s20 + $0xc0] ss:$16 sps:$4 sm:$0xff]   ;;  %2848 = vmatprep.subr.bf16.mxu0 %v16303_v44 }
 0x68d   :  { %v16331_v44 = vld [vmem:[%s22146_s4 + $0x80] ss:$16 sps:$4 sm:$0xff]  }
 0x68e   :  { %2849 = vmatpush1.bf16.msra.mxu0 %v16301_v15  ;;  %v16334_v15 = vld [vmem:[%s22146_s4 + $0x88] ss:$16 sps:$4 sm:$0xff]  }
 0x68f   :  { %2892 = vmatpush1.bf16.msra.mxu1 %v18370_v50  ;;  %v16306_v50 = vld [vmem:[%s22178_s20 + $0xe4] ss:$16 sps:$4 sm:$0xff]  }
 0x690   :  { %3246 = vmatprep.subr.bf16.mxu1 %v16312_v4  ;;  %2850 = vmatprep.subr.bf16.mxu0 %v16306_v50  ;;  %v16339_v50 = vld [vmem:[%s22146_s4 + $0xa4] ss:$16 sps:$4 sm:$0xff]   ;;  %v16342_v4 = vld [vmem:[%s22146_s4 + $0xac] ss:$16 sps:$4 sm:$0xff]  }
 0x692   :  { %2851 = vmatpush1.bf16.msra.mxu0 %v16304_v33  ;;  %v16337_v33 = vld [vmem:[%s22146_s4 + $0xa0] ss:$16 sps:$4 sm:$0xff]  }
 0x693   :  { %3173 = vmatprep.subr.bf16.mxu0 %v16309_v8  ;;  %v16340_v8 = vld [vmem:[%s22146_s4 + $0xa8] ss:$16 sps:$4 sm:$0xff]  }
 0x745   :  { %v2562_v11 = vpop.f32.mrb[24].mxu0  ;;  %v2603_v13 = vpop.f32.mrb[56].mxu1 }
 0x746   :  { %v2610_v18 = vadd.f32 %v2562_v11, %v22211_v14  ;;  %v2612_v55 = vadd.f32 %v2603_v13, %v22212_v17  ;;  %v2564_v56 = vpop.f32.mrb[25].mxu0  ;;  %v2605_v57 = vpop.f32.mrb[57].mxu1  ;;  %v16345_v11 = vld [vmem:[%s22146_s4 + $0xc4] ss:$16 sps:$4 sm:$0xff]   ;;  %v16348_v13 = vld [vmem:[%s22146_s4 + $0xcc] ss:$16 sps:$4 sm:$0xff]  }
 0x747   :  { %v2611_v59 = vadd.f32 %v2564_v56, %v22213_v58  ;;  %v2613_v61 = vadd.f32 %v2605_v57, %v22214_v60  ;;  %v2566_v62 = vpop.f32.mrb[26].mxu0  ;;  %v2607_v63 = vpop.f32.mrb[58].mxu1  ;;  %v16343_v14 = vld [vmem:[%s22146_s4 + $0xc0] ss:$16 sps:$4 sm:$0xff]   ;;  %v16351_v17 = vld [vmem:[%s22146_s4 + $0xe4] ss:$16 sps:$4 sm:$0xff]   ;;  %v2955_v58 = vpack.c.bf16 %v18130_v20, %v18085_v48  ;;  %v2957_v60 = vpack.c.bf16 %v18474_v37, %v18429_v21 }
 0x748   :  { %v14803_v0 = vmul.f32 -1.442695, %v2610_v18  ;;  %v2567_v2 = vpop.f32.mrb[27].mxu0  ;;  %v2608_v3 = vpop.f32.mrb[59].mxu1  ;;  %v16346_v18 = vld [vmem:[%s22146_s4 + $0xc8] ss:$16 sps:$4 sm:$0xff]  }
 0x749   :  { %v14804_v5 = vmul.f32 -1.442695, %v2611_v59  ;;  %v14805_v6 = vmul.f32 -1.442695, %v2613_v61  ;;  %v16349_v56 = vld [vmem:[%s22146_s4 + $0xe0] ss:$16 sps:$4 sm:$0xff]   ;;  %v2956_v59 = vpack.c.bf16 %v18383_v7, %v18256_v34 }
 0x74a   :  { %16987 = vpow2.f32 %v14803_v0  ;;  %v16352_v57 = vld [vmem:[%s22146_s4 + $0xe8] ss:$16 sps:$4 sm:$0xff]   ;;  %v18668_v48 = vld [vmem:[%s22147_s5 + $0x4] ss:$16 sps:$4 sm:$0xff]   ;;  %v18673_v20 = vld [vmem:[%s22147_s5] ss:$16 sps:$4 sm:$0xff]  }
 0x74b   :  { %16989 = vpow2.f32 %v14804_v5  ;;  %v18679_v34 = vld [vmem:[%s22147_s5 + $0x8] ss:$16 sps:$4 sm:$0xff]   ;;  %v18684_v7 = vld [vmem:[%s22147_s5 + $0xc] ss:$16 sps:$4 sm:$0xff]   ;;  %v18691_v21 = vld [vmem:[%s22147_s5 + $0x24] ss:$16 sps:$4 sm:$0xff]  }
 0x74c   :  { %16991 = vpow2.f32 %v14805_v6  ;;  %v18696_v37 = vld [vmem:[%s22147_s5 + $0x2c] ss:$16 sps:$4 sm:$0xff]   ;;  %v18702_v61 = vld [vmem:[%s22147_s5 + $0x20] ss:$16 sps:$4 sm:$0xff]   ;;  %v18707_v62 = vld [vmem:[%s22147_s5 + $0x28] ss:$16 sps:$4 sm:$0xff]  }
 0x74d   :  { %16993 = vtanh.f32 %v2612_v55  ;;  %v16354_v55 = vld [vmem:[%s22146_s4 + $0xec] ss:$16 sps:$4 sm:$0xff]   ;;  %v18715_v63 = vld [vmem:[%s22147_s5 + $0x44] ss:$16 sps:$4 sm:$0xff]   ;;  %v18726_v2 = vld [vmem:[%s22147_s5 + $0x40] ss:$16 sps:$4 sm:$0xff]  }
 0x74e   :  { %v18720_v0 = vld [vmem:[%s22147_s5 + $0x4c] ss:$16 sps:$4 sm:$0xff]   ;;  %v18731_v3 = vld [vmem:[%s22147_s5 + $0x48] ss:$16 sps:$4 sm:$0xff]   ;;  %v18739_v5 = vld [vmem:[%s22147_s5 + $0x60] ss:$16 sps:$4 sm:$0xff]  }
 0x74f   :  { %v18744_v6 = vld [vmem:[%s22147_s5 + $0x64] ss:$16 sps:$4 sm:$0xff]  }
 0x754   :  { %v16988_v32 = vpop.eup %16987 }
 0x755   :  { %v16990_v39 = vpop.eup %16989  ;;  %v2617_v43 = vadd.f32 1.0, %v16988_v32  ;;  %v18749_v32 = vld [vmem:[%s22147_s5 + $0x68] ss:$16 sps:$4 sm:$0xff]  }
 0x756   :  { %v2623_v40 = vadd.f32 1.0, %v16990_v39  ;;  %v16992_v38 = vpop.eup %16991  ;;  %v18755_v39 = vld [vmem:[%s22147_s5 + $0x6c] ss:$16 sps:$4 sm:$0xff]  }
 0x757   :  { %16995 = vrcp.f32 %v2617_v43  ;;  %v16994_v45 = vpop.eup %16993  ;;  %v2630_v47 = vadd.f32 1.0, %v16992_v38  ;;  %v18763_v43 = vld [vmem:[%s22147_s5 + $0x84] ss:$16 sps:$4 sm:$0xff]   ;;  %v18774_v38 = vld [vmem:[%s22147_s5 + $0x80] ss:$16 sps:$4 sm:$0xff]  }
 0x758   :  { %16997 = vrcp.f32 %v2623_v40  ;;  %v18768_v40 = vld [vmem:[%s22147_s5 + $0x8c] ss:$16 sps:$4 sm:$0xff]  }
 0x759   :  { %16999 = vrcp.f32 %v2630_v47  ;;  %v18803_v47 = vld [vmem:[%s22147_s5 + $0xac] ss:$16 sps:$4 sm:$0xff]  }
 0x761   :  { %v16996_v22 = vpop.eup %16995 }
 0x762   :  { %v16998_v42 = vpop.eup %16997  ;;  %v2634_v25 = vmul.f32 %v16996_v22, %v16994_v45  ;;  %v18779_v45 = vld [vmem:[%s22147_s5 + $0x88] ss:$16 sps:$4 sm:$0xff]   ;;  %v18787_v22 = vld [vmem:[%s22147_s5 + $0xa0] ss:$16 sps:$4 sm:$0xff]  }
 0x763   :  { %v2633_v12 = vmul.f32 %v16998_v42, %v18471_v53  ;;  %v17000_v54 = vpop.eup %16999  ;;  %v18792_v42 = vld [vmem:[%s22147_s5 + $0xa4] ss:$16 sps:$4 sm:$0xff]  }
 0x765   :  { %v18554_v49 = vadd.f32 %v2634_v25, %v2633_v12  ;;  %v18797_v25 = vld [vmem:[%s22147_s5 + $0xa8] ss:$16 sps:$4 sm:$0xff]   ;;  %v18811_v12 = vld [vmem:[%s22147_s5 + $0xc4] ss:$16 sps:$4 sm:$0xff]  }
 0x767   :  { %17001 = vtanh.f32 %v18554_v49 }
 0x771   :  { %v17002_v26 = vpop.eup %17001 }
 0x772   :  { %v18557_v29 = vmul.f32 %v17002_v26, %v17000_v54  ;;  %v18816_v54 = vld [vmem:[%s22147_s5 + $0xcc] ss:$16 sps:$4 sm:$0xff]   ;;  %v18822_v26 = vld [vmem:[%s22147_s5 + $0xc0] ss:$16 sps:$4 sm:$0xff]  }
 0x774   :  { %v2643_v53 = vpack.c.bf16 %v18557_v29, %v18557_v29 }
 0x776   :  { %2869 = vmatmul.mubr.bf16.vlgmr.msra.gmra.mrb[28].mxu0 %v2643_v53  ;;  %2910 = vmatmul.mubr.bf16.vlgmr.msra.gmra.mrb[60].mxu1 %v2643_v53  ;;  %v18840_v53 = vld [vmem:[%s22147_s5 + $0xe4] ss:$16 sps:$4 sm:$0xff]  }
 0x777   :  { %3174 = vmatpush1.bf16.msra.mxu0 %v16307_v30  ;;  %3247 = vmatpush1.bf16.msra.mxu1 %v16310_v28  ;;  %v18827_v30 = vld [vmem:[%s22147_s5 + $0xc8] ss:$16 sps:$4 sm:$0xff]   ;;  %v18835_v28 = vld [vmem:[%s22147_s5 + $0xe0] ss:$16 sps:$4 sm:$0xff]  }
 0x778   :  { %3175 = vmatprep.subr.bf16.mxu0 %v16315_v1  ;;  %3248 = vmatprep.subr.bf16.mxu1 %v16318_v51  ;;  %v18845_v1 = vld [vmem:[%s22147_s5 + $0xe8] ss:$16 sps:$4 sm:$0xff]   ;;  %v18851_v51 = vld [vmem:[%s22147_s5 + $0xec] ss:$16 sps:$4 sm:$0xff]  }
 0x779   :  { %3205 = vmatprep.mubr.bf16.mxu0 %v22201_v24  ;;  %3278 = vmatprep.mubr.bf16.mxu1 %v22201_v24 }
 0x77b   :  { %3176 = vmatpush1.bf16.msra.mxu0 %v16313_v41  ;;  %3249 = vmatpush1.bf16.msra.mxu1 %v16316_v16 }
 0x77c   :  { %3177 = vmatprep.subr.bf16.mxu0 %v16321_v52  ;;  %3250 = vmatprep.subr.bf16.mxu1 %v16324_v23  ;;  %v22215_v52 = vld [vmem:[#allocation12_spill] sm:$0xff] }
 0x77f   :  { %3178 = vmatpush1.bf16.msra.mxu0 %v16319_v27  ;;  %3251 = vmatpush1.bf16.msra.mxu1 %v16322_v35  ;;  %v22216_v27 = vld [vmem:[#allocation23_spill] sm:$0xff] }
 0x780   :  { %3179 = vmatprep.subr.bf16.mxu0 %v16327_v31  ;;  %3252 = vmatprep.subr.bf16.mxu1 %v16330_v36 }
 0x783   :  { %3180 = vmatpush1.bf16.msra.mxu0 %v16325_v19  ;;  %3253 = vmatpush1.bf16.msra.mxu1 %v16328_v10  ;;  %v22217_v19 = vld [vmem:[#allocation13_spill] sm:$0xff] }
 0x784   :  { %3181 = vmatprep.subr.bf16.mxu0 %v16333_v46  ;;  %3254 = vmatprep.subr.bf16.mxu1 %v16336_v9  ;;  %v22218_v46 = vld [vmem:[#allocation24_spill] sm:$0xff] }
 0x787   :  { %3182 = vmatpush1.bf16.msra.mxu0 %v16331_v44  ;;  %3255 = vmatpush1.bf16.msra.mxu1 %v16334_v15 }
 0x788   :  { %3183 = vmatprep.subr.bf16.mxu0 %v16339_v50  ;;  %3256 = vmatprep.subr.bf16.mxu1 %v16342_v4 }
 0x78b   :  { %3184 = vmatpush1.bf16.msra.mxu0 %v16337_v33  ;;  %3257 = vmatpush1.bf16.msra.mxu1 %v16340_v8 }
 0x78c   :  { %3185 = vmatprep.subr.bf16.mxu0 %v16345_v11  ;;  %3258 = vmatprep.subr.bf16.mxu1 %v16348_v13 }
 0x78f   :  { %3186 = vmatpush1.bf16.msra.mxu0 %v16343_v14  ;;  %3259 = vmatpush1.bf16.msra.mxu1 %v16346_v18 }
 0x790   :  { %3187 = vmatprep.subr.bf16.mxu0 %v16351_v17  ;;  %3260 = vmatprep.subr.bf16.mxu1 %v16354_v55 }
 0x793   :  { %3188 = vmatpush1.bf16.msra.mxu0 %v16349_v56  ;;  %3261 = vmatpush1.bf16.msra.mxu1 %v16352_v57 }
 0x794   :  { %3547 = vmatprep.subr.bf16.mxu0 %v18668_v48  ;;  %3588 = vmatprep.subr.bf16.mxu1 %v18684_v7 }
 0x796   :  { %3206 = vmatmul.mubr.bf16.vlgmr.msra.gmra.mrb[32].mxu0 %v2955_v58  ;;  %3279 = vmatmul.mubr.bf16.vlgmr.msra.gmra.mrb[64].mxu1 %v2955_v58 }
 0x797   :  { %3215 = vmatprep.mubr.bf16.mxu0 %v22201_v24  ;;  %3288 = vmatprep.mubr.bf16.mxu1 %v22201_v24 }
 0x798   :  { %3548 = vmatpush1.bf16.msra.mxu0 %v18673_v20  ;;  %3589 = vmatpush1.bf16.msra.mxu1 %v18679_v34 }
 0x799   :  { %3549 = vmatprep.subr.bf16.mxu0 %v18691_v21  ;;  %3590 = vmatprep.subr.bf16.mxu1 %v18696_v37 }
 0x79c   :  { %3550 = vmatpush1.bf16.msra.mxu0 %v18702_v61  ;;  %3591 = vmatpush1.bf16.msra.mxu1 %v18707_v62 }
 0x79d   :  { %3551 = vmatprep.subr.bf16.mxu0 %v18715_v63  ;;  %3592 = vmatprep.subr.bf16.mxu1 %v18720_v0 }
 0x79e   :  { %3216 = vmatmul.mubr.bf16.gmra.mrb[36].mxu0 %v2956_v59  ;;  %3289 = vmatmul.mubr.bf16.gmra.mrb[68].mxu1 %v2956_v59 }
 0x79f   :  { %3225 = vmatprep.mubr.bf16.mxu0 %v22201_v24  ;;  %3298 = vmatprep.mubr.bf16.mxu1 %v22201_v24 }
 0x7a0   :  { %3552 = vmatpush1.bf16.msra.mxu0 %v18726_v2  ;;  %3593 = vmatpush1.bf16.msra.mxu1 %v18731_v3 }
 0x7a1   :  { %3553 = vmatprep.subr.bf16.mxu0 %v18744_v6  ;;  %3594 = vmatprep.subr.bf16.mxu1 %v18755_v39 }
 0x7a4   :  { %3554 = vmatpush1.bf16.msra.mxu0 %v18739_v5  ;;  %3595 = vmatpush1.bf16.msra.mxu1 %v18749_v32 }
 0x7a5   :  { %3555 = vmatprep.subr.bf16.mxu0 %v18763_v43  ;;  %3596 = vmatprep.subr.bf16.mxu1 %v18768_v40 }
 0x7a6   :  { %3226 = vmatmul.mubr.bf16.gmra.mrb[40].mxu0 %v2957_v60  ;;  %3299 = vmatmul.mubr.bf16.gmra.mrb[72].mxu1 %v2957_v60 }
 0x7a7   :  { %3235 = vmatprep.mubr.bf16.mxu0 %v22201_v24  ;;  %3308 = vmatprep.mubr.bf16.mxu1 %v22201_v24 }
 0x7a8   :  { %3556 = vmatpush1.bf16.msra.mxu0 %v18774_v38  ;;  %3597 = vmatpush1.bf16.msra.mxu1 %v18779_v45 }
 0x7a9   :  { %3557 = vmatprep.subr.bf16.mxu0 %v18792_v42  ;;  %3598 = vmatprep.subr.bf16.mxu1 %v18803_v47 }
 0x7ac   :  { %3558 = vmatpush1.bf16.msra.mxu0 %v18787_v22  ;;  %3599 = vmatpush1.bf16.msra.mxu1 %v18797_v25 }
 0x7ad   :  { %3559 = vmatprep.subr.bf16.mxu0 %v18811_v12  ;;  %3600 = vmatprep.subr.bf16.mxu1 %v18816_v54 }
 0x7b0   :  { %3560 = vmatpush1.bf16.msra.mxu0 %v18822_v26  ;;  %3601 = vmatpush1.bf16.msra.mxu1 %v18827_v30 }
 0x7b1   :  { %3561 = vmatprep.subr.bf16.mxu0 %v18840_v53  ;;  %3602 = vmatprep.subr.bf16.mxu1 %v18851_v51 }
 0x7b4   :  { %3562 = vmatpush1.bf16.msra.mxu0 %v18835_v28  ;;  %3603 = vmatpush1.bf16.msra.mxu1 %v18845_v1 }
 0x7b5   :  { %3855 = vmatprep.subr.bf16.mxu0 %v18668_v48  ;;  %3896 = vmatprep.subr.bf16.mxu1 %v18684_v7 }
 0x849   :  { %v2870_v41 = vpop.f32.mrb[28].mxu0  ;;  %v2911_v16 = vpop.f32.mrb[60].mxu1 }
 0x84a   :  { %v2918_v23 = vadd.f32 %v2870_v41, %v22215_v52  ;;  %v2920_v35 = vadd.f32 %v2911_v16, %v22216_v27  ;;  %v2872_v31 = vpop.f32.mrb[29].mxu0  ;;  %v2913_v36 = vpop.f32.mrb[61].mxu1 }
 0x84b   :  { %v2919_v10 = vadd.f32 %v2872_v31, %v22217_v19  ;;  %v2921_v9 = vadd.f32 %v2913_v36, %v22218_v46  ;;  %v2874_v44 = vpop.f32.mrb[30].mxu0  ;;  %v2915_v15 = vpop.f32.mrb[62].mxu1 }
 0x84c   :  { %v14838_v50 = vmul.f32 -1.442695, %v2918_v23  ;;  %v2875_v4 = vpop.f32.mrb[31].mxu0  ;;  %v2916_v33 = vpop.f32.mrb[63].mxu1 }
 0x84d   :  { %v14839_v8 = vmul.f32 -1.442695, %v2919_v10  ;;  %v14840_v11 = vmul.f32 -1.442695, %v2921_v9 }
 0x84e   :  { %17003 = vpow2.f32 %v14838_v50 }
 0x84f   :  { %17005 = vpow2.f32 %v14839_v8 }
 0x850   :  { %17007 = vpow2.f32 %v14840_v11 }
 0x851   :  { %17009 = vtanh.f32 %v2920_v35 }
 0x858   :  { %v17004_v13 = vpop.eup %17003 }
 0x859   :  { %v17006_v14 = vpop.eup %17005  ;;  %v2925_v18 = vadd.f32 1.0, %v17004_v13 }
 0x85a   :  { %v2931_v17 = vadd.f32 1.0, %v17006_v14  ;;  %v17008_v55 = vpop.eup %17007 }
 0x85b   :  { %17011 = vrcp.f32 %v2925_v18  ;;  %v17010_v56 = vpop.eup %17009  ;;  %v2938_v60 = vadd.f32 1.0, %v17008_v55 }
 0x85c   :  { %17013 = vrcp.f32 %v2931_v17 }
 0x85d   :  { %17015 = vrcp.f32 %v2938_v60  ;;  %v2991_v60 = vld [vmem:[%s22148_s6] sm:$0xf] }
 0x865   :  { %v17012_v57 = vpop.eup %17011 }
 0x866   :  { %v17014_v58 = vpop.eup %17013  ;;  %v2942_v59 = vmul.f32 %v17012_v57, %v17010_v56 }
 0x867   :  { %v2941_v41 = vmul.f32 %v17014_v58, %v18554_v49  ;;  %v17016_v4 = vpop.eup %17015 }
 0x869   :  { %v18864_v16 = vpop.f32.mrb[32].mxu0  ;;  %v18866_v52 = vpop.f32.mrb[64].mxu1  ;;  %v2943_v23 = vadd.f32 %v2942_v59, %v2941_v41 }
 0x86a   :  { %v18868_v27 = vpop.f32.mrb[33].mxu0  ;;  %v18870_v35 = vpop.f32.mrb[65].mxu1 }
 0x86b   :  { %v18872_v31 = vpop.f32.mrb[34].mxu0  ;;  %v18874_v36 = vpop.f32.mrb[66].mxu1  ;;  %17017 = vtanh.f32 %v2943_v23 }
 0x86c   :  { %v18876_v19 = vpop.f32.mrb[35].mxu0  ;;  %v18878_v10 = vpop.f32.mrb[67].mxu1 }
 0x871   :  { %v18880_v49 = vpop.f32.mrb[36].mxu0  ;;  %v18882_v46 = vpop.f32.mrb[68].mxu1 }
 0x872   :  { %22219 = vst [vmem:[#allocation16_spill] sm:$0xff] %v18882_v46  ;;  %v18884_v9 = vpop.f32.mrb[37].mxu0  ;;  %v18886_v44 = vpop.f32.mrb[69].mxu1 }
 0x873   :  { %22220 = vst [vmem:[#allocation6_spill] sm:$0xff] %v18884_v9  ;;  %22221 = vst [vmem:[#allocation17_spill] sm:$0xff] %v18886_v44  ;;  %v18888_v15 = vpop.f32.mrb[38].mxu0  ;;  %v18890_v50 = vpop.f32.mrb[70].mxu1 }
 0x874   :  { %22222 = vst [vmem:[#allocation7_spill] sm:$0xff] %v18888_v15  ;;  %22223 = vst [vmem:[#allocation18_spill] sm:$0xff] %v18890_v50  ;;  %v18892_v33 = vpop.f32.mrb[39].mxu0  ;;  %v18894_v8 = vpop.f32.mrb[71].mxu1 }
 0x875   :  { %22224 = vst [vmem:[#allocation8_spill] sm:$0xff] %v18892_v33  ;;  %22225 = vst [vmem:[#allocation19_spill] sm:$0xff] %v18894_v8  ;;  %v17018_v11 = vpop.eup %17017 }
 0x876   :  { %v2945_v13 = vmul.f32 %v17018_v11, %v17016_v4 }
 0x878   :  { %v2958_v14 = vpack.c.bf16 %v2945_v13, %v18557_v29 }
 0x879   :  { %v18897_v18 = vpop.f32.mrb[40].mxu0  ;;  %v18899_v17 = vpop.f32.mrb[72].mxu1 }
 0x87a   :  { %22226 = vst [vmem:[#allocation9_spill] sm:$0xff] %v18897_v18  ;;  %22227 = vst [vmem:[#allocation20_spill] sm:$0xff] %v18899_v17  ;;  %v18901_v55 = vpop.f32.mrb[41].mxu0  ;;  %v18903_v56 = vpop.f32.mrb[73].mxu1  ;;  %3236 = vmatmul.mubr.bf16.gmra.mrb[44].mxu0 %v2958_v14  ;;  %3309 = vmatmul.mubr.bf16.gmra.mrb[76].mxu1 %v2958_v14 }
 0x87b   :  { %22228 = vst [vmem:[#allocation10_spill] sm:$0xff] %v18901_v55  ;;  %22229 = vst [vmem:[#allocation21_spill] sm:$0xff] %v18903_v56  ;;  %v18905_v57 = vpop.f32.mrb[42].mxu0  ;;  %v18907_v58 = vpop.f32.mrb[74].mxu1  ;;  %3579 = vmatprep.mubr.bf16.mxu0 %v22201_v24  ;;  %3620 = vmatprep.mubr.bf16.mxu1 %v22201_v24 }
 0x87c   :  { %22230 = vst [vmem:[#allocation11_spill] sm:$0xff] %v18905_v57  ;;  %22231 = vst [vmem:[#allocation22_spill] sm:$0xff] %v18907_v58  ;;  %v18911_v59 = vpop.f32.mrb[43].mxu0  ;;  %v18913_v29 = vpop.f32.mrb[75].mxu1  ;;  %v22241_v58 = vld [vmem:[#allocation14_spill] sm:$0xff] }
 0x87d   :  { %22232 = vst [vmem:[#allocation12_spill] sm:$0xff] %v18911_v59  ;;  %22233 = vst [vmem:[#allocation23_spill] sm:$0xff] %v18913_v29  ;;  %v22240_v29 = vld [vmem:[#allocation4_spill] sm:$0xff]  ;;  %v18970_v57 = vrot.slane %v2991_v60, %v22241_v58 }
 0x87e   :  { %v18967_v59 = vrot.slane %v2991_v60, %v22240_v29 }
 0x87f   :  { %v3281_v29 = vadd.f32 %v18866_v52, %v18970_v57 }
 0x882   :  { %3580 = vmatmul.mubr.bf16.vlgmr.msra.gmra.mrb[48].mxu0 %v22201_v24  ;;  %3621 = vmatmul.mubr.bf16.vlgmr.msra.gmra.mrb[80].mxu1 %v22201_v24 }
 0x883   :  { %3856 = vmatpush1.bf16.msra.mxu0 %v18673_v20  ;;  %3897 = vmatpush1.bf16.msra.mxu1 %v18679_v34 }
 0x884   :  { %3857 = vmatprep.subr.bf16.mxu0 %v18691_v21  ;;  %3898 = vmatprep.subr.bf16.mxu1 %v18696_v37 }
 0x885   :  { %3887 = vmatprep.mubr.bf16.mxu0 %v22201_v24  ;;  %3928 = vmatprep.mubr.bf16.mxu1 %v22201_v24 }
 0x887   :  { %3858 = vmatpush1.bf16.msra.mxu0 %v18702_v61  ;;  %3899 = vmatpush1.bf16.msra.mxu1 %v18707_v62 }
 0x888   :  { %3859 = vmatprep.subr.bf16.mxu0 %v18715_v63  ;;  %3900 = vmatprep.subr.bf16.mxu1 %v18720_v0 }
 0x88b   :  { %3860 = vmatpush1.bf16.msra.mxu0 %v18726_v2  ;;  %3901 = vmatpush1.bf16.msra.mxu1 %v18731_v3 }
 0x88c   :  { %3861 = vmatprep.subr.bf16.mxu0 %v18744_v6  ;;  %3902 = vmatprep.subr.bf16.mxu1 %v18755_v39 }
 0x88f   :  { %3862 = vmatpush1.bf16.msra.mxu0 %v18739_v5  ;;  %3903 = vmatpush1.bf16.msra.mxu1 %v18749_v32 }
 0x890   :  { %3863 = vmatprep.subr.bf16.mxu0 %v18763_v43  ;;  %3904 = vmatprep.subr.bf16.mxu1 %v18768_v40 }
 0x893   :  { %3864 = vmatpush1.bf16.msra.mxu0 %v18774_v38  ;;  %3905 = vmatpush1.bf16.msra.mxu1 %v18779_v45 }
 0x894   :  { %3865 = vmatprep.subr.bf16.mxu0 %v18792_v42  ;;  %3906 = vmatprep.subr.bf16.mxu1 %v18803_v47 }
 0x897   :  { %3866 = vmatpush1.bf16.msra.mxu0 %v18787_v22  ;;  %3907 = vmatpush1.bf16.msra.mxu1 %v18797_v25 }
 0x898   :  { %3867 = vmatprep.subr.bf16.mxu0 %v18811_v12  ;;  %3908 = vmatprep.subr.bf16.mxu1 %v18816_v54 }
 0x89b   :  { %3868 = vmatpush1.bf16.msra.mxu0 %v18822_v26  ;;  %3909 = vmatpush1.bf16.msra.mxu1 %v18827_v30 }
 0x89c   :  { %3869 = vmatprep.subr.bf16.mxu0 %v18840_v53  ;;  %3910 = vmatprep.subr.bf16.mxu1 %v18851_v51 }
 0x89f   :  { %3870 = vmatpush1.bf16.msra.mxu0 %v18835_v28  ;;  %3911 = vmatpush1.bf16.msra.mxu1 %v18845_v1 }
 0x8a0   :  { %4163 = vmatprep.subr.bf16.mxu0 %v18668_v48  ;;  %4204 = vmatprep.subr.bf16.mxu1 %v18684_v7 }
 0x94d   :  { %v18954_v41 = vpop.f32.mrb[44].mxu0  ;;  %v18956_v23 = vpop.f32.mrb[76].mxu1 }
 0x94e   :  { %22234 = vst [vmem:[#allocation13_spill] sm:$0xff] %v18954_v41  ;;  %22235 = vst [vmem:[#allocation24_spill] sm:$0xff] %v18956_v23  ;;  %v18958_v4 = vpop.f32.mrb[45].mxu0  ;;  %v18960_v11 = vpop.f32.mrb[77].mxu1  ;;  %v22244_v41 = vld [vmem:[#allocation5_spill] sm:$0xff] }
 0x94f   :  { %22236 = vst [vmem:[#allocation25_spill] sm:$0xff] %v18958_v4  ;;  %22237 = vst [vmem:[#allocation26_spill] sm:$0xff] %v18960_v11  ;;  %v18962_v13 = vpop.f32.mrb[46].mxu0  ;;  %v18964_v14 = vpop.f32.mrb[78].mxu1  ;;  %v18977_v23 = vrot.slane %v2991_v60, %v22244_v41  ;;  %v22245_v4 = vld [vmem:[#allocation15_spill] sm:$0xff] }
 0x950   :  { %22238 = vst [vmem:[#allocation27_spill] sm:$0xff] %v18962_v13  ;;  %22239 = vst [vmem:[#allocation28_spill] sm:$0xff] %v18964_v14  ;;  %v18972_v56 = vpop.f32.mrb[47].mxu0  ;;  %v18974_v55 = vpop.f32.mrb[79].mxu1  ;;  %v18980_v17 = vrot.slane %v2991_v60, %v22245_v4  ;;  %v3208_v13 = vadd.f32 %v18864_v16, %v18967_v59 }
 0x951   :  { %22242 = vst [vmem:[#allocation29_spill] sm:$0xff] %v18972_v56  ;;  %22243 = vst [vmem:[#allocation30_spill] sm:$0xff] %v18974_v55  ;;  %v3210_v58 = vadd.f32 %v18868_v27, %v18977_v23 }
 0x952   :  { %v3283_v56 = vadd.f32 %v18870_v35, %v18980_v17 }
 0x955   :  { %v3581_v14 = vpop.f32.mrb[48].mxu0  ;;  %v3622_v55 = vpop.f32.mrb[80].mxu1 }
 0x956   :  { %v3629_v11 = vadd.f32 %v3581_v14, %v3208_v13  ;;  %v3631_v41 = vadd.f32 %v3622_v55, %v3281_v29  ;;  %v3583_v18 = vpop.f32.mrb[49].mxu0  ;;  %v3624_v8 = vpop.f32.mrb[81].mxu1  ;;  %v3287_v14 = vadd.f32 %v18878_v10, %v18980_v17 }
 0x957   :  { %v3630_v60 = vadd.f32 %v3583_v18, %v3210_v58  ;;  %v3632_v4 = vadd.f32 %v3624_v8, %v3283_v56  ;;  %v3585_v33 = vpop.f32.mrb[50].mxu0  ;;  %v3626_v50 = vpop.f32.mrb[82].mxu1 }
 0x958   :  { %v14905_v16 = vmul.f32 -1.442695, %v3629_v11  ;;  %v3586_v15 = vpop.f32.mrb[51].mxu0  ;;  %v3627_v44 = vpop.f32.mrb[83].mxu1  ;;  %v3214_v11 = vadd.f32 %v18876_v19, %v18977_v23 }
 0x959   :  { %v14906_v52 = vmul.f32 -1.442695, %v3630_v60  ;;  %v14907_v27 = vmul.f32 -1.442695, %v3632_v4  ;;  %v3285_v4 = vadd.f32 %v18874_v36, %v18970_v57 }
 0x95a   :  { %17019 = vpow2.f32 %v14905_v16 }
 0x95b   :  { %17021 = vpow2.f32 %v14906_v52 }
 0x95c   :  { %17023 = vpow2.f32 %v14907_v27 }
 0x95d   :  { %17025 = vtanh.f32 %v3631_v41  ;;  %v3212_v41 = vadd.f32 %v18872_v31, %v18967_v59 }
 0x964   :  { %v17020_v9 = vpop.eup %17019 }
 0x965   :  { %v17022_v46 = vpop.eup %17021  ;;  %v3636_v35 = vadd.f32 1.0, %v17020_v9 }
 0x966   :  { %v3642_v13 = vadd.f32 1.0, %v17022_v46  ;;  %v17024_v55 = vpop.eup %17023 }
 0x967   :  { %17027 = vrcp.f32 %v3636_v35  ;;  %v17026_v18 = vpop.eup %17025  ;;  %v3649_v56 = vadd.f32 1.0, %v17024_v55 }
 0x968   :  { %17029 = vrcp.f32 %v3642_v13 }
 0x969   :  { %17031 = vrcp.f32 %v3649_v56 }
 0x971   :  { %v17028_v8 = vpop.eup %17027 }
 0x972   :  { %v17030_v33 = vpop.eup %17029  ;;  %v3653_v50 = vmul.f32 %v17028_v8, %v17026_v18 }
 0x973   :  { %v3652_v15 = vmul.f32 0.0, %v17030_v33  ;;  %v17032_v58 = vpop.eup %17031 }
 0x975   :  { %v18990_v44 = vadd.f32 %v3653_v50, %v3652_v15 }
 0x977   :  { %17033 = vtanh.f32 %v18990_v44 }
 0x981   :  { %v17034_v29 = vpop.eup %17033 }
 0x982   :  { %v18993_v9 = vmul.f32 %v17034_v29, %v17032_v58 }
 0x984   :  { %v3662_v46 = vpack.c.bf16 %v18993_v9, %v18993_v9 }
 0x986   :  { %3888 = vmatmul.mubr.bf16.vlgmr.msra.gmra.mrb[52].mxu0 %v3662_v46  ;;  %3929 = vmatmul.mubr.bf16.vlgmr.msra.gmra.mrb[84].mxu1 %v3662_v46 }
 0x987   :  { %4164 = vmatpush1.bf16.msra.mxu0 %v18673_v20  ;;  %4205 = vmatpush1.bf16.msra.mxu1 %v18679_v34 }
 0x988   :  { %4165 = vmatprep.subr.bf16.mxu0 %v18691_v21  ;;  %4206 = vmatprep.subr.bf16.mxu1 %v18696_v37 }
 0x989   :  { %4195 = vmatprep.mubr.bf16.mxu0 %v22201_v24  ;;  %4236 = vmatprep.mubr.bf16.mxu1 %v22201_v24 }
 0x98b   :  { %4166 = vmatpush1.bf16.msra.mxu0 %v18702_v61  ;;  %4207 = vmatpush1.bf16.msra.mxu1 %v18707_v62 }
 0x98c   :  { %4167 = vmatprep.subr.bf16.mxu0 %v18715_v63  ;;  %4208 = vmatprep.subr.bf16.mxu1 %v18720_v0 }
 0x98f   :  { %4168 = vmatpush1.bf16.msra.mxu0 %v18726_v2  ;;  %4209 = vmatpush1.bf16.msra.mxu1 %v18731_v3 }
 0x990   :  { %4169 = vmatprep.subr.bf16.mxu0 %v18744_v6  ;;  %4210 = vmatprep.subr.bf16.mxu1 %v18755_v39 }
 0x993   :  { %4170 = vmatpush1.bf16.msra.mxu0 %v18739_v5  ;;  %4211 = vmatpush1.bf16.msra.mxu1 %v18749_v32 }
 0x994   :  { %4171 = vmatprep.subr.bf16.mxu0 %v18763_v43  ;;  %4212 = vmatprep.subr.bf16.mxu1 %v18768_v40 }
 0x997   :  { %4172 = vmatpush1.bf16.msra.mxu0 %v18774_v38  ;;  %4213 = vmatpush1.bf16.msra.mxu1 %v18779_v45 }
 0x998   :  { %4173 = vmatprep.subr.bf16.mxu0 %v18792_v42  ;;  %4214 = vmatprep.subr.bf16.mxu1 %v18803_v47 }
 0x99b   :  { %4174 = vmatpush1.bf16.msra.mxu0 %v18787_v22  ;;  %4215 = vmatpush1.bf16.msra.mxu1 %v18797_v25 }
 0x99c   :  { %4175 = vmatprep.subr.bf16.mxu0 %v18811_v12  ;;  %4216 = vmatprep.subr.bf16.mxu1 %v18816_v54 }
 0x99f   :  { %4176 = vmatpush1.bf16.msra.mxu0 %v18822_v26  ;;  %4217 = vmatpush1.bf16.msra.mxu1 %v18827_v30 }
 0x9a0   :  { %4177 = vmatprep.subr.bf16.mxu0 %v18840_v53  ;;  %4218 = vmatprep.subr.bf16.mxu1 %v18851_v51 }
 0x9a3   :  { %4178 = vmatpush1.bf16.msra.mxu0 %v18835_v28  ;;  %4219 = vmatpush1.bf16.msra.mxu1 %v18845_v1 }
 0x9a4   :  { %4471 = vmatprep.subr.bf16.mxu0 %v18668_v48  ;;  %4512 = vmatprep.subr.bf16.mxu1 %v18684_v7 }
 0xa59   :  { %v3889_v60 = vpop.f32.mrb[52].mxu0  ;;  %v3930_v16 = vpop.f32.mrb[84].mxu1 }
 0xa5a   :  { %v3937_v52 = vadd.f32 %v3889_v60, %v3212_v41  ;;  %v3939_v27 = vadd.f32 %v3930_v16, %v3285_v4  ;;  %v3891_v35 = vpop.f32.mrb[53].mxu0  ;;  %v3932_v48 = vpop.f32.mrb[85].mxu1 }
 0xa5b   :  { %v3938_v13 = vadd.f32 %v3891_v35, %v3214_v11  ;;  %v3940_v7 = vadd.f32 %v3932_v48, %v3287_v14  ;;  %v3893_v55 = vpop.f32.mrb[54].mxu0  ;;  %v3934_v18 = vpop.f32.mrb[86].mxu1 }
 0xa5c   :  { %v14940_v31 = vmul.f32 -1.442695, %v3937_v52  ;;  %v3894_v8 = vpop.f32.mrb[55].mxu0  ;;  %v3935_v33 = vpop.f32.mrb[87].mxu1 }
 0xa5d   :  { %v14941_v36 = vmul.f32 -1.442695, %v3938_v13  ;;  %v14942_v19 = vmul.f32 -1.442695, %v3940_v7  ;;  %v19100_v8 = vld [vmem:[%s22147_s5 + $0x4] ss:$16 sps:$4 sm:$0xff]  }
 0xa5e   :  { %17035 = vpow2.f32 %v14940_v31  ;;  %v19105_v33 = vld [vmem:[%s22147_s5 + $0xc] ss:$16 sps:$4 sm:$0xff]  }
 0xa5f   :  { %17037 = vpow2.f32 %v14941_v36  ;;  %v19110_v36 = vld [vmem:[%s22147_s5] ss:$16 sps:$4 sm:$0xff]  }
 0xa60   :  { %17039 = vpow2.f32 %v14942_v19  ;;  %v19115_v19 = vld [vmem:[%s22147_s5 + $0x8] ss:$16 sps:$4 sm:$0xff]  }
 0xa61   :  { %17041 = vtanh.f32 %v3939_v27 }
 0xa68   :  { %v17036_v50 = vpop.eup %17035 }
 0xa69   :  { %v17038_v56 = vpop.eup %17037  ;;  %v3944_v10 = vadd.f32 1.0, %v17036_v50  ;;  %v19124_v50 = vld [vmem:[%s22147_s5 + $0x24] ss:$16 sps:$4 sm:$0xff]  }
 0xa6a   :  { %v3950_v15 = vadd.f32 1.0, %v17038_v56  ;;  %v17040_v58 = vpop.eup %17039  ;;  %v19129_v56 = vld [vmem:[%s22147_s5 + $0x2c] ss:$16 sps:$4 sm:$0xff]  }
 0xa6b   :  { %17043 = vrcp.f32 %v3944_v10  ;;  %v17042_v29 = vpop.eup %17041  ;;  %v3957_v11 = vadd.f32 1.0, %v17040_v58  ;;  %v19134_v10 = vld [vmem:[%s22147_s5 + $0x20] ss:$16 sps:$4 sm:$0xff]   ;;  %v19148_v58 = vld [vmem:[%s22147_s5 + $0x44] ss:$16 sps:$4 sm:$0xff]  }
 0xa6c   :  { %17045 = vrcp.f32 %v3950_v15  ;;  %v19139_v15 = vld [vmem:[%s22147_s5 + $0x28] ss:$16 sps:$4 sm:$0xff]  }
 0xa6d   :  { %17047 = vrcp.f32 %v3957_v11  ;;  %v19177_v11 = vld [vmem:[%s22147_s5 + $0x6c] ss:$16 sps:$4 sm:$0xff]  }
 0xa75   :  { %v17044_v46 = vpop.eup %17043 }
 0xa76   :  { %v17046_v41 = vpop.eup %17045  ;;  %v3961_v4 = vmul.f32 %v17044_v46, %v17042_v29  ;;  %v19153_v29 = vld [vmem:[%s22147_s5 + $0x4c] ss:$16 sps:$4 sm:$0xff]   ;;  %v19158_v46 = vld [vmem:[%s22147_s5 + $0x40] ss:$16 sps:$4 sm:$0xff]  }
 0xa77   :  { %v3960_v14 = vmul.f32 %v17046_v41, %v18990_v44  ;;  %v17048_v16 = vpop.eup %17047  ;;  %v19163_v41 = vld [vmem:[%s22147_s5 + $0x48] ss:$16 sps:$4 sm:$0xff]  }
 0xa79   :  { %v19040_v60 = vadd.f32 %v3961_v4, %v3960_v14  ;;  %v19172_v4 = vld [vmem:[%s22147_s5 + $0x64] ss:$16 sps:$4 sm:$0xff]   ;;  %v19182_v14 = vld [vmem:[%s22147_s5 + $0x60] ss:$16 sps:$4 sm:$0xff]  }
 0xa7b   :  { %17049 = vtanh.f32 %v19040_v60 }
 0xa85   :  { %v17050_v52 = vpop.eup %17049 }
 0xa86   :  { %v19043_v35 = vmul.f32 %v17050_v52, %v17048_v16  ;;  %v19196_v16 = vld [vmem:[%s22147_s5 + $0x84] ss:$16 sps:$4 sm:$0xff]   ;;  %v19201_v52 = vld [vmem:[%s22147_s5 + $0x8c] ss:$16 sps:$4 sm:$0xff]  }
 0xa88   :  { %v3970_v27 = vpack.c.bf16 %v19043_v35, %v19043_v35 }
 0xa8a   :  { %4196 = vmatmul.mubr.bf16.vlgmr.msra.gmra.mrb[56].mxu0 %v3970_v27  ;;  %4237 = vmatmul.mubr.bf16.vlgmr.msra.gmra.mrb[88].mxu1 %v3970_v27  ;;  %v19206_v27 = vld [vmem:[%s22147_s5 + $0x80] ss:$16 sps:$4 sm:$0xff]  }
 0xa8b   :  { %4472 = vmatpush1.bf16.msra.mxu0 %v18673_v20  ;;  %4513 = vmatpush1.bf16.msra.mxu1 %v18679_v34  ;;  %v3218_v20 = vadd.f32 %v18880_v49, %v18967_v59  ;;  %v22246_v34 = vld [vmem:[#allocation16_spill] sm:$0xff] }
 0xa8c   :  { %4473 = vmatprep.subr.bf16.mxu0 %v18691_v21  ;;  %4514 = vmatprep.subr.bf16.mxu1 %v18696_v37  ;;  %v3291_v21 = vadd.f32 %v22246_v34, %v18970_v57  ;;  %v22247_v37 = vld [vmem:[#allocation6_spill] sm:$0xff] }
 0xa8d   :  { %4503 = vmatprep.mubr.bf16.mxu0 %v22201_v24  ;;  %4544 = vmatprep.mubr.bf16.mxu1 %v22201_v24  ;;  %v19218_v34 = vld [vmem:[%s22147_s5 + $0xa4] ss:$16 sps:$4 sm:$0xff]  }
 0xa8f   :  { %4474 = vmatpush1.bf16.msra.mxu0 %v18702_v61  ;;  %4515 = vmatpush1.bf16.msra.mxu1 %v18707_v62  ;;  %v3220_v61 = vadd.f32 %v22247_v37, %v18977_v23  ;;  %v22248_v62 = vld [vmem:[#allocation17_spill] sm:$0xff] }
 0xa90   :  { %4475 = vmatprep.subr.bf16.mxu0 %v18715_v63  ;;  %4516 = vmatprep.subr.bf16.mxu1 %v18720_v0  ;;  %v3293_v63 = vadd.f32 %v22248_v62, %v18980_v17  ;;  %v19230_v37 = vld [vmem:[%s22147_s5 + $0xa8] ss:$16 sps:$4 sm:$0xff]   ;;  %v19241_v62 = vld [vmem:[%s22147_s5 + $0xc4] ss:$16 sps:$4 sm:$0xff]  }
 0xa93   :  { %4476 = vmatpush1.bf16.msra.mxu0 %v18726_v2  ;;  %4517 = vmatpush1.bf16.msra.mxu1 %v18731_v3 }
 0xa94   :  { %4477 = vmatprep.subr.bf16.mxu0 %v18744_v6  ;;  %4518 = vmatprep.subr.bf16.mxu1 %v18755_v39 }
 0xa97   :  { %4478 = vmatpush1.bf16.msra.mxu0 %v18739_v5  ;;  %4519 = vmatpush1.bf16.msra.mxu1 %v18749_v32 }
 0xa98   :  { %4479 = vmatprep.subr.bf16.mxu0 %v18763_v43  ;;  %4520 = vmatprep.subr.bf16.mxu1 %v18768_v40 }
 0xa9b   :  { %4480 = vmatpush1.bf16.msra.mxu0 %v18774_v38  ;;  %4521 = vmatpush1.bf16.msra.mxu1 %v18779_v45 }
 0xa9c   :  { %4481 = vmatprep.subr.bf16.mxu0 %v18792_v42  ;;  %4522 = vmatprep.subr.bf16.mxu1 %v18803_v47 }
 0xa9f   :  { %4482 = vmatpush1.bf16.msra.mxu0 %v18787_v22  ;;  %4523 = vmatpush1.bf16.msra.mxu1 %v18797_v25 }
 0xaa0   :  { %4483 = vmatprep.subr.bf16.mxu0 %v18811_v12  ;;  %4524 = vmatprep.subr.bf16.mxu1 %v18816_v54 }
 0xaa3   :  { %4484 = vmatpush1.bf16.msra.mxu0 %v18822_v26  ;;  %4525 = vmatpush1.bf16.msra.mxu1 %v18827_v30 }
 0xaa4   :  { %4485 = vmatprep.subr.bf16.mxu0 %v18840_v53  ;;  %4526 = vmatprep.subr.bf16.mxu1 %v18851_v51 }
 0xaa7   :  { %4486 = vmatpush1.bf16.msra.mxu0 %v18835_v28  ;;  %4527 = vmatpush1.bf16.msra.mxu1 %v18845_v1 }
 0xaa8   :  { %4779 = vmatprep.subr.bf16.mxu0 %v19100_v8  ;;  %4820 = vmatprep.subr.bf16.mxu1 %v19105_v33 }
 0xb5d   :  { %v4197_v0 = vpop.f32.mrb[56].mxu0  ;;  %v4238_v2 = vpop.f32.mrb[88].mxu1 }
 0xb5e   :  { %v4245_v3 = vadd.f32 %v4197_v0, %v3218_v20  ;;  %v4247_v5 = vadd.f32 %v4238_v2, %v3291_v21  ;;  %v4199_v6 = vpop.f32.mrb[57].mxu0  ;;  %v4240_v32 = vpop.f32.mrb[89].mxu1  ;;  %v19211_v20 = vld [vmem:[%s22147_s5 + $0x88] ss:$16 sps:$4 sm:$0xff]   ;;  %v19225_v21 = vld [vmem:[%s22147_s5 + $0xa0] ss:$16 sps:$4 sm:$0xff]  }
 0xb5f   :  { %v4246_v39 = vadd.f32 %v4199_v6, %v3220_v61  ;;  %v4248_v43 = vadd.f32 %v4240_v32, %v3293_v63  ;;  %v4201_v40 = vpop.f32.mrb[58].mxu0  ;;  %v4242_v38 = vpop.f32.mrb[90].mxu1  ;;  %v19235_v61 = vld [vmem:[%s22147_s5 + $0xac] ss:$16 sps:$4 sm:$0xff]   ;;  %v19254_v0 = vld [vmem:[%s22147_s5 + $0xc0] ss:$16 sps:$4 sm:$0xff]  }
 0xb60   :  { %v14975_v45 = vmul.f32 -1.442695, %v4245_v3  ;;  %v4202_v22 = vpop.f32.mrb[59].mxu0  ;;  %v4243_v42 = vpop.f32.mrb[91].mxu1  ;;  %v19246_v63 = vld [vmem:[%s22147_s5 + $0xcc] ss:$16 sps:$4 sm:$0xff]  }
 0xb61   :  { %v14976_v25 = vmul.f32 -1.442695, %v4246_v39  ;;  %v14977_v47 = vmul.f32 -1.442695, %v4248_v43  ;;  %v19259_v2 = vld [vmem:[%s22147_s5 + $0xc8] ss:$16 sps:$4 sm:$0xff]  }
 0xb62   :  { %17051 = vpow2.f32 %v14975_v45  ;;  %v19266_v3 = vld [vmem:[%s22147_s5 + $0xe4] ss:$16 sps:$4 sm:$0xff]   ;;  %v19278_v6 = vld [vmem:[%s22147_s5 + $0xe0] ss:$16 sps:$4 sm:$0xff]   ;;  %v19283_v32 = vld [vmem:[%s22147_s5 + $0xe8] ss:$16 sps:$4 sm:$0xff]  }
 0xb63   :  { %17053 = vpow2.f32 %v14976_v25  ;;  %v22249_v39 = vld [vmem:[#allocation7_spill] sm:$0xff]  ;;  %v22250_v40 = vld [vmem:[#allocation18_spill] sm:$0xff]  ;;  %v22251_v45 = vld [vmem:[#allocation8_spill] sm:$0xff] }
 0xb64   :  { %17055 = vpow2.f32 %v14977_v47  ;;  %v3222_v43 = vadd.f32 %v22249_v39, %v18967_v59  ;;  %v3295_v38 = vadd.f32 %v22250_v40, %v18970_v57  ;;  %v3224_v22 = vadd.f32 %v22251_v45, %v18977_v23  ;;  %v22252_v42 = vld [vmem:[#allocation19_spill] sm:$0xff] }
 0xb65   :  { %17057 = vtanh.f32 %v4247_v5  ;;  %v19271_v5 = vld [vmem:[%s22147_s5 + $0xec] ss:$16 sps:$4 sm:$0xff]   ;;  %v3297_v25 = vadd.f32 %v22252_v42, %v18980_v17 }
 0xb6c   :  { %v17052_v12 = vpop.eup %17051 }
 0xb6d   :  { %v17054_v54 = vpop.eup %17053  ;;  %v4252_v26 = vadd.f32 1.0, %v17052_v12 }
 0xb6e   :  { %v4258_v30 = vadd.f32 1.0, %v17054_v54  ;;  %v17056_v28 = vpop.eup %17055 }
 0xb6f   :  { %17059 = vrcp.f32 %v4252_v26  ;;  %v17058_v53 = vpop.eup %17057  ;;  %v4265_v44 = vadd.f32 1.0, %v17056_v28 }
 0xb70   :  { %17061 = vrcp.f32 %v4258_v30 }
 0xb71   :  { %17063 = vrcp.f32 %v4265_v44 }
 0xb79   :  { %v17060_v1 = vpop.eup %17059 }
 0xb7a   :  { %v17062_v51 = vpop.eup %17061  ;;  %v4269_v49 = vmul.f32 %v17060_v1, %v17058_v53 }
 0xb7b   :  { %v4268_v48 = vmul.f32 %v17062_v51, %v19040_v60  ;;  %v17064_v7 = vpop.eup %17063  ;;  %v19187_v60 = vld [vmem:[%s22147_s5 + $0x68] ss:$16 sps:$4 sm:$0xff]  }
 0xb7d   :  { %v19088_v13 = vadd.f32 %v4269_v49, %v4268_v48 }
 0xb7f   :  { %17065 = vtanh.f32 %v19088_v13 }
 0xb89   :  { %v17066_v55 = vpop.eup %17065 }
 0xb8a   :  { %v19091_v18 = vmul.f32 %v17066_v55, %v17064_v7 }
 0xb8c   :  { %v4278_v31 = vpack.c.bf16 %v19091_v18, %v19091_v18 }
 0xb8e   :  { %4504 = vmatmul.mubr.bf16.vlgmr.msra.gmra.mrb[60].mxu0 %v4278_v31  ;;  %4545 = vmatmul.mubr.bf16.vlgmr.msra.gmra.mrb[92].mxu1 %v4278_v31 }
 0xb8f   :  { %4811 = vmatprep.mubr.bf16.mxu0 %v22201_v24  ;;  %4852 = vmatprep.mubr.bf16.mxu1 %v22201_v24 }
 0xb90   :  { %4780 = vmatpush1.bf16.msra.mxu0 %v19110_v36  ;;  %4821 = vmatpush1.bf16.msra.mxu1 %v19115_v19 }
 0xb91   :  { %4781 = vmatprep.subr.bf16.mxu0 %v19124_v50  ;;  %4822 = vmatprep.subr.bf16.mxu1 %v19129_v56 }
 0xb94   :  { %4782 = vmatpush1.bf16.msra.mxu0 %v19134_v10  ;;  %4823 = vmatpush1.bf16.msra.mxu1 %v19139_v15 }
 0xb95   :  { %4783 = vmatprep.subr.bf16.mxu0 %v19148_v58  ;;  %4824 = vmatprep.subr.bf16.mxu1 %v19153_v29 }
 0xb98   :  { %4784 = vmatpush1.bf16.msra.mxu0 %v19158_v46  ;;  %4825 = vmatpush1.bf16.msra.mxu1 %v19163_v41 }
 0xb99   :  { %4785 = vmatprep.subr.bf16.mxu0 %v19172_v4  ;;  %4826 = vmatprep.subr.bf16.mxu1 %v19177_v11 }
 0xb9c   :  { %4786 = vmatpush1.bf16.msra.mxu0 %v19182_v14  ;;  %4827 = vmatpush1.bf16.msra.mxu1 %v19187_v60 }
 0xb9d   :  { %4787 = vmatprep.subr.bf16.mxu0 %v19196_v16  ;;  %4828 = vmatprep.subr.bf16.mxu1 %v19201_v52 }
 0xba0   :  { %4788 = vmatpush1.bf16.msra.mxu0 %v19206_v27  ;;  %4829 = vmatpush1.bf16.msra.mxu1 %v19211_v20 }
 0xba1   :  { %4789 = vmatprep.subr.bf16.mxu0 %v19218_v34  ;;  %4830 = vmatprep.subr.bf16.mxu1 %v19235_v61 }
 0xba4   :  { %4790 = vmatpush1.bf16.msra.mxu0 %v19225_v21  ;;  %4831 = vmatpush1.bf16.msra.mxu1 %v19230_v37 }
 0xba5   :  { %4791 = vmatprep.subr.bf16.mxu0 %v19241_v62  ;;  %4832 = vmatprep.subr.bf16.mxu1 %v19246_v63 }
 0xba8   :  { %4792 = vmatpush1.bf16.msra.mxu0 %v19254_v0  ;;  %4833 = vmatpush1.bf16.msra.mxu1 %v19259_v2 }
 0xba9   :  { %4793 = vmatprep.subr.bf16.mxu0 %v19266_v3  ;;  %4834 = vmatprep.subr.bf16.mxu1 %v19271_v5 }
 0xbac   :  { %4794 = vmatpush1.bf16.msra.mxu0 %v19278_v6  ;;  %4835 = vmatpush1.bf16.msra.mxu1 %v19283_v32 }
 0xbad   :  { %5087 = vmatprep.subr.bf16.mxu0 %v19100_v8  ;;  %5128 = vmatprep.subr.bf16.mxu1 %v19105_v33 }
 0xc61   :  { %v4505_v47 = vpop.f32.mrb[60].mxu0  ;;  %v4546_v12 = vpop.f32.mrb[92].mxu1 }
 0xc62   :  { %v4553_v54 = vadd.f32 %v4505_v47, %v3222_v43  ;;  %v4555_v26 = vadd.f32 %v4546_v12, %v3295_v38  ;;  %v4507_v30 = vpop.f32.mrb[61].mxu0  ;;  %v4548_v28 = vpop.f32.mrb[93].mxu1 }
 0xc63   :  { %v4554_v53 = vadd.f32 %v4507_v30, %v3224_v22  ;;  %v4556_v1 = vadd.f32 %v4548_v28, %v3297_v25  ;;  %v4509_v51 = vpop.f32.mrb[62].mxu0  ;;  %v4550_v49 = vpop.f32.mrb[94].mxu1 }
 0xc64   :  { %v15010_v44 = vmul.f32 -1.442695, %v4553_v54  ;;  %v4510_v48 = vpop.f32.mrb[63].mxu0  ;;  %v4551_v7 = vpop.f32.mrb[95].mxu1  ;;  %v22254_v49 = vld [vmem:[#allocation20_spill] sm:$0xff] }
 0xc65   :  { %v15011_v55 = vmul.f32 -1.442695, %v4554_v53  ;;  %v15012_v31 = vmul.f32 -1.442695, %v4556_v1  ;;  %v22255_v48 = vld [vmem:[#allocation10_spill] sm:$0xff] }
 0xc66   :  { %17067 = vpow2.f32 %v15010_v44  ;;  %v3301_v44 = vadd.f32 %v22254_v49, %v18970_v57  ;;  %v3230_v7 = vadd.f32 %v22255_v48, %v18977_v23 }
 0xc67   :  { %17069 = vpow2.f32 %v15011_v55  ;;  %v22256_v55 = vld [vmem:[#allocation21_spill] sm:$0xff] }
 0xc68   :  { %17071 = vpow2.f32 %v15012_v31  ;;  %v3303_v31 = vadd.f32 %v22256_v55, %v18980_v17 }
 0xc69   :  { %17073 = vtanh.f32 %v4555_v26 }
 0xc70   :  { %v17068_v39 = vpop.eup %17067 }
 0xc71   :  { %v17070_v40 = vpop.eup %17069  ;;  %v4560_v45 = vadd.f32 1.0, %v17068_v39 }
 0xc72   :  { %v4566_v43 = vadd.f32 1.0, %v17070_v40  ;;  %v17072_v38 = vpop.eup %17071 }
 0xc73   :  { %17075 = vrcp.f32 %v4560_v45  ;;  %v17074_v22 = vpop.eup %17073  ;;  %v4573_v12 = vadd.f32 1.0, %v17072_v38 }
 0xc74   :  { %17077 = vrcp.f32 %v4566_v43 }
 0xc75   :  { %17079 = vrcp.f32 %v4573_v12 }
 0xc7d   :  { %v17076_v42 = vpop.eup %17075 }
 0xc7e   :  { %v17078_v25 = vpop.eup %17077  ;;  %v4577_v47 = vmul.f32 %v17076_v42, %v17074_v22 }
 0xc7f   :  { %v4576_v54 = vmul.f32 %v17078_v25, %v19088_v13  ;;  %v17080_v28 = vpop.eup %17079  ;;  %v22253_v13 = vld [vmem:[#allocation9_spill] sm:$0xff] }
 0xc80   :  { %v3228_v51 = vadd.f32 %v22253_v13, %v18967_v59 }
 0xc81   :  { %v19300_v30 = vadd.f32 %v4577_v47, %v4576_v54 }
 0xc83   :  { %17081 = vtanh.f32 %v19300_v30 }
 0xc8d   :  { %v17082_v53 = vpop.eup %17081 }
 0xc8e   :  { %v19303_v1 = vmul.f32 %v17082_v53, %v17080_v28 }
 0xc90   :  { %v4586_v26 = vpack.c.bf16 %v19303_v1, %v19303_v1 }
 0xc92   :  { %4812 = vmatmul.mubr.bf16.vlgmr.msra.gmra.mrb[64].mxu0 %v4586_v26  ;;  %4853 = vmatmul.mubr.bf16.vlgmr.msra.gmra.mrb[96].mxu1 %v4586_v26 }
 0xc93   :  { %5088 = vmatpush1.bf16.msra.mxu0 %v19110_v36  ;;  %5129 = vmatpush1.bf16.msra.mxu1 %v19115_v19 }
 0xc94   :  { %5089 = vmatprep.subr.bf16.mxu0 %v19124_v50  ;;  %5130 = vmatprep.subr.bf16.mxu1 %v19129_v56 }
 0xc95   :  { %5119 = vmatprep.mubr.bf16.mxu0 %v22201_v24  ;;  %5160 = vmatprep.mubr.bf16.mxu1 %v22201_v24 }
 0xc97   :  { %5090 = vmatpush1.bf16.msra.mxu0 %v19134_v10  ;;  %5131 = vmatpush1.bf16.msra.mxu1 %v19139_v15 }
 0xc98   :  { %5091 = vmatprep.subr.bf16.mxu0 %v19148_v58  ;;  %5132 = vmatprep.subr.bf16.mxu1 %v19153_v29 }
 0xc9b   :  { %5092 = vmatpush1.bf16.msra.mxu0 %v19158_v46  ;;  %5133 = vmatpush1.bf16.msra.mxu1 %v19163_v41 }
 0xc9c   :  { %5093 = vmatprep.subr.bf16.mxu0 %v19172_v4  ;;  %5134 = vmatprep.subr.bf16.mxu1 %v19177_v11 }
 0xc9f   :  { %5094 = vmatpush1.bf16.msra.mxu0 %v19182_v14  ;;  %5135 = vmatpush1.bf16.msra.mxu1 %v19187_v60 }
 0xca0   :  { %5095 = vmatprep.subr.bf16.mxu0 %v19196_v16  ;;  %5136 = vmatprep.subr.bf16.mxu1 %v19201_v52 }
 0xca3   :  { %5096 = vmatpush1.bf16.msra.mxu0 %v19206_v27  ;;  %5137 = vmatpush1.bf16.msra.mxu1 %v19211_v20 }
 0xca4   :  { %5097 = vmatprep.subr.bf16.mxu0 %v19218_v34  ;;  %5138 = vmatprep.subr.bf16.mxu1 %v19235_v61 }
 0xca7   :  { %5098 = vmatpush1.bf16.msra.mxu0 %v19225_v21  ;;  %5139 = vmatpush1.bf16.msra.mxu1 %v19230_v37 }
 0xca8   :  { %5099 = vmatprep.subr.bf16.mxu0 %v19241_v62  ;;  %5140 = vmatprep.subr.bf16.mxu1 %v19246_v63 }
 0xcab   :  { %5100 = vmatpush1.bf16.msra.mxu0 %v19254_v0  ;;  %5141 = vmatpush1.bf16.msra.mxu1 %v19259_v2 }
 0xcac   :  { %5101 = vmatprep.subr.bf16.mxu0 %v19266_v3  ;;  %5142 = vmatprep.subr.bf16.mxu1 %v19271_v5 }
 0xcaf   :  { %5102 = vmatpush1.bf16.msra.mxu0 %v19278_v6  ;;  %5143 = vmatpush1.bf16.msra.mxu1 %v19283_v32 }
 0xcb0   :  { %5395 = vmatprep.subr.bf16.mxu0 %v19100_v8  ;;  %5436 = vmatprep.subr.bf16.mxu1 %v19105_v33 }
 0xd65   :  { %v4813_v39 = vpop.f32.mrb[64].mxu0  ;;  %v4854_v40 = vpop.f32.mrb[96].mxu1 }
 0xd66   :  { %v4861_v45 = vadd.f32 %v4813_v39, %v3228_v51  ;;  %v4863_v43 = vadd.f32 %v4854_v40, %v3301_v44  ;;  %v4815_v38 = vpop.f32.mrb[65].mxu0  ;;  %v4856_v22 = vpop.f32.mrb[97].mxu1 }
 0xd67   :  { %v4862_v42 = vadd.f32 %v4815_v38, %v3230_v7  ;;  %v4864_v25 = vadd.f32 %v4856_v22, %v3303_v31  ;;  %v4817_v47 = vpop.f32.mrb[66].mxu0  ;;  %v4858_v12 = vpop.f32.mrb[98].mxu1 }
 0xd68   :  { %v15045_v54 = vmul.f32 -1.442695, %v4861_v45  ;;  %v4818_v28 = vpop.f32.mrb[67].mxu0  ;;  %v4859_v53 = vpop.f32.mrb[99].mxu1 }
 0xd69   :  { %v15046_v26 = vmul.f32 -1.442695, %v4862_v42  ;;  %v15047_v13 = vmul.f32 -1.442695, %v4864_v25  ;;  %v22259_v53 = vld [vmem:[#allocation12_spill] sm:$0xff] }
 0xd6a   :  { %17083 = vpow2.f32 %v15045_v54  ;;  %v22258_v54 = vld [vmem:[#allocation22_spill] sm:$0xff] }
 0xd6b   :  { %17085 = vpow2.f32 %v15046_v26  ;;  %v3305_v28 = vadd.f32 %v22258_v54, %v18970_v57  ;;  %v3234_v26 = vadd.f32 %v22259_v53, %v18977_v23 }
 0xd6c   :  { %17087 = vpow2.f32 %v15047_v13  ;;  %v22260_v13 = vld [vmem:[#allocation23_spill] sm:$0xff] }
 0xd6d   :  { %17089 = vtanh.f32 %v4863_v43 }
 0xd74   :  { %v17084_v49 = vpop.eup %17083 }
 0xd75   :  { %v17086_v48 = vpop.eup %17085  ;;  %v4868_v55 = vadd.f32 1.0, %v17084_v49  ;;  %v3307_v49 = vadd.f32 %v22260_v13, %v18980_v17 }
 0xd76   :  { %v4874_v51 = vadd.f32 1.0, %v17086_v48  ;;  %v17088_v44 = vpop.eup %17087 }
 0xd77   :  { %17091 = vrcp.f32 %v4868_v55  ;;  %v17090_v7 = vpop.eup %17089  ;;  %v4881_v45 = vadd.f32 1.0, %v17088_v44 }
 0xd78   :  { %17093 = vrcp.f32 %v4874_v51 }
 0xd79   :  { %17095 = vrcp.f32 %v4881_v45 }
 0xd81   :  { %v17092_v31 = vpop.eup %17091 }
 0xd82   :  { %v17094_v39 = vpop.eup %17093  ;;  %v4885_v40 = vmul.f32 %v17092_v31, %v17090_v7 }
 0xd83   :  { %v4884_v38 = vmul.f32 %v17094_v39, %v19300_v30  ;;  %v17096_v42 = vpop.eup %17095  ;;  %v22257_v30 = vld [vmem:[#allocation11_spill] sm:$0xff] }
 0xd84   :  { %v3232_v12 = vadd.f32 %v22257_v30, %v18967_v59 }
 0xd85   :  { %v19350_v22 = vadd.f32 %v4885_v40, %v4884_v38 }
 0xd87   :  { %17097 = vtanh.f32 %v19350_v22 }
 0xd91   :  { %v17098_v25 = vpop.eup %17097 }
 0xd92   :  { %v19353_v47 = vmul.f32 %v17098_v25, %v17096_v42 }
 0xd94   :  { %v4894_v43 = vpack.c.bf16 %v19353_v47, %v19353_v47 }
 0xd96   :  { %5120 = vmatmul.mubr.bf16.vlgmr.msra.gmra.mrb[68].mxu0 %v4894_v43  ;;  %5161 = vmatmul.mubr.bf16.vlgmr.msra.gmra.mrb[100].mxu1 %v4894_v43 }
 0xd97   :  { %5396 = vmatpush1.bf16.msra.mxu0 %v19110_v36  ;;  %5437 = vmatpush1.bf16.msra.mxu1 %v19115_v19 }
 0xd98   :  { %5397 = vmatprep.subr.bf16.mxu0 %v19124_v50  ;;  %5438 = vmatprep.subr.bf16.mxu1 %v19129_v56 }
 0xd99   :  { %5427 = vmatprep.mubr.bf16.mxu0 %v22201_v24  ;;  %5468 = vmatprep.mubr.bf16.mxu1 %v22201_v24 }
 0xd9b   :  { %5398 = vmatpush1.bf16.msra.mxu0 %v19134_v10  ;;  %5439 = vmatpush1.bf16.msra.mxu1 %v19139_v15 }
 0xd9c   :  { %5399 = vmatprep.subr.bf16.mxu0 %v19148_v58  ;;  %5440 = vmatprep.subr.bf16.mxu1 %v19153_v29 }
 0xd9f   :  { %5400 = vmatpush1.bf16.msra.mxu0 %v19158_v46  ;;  %5441 = vmatpush1.bf16.msra.mxu1 %v19163_v41 }
 0xda0   :  { %5401 = vmatprep.subr.bf16.mxu0 %v19172_v4  ;;  %5442 = vmatprep.subr.bf16.mxu1 %v19177_v11 }
 0xda3   :  { %5402 = vmatpush1.bf16.msra.mxu0 %v19182_v14  ;;  %5443 = vmatpush1.bf16.msra.mxu1 %v19187_v60 }
 0xda4   :  { %5403 = vmatprep.subr.bf16.mxu0 %v19196_v16  ;;  %5444 = vmatprep.subr.bf16.mxu1 %v19201_v52 }
 0xda7   :  { %5404 = vmatpush1.bf16.msra.mxu0 %v19206_v27  ;;  %5445 = vmatpush1.bf16.msra.mxu1 %v19211_v20 }
 0xda8   :  { %5405 = vmatprep.subr.bf16.mxu0 %v19218_v34  ;;  %5446 = vmatprep.subr.bf16.mxu1 %v19235_v61 }
 0xdab   :  { %5406 = vmatpush1.bf16.msra.mxu0 %v19225_v21  ;;  %5447 = vmatpush1.bf16.msra.mxu1 %v19230_v37 }
 0xdac   :  { %5407 = vmatprep.subr.bf16.mxu0 %v19241_v62  ;;  %5448 = vmatprep.subr.bf16.mxu1 %v19246_v63 }
 0xdaf   :  { %5408 = vmatpush1.bf16.msra.mxu0 %v19254_v0  ;;  %5449 = vmatpush1.bf16.msra.mxu1 %v19259_v2 }
 0xdb0   :  { %5409 = vmatprep.subr.bf16.mxu0 %v19266_v3  ;;  %5450 = vmatprep.subr.bf16.mxu1 %v19271_v5 }
 0xdb3   :  { %5410 = vmatpush1.bf16.msra.mxu0 %v19278_v6  ;;  %5451 = vmatpush1.bf16.msra.mxu1 %v19283_v32 }
 0xdb4   :  { %5703 = vmatprep.subr.bf16.mxu0 %v19100_v8  ;;  %5744 = vmatprep.subr.bf16.mxu1 %v19105_v33 }
 0xe69   :  { %v5121_v48 = vpop.f32.mrb[68].mxu0  ;;  %v5162_v55 = vpop.f32.mrb[100].mxu1 }
 0xe6a   :  { %v5169_v51 = vadd.f32 %v5121_v48, %v3232_v12  ;;  %v5171_v44 = vadd.f32 %v5162_v55, %v3305_v28  ;;  %v5123_v7 = vpop.f32.mrb[69].mxu0  ;;  %v5164_v8 = vpop.f32.mrb[101].mxu1 }
 0xe6b   :  { %v5170_v31 = vadd.f32 %v5123_v7, %v3234_v26  ;;  %v5172_v33 = vadd.f32 %v5164_v8, %v3307_v49  ;;  %v5125_v39 = vpop.f32.mrb[70].mxu0  ;;  %v5166_v40 = vpop.f32.mrb[102].mxu1 }
 0xe6c   :  { %v15080_v45 = vmul.f32 -1.442695, %v5169_v51  ;;  %v5126_v38 = vpop.f32.mrb[71].mxu0  ;;  %v5167_v42 = vpop.f32.mrb[103].mxu1 }
 0xe6d   :  { %v15081_v25 = vmul.f32 -1.442695, %v5170_v31  ;;  %v15082_v43 = vmul.f32 -1.442695, %v5172_v33 }
 0xe6e   :  { %17099 = vpow2.f32 %v15080_v45 }
 0xe6f   :  { %17101 = vpow2.f32 %v15081_v25 }
 0xe70   :  { %17103 = vpow2.f32 %v15082_v43 }
 0xe71   :  { %17105 = vtanh.f32 %v5171_v44 }
 0xe78   :  { %v17100_v30 = vpop.eup %17099 }
 0xe79   :  { %v17102_v54 = vpop.eup %17101  ;;  %v5176_v53 = vadd.f32 1.0, %v17100_v30 }
 0xe7a   :  { %v5182_v12 = vadd.f32 1.0, %v17102_v54  ;;  %v17104_v28 = vpop.eup %17103 }
 0xe7b   :  { %17107 = vrcp.f32 %v5176_v53  ;;  %v17106_v26 = vpop.eup %17105  ;;  %v5189_v55 = vadd.f32 1.0, %v17104_v28  ;;  %v16451_v53 = vld [vmem:[%s22149_s7] ss:$16 sps:$4 sm:$0xff]  }
 0xe7c   :  { %17109 = vrcp.f32 %v5182_v12  ;;  %v16454_v12 = vld [vmem:[%s22149_s7 + $0x8] ss:$16 sps:$4 sm:$0xff]  }
 0xe7d   :  { %17111 = vrcp.f32 %v5189_v55  ;;  %v16465_v55 = vld [vmem:[%s22149_s7 + $0x44] ss:$16 sps:$4 sm:$0xff]  }
 0xe85   :  { %v17108_v13 = vpop.eup %17107 }
 0xe86   :  { %v17110_v49 = vpop.eup %17109  ;;  %v5193_v48 = vmul.f32 %v17108_v13, %v17106_v26  ;;  %v16459_v26 = vld [vmem:[%s22149_s7 + $0x24] ss:$16 sps:$4 sm:$0xff]   ;;  %v16462_v13 = vld [vmem:[%s22149_s7 + $0x2c] ss:$16 sps:$4 sm:$0xff]  }
 0xe87   :  { %v5192_v51 = vmul.f32 %v17110_v49, %v19350_v22  ;;  %v17112_v8 = vpop.eup %17111  ;;  %v16457_v49 = vld [vmem:[%s22149_s7 + $0x20] ss:$16 sps:$4 sm:$0xff]  }
 0xe89   :  { %v19400_v7 = vadd.f32 %v5193_v48, %v5192_v51  ;;  %v16460_v48 = vld [vmem:[%s22149_s7 + $0x28] ss:$16 sps:$4 sm:$0xff]   ;;  %v16468_v51 = vld [vmem:[%s22149_s7 + $0x4c] ss:$16 sps:$4 sm:$0xff]  }
 0xe8b   :  { %17113 = vtanh.f32 %v19400_v7 }
 0xe95   :  { %v17114_v31 = vpop.eup %17113 }
 0xe96   :  { %v19403_v33 = vmul.f32 %v17114_v31, %v17112_v8  ;;  %v16466_v8 = vld [vmem:[%s22149_s7 + $0x48] ss:$16 sps:$4 sm:$0xff]   ;;  %v16471_v31 = vld [vmem:[%s22149_s7 + $0x64] ss:$16 sps:$4 sm:$0xff]  }
 0xe98   :  { %v5202_v44 = vpack.c.bf16 %v19403_v33, %v19403_v33 }
 0xe9a   :  { %5428 = vmatmul.mubr.bf16.vlgmr.msra.gmra.mrb[72].mxu0 %v5202_v44  ;;  %5469 = vmatmul.mubr.bf16.vlgmr.msra.gmra.mrb[104].mxu1 %v5202_v44  ;;  %v16474_v44 = vld [vmem:[%s22149_s7 + $0x6c] ss:$16 sps:$4 sm:$0xff]  }
 0xe9b   :  { %5704 = vmatpush1.bf16.msra.mxu0 %v19110_v36  ;;  %5745 = vmatpush1.bf16.msra.mxu1 %v19115_v19  ;;  %v16453_v36 = vld [vmem:[%s22149_s7 + $0x4] ss:$16 sps:$4 sm:$0xff]   ;;  %v16456_v19 = vld [vmem:[%s22149_s7 + $0xc] ss:$16 sps:$4 sm:$0xff]  }
 0xe9c   :  { %5705 = vmatprep.subr.bf16.mxu0 %v19124_v50  ;;  %5746 = vmatprep.subr.bf16.mxu1 %v19129_v56  ;;  %v22261_v50 = vld [vmem:[#allocation13_spill] sm:$0xff] }
 0xe9d   :  { %5735 = vmatprep.mubr.bf16.mxu0 %v22201_v24  ;;  %5776 = vmatprep.mubr.bf16.mxu1 %v22201_v24  ;;  %v3238_v56 = vadd.f32 %v22261_v50, %v18967_v59  ;;  %v16477_v50 = vld [vmem:[%s22149_s7 + $0x84] ss:$16 sps:$4 sm:$0xff]  }
 0xe9f   :  { %5706 = vmatpush1.bf16.msra.mxu0 %v19134_v10  ;;  %5747 = vmatpush1.bf16.msra.mxu1 %v19139_v15  ;;  %v22262_v10 = vld [vmem:[#allocation24_spill] sm:$0xff] }
 0xea0   :  { %5707 = vmatprep.subr.bf16.mxu0 %v19148_v58  ;;  %5748 = vmatprep.subr.bf16.mxu1 %v19153_v29  ;;  %v3311_v15 = vadd.f32 %v22262_v10, %v18970_v57  ;;  %v22263_v58 = vld [vmem:[#allocation25_spill] sm:$0xff]  ;;  %v16475_v10 = vld [vmem:[%s22149_s7 + $0x80] ss:$16 sps:$4 sm:$0xff]  }
 0xea1   :  { %v3240_v29 = vadd.f32 %v22263_v58, %v18977_v23  ;;  %v16483_v58 = vld [vmem:[%s22149_s7 + $0xa4] ss:$16 sps:$4 sm:$0xff]  }
 0xea3   :  { %5708 = vmatpush1.bf16.msra.mxu0 %v19158_v46  ;;  %5749 = vmatpush1.bf16.msra.mxu1 %v19163_v41  ;;  %v22264_v46 = vld [vmem:[#allocation26_spill] sm:$0xff] }
 0xea4   :  { %5709 = vmatprep.subr.bf16.mxu0 %v19172_v4  ;;  %5750 = vmatprep.subr.bf16.mxu1 %v19177_v11  ;;  %v3313_v41 = vadd.f32 %v22264_v46, %v18980_v17  ;;  %v16481_v46 = vld [vmem:[%s22149_s7 + $0xa0] ss:$16 sps:$4 sm:$0xff]  }
 0xea7   :  { %5710 = vmatpush1.bf16.msra.mxu0 %v19182_v14  ;;  %5751 = vmatpush1.bf16.msra.mxu1 %v19187_v60 }
 0xea8   :  { %5711 = vmatprep.subr.bf16.mxu0 %v19196_v16  ;;  %5752 = vmatprep.subr.bf16.mxu1 %v19201_v52 }
 0xeab   :  { %5712 = vmatpush1.bf16.msra.mxu0 %v19206_v27  ;;  %5753 = vmatpush1.bf16.msra.mxu1 %v19211_v20 }
 0xeac   :  { %5713 = vmatprep.subr.bf16.mxu0 %v19218_v34  ;;  %5754 = vmatprep.subr.bf16.mxu1 %v19235_v61 }
 0xeaf   :  { %5714 = vmatpush1.bf16.msra.mxu0 %v19225_v21  ;;  %5755 = vmatpush1.bf16.msra.mxu1 %v19230_v37 }
 0xeb0   :  { %5715 = vmatprep.subr.bf16.mxu0 %v19241_v62  ;;  %5756 = vmatprep.subr.bf16.mxu1 %v19246_v63 }
 0xeb3   :  { %5716 = vmatpush1.bf16.msra.mxu0 %v19254_v0  ;;  %5757 = vmatpush1.bf16.msra.mxu1 %v19259_v2 }
 0xeb4   :  { %5717 = vmatprep.subr.bf16.mxu0 %v19266_v3  ;;  %5758 = vmatprep.subr.bf16.mxu1 %v19271_v5 }
 0xeb7   :  { %5718 = vmatpush1.bf16.msra.mxu0 %v19278_v6  ;;  %5759 = vmatpush1.bf16.msra.mxu1 %v19283_v32 }
 0xeb8   :  { %6040 = vmatprep.subr.bf16.mxu0 %v16453_v36  ;;  %6113 = vmatprep.subr.bf16.mxu1 %v16456_v19  ;;  %v16469_v36 = vld [vmem:[%s22149_s7 + $0x60] ss:$16 sps:$4 sm:$0xff]   ;;  %v16472_v19 = vld [vmem:[%s22149_s7 + $0x68] ss:$16 sps:$4 sm:$0xff]  }
 0xf6d   :  { %v5429_v4 = vpop.f32.mrb[72].mxu0  ;;  %v5470_v11 = vpop.f32.mrb[104].mxu1 }
 0xf6e   :  { %v5477_v14 = vadd.f32 %v5429_v4, %v3238_v56  ;;  %v5479_v60 = vadd.f32 %v5470_v11, %v3311_v15  ;;  %v5431_v16 = vpop.f32.mrb[73].mxu0  ;;  %v5472_v52 = vpop.f32.mrb[105].mxu1  ;;  %v16480_v56 = vld [vmem:[%s22149_s7 + $0x8c] ss:$16 sps:$4 sm:$0xff]   ;;  %v16478_v15 = vld [vmem:[%s22149_s7 + $0x88] ss:$16 sps:$4 sm:$0xff]  }
 0xf6f   :  { %v5478_v27 = vadd.f32 %v5431_v16, %v3240_v29  ;;  %v5480_v20 = vadd.f32 %v5472_v52, %v3313_v41  ;;  %v5433_v34 = vpop.f32.mrb[74].mxu0  ;;  %v5474_v21 = vpop.f32.mrb[106].mxu1  ;;  %v16486_v29 = vld [vmem:[%s22149_s7 + $0xac] ss:$16 sps:$4 sm:$0xff]   ;;  %v16484_v41 = vld [vmem:[%s22149_s7 + $0xa8] ss:$16 sps:$4 sm:$0xff]  }
 0xf70   :  { %v15115_v37 = vmul.f32 -1.442695, %v5477_v14  ;;  %v5434_v61 = vpop.f32.mrb[75].mxu0  ;;  %v5475_v62 = vpop.f32.mrb[107].mxu1  ;;  %v16489_v4 = vld [vmem:[%s22149_s7 + $0xc4] ss:$16 sps:$4 sm:$0xff]   ;;  %v5822_v34 = vpack.c.bf16 %v19043_v35, %v18993_v9  ;;  %v5823_v21 = vpack.c.bf16 %v19303_v1, %v19091_v18 }
 0xf71   :  { %v15116_v63 = vmul.f32 -1.442695, %v5478_v27  ;;  %v15117_v0 = vmul.f32 -1.442695, %v5480_v20  ;;  %v16492_v11 = vld [vmem:[%s22149_s7 + $0xcc] ss:$16 sps:$4 sm:$0xff]  }
 0xf72   :  { %17115 = vpow2.f32 %v15115_v37  ;;  %v16487_v14 = vld [vmem:[%s22149_s7 + $0xc0] ss:$16 sps:$4 sm:$0xff]   ;;  %v16495_v16 = vld [vmem:[%s22149_s7 + $0xe4] ss:$16 sps:$4 sm:$0xff]   ;;  %v16498_v52 = vld [vmem:[%s22149_s7 + $0xec] ss:$16 sps:$4 sm:$0xff]   ;;  %v5824_v37 = vpack.c.bf16 %v19403_v33, %v19353_v47 }
 0xf73   :  { %17117 = vpow2.f32 %v15116_v63  ;;  %v16493_v27 = vld [vmem:[%s22149_s7 + $0xe0] ss:$16 sps:$4 sm:$0xff]   ;;  %v16496_v20 = vld [vmem:[%s22149_s7 + $0xe8] ss:$16 sps:$4 sm:$0xff]   ;;  %v19568_v9 = vld [vmem:[%s22150_s8 + $0x4] ss:$16 sps:$4 sm:$0xff]  }
 0xf74   :  { %17119 = vpow2.f32 %v15117_v0  ;;  %v19573_v35 = vld [vmem:[%s22150_s8] ss:$16 sps:$4 sm:$0xff]   ;;  %v19579_v18 = vld [vmem:[%s22150_s8 + $0x8] ss:$16 sps:$4 sm:$0xff]   ;;  %v19584_v1 = vld [vmem:[%s22150_s8 + $0xc] ss:$16 sps:$4 sm:$0xff]  }
 0xf75   :  { %17121 = vtanh.f32 %v5479_v60  ;;  %v16490_v60 = vld [vmem:[%s22149_s7 + $0xc8] ss:$16 sps:$4 sm:$0xff]   ;;  %v19591_v47 = vld [vmem:[%s22150_s8 + $0x24] ss:$16 sps:$4 sm:$0xff]   ;;  %v19596_v33 = vld [vmem:[%s22150_s8 + $0x2c] ss:$16 sps:$4 sm:$0xff]  }
 0xf76   :  { %v19602_v61 = vld [vmem:[%s22150_s8 + $0x20] ss:$16 sps:$4 sm:$0xff]   ;;  %v19607_v62 = vld [vmem:[%s22150_s8 + $0x28] ss:$16 sps:$4 sm:$0xff]   ;;  %v19615_v63 = vld [vmem:[%s22150_s8 + $0x44] ss:$16 sps:$4 sm:$0xff]  }
 0xf77   :  { %v19620_v0 = vld [vmem:[%s22150_s8 + $0x4c] ss:$16 sps:$4 sm:$0xff]  }
 0xf7c   :  { %v17116_v2 = vpop.eup %17115 }
 0xf7d   :  { %v17118_v3 = vpop.eup %17117  ;;  %v5484_v5 = vadd.f32 1.0, %v17116_v2  ;;  %v19626_v2 = vld [vmem:[%s22150_s8 + $0x40] ss:$16 sps:$4 sm:$0xff]  }
 0xf7e   :  { %v5490_v6 = vadd.f32 1.0, %v17118_v3  ;;  %v17120_v32 = vpop.eup %17119  ;;  %v19631_v3 = vld [vmem:[%s22150_s8 + $0x48] ss:$16 sps:$4 sm:$0xff]  }
 0xf7f   :  { %17123 = vrcp.f32 %v5484_v5  ;;  %v17122_v22 = vpop.eup %17121  ;;  %v5497_v38 = vadd.f32 1.0, %v17120_v32  ;;  %v19639_v5 = vld [vmem:[%s22150_s8 + $0x60] ss:$16 sps:$4 sm:$0xff]   ;;  %v19649_v32 = vld [vmem:[%s22150_s8 + $0x68] ss:$16 sps:$4 sm:$0xff]  }
 0xf80   :  { %17125 = vrcp.f32 %v5490_v6  ;;  %v19644_v6 = vld [vmem:[%s22150_s8 + $0x64] ss:$16 sps:$4 sm:$0xff]  }
 0xf81   :  { %17127 = vrcp.f32 %v5497_v38  ;;  %v19679_v38 = vld [vmem:[%s22150_s8 + $0x88] ss:$16 sps:$4 sm:$0xff]  }
 0xf89   :  { %v17124_v39 = vpop.eup %17123 }
 0xf8a   :  { %v17126_v40 = vpop.eup %17125  ;;  %v5501_v45 = vmul.f32 %v17124_v39, %v17122_v22  ;;  %v19655_v22 = vld [vmem:[%s22150_s8 + $0x6c] ss:$16 sps:$4 sm:$0xff]   ;;  %v19663_v39 = vld [vmem:[%s22150_s8 + $0x84] ss:$16 sps:$4 sm:$0xff]  }
 0xf8b   :  { %v5500_v42 = vmul.f32 %v17126_v40, %v19400_v7  ;;  %v17128_v43 = vpop.eup %17127  ;;  %v16463_v7 = vld [vmem:[%s22149_s7 + $0x40] ss:$16 sps:$4 sm:$0xff]   ;;  %v19668_v40 = vld [vmem:[%s22150_s8 + $0x8c] ss:$16 sps:$4 sm:$0xff]  }
 0xf8d   :  { %v19454_v25 = vadd.f32 %v5501_v45, %v5500_v42  ;;  %v19674_v45 = vld [vmem:[%s22150_s8 + $0x80] ss:$16 sps:$4 sm:$0xff]  }
 0xf8e   :  { %v19687_v42 = vld [vmem:[%s22150_s8 + $0xa0] ss:$16 sps:$4 sm:$0xff]  }
 0xf8f   :  { %17129 = vtanh.f32 %v19454_v25 }
 0xf99   :  { %v17130_v30 = vpop.eup %17129 }
 0xf9a   :  { %v19457_v54 = vmul.f32 %v17130_v30, %v17128_v43  ;;  %v19692_v43 = vld [vmem:[%s22150_s8 + $0xa4] ss:$16 sps:$4 sm:$0xff]   ;;  %v19697_v30 = vld [vmem:[%s22150_s8 + $0xa8] ss:$16 sps:$4 sm:$0xff]  }
 0xf9c   :  { %v5510_v28 = vpack.c.bf16 %v19457_v54, %v19457_v54 }
 0xf9e   :  { %5736 = vmatmul.mubr.bf16.vlgmr.msra.gmra.mrb[76].mxu0 %v5510_v28  ;;  %5777 = vmatmul.mubr.bf16.vlgmr.msra.gmra.mrb[108].mxu1 %v5510_v28  ;;  %v19716_v28 = vld [vmem:[%s22150_s8 + $0xcc] ss:$16 sps:$4 sm:$0xff]  }
 0xf9f   :  { %6041 = vmatpush1.bf16.msra.mxu0 %v16451_v53  ;;  %6114 = vmatpush1.bf16.msra.mxu1 %v16454_v12  ;;  %v19703_v53 = vld [vmem:[%s22150_s8 + $0xac] ss:$16 sps:$4 sm:$0xff]   ;;  %v19711_v12 = vld [vmem:[%s22150_s8 + $0xc4] ss:$16 sps:$4 sm:$0xff]  }
 0xfa0   :  { %6042 = vmatprep.subr.bf16.mxu0 %v16459_v26  ;;  %6115 = vmatprep.subr.bf16.mxu1 %v16462_v13  ;;  %v19722_v26 = vld [vmem:[%s22150_s8 + $0xc0] ss:$16 sps:$4 sm:$0xff]   ;;  %v19727_v13 = vld [vmem:[%s22150_s8 + $0xc8] ss:$16 sps:$4 sm:$0xff]  }
 0xfa1   :  { %6072 = vmatprep.mubr.bf16.mxu0 %v22201_v24  ;;  %6145 = vmatprep.mubr.bf16.mxu1 %v22201_v24 }
 0xfa3   :  { %6043 = vmatpush1.bf16.msra.mxu0 %v16457_v49  ;;  %6116 = vmatpush1.bf16.msra.mxu1 %v16460_v48  ;;  %v19735_v49 = vld [vmem:[%s22150_s8 + $0xe0] ss:$16 sps:$4 sm:$0xff]   ;;  %v19740_v48 = vld [vmem:[%s22150_s8 + $0xe4] ss:$16 sps:$4 sm:$0xff]  }
 0xfa4   :  { %6044 = vmatprep.subr.bf16.mxu0 %v16465_v55  ;;  %6117 = vmatprep.subr.bf16.mxu1 %v16468_v51  ;;  %v19745_v55 = vld [vmem:[%s22150_s8 + $0xe8] ss:$16 sps:$4 sm:$0xff]   ;;  %v19751_v51 = vld [vmem:[%s22150_s8 + $0xec] ss:$16 sps:$4 sm:$0xff]  }
 0xfa7   :  { %6045 = vmatpush1.bf16.msra.mxu0 %v16463_v7  ;;  %6118 = vmatpush1.bf16.msra.mxu1 %v16466_v8  ;;  %v22265_v7 = vld [vmem:[#allocation27_spill] sm:$0xff] }
 0xfa8   :  { %6046 = vmatprep.subr.bf16.mxu0 %v16471_v31  ;;  %6119 = vmatprep.subr.bf16.mxu1 %v16474_v44  ;;  %v3242_v8 = vadd.f32 %v22265_v7, %v18967_v59  ;;  %v22266_v31 = vld [vmem:[#allocation28_spill] sm:$0xff] }
 0xfa9   :  { %v3315_v44 = vadd.f32 %v22266_v31, %v18970_v57 }
 0xfab   :  { %6047 = vmatpush1.bf16.msra.mxu0 %v16469_v36  ;;  %6120 = vmatpush1.bf16.msra.mxu1 %v16472_v19  ;;  %v22267_v36 = vld [vmem:[#allocation29_spill] sm:$0xff] }
 0xfac   :  { %6048 = vmatprep.subr.bf16.mxu0 %v16477_v50  ;;  %6121 = vmatprep.subr.bf16.mxu1 %v16480_v56  ;;  %v3244_v19 = vadd.f32 %v22267_v36, %v18977_v23  ;;  %v22268_v50 = vld [vmem:[#allocation30_spill] sm:$0xff] }
 0xfad   :  { %v3317_v56 = vadd.f32 %v22268_v50, %v18980_v17 }
 0xfaf   :  { %6049 = vmatpush1.bf16.msra.mxu0 %v16475_v10  ;;  %6122 = vmatpush1.bf16.msra.mxu1 %v16478_v15 }
 0xfb0   :  { %6050 = vmatprep.subr.bf16.mxu0 %v16483_v58  ;;  %6123 = vmatprep.subr.bf16.mxu1 %v16486_v29 }
 0xfb3   :  { %6051 = vmatpush1.bf16.msra.mxu0 %v16481_v46  ;;  %6124 = vmatpush1.bf16.msra.mxu1 %v16484_v41 }
 0xfb4   :  { %6052 = vmatprep.subr.bf16.mxu0 %v16489_v4  ;;  %6125 = vmatprep.subr.bf16.mxu1 %v16492_v11 }
 0xfb7   :  { %6053 = vmatpush1.bf16.msra.mxu0 %v16487_v14  ;;  %6126 = vmatpush1.bf16.msra.mxu1 %v16490_v60 }
 0xfb8   :  { %6054 = vmatprep.subr.bf16.mxu0 %v16495_v16  ;;  %6127 = vmatprep.subr.bf16.mxu1 %v16498_v52 }
 0xfbb   :  { %6055 = vmatpush1.bf16.msra.mxu0 %v16493_v27  ;;  %6128 = vmatpush1.bf16.msra.mxu1 %v16496_v20 }
 0xfbc   :  { %6414 = vmatprep.subr.bf16.mxu0 %v19568_v9  ;;  %6455 = vmatprep.subr.bf16.mxu1 %v19584_v1 }
 0xfbe   :  { %6073 = vmatmul.mubr.bf16.vlgmr.msra.gmra.mrb[80].mxu0 %v5822_v34  ;;  %6146 = vmatmul.mubr.bf16.vlgmr.msra.gmra.mrb[112].mxu1 %v5822_v34 }
 0xfbf   :  { %6082 = vmatprep.mubr.bf16.mxu0 %v22201_v24  ;;  %6155 = vmatprep.mubr.bf16.mxu1 %v22201_v24 }
 0xfc0   :  { %6415 = vmatpush1.bf16.msra.mxu0 %v19573_v35  ;;  %6456 = vmatpush1.bf16.msra.mxu1 %v19579_v18 }
 0xfc1   :  { %6416 = vmatprep.subr.bf16.mxu0 %v19591_v47  ;;  %6457 = vmatprep.subr.bf16.mxu1 %v19596_v33 }
 0xfc4   :  { %6417 = vmatpush1.bf16.msra.mxu0 %v19602_v61  ;;  %6458 = vmatpush1.bf16.msra.mxu1 %v19607_v62 }
 0xfc5   :  { %6418 = vmatprep.subr.bf16.mxu0 %v19615_v63  ;;  %6459 = vmatprep.subr.bf16.mxu1 %v19620_v0 }
 0xfc6   :  { %6083 = vmatmul.mubr.bf16.gmra.mrb[84].mxu0 %v5823_v21  ;;  %6156 = vmatmul.mubr.bf16.gmra.mrb[116].mxu1 %v5823_v21 }
 0xfc7   :  { %6092 = vmatprep.mubr.bf16.mxu0 %v22201_v24  ;;  %6165 = vmatprep.mubr.bf16.mxu1 %v22201_v24 }
 0xfc8   :  { %6419 = vmatpush1.bf16.msra.mxu0 %v19626_v2  ;;  %6460 = vmatpush1.bf16.msra.mxu1 %v19631_v3 }
 0xfc9   :  { %6420 = vmatprep.subr.bf16.mxu0 %v19644_v6  ;;  %6461 = vmatprep.subr.bf16.mxu1 %v19655_v22 }
 0xfcc   :  { %6421 = vmatpush1.bf16.msra.mxu0 %v19639_v5  ;;  %6462 = vmatpush1.bf16.msra.mxu1 %v19649_v32 }
 0xfcd   :  { %6422 = vmatprep.subr.bf16.mxu0 %v19663_v39  ;;  %6463 = vmatprep.subr.bf16.mxu1 %v19668_v40 }
 0xfce   :  { %6093 = vmatmul.mubr.bf16.gmra.mrb[88].mxu0 %v5824_v37  ;;  %6166 = vmatmul.mubr.bf16.gmra.mrb[120].mxu1 %v5824_v37 }
 0xfcf   :  { %6102 = vmatprep.mubr.bf16.mxu0 %v22201_v24  ;;  %6175 = vmatprep.mubr.bf16.mxu1 %v22201_v24 }
 0xfd0   :  { %6423 = vmatpush1.bf16.msra.mxu0 %v19674_v45  ;;  %6464 = vmatpush1.bf16.msra.mxu1 %v19679_v38 }
 0xfd1   :  { %6424 = vmatprep.subr.bf16.mxu0 %v19692_v43  ;;  %6465 = vmatprep.subr.bf16.mxu1 %v19703_v53 }
 0xfd4   :  { %6425 = vmatpush1.bf16.msra.mxu0 %v19687_v42  ;;  %6466 = vmatpush1.bf16.msra.mxu1 %v19697_v30 }
 0xfd5   :  { %6426 = vmatprep.subr.bf16.mxu0 %v19711_v12  ;;  %6467 = vmatprep.subr.bf16.mxu1 %v19716_v28 }
 0xfd8   :  { %6427 = vmatpush1.bf16.msra.mxu0 %v19722_v26  ;;  %6468 = vmatpush1.bf16.msra.mxu1 %v19727_v13 }
 0xfd9   :  { %6428 = vmatprep.subr.bf16.mxu0 %v19740_v48  ;;  %6469 = vmatprep.subr.bf16.mxu1 %v19751_v51 }
 0xfdc   :  { %6429 = vmatpush1.bf16.msra.mxu0 %v19735_v49  ;;  %6470 = vmatpush1.bf16.msra.mxu1 %v19745_v55 }
 0xfdd   :  { %6723 = vmatprep.subr.bf16.mxu0 %v19568_v9  ;;  %6764 = vmatprep.subr.bf16.mxu1 %v19584_v1 }
0x1071   :  { %v5737_v10 = vpop.f32.mrb[76].mxu0  ;;  %v5778_v15 = vpop.f32.mrb[108].mxu1 }
0x1072   :  { %v5785_v58 = vadd.f32 %v5737_v10, %v3242_v8  ;;  %v5787_v29 = vadd.f32 %v5778_v15, %v3315_v44  ;;  %v5739_v46 = vpop.f32.mrb[77].mxu0  ;;  %v5780_v41 = vpop.f32.mrb[109].mxu1 }
0x1073   :  { %v5786_v4 = vadd.f32 %v5739_v46, %v3244_v19  ;;  %v5788_v11 = vadd.f32 %v5780_v41, %v3317_v56  ;;  %v5741_v14 = vpop.f32.mrb[78].mxu0  ;;  %v5782_v60 = vpop.f32.mrb[110].mxu1 }
0x1074   :  { %v15150_v59 = vmul.f32 -1.442695, %v5785_v58  ;;  %v5742_v16 = vpop.f32.mrb[79].mxu0  ;;  %v5783_v52 = vpop.f32.mrb[111].mxu1 }
0x1075   :  { %v15151_v57 = vmul.f32 -1.442695, %v5786_v4  ;;  %v15152_v23 = vmul.f32 -1.442695, %v5788_v11 }
0x1076   :  { %17131 = vpow2.f32 %v15150_v59 }
0x1077   :  { %17133 = vpow2.f32 %v15151_v57 }
0x1078   :  { %17135 = vpow2.f32 %v15152_v23 }
0x1079   :  { %17137 = vtanh.f32 %v5787_v29 }
0x1080   :  { %v17132_v27 = vpop.eup %17131 }
0x1081   :  { %v17134_v20 = vpop.eup %17133  ;;  %v5792_v17 = vadd.f32 1.0, %v17132_v27 }
0x1082   :  { %v5798_v34 = vadd.f32 1.0, %v17134_v20  ;;  %v17136_v21 = vpop.eup %17135 }
0x1083   :  { %17139 = vrcp.f32 %v5792_v17  ;;  %v17138_v37 = vpop.eup %17137  ;;  %v5805_v44 = vadd.f32 1.0, %v17136_v21 }
0x1084   :  { %17141 = vrcp.f32 %v5798_v34 }
0x1085   :  { %17143 = vrcp.f32 %v5805_v44  ;;  %v5858_v44 = vld [vmem:[%s22151_s9] sm:$0xf] }
0x108d   :  { %v17140_v7 = vpop.eup %17139 }
0x108e   :  { %v17142_v8 = vpop.eup %17141  ;;  %v5809_v31 = vmul.f32 %v17140_v7, %v17138_v37 }
0x108f   :  { %v5808_v36 = vmul.f32 %v17142_v8, %v19454_v25  ;;  %v17144_v16 = vpop.eup %17143 }
0x1091   :  { %v19768_v19 = vpop.f32.mrb[80].mxu0  ;;  %v19770_v50 = vpop.f32.mrb[112].mxu1  ;;  %v5810_v56 = vadd.f32 %v5809_v31, %v5808_v36 }
0x1092   :  { %v19772_v10 = vpop.f32.mrb[81].mxu0  ;;  %v19774_v15 = vpop.f32.mrb[113].mxu1 }
0x1093   :  { %v19776_v58 = vpop.f32.mrb[82].mxu0  ;;  %v19778_v29 = vpop.f32.mrb[114].mxu1  ;;  %17145 = vtanh.f32 %v5810_v56 }
0x1094   :  { %v19780_v46 = vpop.f32.mrb[83].mxu0  ;;  %v19782_v41 = vpop.f32.mrb[115].mxu1 }
0x1099   :  { %v19784_v25 = vpop.f32.mrb[84].mxu0  ;;  %v19786_v4 = vpop.f32.mrb[116].mxu1 }
0x109a   :  { %22269 = vst [vmem:[#allocation16_spill] sm:$0xff] %v19786_v4  ;;  %v19788_v11 = vpop.f32.mrb[85].mxu0  ;;  %v19790_v14 = vpop.f32.mrb[117].mxu1 }
0x109b   :  { %22270 = vst [vmem:[#allocation6_spill] sm:$0xff] %v19788_v11  ;;  %22271 = vst [vmem:[#allocation17_spill] sm:$0xff] %v19790_v14  ;;  %v19792_v60 = vpop.f32.mrb[86].mxu0  ;;  %v19794_v59 = vpop.f32.mrb[118].mxu1 }
0x109c   :  { %22272 = vst [vmem:[#allocation7_spill] sm:$0xff] %v19792_v60  ;;  %22273 = vst [vmem:[#allocation18_spill] sm:$0xff] %v19794_v59  ;;  %v19796_v52 = vpop.f32.mrb[87].mxu0  ;;  %v19798_v57 = vpop.f32.mrb[119].mxu1 }
0x109d   :  { %22274 = vst [vmem:[#allocation8_spill] sm:$0xff] %v19796_v52  ;;  %22275 = vst [vmem:[#allocation19_spill] sm:$0xff] %v19798_v57  ;;  %v17146_v23 = vpop.eup %17145 }
0x109e   :  { %v5812_v27 = vmul.f32 %v17146_v23, %v17144_v16 }
0x10a0   :  { %v5825_v20 = vpack.c.bf16 %v5812_v27, %v19457_v54 }
0x10a1   :  { %v19801_v17 = vpop.f32.mrb[88].mxu0  ;;  %v19803_v34 = vpop.f32.mrb[120].mxu1 }
0x10a2   :  { %22276 = vst [vmem:[#allocation9_spill] sm:$0xff] %v19801_v17  ;;  %22277 = vst [vmem:[#allocation20_spill] sm:$0xff] %v19803_v34  ;;  %v19805_v21 = vpop.f32.mrb[89].mxu0  ;;  %v19807_v37 = vpop.f32.mrb[121].mxu1  ;;  %6103 = vmatmul.mubr.bf16.gmra.mrb[92].mxu0 %v5825_v20  ;;  %6176 = vmatmul.mubr.bf16.gmra.mrb[124].mxu1 %v5825_v20 }
0x10a3   :  { %22278 = vst [vmem:[#allocation10_spill] sm:$0xff] %v19805_v21  ;;  %22279 = vst [vmem:[#allocation21_spill] sm:$0xff] %v19807_v37  ;;  %v19809_v7 = vpop.f32.mrb[90].mxu0  ;;  %v19811_v8 = vpop.f32.mrb[122].mxu1  ;;  %6446 = vmatprep.mubr.bf16.mxu0 %v22201_v24  ;;  %6487 = vmatprep.mubr.bf16.mxu1 %v22201_v24 }
0x10a4   :  { %22280 = vst [vmem:[#allocation11_spill] sm:$0xff] %v19809_v7  ;;  %22281 = vst [vmem:[#allocation22_spill] sm:$0xff] %v19811_v8  ;;  %v19815_v31 = vpop.f32.mrb[91].mxu0  ;;  %v19817_v54 = vpop.f32.mrb[123].mxu1  ;;  %v22291_v8 = vld [vmem:[#allocation14_spill] sm:$0xff] }
0x10a5   :  { %22282 = vst [vmem:[#allocation12_spill] sm:$0xff] %v19815_v31  ;;  %22283 = vst [vmem:[#allocation23_spill] sm:$0xff] %v19817_v54  ;;  %v22290_v54 = vld [vmem:[#allocation4_spill] sm:$0xff]  ;;  %v19874_v7 = vrot.slane %v5858_v44, %v22291_v8 }
0x10a6   :  { %v19871_v31 = vrot.slane %v5858_v44, %v22290_v54 }
0x10a7   :  { %v6148_v54 = vadd.f32 %v19770_v50, %v19874_v7 }
0x10aa   :  { %6447 = vmatmul.mubr.bf16.vlgmr.msra.gmra.mrb[96].mxu0 %v22201_v24  ;;  %6488 = vmatmul.mubr.bf16.vlgmr.msra.gmra.mrb[128].mxu1 %v22201_v24 }
0x10ab   :  { %6724 = vmatpush1.bf16.msra.mxu0 %v19573_v35  ;;  %6765 = vmatpush1.bf16.msra.mxu1 %v19579_v18 }
0x10ac   :  { %6725 = vmatprep.subr.bf16.mxu0 %v19591_v47  ;;  %6766 = vmatprep.subr.bf16.mxu1 %v19596_v33 }
0x10ad   :  { %6755 = vmatprep.mubr.bf16.mxu0 %v22201_v24  ;;  %6796 = vmatprep.mubr.bf16.mxu1 %v22201_v24 }
0x10af   :  { %6726 = vmatpush1.bf16.msra.mxu0 %v19602_v61  ;;  %6767 = vmatpush1.bf16.msra.mxu1 %v19607_v62 }
0x10b0   :  { %6727 = vmatprep.subr.bf16.mxu0 %v19615_v63  ;;  %6768 = vmatprep.subr.bf16.mxu1 %v19620_v0 }
0x10b3   :  { %6728 = vmatpush1.bf16.msra.mxu0 %v19626_v2  ;;  %6769 = vmatpush1.bf16.msra.mxu1 %v19631_v3 }
0x10b4   :  { %6729 = vmatprep.subr.bf16.mxu0 %v19644_v6  ;;  %6770 = vmatprep.subr.bf16.mxu1 %v19655_v22 }
0x10b7   :  { %6730 = vmatpush1.bf16.msra.mxu0 %v19639_v5  ;;  %6771 = vmatpush1.bf16.msra.mxu1 %v19649_v32 }
0x10b8   :  { %6731 = vmatprep.subr.bf16.mxu0 %v19663_v39  ;;  %6772 = vmatprep.subr.bf16.mxu1 %v19668_v40 }
0x10bb   :  { %6732 = vmatpush1.bf16.msra.mxu0 %v19674_v45  ;;  %6773 = vmatpush1.bf16.msra.mxu1 %v19679_v38 }
0x10bc   :  { %6733 = vmatprep.subr.bf16.mxu0 %v19692_v43  ;;  %6774 = vmatprep.subr.bf16.mxu1 %v19703_v53 }
0x10bf   :  { %6734 = vmatpush1.bf16.msra.mxu0 %v19687_v42  ;;  %6775 = vmatpush1.bf16.msra.mxu1 %v19697_v30 }
0x10c0   :  { %6735 = vmatprep.subr.bf16.mxu0 %v19711_v12  ;;  %6776 = vmatprep.subr.bf16.mxu1 %v19716_v28 }
0x10c3   :  { %6736 = vmatpush1.bf16.msra.mxu0 %v19722_v26  ;;  %6777 = vmatpush1.bf16.msra.mxu1 %v19727_v13 }
0x10c4   :  { %6737 = vmatprep.subr.bf16.mxu0 %v19740_v48  ;;  %6778 = vmatprep.subr.bf16.mxu1 %v19751_v51 }
0x10c7   :  { %6738 = vmatpush1.bf16.msra.mxu0 %v19735_v49  ;;  %6779 = vmatpush1.bf16.msra.mxu1 %v19745_v55 }
0x10c8   :  { %7032 = vmatprep.subr.bf16.mxu0 %v19568_v9  ;;  %7073 = vmatprep.subr.bf16.mxu1 %v19584_v1 }
0x1175   :  { %v19858_v36 = vpop.f32.mrb[92].mxu0  ;;  %v19860_v56 = vpop.f32.mrb[124].mxu1 }
0x1176   :  { %22284 = vst [vmem:[#allocation13_spill] sm:$0xff] %v19858_v36  ;;  %22285 = vst [vmem:[#allocation24_spill] sm:$0xff] %v19860_v56  ;;  %v19862_v16 = vpop.f32.mrb[93].mxu0  ;;  %v19864_v23 = vpop.f32.mrb[125].mxu1  ;;  %v22294_v36 = vld [vmem:[#allocation5_spill] sm:$0xff] }
0x1177   :  { %22286 = vst [vmem:[#allocation25_spill] sm:$0xff] %v19862_v16  ;;  %22287 = vst [vmem:[#allocation26_spill] sm:$0xff] %v19864_v23  ;;  %v19866_v27 = vpop.f32.mrb[94].mxu0  ;;  %v19868_v20 = vpop.f32.mrb[126].mxu1  ;;  %v19881_v56 = vrot.slane %v5858_v44, %v22294_v36  ;;  %v22295_v16 = vld [vmem:[#allocation15_spill] sm:$0xff] }
0x1178   :  { %22288 = vst [vmem:[#allocation27_spill] sm:$0xff] %v19866_v27  ;;  %22289 = vst [vmem:[#allocation28_spill] sm:$0xff] %v19868_v20  ;;  %v19876_v37 = vpop.f32.mrb[95].mxu0  ;;  %v19878_v21 = vpop.f32.mrb[127].mxu1  ;;  %v19884_v34 = vrot.slane %v5858_v44, %v22295_v16  ;;  %v6075_v27 = vadd.f32 %v19768_v19, %v19871_v31 }
0x1179   :  { %22292 = vst [vmem:[#allocation29_spill] sm:$0xff] %v19876_v37  ;;  %22293 = vst [vmem:[#allocation30_spill] sm:$0xff] %v19878_v21  ;;  %v6077_v8 = vadd.f32 %v19772_v10, %v19881_v56 }
0x117a   :  { %v6150_v37 = vadd.f32 %v19774_v15, %v19884_v34 }
0x117d   :  { %v6448_v20 = vpop.f32.mrb[96].mxu0  ;;  %v6489_v21 = vpop.f32.mrb[128].mxu1 }
0x117e   :  { %v6496_v23 = vadd.f32 %v6448_v20, %v6075_v27  ;;  %v6498_v36 = vadd.f32 %v6489_v21, %v6148_v54  ;;  %v6450_v17 = vpop.f32.mrb[97].mxu0  ;;  %v6491_v57 = vpop.f32.mrb[129].mxu1  ;;  %v6154_v20 = vadd.f32 %v19782_v41, %v19884_v34 }
0x117f   :  { %v6497_v44 = vadd.f32 %v6450_v17, %v6077_v8  ;;  %v6499_v16 = vadd.f32 %v6491_v57, %v6150_v37  ;;  %v6452_v52 = vpop.f32.mrb[98].mxu0  ;;  %v6493_v59 = vpop.f32.mrb[130].mxu1 }
0x1180   :  { %v15217_v19 = vmul.f32 -1.442695, %v6496_v23  ;;  %v6453_v60 = vpop.f32.mrb[99].mxu0  ;;  %v6494_v14 = vpop.f32.mrb[131].mxu1  ;;  %v6081_v23 = vadd.f32 %v19780_v46, %v19881_v56 }
0x1181   :  { %v15218_v50 = vmul.f32 -1.442695, %v6497_v44  ;;  %v15219_v10 = vmul.f32 -1.442695, %v6499_v16  ;;  %v6152_v16 = vadd.f32 %v19778_v29, %v19874_v7 }
0x1182   :  { %17147 = vpow2.f32 %v15217_v19 }
0x1183   :  { %17149 = vpow2.f32 %v15218_v50 }
0x1184   :  { %17151 = vpow2.f32 %v15219_v10 }
0x1185   :  { %17153 = vtanh.f32 %v6498_v36  ;;  %v6079_v36 = vadd.f32 %v19776_v58, %v19871_v31 }
0x118c   :  { %v17148_v11 = vpop.eup %17147 }
0x118d   :  { %v17150_v4 = vpop.eup %17149  ;;  %v6503_v15 = vadd.f32 1.0, %v17148_v11 }
0x118e   :  { %v6509_v27 = vadd.f32 1.0, %v17150_v4  ;;  %v17152_v21 = vpop.eup %17151 }
0x118f   :  { %17155 = vrcp.f32 %v6503_v15  ;;  %v17154_v17 = vpop.eup %17153  ;;  %v6516_v37 = vadd.f32 1.0, %v17152_v21 }
0x1190   :  { %17157 = vrcp.f32 %v6509_v27 }
0x1191   :  { %17159 = vrcp.f32 %v6516_v37 }
0x1199   :  { %v17156_v57 = vpop.eup %17155 }
0x119a   :  { %v17158_v52 = vpop.eup %17157  ;;  %v6520_v59 = vmul.f32 %v17156_v57, %v17154_v17 }
0x119b   :  { %v6519_v60 = vmul.f32 0.0, %v17158_v52  ;;  %v17160_v8 = vpop.eup %17159 }
0x119d   :  { %v19894_v14 = vadd.f32 %v6520_v59, %v6519_v60 }
0x119f   :  { %17161 = vtanh.f32 %v19894_v14 }
0x11a9   :  { %v17162_v54 = vpop.eup %17161 }
0x11aa   :  { %v19897_v11 = vmul.f32 %v17162_v54, %v17160_v8 }
0x11ac   :  { %v6530_v4 = vpack.c.bf16 %v19897_v11, %v19897_v11 }
0x11ae   :  { %6756 = vmatmul.mubr.bf16.vlgmr.msra.gmra.mrb[100].mxu0 %v6530_v4  ;;  %6797 = vmatmul.mubr.bf16.vlgmr.msra.gmra.mrb[132].mxu1 %v6530_v4 }
0x11af   :  { %7033 = vmatpush1.bf16.msra.mxu0 %v19573_v35  ;;  %7074 = vmatpush1.bf16.msra.mxu1 %v19579_v18 }
0x11b0   :  { %7034 = vmatprep.subr.bf16.mxu0 %v19591_v47  ;;  %7075 = vmatprep.subr.bf16.mxu1 %v19596_v33 }
0x11b1   :  { %7064 = vmatprep.mubr.bf16.mxu0 %v22201_v24  ;;  %7105 = vmatprep.mubr.bf16.mxu1 %v22201_v24 }
0x11b3   :  { %7035 = vmatpush1.bf16.msra.mxu0 %v19602_v61  ;;  %7076 = vmatpush1.bf16.msra.mxu1 %v19607_v62 }
0x11b4   :  { %7036 = vmatprep.subr.bf16.mxu0 %v19615_v63  ;;  %7077 = vmatprep.subr.bf16.mxu1 %v19620_v0 }
0x11b7   :  { %7037 = vmatpush1.bf16.msra.mxu0 %v19626_v2  ;;  %7078 = vmatpush1.bf16.msra.mxu1 %v19631_v3 }
0x11b8   :  { %7038 = vmatprep.subr.bf16.mxu0 %v19644_v6  ;;  %7079 = vmatprep.subr.bf16.mxu1 %v19655_v22 }
0x11bb   :  { %7039 = vmatpush1.bf16.msra.mxu0 %v19639_v5  ;;  %7080 = vmatpush1.bf16.msra.mxu1 %v19649_v32 }
0x11bc   :  { %7040 = vmatprep.subr.bf16.mxu0 %v19663_v39  ;;  %7081 = vmatprep.subr.bf16.mxu1 %v19668_v40 }
0x11bf   :  { %7041 = vmatpush1.bf16.msra.mxu0 %v19674_v45  ;;  %7082 = vmatpush1.bf16.msra.mxu1 %v19679_v38 }
0x11c0   :  { %7042 = vmatprep.subr.bf16.mxu0 %v19692_v43  ;;  %7083 = vmatprep.subr.bf16.mxu1 %v19703_v53 }
0x11c3   :  { %7043 = vmatpush1.bf16.msra.mxu0 %v19687_v42  ;;  %7084 = vmatpush1.bf16.msra.mxu1 %v19697_v30 }
0x11c4   :  { %7044 = vmatprep.subr.bf16.mxu0 %v19711_v12  ;;  %7085 = vmatprep.subr.bf16.mxu1 %v19716_v28 }
0x11c7   :  { %7045 = vmatpush1.bf16.msra.mxu0 %v19722_v26  ;;  %7086 = vmatpush1.bf16.msra.mxu1 %v19727_v13 }
0x11c8   :  { %7046 = vmatprep.subr.bf16.mxu0 %v19740_v48  ;;  %7087 = vmatprep.subr.bf16.mxu1 %v19751_v51 }
0x11cb   :  { %7047 = vmatpush1.bf16.msra.mxu0 %v19735_v49  ;;  %7088 = vmatpush1.bf16.msra.mxu1 %v19745_v55 }
0x11cc   :  { %7341 = vmatprep.subr.bf16.mxu0 %v19568_v9  ;;  %7382 = vmatprep.subr.bf16.mxu1 %v19584_v1 }
0x1281   :  { %v6757_v44 = vpop.f32.mrb[100].mxu0  ;;  %v6798_v19 = vpop.f32.mrb[132].mxu1 }
0x1282   :  { %v6805_v50 = vadd.f32 %v6757_v44, %v6079_v36  ;;  %v6807_v10 = vadd.f32 %v6798_v19, %v6152_v16  ;;  %v6759_v15 = vpop.f32.mrb[101].mxu0  ;;  %v6800_v9 = vpop.f32.mrb[133].mxu1 }
0x1283   :  { %v6806_v27 = vadd.f32 %v6759_v15, %v6081_v23  ;;  %v6808_v1 = vadd.f32 %v6800_v9, %v6154_v20  ;;  %v6761_v21 = vpop.f32.mrb[102].mxu0  ;;  %v6802_v17 = vpop.f32.mrb[134].mxu1 }
0x1284   :  { %v15252_v58 = vmul.f32 -1.442695, %v6805_v50  ;;  %v6762_v57 = vpop.f32.mrb[103].mxu0  ;;  %v6803_v52 = vpop.f32.mrb[135].mxu1 }
0x1285   :  { %v15253_v29 = vmul.f32 -1.442695, %v6806_v27  ;;  %v15254_v46 = vmul.f32 -1.442695, %v6808_v1 }
0x1286   :  { %17163 = vpow2.f32 %v15252_v58 }
0x1287   :  { %17165 = vpow2.f32 %v15253_v29  ;;  %v20004_v29 = vld [vmem:[%s22150_s8 + $0x4] ss:$16 sps:$4 sm:$0xff]  }
0x1288   :  { %17167 = vpow2.f32 %v15254_v46  ;;  %v20009_v46 = vld [vmem:[%s22150_s8 + $0xc] ss:$16 sps:$4 sm:$0xff]  }
0x1289   :  { %17169 = vtanh.f32 %v6807_v10 }
0x1290   :  { %v17164_v59 = vpop.eup %17163 }
0x1291   :  { %v17166_v37 = vpop.eup %17165  ;;  %v6812_v41 = vadd.f32 1.0, %v17164_v59  ;;  %v20019_v59 = vld [vmem:[%s22150_s8 + $0x8] ss:$16 sps:$4 sm:$0xff]  }
0x1292   :  { %v6818_v60 = vadd.f32 1.0, %v17166_v37  ;;  %v17168_v8 = vpop.eup %17167  ;;  %v20028_v37 = vld [vmem:[%s22150_s8 + $0x24] ss:$16 sps:$4 sm:$0xff]  }
0x1293   :  { %17171 = vrcp.f32 %v6812_v41  ;;  %v17170_v54 = vpop.eup %17169  ;;  %v6825_v23 = vadd.f32 1.0, %v17168_v8  ;;  %v20033_v41 = vld [vmem:[%s22150_s8 + $0x2c] ss:$16 sps:$4 sm:$0xff]   ;;  %v20043_v8 = vld [vmem:[%s22150_s8 + $0x28] ss:$16 sps:$4 sm:$0xff]  }
0x1294   :  { %17173 = vrcp.f32 %v6818_v60  ;;  %v20038_v60 = vld [vmem:[%s22150_s8 + $0x20] ss:$16 sps:$4 sm:$0xff]  }
0x1295   :  { %17175 = vrcp.f32 %v6825_v23  ;;  %v20076_v23 = vld [vmem:[%s22150_s8 + $0x64] ss:$16 sps:$4 sm:$0xff]  }
0x129d   :  { %v17172_v4 = vpop.eup %17171 }
0x129e   :  { %v17174_v36 = vpop.eup %17173  ;;  %v6829_v16 = vmul.f32 %v17172_v4, %v17170_v54  ;;  %v20052_v54 = vld [vmem:[%s22150_s8 + $0x44] ss:$16 sps:$4 sm:$0xff]   ;;  %v20057_v4 = vld [vmem:[%s22150_s8 + $0x4c] ss:$16 sps:$4 sm:$0xff]  }
0x129f   :  { %v6828_v20 = vmul.f32 %v17174_v36, %v19894_v14  ;;  %v17176_v19 = vpop.eup %17175  ;;  %v20062_v36 = vld [vmem:[%s22150_s8 + $0x40] ss:$16 sps:$4 sm:$0xff]  }
0x12a1   :  { %v19944_v44 = vadd.f32 %v6829_v16, %v6828_v20  ;;  %v20067_v16 = vld [vmem:[%s22150_s8 + $0x48] ss:$16 sps:$4 sm:$0xff]   ;;  %v20081_v20 = vld [vmem:[%s22150_s8 + $0x6c] ss:$16 sps:$4 sm:$0xff]  }
0x12a3   :  { %17177 = vtanh.f32 %v19944_v44 }
0x12ad   :  { %v17178_v50 = vpop.eup %17177 }
0x12ae   :  { %v19947_v15 = vmul.f32 %v17178_v50, %v17176_v19  ;;  %v20091_v19 = vld [vmem:[%s22150_s8 + $0x68] ss:$16 sps:$4 sm:$0xff]   ;;  %v20100_v50 = vld [vmem:[%s22150_s8 + $0x84] ss:$16 sps:$4 sm:$0xff]  }
0x12b0   :  { %v6839_v10 = vpack.c.bf16 %v19947_v15, %v19947_v15  ;;  %v6834_v17 = vadd.f32 %v19947_v15, %v19897_v11  ;;  %v20014_v11 = vld [vmem:[%s22150_s8] ss:$16 sps:$4 sm:$0xff]   ;;  %v20105_v15 = vld [vmem:[%s22150_s8 + $0x8c] ss:$16 sps:$4 sm:$0xff]  }
0x12b2   :  { %7065 = vmatmul.mubr.bf16.vlgmr.msra.gmra.mrb[104].mxu0 %v6839_v10  ;;  %7106 = vmatmul.mubr.bf16.vlgmr.msra.gmra.mrb[136].mxu1 %v6839_v10  ;;  %v20110_v10 = vld [vmem:[%s22150_s8 + $0x80] ss:$16 sps:$4 sm:$0xff]  }
0x12b3   :  { %7342 = vmatpush1.bf16.msra.mxu0 %v19573_v35  ;;  %7383 = vmatpush1.bf16.msra.mxu1 %v19579_v18  ;;  %v6085_v35 = vadd.f32 %v19784_v25, %v19871_v31  ;;  %v22296_v18 = vld [vmem:[#allocation16_spill] sm:$0xff] }
0x12b4   :  { %7343 = vmatprep.subr.bf16.mxu0 %v19591_v47  ;;  %7384 = vmatprep.subr.bf16.mxu1 %v19596_v33  ;;  %v6158_v47 = vadd.f32 %v22296_v18, %v19874_v7  ;;  %v22297_v33 = vld [vmem:[#allocation6_spill] sm:$0xff] }
0x12b5   :  { %7373 = vmatprep.mubr.bf16.mxu0 %v22201_v24  ;;  %7414 = vmatprep.mubr.bf16.mxu1 %v22201_v24  ;;  %v20122_v18 = vld [vmem:[%s22150_s8 + $0xa4] ss:$16 sps:$4 sm:$0xff]  }
0x12b7   :  { %7344 = vmatpush1.bf16.msra.mxu0 %v19602_v61  ;;  %7385 = vmatpush1.bf16.msra.mxu1 %v19607_v62  ;;  %v6087_v61 = vadd.f32 %v22297_v33, %v19881_v56  ;;  %v22298_v62 = vld [vmem:[#allocation17_spill] sm:$0xff] }
0x12b8   :  { %7345 = vmatprep.subr.bf16.mxu0 %v19615_v63  ;;  %7386 = vmatprep.subr.bf16.mxu1 %v19620_v0  ;;  %v6160_v63 = vadd.f32 %v22298_v62, %v19884_v34  ;;  %v20134_v33 = vld [vmem:[%s22150_s8 + $0xa8] ss:$16 sps:$4 sm:$0xff]   ;;  %v20145_v62 = vld [vmem:[%s22150_s8 + $0xc4] ss:$16 sps:$4 sm:$0xff]  }
0x12bb   :  { %7346 = vmatpush1.bf16.msra.mxu0 %v19626_v2  ;;  %7387 = vmatpush1.bf16.msra.mxu1 %v19631_v3 }
0x12bc   :  { %7347 = vmatprep.subr.bf16.mxu0 %v19644_v6  ;;  %7388 = vmatprep.subr.bf16.mxu1 %v19655_v22 }
0x12bf   :  { %7348 = vmatpush1.bf16.msra.mxu0 %v19639_v5  ;;  %7389 = vmatpush1.bf16.msra.mxu1 %v19649_v32 }
0x12c0   :  { %7349 = vmatprep.subr.bf16.mxu0 %v19663_v39  ;;  %7390 = vmatprep.subr.bf16.mxu1 %v19668_v40 }
0x12c3   :  { %7350 = vmatpush1.bf16.msra.mxu0 %v19674_v45  ;;  %7391 = vmatpush1.bf16.msra.mxu1 %v19679_v38 }
0x12c4   :  { %7351 = vmatprep.subr.bf16.mxu0 %v19692_v43  ;;  %7392 = vmatprep.subr.bf16.mxu1 %v19703_v53 }
0x12c7   :  { %7352 = vmatpush1.bf16.msra.mxu0 %v19687_v42  ;;  %7393 = vmatpush1.bf16.msra.mxu1 %v19697_v30 }
0x12c8   :  { %7353 = vmatprep.subr.bf16.mxu0 %v19711_v12  ;;  %7394 = vmatprep.subr.bf16.mxu1 %v19716_v28 }
0x12cb   :  { %7354 = vmatpush1.bf16.msra.mxu0 %v19722_v26  ;;  %7395 = vmatpush1.bf16.msra.mxu1 %v19727_v13 }
0x12cc   :  { %7355 = vmatprep.subr.bf16.mxu0 %v19740_v48  ;;  %7396 = vmatprep.subr.bf16.mxu1 %v19751_v51 }
0x12cf   :  { %7356 = vmatpush1.bf16.msra.mxu0 %v19735_v49  ;;  %7397 = vmatpush1.bf16.msra.mxu1 %v19745_v55 }
0x12d0   :  { %7650 = vmatprep.subr.bf16.mxu0 %v20004_v29  ;;  %7691 = vmatprep.subr.bf16.mxu1 %v20009_v46 }
0x1385   :  { %v7066_v0 = vpop.f32.mrb[104].mxu0  ;;  %v7107_v2 = vpop.f32.mrb[136].mxu1 }
0x1386   :  { %v7114_v3 = vadd.f32 %v7066_v0, %v6085_v35  ;;  %v7116_v5 = vadd.f32 %v7107_v2, %v6158_v47  ;;  %v7068_v6 = vpop.f32.mrb[105].mxu0  ;;  %v7109_v32 = vpop.f32.mrb[137].mxu1  ;;  %v20115_v35 = vld [vmem:[%s22150_s8 + $0x88] ss:$16 sps:$4 sm:$0xff]   ;;  %v20129_v47 = vld [vmem:[%s22150_s8 + $0xa0] ss:$16 sps:$4 sm:$0xff]  }
0x1387   :  { %v7115_v22 = vadd.f32 %v7068_v6, %v6087_v61  ;;  %v7117_v39 = vadd.f32 %v7109_v32, %v6160_v63  ;;  %v7070_v40 = vpop.f32.mrb[106].mxu0  ;;  %v7111_v45 = vpop.f32.mrb[138].mxu1  ;;  %v20139_v61 = vld [vmem:[%s22150_s8 + $0xac] ss:$16 sps:$4 sm:$0xff]   ;;  %v20158_v0 = vld [vmem:[%s22150_s8 + $0xc0] ss:$16 sps:$4 sm:$0xff]  }
0x1388   :  { %v15287_v38 = vmul.f32 -1.442695, %v7114_v3  ;;  %v7071_v42 = vpop.f32.mrb[107].mxu0  ;;  %v7112_v43 = vpop.f32.mrb[139].mxu1  ;;  %v20150_v63 = vld [vmem:[%s22150_s8 + $0xcc] ss:$16 sps:$4 sm:$0xff]  }
0x1389   :  { %v15288_v30 = vmul.f32 -1.442695, %v7115_v22  ;;  %v15289_v53 = vmul.f32 -1.442695, %v7117_v39  ;;  %v20163_v2 = vld [vmem:[%s22150_s8 + $0xc8] ss:$16 sps:$4 sm:$0xff]  }
0x138a   :  { %17179 = vpow2.f32 %v15287_v38  ;;  %v20170_v3 = vld [vmem:[%s22150_s8 + $0xe4] ss:$16 sps:$4 sm:$0xff]   ;;  %v20182_v6 = vld [vmem:[%s22150_s8 + $0xe0] ss:$16 sps:$4 sm:$0xff]   ;;  %v20187_v32 = vld [vmem:[%s22150_s8 + $0xe8] ss:$16 sps:$4 sm:$0xff]  }
0x138b   :  { %17181 = vpow2.f32 %v15288_v30  ;;  %v22299_v22 = vld [vmem:[#allocation7_spill] sm:$0xff]  ;;  %v22300_v40 = vld [vmem:[#allocation18_spill] sm:$0xff]  ;;  %v22301_v38 = vld [vmem:[#allocation8_spill] sm:$0xff] }
0x138c   :  { %17183 = vpow2.f32 %v15289_v53  ;;  %v6089_v39 = vadd.f32 %v22299_v22, %v19871_v31  ;;  %v6162_v45 = vadd.f32 %v22300_v40, %v19874_v7  ;;  %v6091_v42 = vadd.f32 %v22301_v38, %v19881_v56  ;;  %v22302_v43 = vld [vmem:[#allocation19_spill] sm:$0xff] }
0x138d   :  { %17185 = vtanh.f32 %v7116_v5  ;;  %v20175_v5 = vld [vmem:[%s22150_s8 + $0xec] ss:$16 sps:$4 sm:$0xff]   ;;  %v6164_v30 = vadd.f32 %v22302_v43, %v19884_v34 }
0x1394   :  { %v17180_v12 = vpop.eup %17179 }
0x1395   :  { %v17182_v28 = vpop.eup %17181  ;;  %v7121_v26 = vadd.f32 1.0, %v17180_v12 }
0x1396   :  { %v7127_v13 = vadd.f32 1.0, %v17182_v28  ;;  %v17184_v49 = vpop.eup %17183 }
0x1397   :  { %17187 = vrcp.f32 %v7121_v26  ;;  %v17186_v48 = vpop.eup %17185  ;;  %v7134_v14 = vadd.f32 1.0, %v17184_v49 }
0x1398   :  { %17189 = vrcp.f32 %v7127_v13 }
0x1399   :  { %17191 = vrcp.f32 %v7134_v14 }
0x13a1   :  { %v17188_v55 = vpop.eup %17187 }
0x13a2   :  { %v17190_v51 = vpop.eup %17189  ;;  %v7138_v25 = vmul.f32 %v17188_v55, %v17186_v48 }
0x13a3   :  { %v7137_v9 = vmul.f32 %v17190_v51, %v19944_v44  ;;  %v17192_v1 = vpop.eup %17191  ;;  %v20086_v44 = vld [vmem:[%s22150_s8 + $0x60] ss:$16 sps:$4 sm:$0xff]  }
0x13a5   :  { %v19992_v27 = vadd.f32 %v7138_v25, %v7137_v9 }
0x13a7   :  { %17193 = vtanh.f32 %v19992_v27 }
0x13b1   :  { %v17194_v21 = vpop.eup %17193 }
0x13b2   :  { %v7141_v58 = vmul.f32 %v17194_v21, %v17192_v1 }
0x13b4   :  { %v19997_v57 = vadd.f32 %v7141_v58, %v6834_v17  ;;  %v7148_v52 = vpack.c.bf16 %v7141_v58, %v7141_v58 }
0x13b6   :  { %7374 = vmatmul.mubr.bf16.vlgmr.msra.gmra.mrb[108].mxu0 %v7148_v52  ;;  %7415 = vmatmul.mubr.bf16.vlgmr.msra.gmra.mrb[140].mxu1 %v7148_v52 }
0x13b7   :  { %7682 = vmatprep.mubr.bf16.mxu0 %v22201_v24  ;;  %7723 = vmatprep.mubr.bf16.mxu1 %v22201_v24 }
0x13b8   :  { %7651 = vmatpush1.bf16.msra.mxu0 %v20014_v11  ;;  %7692 = vmatpush1.bf16.msra.mxu1 %v20019_v59 }
0x13b9   :  { %7652 = vmatprep.subr.bf16.mxu0 %v20028_v37  ;;  %7693 = vmatprep.subr.bf16.mxu1 %v20033_v41 }
0x13bc   :  { %7653 = vmatpush1.bf16.msra.mxu0 %v20038_v60  ;;  %7694 = vmatpush1.bf16.msra.mxu1 %v20043_v8 }
0x13bd   :  { %7654 = vmatprep.subr.bf16.mxu0 %v20052_v54  ;;  %7695 = vmatprep.subr.bf16.mxu1 %v20057_v4 }
0x13c0   :  { %7655 = vmatpush1.bf16.msra.mxu0 %v20062_v36  ;;  %7696 = vmatpush1.bf16.msra.mxu1 %v20067_v16 }
0x13c1   :  { %7656 = vmatprep.subr.bf16.mxu0 %v20076_v23  ;;  %7697 = vmatprep.subr.bf16.mxu1 %v20081_v20 }
0x13c4   :  { %7657 = vmatpush1.bf16.msra.mxu0 %v20086_v44  ;;  %7698 = vmatpush1.bf16.msra.mxu1 %v20091_v19 }
0x13c5   :  { %7658 = vmatprep.subr.bf16.mxu0 %v20100_v50  ;;  %7699 = vmatprep.subr.bf16.mxu1 %v20105_v15 }
0x13c8   :  { %7659 = vmatpush1.bf16.msra.mxu0 %v20110_v10  ;;  %7700 = vmatpush1.bf16.msra.mxu1 %v20115_v35 }
0x13c9   :  { %7660 = vmatprep.subr.bf16.mxu0 %v20122_v18  ;;  %7701 = vmatprep.subr.bf16.mxu1 %v20139_v61 }
0x13cc   :  { %7661 = vmatpush1.bf16.msra.mxu0 %v20129_v47  ;;  %7702 = vmatpush1.bf16.msra.mxu1 %v20134_v33 }
0x13cd   :  { %7662 = vmatprep.subr.bf16.mxu0 %v20145_v62  ;;  %7703 = vmatprep.subr.bf16.mxu1 %v20150_v63 }
0x13d0   :  { %7663 = vmatpush1.bf16.msra.mxu0 %v20158_v0  ;;  %7704 = vmatpush1.bf16.msra.mxu1 %v20163_v2 }
0x13d1   :  { %7664 = vmatprep.subr.bf16.mxu0 %v20170_v3  ;;  %7705 = vmatprep.subr.bf16.mxu1 %v20175_v5 }
0x13d4   :  { %7665 = vmatpush1.bf16.msra.mxu0 %v20182_v6  ;;  %7706 = vmatpush1.bf16.msra.mxu1 %v20187_v32 }
0x13d5   :  { %7959 = vmatprep.subr.bf16.mxu0 %v20004_v29  ;;  %8000 = vmatprep.subr.bf16.mxu1 %v20009_v46 }
0x1489   :  { %v7375_v53 = vpop.f32.mrb[108].mxu0  ;;  %v7416_v12 = vpop.f32.mrb[140].mxu1 }
0x148a   :  { %v7423_v28 = vadd.f32 %v7375_v53, %v6089_v39  ;;  %v7425_v26 = vadd.f32 %v7416_v12, %v6162_v45  ;;  %v7377_v13 = vpop.f32.mrb[109].mxu0  ;;  %v7418_v49 = vpop.f32.mrb[141].mxu1 }
0x148b   :  { %v7424_v48 = vadd.f32 %v7377_v13, %v6091_v42  ;;  %v7426_v55 = vadd.f32 %v7418_v49, %v6164_v30  ;;  %v7379_v51 = vpop.f32.mrb[110].mxu0  ;;  %v7420_v25 = vpop.f32.mrb[142].mxu1 }
0x148c   :  { %v15322_v14 = vmul.f32 -1.442695, %v7423_v28  ;;  %v7380_v9 = vpop.f32.mrb[111].mxu0  ;;  %v7421_v1 = vpop.f32.mrb[143].mxu1  ;;  %v22305_v25 = vld [vmem:[#allocation10_spill] sm:$0xff] }
0x148d   :  { %v15323_v21 = vmul.f32 -1.442695, %v7424_v48  ;;  %v15324_v17 = vmul.f32 -1.442695, %v7426_v55  ;;  %v22304_v55 = vld [vmem:[#allocation20_spill] sm:$0xff]  ;;  %v22306_v9 = vld [vmem:[#allocation21_spill] sm:$0xff] }
0x148e   :  { %17195 = vpow2.f32 %v15322_v14  ;;  %v6168_v51 = vadd.f32 %v22304_v55, %v19874_v7  ;;  %v6097_v14 = vadd.f32 %v22305_v25, %v19881_v56  ;;  %v6170_v1 = vadd.f32 %v22306_v9, %v19884_v34 }
0x148f   :  { %17197 = vpow2.f32 %v15323_v21 }
0x1490   :  { %17199 = vpow2.f32 %v15324_v17 }
0x1491   :  { %17201 = vtanh.f32 %v7425_v26 }
0x1498   :  { %v17196_v58 = vpop.eup %17195 }
0x1499   :  { %v17198_v52 = vpop.eup %17197  ;;  %v7430_v22 = vadd.f32 1.0, %v17196_v58 }
0x149a   :  { %v7436_v39 = vadd.f32 1.0, %v17198_v52  ;;  %v17200_v40 = vpop.eup %17199 }
0x149b   :  { %17203 = vrcp.f32 %v7430_v22  ;;  %v17202_v45 = vpop.eup %17201  ;;  %v7443_v30 = vadd.f32 1.0, %v17200_v40 }
0x149c   :  { %17205 = vrcp.f32 %v7436_v39 }
0x149d   :  { %17207 = vrcp.f32 %v7443_v30 }
0x14a5   :  { %v17204_v38 = vpop.eup %17203 }
0x14a6   :  { %v17206_v42 = vpop.eup %17205  ;;  %v7447_v43 = vmul.f32 %v17204_v38, %v17202_v45 }
0x14a7   :  { %v7446_v53 = vmul.f32 %v17206_v42, %v19992_v27  ;;  %v17208_v28 = vpop.eup %17207  ;;  %v22303_v27 = vld [vmem:[#allocation9_spill] sm:$0xff] }
0x14a9   :  { %v20204_v12 = vadd.f32 %v7447_v43, %v7446_v53 }
0x14ab   :  { %17209 = vtanh.f32 %v20204_v12 }
0x14b5   :  { %v17210_v13 = vpop.eup %17209 }
0x14b6   :  { %v7450_v49 = vmul.f32 %v17210_v13, %v17208_v28 }
0x14b8   :  { %v20208_v26 = vadd.f32 %v7450_v49, %v19997_v57  ;;  %v7457_v48 = vpack.c.bf16 %v7450_v49, %v7450_v49  ;;  %v6095_v57 = vadd.f32 %v22303_v27, %v19871_v31 }
0x14ba   :  { %7683 = vmatmul.mubr.bf16.vlgmr.msra.gmra.mrb[112].mxu0 %v7457_v48  ;;  %7724 = vmatmul.mubr.bf16.vlgmr.msra.gmra.mrb[144].mxu1 %v7457_v48 }
0x14bb   :  { %7960 = vmatpush1.bf16.msra.mxu0 %v20014_v11  ;;  %8001 = vmatpush1.bf16.msra.mxu1 %v20019_v59 }
0x14bc   :  { %7961 = vmatprep.subr.bf16.mxu0 %v20028_v37  ;;  %8002 = vmatprep.subr.bf16.mxu1 %v20033_v41 }
0x14bd   :  { %7991 = vmatprep.mubr.bf16.mxu0 %v22201_v24  ;;  %8032 = vmatprep.mubr.bf16.mxu1 %v22201_v24 }
0x14bf   :  { %7962 = vmatpush1.bf16.msra.mxu0 %v20038_v60  ;;  %8003 = vmatpush1.bf16.msra.mxu1 %v20043_v8 }
0x14c0   :  { %7963 = vmatprep.subr.bf16.mxu0 %v20052_v54  ;;  %8004 = vmatprep.subr.bf16.mxu1 %v20057_v4 }
0x14c3   :  { %7964 = vmatpush1.bf16.msra.mxu0 %v20062_v36  ;;  %8005 = vmatpush1.bf16.msra.mxu1 %v20067_v16 }
0x14c4   :  { %7965 = vmatprep.subr.bf16.mxu0 %v20076_v23  ;;  %8006 = vmatprep.subr.bf16.mxu1 %v20081_v20 }
0x14c7   :  { %7966 = vmatpush1.bf16.msra.mxu0 %v20086_v44  ;;  %8007 = vmatpush1.bf16.msra.mxu1 %v20091_v19 }
0x14c8   :  { %7967 = vmatprep.subr.bf16.mxu0 %v20100_v50  ;;  %8008 = vmatprep.subr.bf16.mxu1 %v20105_v15 }
0x14cb   :  { %7968 = vmatpush1.bf16.msra.mxu0 %v20110_v10  ;;  %8009 = vmatpush1.bf16.msra.mxu1 %v20115_v35 }
0x14cc   :  { %7969 = vmatprep.subr.bf16.mxu0 %v20122_v18  ;;  %8010 = vmatprep.subr.bf16.mxu1 %v20139_v61 }
0x14cf   :  { %7970 = vmatpush1.bf16.msra.mxu0 %v20129_v47  ;;  %8011 = vmatpush1.bf16.msra.mxu1 %v20134_v33 }
0x14d0   :  { %7971 = vmatprep.subr.bf16.mxu0 %v20145_v62  ;;  %8012 = vmatprep.subr.bf16.mxu1 %v20150_v63 }
0x14d3   :  { %7972 = vmatpush1.bf16.msra.mxu0 %v20158_v0  ;;  %8013 = vmatpush1.bf16.msra.mxu1 %v20163_v2 }
0x14d4   :  { %7973 = vmatprep.subr.bf16.mxu0 %v20170_v3  ;;  %8014 = vmatprep.subr.bf16.mxu1 %v20175_v5 }
0x14d7   :  { %7974 = vmatpush1.bf16.msra.mxu0 %v20182_v6  ;;  %8015 = vmatpush1.bf16.msra.mxu1 %v20187_v32 }
0x14d8   :  { %8268 = vmatprep.subr.bf16.mxu0 %v20004_v29  ;;  %8309 = vmatprep.subr.bf16.mxu1 %v20009_v46 }
0x158d   :  { %v7684_v21 = vpop.f32.mrb[112].mxu0  ;;  %v7725_v17 = vpop.f32.mrb[144].mxu1 }
0x158e   :  { %v7732_v58 = vadd.f32 %v7684_v21, %v6095_v57  ;;  %v7734_v52 = vadd.f32 %v7725_v17, %v6168_v51  ;;  %v7686_v22 = vpop.f32.mrb[113].mxu0  ;;  %v7727_v39 = vpop.f32.mrb[145].mxu1 }
0x158f   :  { %v7733_v40 = vadd.f32 %v7686_v22, %v6097_v14  ;;  %v7735_v45 = vadd.f32 %v7727_v39, %v6170_v1  ;;  %v7688_v38 = vpop.f32.mrb[114].mxu0  ;;  %v7729_v42 = vpop.f32.mrb[146].mxu1 }
0x1590   :  { %v15357_v43 = vmul.f32 -1.442695, %v7732_v58  ;;  %v7689_v30 = vpop.f32.mrb[115].mxu0  ;;  %v7730_v53 = vpop.f32.mrb[147].mxu1  ;;  %v22309_v42 = vld [vmem:[#allocation12_spill] sm:$0xff] }
0x1591   :  { %v15358_v28 = vmul.f32 -1.442695, %v7733_v40  ;;  %v15359_v13 = vmul.f32 -1.442695, %v7735_v45  ;;  %v22308_v45 = vld [vmem:[#allocation22_spill] sm:$0xff]  ;;  %v22310_v30 = vld [vmem:[#allocation23_spill] sm:$0xff] }
0x1592   :  { %17211 = vpow2.f32 %v15357_v43  ;;  %v6172_v38 = vadd.f32 %v22308_v45, %v19874_v7  ;;  %v6101_v43 = vadd.f32 %v22309_v42, %v19881_v56  ;;  %v6174_v53 = vadd.f32 %v22310_v30, %v19884_v34 }
0x1593   :  { %17213 = vpow2.f32 %v15358_v28 }
0x1594   :  { %17215 = vpow2.f32 %v15359_v13 }
0x1595   :  { %17217 = vtanh.f32 %v7734_v52 }
0x159c   :  { %v17212_v49 = vpop.eup %17211 }
0x159d   :  { %v17214_v48 = vpop.eup %17213  ;;  %v7739_v27 = vadd.f32 1.0, %v17212_v49 }
0x159e   :  { %v7745_v57 = vadd.f32 1.0, %v17214_v48  ;;  %v17216_v55 = vpop.eup %17215 }
0x159f   :  { %17219 = vrcp.f32 %v7739_v27  ;;  %v17218_v51 = vpop.eup %17217  ;;  %v7752_v1 = vadd.f32 1.0, %v17216_v55 }
0x15a0   :  { %17221 = vrcp.f32 %v7745_v57 }
0x15a1   :  { %17223 = vrcp.f32 %v7752_v1 }
0x15a9   :  { %v17220_v25 = vpop.eup %17219 }
0x15aa   :  { %v17222_v14 = vpop.eup %17221  ;;  %v7756_v9 = vmul.f32 %v17220_v25, %v17218_v51 }
0x15ab   :  { %v7755_v21 = vmul.f32 %v17222_v14, %v20204_v12  ;;  %v17224_v58 = vpop.eup %17223  ;;  %v22307_v12 = vld [vmem:[#allocation11_spill] sm:$0xff] }
0x15ad   :  { %v20253_v17 = vadd.f32 %v7756_v9, %v7755_v21 }
0x15af   :  { %17225 = vtanh.f32 %v20253_v17 }
0x15b9   :  { %v17226_v22 = vpop.eup %17225 }
0x15ba   :  { %v7759_v39 = vmul.f32 %v17226_v22, %v17224_v58 }
0x15bc   :  { %v20257_v52 = vadd.f32 %v7759_v39, %v20208_v26  ;;  %v7766_v40 = vpack.c.bf16 %v7759_v39, %v7759_v39  ;;  %v6099_v26 = vadd.f32 %v22307_v12, %v19871_v31 }
0x15be   :  { %7992 = vmatmul.mubr.bf16.vlgmr.msra.gmra.mrb[116].mxu0 %v7766_v40  ;;  %8033 = vmatmul.mubr.bf16.vlgmr.msra.gmra.mrb[148].mxu1 %v7766_v40 }
0x15bf   :  { %8269 = vmatpush1.bf16.msra.mxu0 %v20014_v11  ;;  %8310 = vmatpush1.bf16.msra.mxu1 %v20019_v59 }
0x15c0   :  { %8270 = vmatprep.subr.bf16.mxu0 %v20028_v37  ;;  %8311 = vmatprep.subr.bf16.mxu1 %v20033_v41 }
0x15c1   :  { %8300 = vmatprep.mubr.bf16.mxu0 %v22201_v24  ;;  %8341 = vmatprep.mubr.bf16.mxu1 %v22201_v24 }
0x15c3   :  { %8271 = vmatpush1.bf16.msra.mxu0 %v20038_v60  ;;  %8312 = vmatpush1.bf16.msra.mxu1 %v20043_v8 }
0x15c4   :  { %8272 = vmatprep.subr.bf16.mxu0 %v20052_v54  ;;  %8313 = vmatprep.subr.bf16.mxu1 %v20057_v4 }
0x15c7   :  { %8273 = vmatpush1.bf16.msra.mxu0 %v20062_v36  ;;  %8314 = vmatpush1.bf16.msra.mxu1 %v20067_v16 }
0x15c8   :  { %8274 = vmatprep.subr.bf16.mxu0 %v20076_v23  ;;  %8315 = vmatprep.subr.bf16.mxu1 %v20081_v20 }
0x15cb   :  { %8275 = vmatpush1.bf16.msra.mxu0 %v20086_v44  ;;  %8316 = vmatpush1.bf16.msra.mxu1 %v20091_v19 }
0x15cc   :  { %8276 = vmatprep.subr.bf16.mxu0 %v20100_v50  ;;  %8317 = vmatprep.subr.bf16.mxu1 %v20105_v15 }
0x15cf   :  { %8277 = vmatpush1.bf16.msra.mxu0 %v20110_v10  ;;  %8318 = vmatpush1.bf16.msra.mxu1 %v20115_v35 }
0x15d0   :  { %8278 = vmatprep.subr.bf16.mxu0 %v20122_v18  ;;  %8319 = vmatprep.subr.bf16.mxu1 %v20139_v61 }
0x15d3   :  { %8279 = vmatpush1.bf16.msra.mxu0 %v20129_v47  ;;  %8320 = vmatpush1.bf16.msra.mxu1 %v20134_v33 }
0x15d4   :  { %8280 = vmatprep.subr.bf16.mxu0 %v20145_v62  ;;  %8321 = vmatprep.subr.bf16.mxu1 %v20150_v63 }
0x15d7   :  { %8281 = vmatpush1.bf16.msra.mxu0 %v20158_v0  ;;  %8322 = vmatpush1.bf16.msra.mxu1 %v20163_v2 }
0x15d8   :  { %8282 = vmatprep.subr.bf16.mxu0 %v20170_v3  ;;  %8323 = vmatprep.subr.bf16.mxu1 %v20175_v5 }
0x15db   :  { %8283 = vmatpush1.bf16.msra.mxu0 %v20182_v6  ;;  %8324 = vmatpush1.bf16.msra.mxu1 %v20187_v32 }
0x15dc   :  { %8577 = vmatprep.subr.bf16.mxu0 %v20004_v29  ;;  %8618 = vmatprep.subr.bf16.mxu1 %v20009_v46 }
0x1691   :  { %v7993_v28 = vpop.f32.mrb[116].mxu0  ;;  %v8034_v13 = vpop.f32.mrb[148].mxu1 }
0x1692   :  { %v8041_v49 = vadd.f32 %v7993_v28, %v6099_v26  ;;  %v8043_v48 = vadd.f32 %v8034_v13, %v6172_v38  ;;  %v7995_v27 = vpop.f32.mrb[117].mxu0  ;;  %v8036_v29 = vpop.f32.mrb[149].mxu1 }
0x1693   :  { %v8042_v57 = vadd.f32 %v7995_v27, %v6101_v43  ;;  %v8044_v46 = vadd.f32 %v8036_v29, %v6174_v53  ;;  %v7997_v55 = vpop.f32.mrb[118].mxu0  ;;  %v8038_v51 = vpop.f32.mrb[150].mxu1 }
0x1694   :  { %v15392_v25 = vmul.f32 -1.442695, %v8041_v49  ;;  %v7998_v14 = vpop.f32.mrb[119].mxu0  ;;  %v8039_v9 = vpop.f32.mrb[151].mxu1 }
0x1695   :  { %v15393_v1 = vmul.f32 -1.442695, %v8042_v57  ;;  %v15394_v21 = vmul.f32 -1.442695, %v8044_v46 }
0x1696   :  { %17227 = vpow2.f32 %v15392_v25 }
0x1697   :  { %17229 = vpow2.f32 %v15393_v1  ;;  %v16597_v1 = vld [vmem:[%s22152_s10 + $0x4] ss:$16 sps:$4 sm:$0xff]  }
0x1698   :  { %17231 = vpow2.f32 %v15394_v21  ;;  %v16595_v21 = vld [vmem:[%s22152_s10] ss:$16 sps:$4 sm:$0xff]  }
0x1699   :  { %17233 = vtanh.f32 %v8043_v48 }
0x16a0   :  { %v17228_v58 = vpop.eup %17227 }
0x16a1   :  { %v17230_v22 = vpop.eup %17229  ;;  %v8048_v39 = vadd.f32 1.0, %v17228_v58  ;;  %v16598_v58 = vld [vmem:[%s22152_s10 + $0x8] ss:$16 sps:$4 sm:$0xff]  }
0x16a2   :  { %v8054_v40 = vadd.f32 1.0, %v17230_v22  ;;  %v17232_v12 = vpop.eup %17231  ;;  %v16600_v22 = vld [vmem:[%s22152_s10 + $0xc] ss:$16 sps:$4 sm:$0xff]  }
0x16a3   :  { %17235 = vrcp.f32 %v8048_v39  ;;  %v17234_v26 = vpop.eup %17233  ;;  %v8061_v43 = vadd.f32 1.0, %v17232_v12  ;;  %v16603_v39 = vld [vmem:[%s22152_s10 + $0x24] ss:$16 sps:$4 sm:$0xff]   ;;  %v16601_v12 = vld [vmem:[%s22152_s10 + $0x20] ss:$16 sps:$4 sm:$0xff]  }
0x16a4   :  { %17237 = vrcp.f32 %v8054_v40  ;;  %v16606_v40 = vld [vmem:[%s22152_s10 + $0x2c] ss:$16 sps:$4 sm:$0xff]  }
0x16a5   :  { %17239 = vrcp.f32 %v8061_v43  ;;  %v16610_v43 = vld [vmem:[%s22152_s10 + $0x48] ss:$16 sps:$4 sm:$0xff]  }
0x16ad   :  { %v17236_v45 = vpop.eup %17235 }
0x16ae   :  { %v17238_v38 = vpop.eup %17237  ;;  %v8065_v42 = vmul.f32 %v17236_v45, %v17234_v26  ;;  %v16604_v26 = vld [vmem:[%s22152_s10 + $0x28] ss:$16 sps:$4 sm:$0xff]   ;;  %v16609_v45 = vld [vmem:[%s22152_s10 + $0x44] ss:$16 sps:$4 sm:$0xff]  }
0x16af   :  { %v8064_v30 = vmul.f32 %v17238_v38, %v20253_v17  ;;  %v17240_v28 = vpop.eup %17239  ;;  %v16612_v38 = vld [vmem:[%s22152_s10 + $0x4c] ss:$16 sps:$4 sm:$0xff]  }
0x16b1   :  { %v20302_v53 = vadd.f32 %v8065_v42, %v8064_v30  ;;  %v16607_v42 = vld [vmem:[%s22152_s10 + $0x40] ss:$16 sps:$4 sm:$0xff]   ;;  %v16615_v30 = vld [vmem:[%s22152_s10 + $0x64] ss:$16 sps:$4 sm:$0xff]  }
0x16b3   :  { %17241 = vtanh.f32 %v20302_v53 }
0x16bd   :  { %v17242_v13 = vpop.eup %17241 }
0x16be   :  { %v8068_v49 = vmul.f32 %v17242_v13, %v17240_v28  ;;  %v16613_v28 = vld [vmem:[%s22152_s10 + $0x60] ss:$16 sps:$4 sm:$0xff]   ;;  %v16616_v13 = vld [vmem:[%s22152_s10 + $0x68] ss:$16 sps:$4 sm:$0xff]  }
0x16c0   :  { %v20306_v48 = vadd.f32 %v8068_v49, %v20257_v52  ;;  %v8075_v27 = vpack.c.bf16 %v8068_v49, %v8068_v49  ;;  %v16619_v49 = vld [vmem:[%s22152_s10 + $0x80] ss:$16 sps:$4 sm:$0xff]  }
0x16c2   :  { %8301 = vmatmul.mubr.bf16.vlgmr.msra.gmra.mrb[120].mxu0 %v8075_v27  ;;  %8342 = vmatmul.mubr.bf16.vlgmr.msra.gmra.mrb[152].mxu1 %v8075_v27  ;;  %v16624_v27 = vld [vmem:[%s22152_s10 + $0x8c] ss:$16 sps:$4 sm:$0xff]  }
0x16c3   :  { %8578 = vmatpush1.bf16.msra.mxu0 %v20014_v11  ;;  %8619 = vmatpush1.bf16.msra.mxu1 %v20019_v59  ;;  %v22311_v11 = vld [vmem:[#allocation13_spill] sm:$0xff] }
0x16c4   :  { %8579 = vmatprep.subr.bf16.mxu0 %v20028_v37  ;;  %8620 = vmatprep.subr.bf16.mxu1 %v20033_v41  ;;  %v6105_v59 = vadd.f32 %v22311_v11, %v19871_v31  ;;  %v22312_v37 = vld [vmem:[#allocation24_spill] sm:$0xff] }
0x16c5   :  { %8609 = vmatprep.mubr.bf16.mxu0 %v22201_v24  ;;  %8650 = vmatprep.mubr.bf16.mxu1 %v22201_v24  ;;  %v6178_v41 = vadd.f32 %v22312_v37, %v19874_v7  ;;  %v16627_v11 = vld [vmem:[%s22152_s10 + $0xa4] ss:$16 sps:$4 sm:$0xff]   ;;  %v16630_v37 = vld [vmem:[%s22152_s10 + $0xac] ss:$16 sps:$4 sm:$0xff]  }
0x16c7   :  { %8580 = vmatpush1.bf16.msra.mxu0 %v20038_v60  ;;  %8621 = vmatpush1.bf16.msra.mxu1 %v20043_v8  ;;  %v22313_v60 = vld [vmem:[#allocation25_spill] sm:$0xff] }
0x16c8   :  { %8581 = vmatprep.subr.bf16.mxu0 %v20052_v54  ;;  %8622 = vmatprep.subr.bf16.mxu1 %v20057_v4  ;;  %v6107_v8 = vadd.f32 %v22313_v60, %v19881_v56  ;;  %v22314_v54 = vld [vmem:[#allocation26_spill] sm:$0xff] }
0x16c9   :  { %v6180_v4 = vadd.f32 %v22314_v54, %v19884_v34  ;;  %v16633_v60 = vld [vmem:[%s22152_s10 + $0xc4] ss:$16 sps:$4 sm:$0xff]   ;;  %v16631_v54 = vld [vmem:[%s22152_s10 + $0xc0] ss:$16 sps:$4 sm:$0xff]  }
0x16cb   :  { %8582 = vmatpush1.bf16.msra.mxu0 %v20062_v36  ;;  %8623 = vmatpush1.bf16.msra.mxu1 %v20067_v16 }
0x16cc   :  { %8583 = vmatprep.subr.bf16.mxu0 %v20076_v23  ;;  %8624 = vmatprep.subr.bf16.mxu1 %v20081_v20 }
0x16cf   :  { %8584 = vmatpush1.bf16.msra.mxu0 %v20086_v44  ;;  %8625 = vmatpush1.bf16.msra.mxu1 %v20091_v19 }
0x16d0   :  { %8585 = vmatprep.subr.bf16.mxu0 %v20100_v50  ;;  %8626 = vmatprep.subr.bf16.mxu1 %v20105_v15 }
0x16d3   :  { %8586 = vmatpush1.bf16.msra.mxu0 %v20110_v10  ;;  %8627 = vmatpush1.bf16.msra.mxu1 %v20115_v35 }
0x16d4   :  { %8587 = vmatprep.subr.bf16.mxu0 %v20122_v18  ;;  %8628 = vmatprep.subr.bf16.mxu1 %v20139_v61 }
0x16d7   :  { %8588 = vmatpush1.bf16.msra.mxu0 %v20129_v47  ;;  %8629 = vmatpush1.bf16.msra.mxu1 %v20134_v33 }
0x16d8   :  { %8589 = vmatprep.subr.bf16.mxu0 %v20145_v62  ;;  %8630 = vmatprep.subr.bf16.mxu1 %v20150_v63 }
0x16db   :  { %8590 = vmatpush1.bf16.msra.mxu0 %v20158_v0  ;;  %8631 = vmatpush1.bf16.msra.mxu1 %v20163_v2 }
0x16dc   :  { %8591 = vmatprep.subr.bf16.mxu0 %v20170_v3  ;;  %8632 = vmatprep.subr.bf16.mxu1 %v20175_v5 }
0x16df   :  { %8592 = vmatpush1.bf16.msra.mxu0 %v20182_v6  ;;  %8633 = vmatpush1.bf16.msra.mxu1 %v20187_v32 }
0x16e0   :  { %8905 = vmatprep.subr.bf16.mxu0 %v16597_v1  ;;  %8946 = vmatprep.subr.bf16.mxu1 %v16600_v22 }
0x1795   :  { %v8302_v36 = vpop.f32.mrb[120].mxu0  ;;  %v8343_v16 = vpop.f32.mrb[152].mxu1 }
0x1796   :  { %v8350_v23 = vadd.f32 %v8302_v36, %v6105_v59  ;;  %v8352_v20 = vadd.f32 %v8343_v16, %v6178_v41  ;;  %v8304_v44 = vpop.f32.mrb[121].mxu0  ;;  %v8345_v19 = vpop.f32.mrb[153].mxu1  ;;  %v16622_v59 = vld [vmem:[%s22152_s10 + $0x88] ss:$16 sps:$4 sm:$0xff]   ;;  %v16625_v41 = vld [vmem:[%s22152_s10 + $0xa0] ss:$16 sps:$4 sm:$0xff]  }
0x1797   :  { %v8351_v50 = vadd.f32 %v8304_v44, %v6107_v8  ;;  %v8353_v15 = vadd.f32 %v8345_v19, %v6180_v4  ;;  %v8306_v10 = vpop.f32.mrb[122].mxu0  ;;  %v8347_v35 = vpop.f32.mrb[154].mxu1  ;;  %v16628_v8 = vld [vmem:[%s22152_s10 + $0xa8] ss:$16 sps:$4 sm:$0xff]   ;;  %v16636_v4 = vld [vmem:[%s22152_s10 + $0xcc] ss:$16 sps:$4 sm:$0xff]  }
0x1798   :  { %v15427_v18 = vmul.f32 -1.442695, %v8350_v23  ;;  %v8307_v47 = vpop.f32.mrb[123].mxu0  ;;  %v8348_v33 = vpop.f32.mrb[155].mxu1  ;;  %v16634_v36 = vld [vmem:[%s22152_s10 + $0xc8] ss:$16 sps:$4 sm:$0xff]  }
0x1799   :  { %v15428_v61 = vmul.f32 -1.442695, %v8351_v50  ;;  %v15429_v62 = vmul.f32 -1.442695, %v8353_v15  ;;  %v16639_v16 = vld [vmem:[%s22152_s10 + $0xe4] ss:$16 sps:$4 sm:$0xff]  }
0x179a   :  { %17243 = vpow2.f32 %v15427_v18  ;;  %v16642_v23 = vld [vmem:[%s22152_s10 + $0xec] ss:$16 sps:$4 sm:$0xff]   ;;  %v20453_v44 = vld [vmem:[%s22153_s11 + $0x4] ss:$16 sps:$4 sm:$0xff]   ;;  %v16640_v19 = vld [vmem:[%s22152_s10 + $0xe8] ss:$16 sps:$4 sm:$0xff]  }
0x179b   :  { %17245 = vpow2.f32 %v15428_v61  ;;  %v20461_v50 = vld [vmem:[%s22153_s11 + $0xc] ss:$16 sps:$4 sm:$0xff]   ;;  %v22316_v35 = vld [vmem:[#allocation28_spill] sm:$0xff]  ;;  %v22318_v61 = vld [vmem:[#allocation30_spill] sm:$0xff] }
0x179c   :  { %17247 = vpow2.f32 %v15429_v62  ;;  %v22315_v15 = vld [vmem:[#allocation27_spill] sm:$0xff]  ;;  %v6182_v18 = vadd.f32 %v22316_v35, %v19874_v7  ;;  %v22317_v47 = vld [vmem:[#allocation29_spill] sm:$0xff]  ;;  %v6184_v62 = vadd.f32 %v22318_v61, %v19884_v34  ;;  %v20610_v35 = vld [vmem:[%s22153_s11 + $0xc4] ss:$16 sps:$4 sm:$0xff]  }
0x179d   :  { %17249 = vtanh.f32 %v8352_v20  ;;  %v16637_v20 = vld [vmem:[%s22152_s10 + $0xe0] ss:$16 sps:$4 sm:$0xff]   ;;  %v6109_v10 = vadd.f32 %v22315_v15, %v19871_v31  ;;  %v6111_v33 = vadd.f32 %v22317_v47, %v19881_v56  ;;  %v20634_v61 = vld [vmem:[%s22153_s11 + $0xe4] ss:$16 sps:$4 sm:$0xff]  }
0x179e   :  { %v20598_v15 = vld [vmem:[%s22153_s11 + $0xa0] ss:$16 sps:$4 sm:$0xff]  }
0x179f   :  { %v20622_v47 = vld [vmem:[%s22153_s11 + $0xc0] ss:$16 sps:$4 sm:$0xff]  }
0x17a4   :  { %v17244_v63 = vpop.eup %17243 }
0x17a5   :  { %v17246_v0 = vpop.eup %17245  ;;  %v8357_v2 = vadd.f32 1.0, %v17244_v63 }
0x17a6   :  { %v8363_v3 = vadd.f32 1.0, %v17246_v0  ;;  %v17248_v5 = vpop.eup %17247 }
0x17a7   :  { %17251 = vrcp.f32 %v8357_v2  ;;  %v17250_v6 = vpop.eup %17249  ;;  %v8370_v29 = vadd.f32 1.0, %v17248_v5 }
0x17a8   :  { %17253 = vrcp.f32 %v8363_v3 }
0x17a9   :  { %17255 = vrcp.f32 %v8370_v29 }
0x17b1   :  { %v17252_v32 = vpop.eup %17251 }
0x17b2   :  { %v17254_v17 = vpop.eup %17253  ;;  %v8374_v52 = vmul.f32 %v17252_v32, %v17250_v6 }
0x17b3   :  { %v8373_v57 = vmul.f32 %v17254_v17, %v20302_v53  ;;  %v17256_v55 = vpop.eup %17255  ;;  %v16618_v53 = vld [vmem:[%s22152_s10 + $0x6c] ss:$16 sps:$4 sm:$0xff]  }
0x17b5   :  { %v20349_v46 = vadd.f32 %v8374_v52, %v8373_v57 }
0x17b7   :  { %17257 = vtanh.f32 %v20349_v46 }
0x17c1   :  { %v17258_v51 = vpop.eup %17257 }
0x17c2   :  { %v8377_v25 = vmul.f32 %v17258_v51, %v17256_v55 }
0x17c4   :  { %v8384_v14 = vpack.c.bf16 %v8377_v25, %v8377_v25  ;;  %v20353_v9 = vadd.f32 %v8377_v25, %v20306_v48  ;;  %v16621_v48 = vld [vmem:[%s22152_s10 + $0x84] ss:$16 sps:$4 sm:$0xff]  }
0x17c6   :  { %8610 = vmatmul.mubr.bf16.vlgmr.msra.gmra.mrb[124].mxu0 %v8384_v14  ;;  %8651 = vmatmul.mubr.bf16.vlgmr.msra.gmra.mrb[156].mxu1 %v8384_v14 }
0x17c7   :  { %8937 = vmatprep.mubr.bf16.mxu0 %v22201_v24  ;;  %8978 = vmatprep.mubr.bf16.mxu1 %v22201_v24 }
0x17c8   :  { %8906 = vmatpush1.bf16.msra.mxu0 %v16595_v21  ;;  %8947 = vmatpush1.bf16.msra.mxu1 %v16598_v58 }
0x17c9   :  { %8907 = vmatprep.subr.bf16.mxu0 %v16603_v39  ;;  %8948 = vmatprep.subr.bf16.mxu1 %v16606_v40 }
0x17cc   :  { %8908 = vmatpush1.bf16.msra.mxu0 %v16601_v12  ;;  %8949 = vmatpush1.bf16.msra.mxu1 %v16604_v26 }
0x17cd   :  { %8909 = vmatprep.subr.bf16.mxu0 %v16609_v45  ;;  %8950 = vmatprep.subr.bf16.mxu1 %v16612_v38 }
0x17d0   :  { %8910 = vmatpush1.bf16.msra.mxu0 %v16607_v42  ;;  %8951 = vmatpush1.bf16.msra.mxu1 %v16610_v43 }
0x17d1   :  { %8911 = vmatprep.subr.bf16.mxu0 %v16615_v30  ;;  %8952 = vmatprep.subr.bf16.mxu1 %v16618_v53  ;;  %v20478_v53 = vld [vmem:[%s22153_s11] ss:$16 sps:$4 sm:$0xff]  }
0x17d4   :  { %8912 = vmatpush1.bf16.msra.mxu0 %v16613_v28  ;;  %8953 = vmatpush1.bf16.msra.mxu1 %v16616_v13  ;;  %v20483_v28 = vld [vmem:[%s22153_s11 + $0x8] ss:$16 sps:$4 sm:$0xff]   ;;  %v20488_v13 = vld [vmem:[%s22153_s11 + $0x24] ss:$16 sps:$4 sm:$0xff]  }
0x17d5   :  { %8913 = vmatprep.subr.bf16.mxu0 %v16621_v48  ;;  %8954 = vmatprep.subr.bf16.mxu1 %v16624_v27  ;;  %v20505_v48 = vld [vmem:[%s22153_s11 + $0x28] ss:$16 sps:$4 sm:$0xff]   ;;  %v20512_v27 = vld [vmem:[%s22153_s11 + $0x44] ss:$16 sps:$4 sm:$0xff]  }
0x17d8   :  { %8914 = vmatpush1.bf16.msra.mxu0 %v16619_v49  ;;  %8955 = vmatpush1.bf16.msra.mxu1 %v16622_v59  ;;  %v20500_v49 = vld [vmem:[%s22153_s11 + $0x20] ss:$16 sps:$4 sm:$0xff]  }
0x17d9   :  { %8915 = vmatprep.subr.bf16.mxu0 %v16627_v11  ;;  %8956 = vmatprep.subr.bf16.mxu1 %v16630_v37  ;;  %v20517_v11 = vld [vmem:[%s22153_s11 + $0x4c] ss:$16 sps:$4 sm:$0xff]   ;;  %v20526_v59 = vld [vmem:[%s22153_s11 + $0x40] ss:$16 sps:$4 sm:$0xff]   ;;  %v20531_v37 = vld [vmem:[%s22153_s11 + $0x48] ss:$16 sps:$4 sm:$0xff]  }
0x17dc   :  { %8916 = vmatpush1.bf16.msra.mxu0 %v16625_v41  ;;  %8957 = vmatpush1.bf16.msra.mxu1 %v16628_v8  ;;  %v20538_v41 = vld [vmem:[%s22153_s11 + $0x64] ss:$16 sps:$4 sm:$0xff]   ;;  %v20550_v8 = vld [vmem:[%s22153_s11 + $0x60] ss:$16 sps:$4 sm:$0xff]  }
0x17dd   :  { %8917 = vmatprep.subr.bf16.mxu0 %v16633_v60  ;;  %8958 = vmatprep.subr.bf16.mxu1 %v16636_v4  ;;  %v20543_v60 = vld [vmem:[%s22153_s11 + $0x6c] ss:$16 sps:$4 sm:$0xff]   ;;  %v20562_v4 = vld [vmem:[%s22153_s11 + $0x84] ss:$16 sps:$4 sm:$0xff]  }
0x17e0   :  { %8918 = vmatpush1.bf16.msra.mxu0 %v16631_v54  ;;  %8959 = vmatpush1.bf16.msra.mxu1 %v16634_v36  ;;  %v20555_v54 = vld [vmem:[%s22153_s11 + $0x68] ss:$16 sps:$4 sm:$0xff]   ;;  %v20567_v36 = vld [vmem:[%s22153_s11 + $0x8c] ss:$16 sps:$4 sm:$0xff]  }
0x17e1   :  { %8919 = vmatprep.subr.bf16.mxu0 %v16639_v16  ;;  %8960 = vmatprep.subr.bf16.mxu1 %v16642_v23  ;;  %v20574_v16 = vld [vmem:[%s22153_s11 + $0x80] ss:$16 sps:$4 sm:$0xff]   ;;  %v20579_v23 = vld [vmem:[%s22153_s11 + $0x88] ss:$16 sps:$4 sm:$0xff]  }
0x17e4   :  { %8920 = vmatpush1.bf16.msra.mxu0 %v16637_v20  ;;  %8961 = vmatpush1.bf16.msra.mxu1 %v16640_v19  ;;  %v20586_v20 = vld [vmem:[%s22153_s11 + $0xa4] ss:$16 sps:$4 sm:$0xff]   ;;  %v20591_v19 = vld [vmem:[%s22153_s11 + $0xac] ss:$16 sps:$4 sm:$0xff]  }
0x17e5   :  { %9179 = vmatprep.subr.bf16.mxu0 %v20453_v44  ;;  %9220 = vmatprep.subr.bf16.mxu1 %v20461_v50 }
0x1899   :  { %v8611_v63 = vpop.f32.mrb[124].mxu0  ;;  %v8652_v0 = vpop.f32.mrb[156].mxu1 }
0x189a   :  { %v8659_v2 = vadd.f32 %v8611_v63, %v6109_v10  ;;  %v8661_v3 = vadd.f32 %v8652_v0, %v6182_v18  ;;  %v8613_v5 = vpop.f32.mrb[125].mxu0  ;;  %v8654_v6 = vpop.f32.mrb[157].mxu1  ;;  %v20603_v10 = vld [vmem:[%s22153_s11 + $0xa8] ss:$16 sps:$4 sm:$0xff]   ;;  %v20615_v18 = vld [vmem:[%s22153_s11 + $0xcc] ss:$16 sps:$4 sm:$0xff]  }
0x189b   :  { %v8660_v32 = vadd.f32 %v8613_v5, %v6111_v33  ;;  %v8662_v17 = vadd.f32 %v8654_v6, %v6184_v62  ;;  %v8615_v52 = vpop.f32.mrb[126].mxu0  ;;  %v8656_v29 = vpop.f32.mrb[158].mxu1  ;;  %v20627_v33 = vld [vmem:[%s22153_s11 + $0xc8] ss:$16 sps:$4 sm:$0xff]   ;;  %v20639_v62 = vld [vmem:[%s22153_s11 + $0xec] ss:$16 sps:$4 sm:$0xff]  }
0x189c   :  { %v15462_v31 = vmul.f32 -1.442695, %v8659_v2  ;;  %v8616_v57 = vpop.f32.mrb[127].mxu0  ;;  %v8657_v55 = vpop.f32.mrb[159].mxu1  ;;  %v20646_v63 = vld [vmem:[%s22153_s11 + $0xe0] ss:$16 sps:$4 sm:$0xff]  }
0x189d   :  { %v15463_v7 = vmul.f32 -1.442695, %v8660_v32  ;;  %v15464_v56 = vmul.f32 -1.442695, %v8662_v17  ;;  %v20651_v0 = vld [vmem:[%s22153_s11 + $0xe8] ss:$16 sps:$4 sm:$0xff]  }
0x189e   :  { %17259 = vpow2.f32 %v15462_v31  ;;  %v8723_v31 = vld [vmem:[%s22154_s12] sm:$0xf] }
0x189f   :  { %17261 = vpow2.f32 %v15463_v7  ;;  %v22319_v57 = vld [vmem:[#allocation4_spill] sm:$0xff]  ;;  %v22320_v7 = vld [vmem:[#allocation5_spill] sm:$0xff] }
0x18a0   :  { %17263 = vpow2.f32 %v15464_v56  ;;  %v8728_v55 = vrot.slane %v8723_v31, %v22319_v57  ;;  %v8732_v56 = vrot.slane %v8723_v31, %v22320_v7 }
0x18a1   :  { %17265 = vtanh.f32 %v8661_v3 }
0x18a8   :  { %v17260_v51 = vpop.eup %17259 }
0x18a9   :  { %v17262_v25 = vpop.eup %17261  ;;  %v8666_v34 = vadd.f32 1.0, %v17260_v51 }
0x18aa   :  { %v8672_v14 = vadd.f32 1.0, %v17262_v25  ;;  %v17264_v1 = vpop.eup %17263 }
0x18ab   :  { %17267 = vrcp.f32 %v8666_v34  ;;  %v17266_v21 = vpop.eup %17265  ;;  %v8679_v40 = vadd.f32 1.0, %v17264_v1 }
0x18ac   :  { %17269 = vrcp.f32 %v8672_v14 }
0x18ad   :  { %17271 = vrcp.f32 %v8679_v40 }
0x18b5   :  { %v17268_v58 = vpop.eup %17267 }
0x18b6   :  { %v17270_v22 = vpop.eup %17269  ;;  %v8683_v39 = vmul.f32 %v17268_v58, %v17266_v21 }
0x18b7   :  { %v8682_v12 = vmul.f32 %v17270_v22, %v20349_v46  ;;  %v17272_v45 = vpop.eup %17271  ;;  %v22321_v22 = vld [vmem:[#allocation15_spill] sm:$0xff] }
0x18b9   :  { %v8684_v26 = vadd.f32 %v8683_v39, %v8682_v12  ;;  %v8740_v39 = vrot.slane %v8723_v31, %v22321_v22 }
0x18bb   :  { %17273 = vtanh.f32 %v8684_v26 }
0x18c5   :  { %v17274_v38 = vpop.eup %17273 }
0x18c6   :  { %v8686_v42 = vmul.f32 %v17274_v38, %v17272_v45 }
0x18c8   :  { %v8688_v43 = vadd.f32 %v8686_v42, %v20353_v9  ;;  %v20493_v9 = vld [vmem:[%s22153_s11 + $0x2c] ss:$16 sps:$4 sm:$0xff]  }
0x18ca   :  { %v8689_v30 = vmul.f32 0.125, %v8688_v43 }
0x18cc   :  { %v8690_v46 = vpack.c.bf16 %v8689_v30, %v8689_v30 }
0x18ce   :  { %8938 = vmatmul.mubr.bf16.vlgmr.msra.gmra.mrb[128].mxu0 %v8690_v46  ;;  %8979 = vmatmul.mubr.bf16.vlgmr.msra.gmra.mrb[160].mxu1 %v8690_v46  ;;  %v22322_v46 = vld [vmem:[#allocation14_spill] sm:$0xff] }
0x18cf   :  { %9180 = vmatpush1.bf16.msra.mxu0 %v20478_v53  ;;  %9221 = vmatpush1.bf16.msra.mxu1 %v20483_v28 }
0x18d0   :  { %9181 = vmatprep.subr.bf16.mxu0 %v20488_v13  ;;  %9222 = vmatprep.subr.bf16.mxu1 %v20493_v9 }
0x18d1   :  { %9211 = vmatprep.mubr.bf16.mxu0 %v22201_v24  ;;  %9252 = vmatprep.mubr.bf16.mxu1 %v22201_v24 }
0x18d3   :  { %9182 = vmatpush1.bf16.msra.mxu0 %v20500_v49  ;;  %9223 = vmatpush1.bf16.msra.mxu1 %v20505_v48 }
0x18d4   :  { %9183 = vmatprep.subr.bf16.mxu0 %v20512_v27  ;;  %9224 = vmatprep.subr.bf16.mxu1 %v20517_v11 }
0x18d7   :  { %9184 = vmatpush1.bf16.msra.mxu0 %v20526_v59  ;;  %9225 = vmatpush1.bf16.msra.mxu1 %v20531_v37 }
0x18d8   :  { %9185 = vmatprep.subr.bf16.mxu0 %v20538_v41  ;;  %9226 = vmatprep.subr.bf16.mxu1 %v20543_v60 }
0x18db   :  { %9186 = vmatpush1.bf16.msra.mxu0 %v20550_v8  ;;  %9227 = vmatpush1.bf16.msra.mxu1 %v20555_v54 }
0x18dc   :  { %9187 = vmatprep.subr.bf16.mxu0 %v20562_v4  ;;  %9228 = vmatprep.subr.bf16.mxu1 %v20567_v36 }
0x18df   :  { %9188 = vmatpush1.bf16.msra.mxu0 %v20574_v16  ;;  %9229 = vmatpush1.bf16.msra.mxu1 %v20579_v23 }
0x18e0   :  { %9189 = vmatprep.subr.bf16.mxu0 %v20586_v20  ;;  %9230 = vmatprep.subr.bf16.mxu1 %v20591_v19 }
0x18e3   :  { %9190 = vmatpush1.bf16.msra.mxu0 %v20598_v15  ;;  %9231 = vmatpush1.bf16.msra.mxu1 %v20603_v10 }
0x18e4   :  { %9191 = vmatprep.subr.bf16.mxu0 %v20610_v35  ;;  %9232 = vmatprep.subr.bf16.mxu1 %v20615_v18 }
0x18e7   :  { %9192 = vmatpush1.bf16.msra.mxu0 %v20622_v47  ;;  %9233 = vmatpush1.bf16.msra.mxu1 %v20627_v33 }
0x18e8   :  { %9193 = vmatprep.subr.bf16.mxu0 %v20634_v61  ;;  %9234 = vmatprep.subr.bf16.mxu1 %v20639_v62 }
0x18eb   :  { %9194 = vmatpush1.bf16.msra.mxu0 %v20646_v63  ;;  %9235 = vmatpush1.bf16.msra.mxu1 %v20651_v0 }
0x18ec   :  { %9483 = vmatprep.subr.bf16.mxu0 %v20453_v44  ;;  %9524 = vmatprep.subr.bf16.mxu1 %v20461_v50 }
0x18ee   :  { %9212 = vmatmul.mubr.bf16.vlgmr.msra.gmra.mrb[132].mxu0 %v22201_v24  ;;  %9253 = vmatmul.mubr.bf16.vlgmr.msra.gmra.mrb[164].mxu1 %v22201_v24 }
0x18ef   :  { %9484 = vmatpush1.bf16.msra.mxu0 %v20478_v53  ;;  %9525 = vmatpush1.bf16.msra.mxu1 %v20483_v28 }
0x18f0   :  { %9485 = vmatprep.subr.bf16.mxu0 %v20488_v13  ;;  %9526 = vmatprep.subr.bf16.mxu1 %v20493_v9 }
0x18f1   :  { %9515 = vmatprep.mubr.bf16.mxu0 %v22201_v24  ;;  %9556 = vmatprep.mubr.bf16.mxu1 %v22201_v24 }
0x18f3   :  { %9486 = vmatpush1.bf16.msra.mxu0 %v20500_v49  ;;  %9527 = vmatpush1.bf16.msra.mxu1 %v20505_v48 }
0x18f4   :  { %9487 = vmatprep.subr.bf16.mxu0 %v20512_v27  ;;  %9528 = vmatprep.subr.bf16.mxu1 %v20517_v11 }
0x18f7   :  { %9488 = vmatpush1.bf16.msra.mxu0 %v20526_v59  ;;  %9529 = vmatpush1.bf16.msra.mxu1 %v20531_v37 }
0x18f8   :  { %9489 = vmatprep.subr.bf16.mxu0 %v20538_v41  ;;  %9530 = vmatprep.subr.bf16.mxu1 %v20543_v60 }
0x18fb   :  { %9490 = vmatpush1.bf16.msra.mxu0 %v20550_v8  ;;  %9531 = vmatpush1.bf16.msra.mxu1 %v20555_v54 }
0x18fc   :  { %9491 = vmatprep.subr.bf16.mxu0 %v20562_v4  ;;  %9532 = vmatprep.subr.bf16.mxu1 %v20567_v36 }
0x18ff   :  { %9492 = vmatpush1.bf16.msra.mxu0 %v20574_v16  ;;  %9533 = vmatpush1.bf16.msra.mxu1 %v20579_v23 }
0x1900   :  { %9493 = vmatprep.subr.bf16.mxu0 %v20586_v20  ;;  %9534 = vmatprep.subr.bf16.mxu1 %v20591_v19 }
0x1903   :  { %9494 = vmatpush1.bf16.msra.mxu0 %v20598_v15  ;;  %9535 = vmatpush1.bf16.msra.mxu1 %v20603_v10 }
0x1904   :  { %9495 = vmatprep.subr.bf16.mxu0 %v20610_v35  ;;  %9536 = vmatprep.subr.bf16.mxu1 %v20615_v18 }
0x1907   :  { %9496 = vmatpush1.bf16.msra.mxu0 %v20622_v47  ;;  %9537 = vmatpush1.bf16.msra.mxu1 %v20627_v33 }
0x1908   :  { %9497 = vmatprep.subr.bf16.mxu0 %v20634_v61  ;;  %9538 = vmatprep.subr.bf16.mxu1 %v20639_v62 }
0x190b   :  { %9498 = vmatpush1.bf16.msra.mxu0 %v20646_v63  ;;  %9539 = vmatpush1.bf16.msra.mxu1 %v20651_v0 }
0x190c   :  { %9787 = vmatprep.subr.bf16.mxu0 %v20453_v44  ;;  %9828 = vmatprep.subr.bf16.mxu1 %v20461_v50 }
0x19a1   :  { %v8939_v2 = vpop.f32.mrb[128].mxu0  ;;  %v8980_v3 = vpop.f32.mrb[160].mxu1 }
0x19a2   :  { %v8941_v5 = vpop.f32.mrb[129].mxu0  ;;  %v8982_v6 = vpop.f32.mrb[161].mxu1  ;;  %v20700_v51 = vadd.f32 %v8939_v2, %v8728_v55  ;;  %v8736_v2 = vrot.slane %v8723_v31, %v22322_v46 }
0x19a3   :  { %v8943_v32 = vpop.f32.mrb[130].mxu0  ;;  %v8984_v17 = vpop.f32.mrb[162].mxu1  ;;  %v20702_v25 = vadd.f32 %v8941_v5, %v8732_v56  ;;  %v20707_v30 = vadd.f32 %v8982_v6, %v8740_v39 }
0x19a4   :  { %v8944_v52 = vpop.f32.mrb[131].mxu0  ;;  %v8985_v29 = vpop.f32.mrb[163].mxu1  ;;  %v20711_v32 = vadd.f32 %v8980_v3, %v8736_v2 }
0x19c1   :  { %v9213_v34 = vpop.f32.mrb[132].mxu0  ;;  %v9254_v14 = vpop.f32.mrb[164].mxu1 }
0x19c2   :  { %v9261_v1 = vadd.f32 %v9213_v34, %v20700_v51  ;;  %v9215_v21 = vpop.f32.mrb[133].mxu0  ;;  %v9256_v58 = vpop.f32.mrb[165].mxu1  ;;  %v9263_v52 = vadd.f32 %v9254_v14, %v20711_v32 }
0x19c3   :  { %v9262_v40 = vadd.f32 %v9215_v21, %v20702_v25  ;;  %v9217_v12 = vpop.f32.mrb[134].mxu0  ;;  %v9258_v26 = vpop.f32.mrb[166].mxu1  ;;  %v9264_v5 = vadd.f32 %v9256_v58, %v20707_v30 }
0x19c4   :  { %v15529_v45 = vmul.f32 -1.442695, %v9261_v1  ;;  %v9218_v38 = vpop.f32.mrb[135].mxu0  ;;  %v9259_v42 = vpop.f32.mrb[167].mxu1 }
0x19c5   :  { %v15530_v43 = vmul.f32 -1.442695, %v9262_v40  ;;  %v15531_v17 = vmul.f32 -1.442695, %v9264_v5 }
0x19c6   :  { %17275 = vpow2.f32 %v15529_v45 }
0x19c7   :  { %17277 = vpow2.f32 %v15530_v43 }
0x19c8   :  { %17279 = vpow2.f32 %v15531_v17 }
0x19c9   :  { %17281 = vtanh.f32 %v9263_v52 }
0x19d0   :  { %v17276_v29 = vpop.eup %17275 }
0x19d1   :  { %v17278_v55 = vpop.eup %17277  ;;  %v9268_v56 = vadd.f32 1.0, %v17276_v29 }
0x19d2   :  { %v9274_v34 = vadd.f32 1.0, %v17278_v55  ;;  %v17280_v6 = vpop.eup %17279 }
0x19d3   :  { %17283 = vrcp.f32 %v9268_v56  ;;  %v17282_v1 = vpop.eup %17281  ;;  %v9281_v40 = vadd.f32 1.0, %v17280_v6 }
0x19d4   :  { %17285 = vrcp.f32 %v9274_v34 }
0x19d5   :  { %17287 = vrcp.f32 %v9281_v40 }
0x19dd   :  { %v17284_v21 = vpop.eup %17283 }
0x19de   :  { %v17286_v39 = vpop.eup %17285  ;;  %v9285_v31 = vmul.f32 %v17284_v21, %v17282_v1 }
0x19df   :  { %v9284_v58 = vmul.f32 0.0, %v17286_v39  ;;  %v17288_v14 = vpop.eup %17287 }
0x19e1   :  { %v20714_v3 = vadd.f32 %v9285_v31, %v9284_v58 }
0x19e3   :  { %17289 = vtanh.f32 %v20714_v3 }
0x19ed   :  { %v17290_v12 = vpop.eup %17289 }
0x19ee   :  { %v20717_v26 = vmul.f32 %v17290_v12, %v17288_v14 }
0x19f0   :  { %v9290_v45 = vpack.c.bf16 %v20717_v26, %v20717_v26 }
0x19f2   :  { %9516 = vmatmul.mubr.bf16.vlgmr.msra.gmra.mrb[136].mxu0 %v9290_v45  ;;  %9557 = vmatmul.mubr.bf16.vlgmr.msra.gmra.mrb[168].mxu1 %v9290_v45 }
0x19f3   :  { %9788 = vmatpush1.bf16.msra.mxu0 %v20478_v53  ;;  %9829 = vmatpush1.bf16.msra.mxu1 %v20483_v28 }
0x19f4   :  { %9789 = vmatprep.subr.bf16.mxu0 %v20488_v13  ;;  %9830 = vmatprep.subr.bf16.mxu1 %v20493_v9 }
0x19f5   :  { %9819 = vmatprep.mubr.bf16.mxu0 %v22201_v24  ;;  %9860 = vmatprep.mubr.bf16.mxu1 %v22201_v24 }
0x19f7   :  { %9790 = vmatpush1.bf16.msra.mxu0 %v20500_v49  ;;  %9831 = vmatpush1.bf16.msra.mxu1 %v20505_v48 }
0x19f8   :  { %9791 = vmatprep.subr.bf16.mxu0 %v20512_v27  ;;  %9832 = vmatprep.subr.bf16.mxu1 %v20517_v11 }
0x19fb   :  { %9792 = vmatpush1.bf16.msra.mxu0 %v20526_v59  ;;  %9833 = vmatpush1.bf16.msra.mxu1 %v20531_v37 }
0x19fc   :  { %9793 = vmatprep.subr.bf16.mxu0 %v20538_v41  ;;  %9834 = vmatprep.subr.bf16.mxu1 %v20543_v60 }
0x19ff   :  { %9794 = vmatpush1.bf16.msra.mxu0 %v20550_v8  ;;  %9835 = vmatpush1.bf16.msra.mxu1 %v20555_v54 }
0x1a00   :  { %9795 = vmatprep.subr.bf16.mxu0 %v20562_v4  ;;  %9836 = vmatprep.subr.bf16.mxu1 %v20567_v36 }
0x1a03   :  { %9796 = vmatpush1.bf16.msra.mxu0 %v20574_v16  ;;  %9837 = vmatpush1.bf16.msra.mxu1 %v20579_v23 }
0x1a04   :  { %9797 = vmatprep.subr.bf16.mxu0 %v20586_v20  ;;  %9838 = vmatprep.subr.bf16.mxu1 %v20591_v19 }
0x1a07   :  { %9798 = vmatpush1.bf16.msra.mxu0 %v20598_v15  ;;  %9839 = vmatpush1.bf16.msra.mxu1 %v20603_v10 }
0x1a08   :  { %9799 = vmatprep.subr.bf16.mxu0 %v20610_v35  ;;  %9840 = vmatprep.subr.bf16.mxu1 %v20615_v18 }
0x1a0b   :  { %9800 = vmatpush1.bf16.msra.mxu0 %v20622_v47  ;;  %9841 = vmatpush1.bf16.msra.mxu1 %v20627_v33 }
0x1a0c   :  { %9801 = vmatprep.subr.bf16.mxu0 %v20634_v61  ;;  %9842 = vmatprep.subr.bf16.mxu1 %v20639_v62 }
0x1a0f   :  { %9802 = vmatpush1.bf16.msra.mxu0 %v20646_v63  ;;  %9843 = vmatpush1.bf16.msra.mxu1 %v20651_v0 }
0x1a10   :  { %10091 = vmatprep.subr.bf16.mxu0 %v20453_v44  ;;  %10132 = vmatprep.subr.bf16.mxu1 %v20461_v50 }
0x1ac5   :  { %v9517_v38 = vpop.f32.mrb[136].mxu0  ;;  %v9558_v42 = vpop.f32.mrb[168].mxu1 }
0x1ac6   :  { %v9565_v43 = vadd.f32 %v9517_v38, %v20700_v51  ;;  %v9519_v2 = vpop.f32.mrb[137].mxu0  ;;  %v9560_v5 = vpop.f32.mrb[169].mxu1  ;;  %v9567_v50 = vadd.f32 %v9558_v42, %v20711_v32 }
0x1ac7   :  { %v9566_v17 = vadd.f32 %v9519_v2, %v20702_v25  ;;  %v9521_v52 = vpop.f32.mrb[138].mxu0  ;;  %v9562_v29 = vpop.f32.mrb[170].mxu1  ;;  %v9568_v44 = vadd.f32 %v9560_v5, %v20707_v30 }
0x1ac8   :  { %v15564_v55 = vmul.f32 -1.442695, %v9565_v43  ;;  %v9522_v56 = vpop.f32.mrb[139].mxu0  ;;  %v9563_v34 = vpop.f32.mrb[171].mxu1 }
0x1ac9   :  { %v15565_v6 = vmul.f32 -1.442695, %v9566_v17  ;;  %v15566_v1 = vmul.f32 -1.442695, %v9568_v44  ;;  %v20821_v56 = vld [vmem:[%s22153_s11 + $0xc] ss:$16 sps:$4 sm:$0xff]  }
0x1aca   :  { %17291 = vpow2.f32 %v15564_v55  ;;  %v20816_v55 = vld [vmem:[%s22153_s11 + $0x4] ss:$16 sps:$4 sm:$0xff]   ;;  %v20826_v34 = vld [vmem:[%s22153_s11] ss:$16 sps:$4 sm:$0xff]  }
0x1acb   :  { %17293 = vpow2.f32 %v15565_v6  ;;  %v20831_v6 = vld [vmem:[%s22153_s11 + $0x8] ss:$16 sps:$4 sm:$0xff]   ;;  %v20840_v44 = vld [vmem:[%s22153_s11 + $0x24] ss:$16 sps:$4 sm:$0xff]  }
0x1acc   :  { %17295 = vpow2.f32 %v15566_v1  ;;  %v20845_v1 = vld [vmem:[%s22153_s11 + $0x2c] ss:$16 sps:$4 sm:$0xff]  }
0x1acd   :  { %17297 = vtanh.f32 %v9567_v50  ;;  %v20850_v50 = vld [vmem:[%s22153_s11 + $0x20] ss:$16 sps:$4 sm:$0xff]  }
0x1ad4   :  { %v17292_v21 = vpop.eup %17291 }
0x1ad5   :  { %v17294_v39 = vpop.eup %17293  ;;  %v9572_v31 = vadd.f32 1.0, %v17292_v21  ;;  %v20855_v21 = vld [vmem:[%s22153_s11 + $0x28] ss:$16 sps:$4 sm:$0xff]  }
0x1ad6   :  { %v9578_v40 = vadd.f32 1.0, %v17294_v39  ;;  %v17296_v58 = vpop.eup %17295  ;;  %v20864_v39 = vld [vmem:[%s22153_s11 + $0x44] ss:$16 sps:$4 sm:$0xff]  }
0x1ad7   :  { %17299 = vrcp.f32 %v9572_v31  ;;  %v17298_v14 = vpop.eup %17297  ;;  %v9585_v43 = vadd.f32 1.0, %v17296_v58  ;;  %v20869_v31 = vld [vmem:[%s22153_s11 + $0x4c] ss:$16 sps:$4 sm:$0xff]   ;;  %v20879_v58 = vld [vmem:[%s22153_s11 + $0x48] ss:$16 sps:$4 sm:$0xff]  }
0x1ad8   :  { %17301 = vrcp.f32 %v9578_v40  ;;  %v20874_v40 = vld [vmem:[%s22153_s11 + $0x40] ss:$16 sps:$4 sm:$0xff]  }
0x1ad9   :  { %17303 = vrcp.f32 %v9585_v43  ;;  %v20912_v43 = vld [vmem:[%s22153_s11 + $0x84] ss:$16 sps:$4 sm:$0xff]  }
0x1ae1   :  { %v17300_v12 = vpop.eup %17299 }
0x1ae2   :  { %v17302_v45 = vpop.eup %17301  ;;  %v9589_v38 = vmul.f32 %v17300_v12, %v17298_v14  ;;  %v20888_v14 = vld [vmem:[%s22153_s11 + $0x64] ss:$16 sps:$4 sm:$0xff]   ;;  %v20893_v12 = vld [vmem:[%s22153_s11 + $0x6c] ss:$16 sps:$4 sm:$0xff]  }
0x1ae3   :  { %v9588_v2 = vmul.f32 %v17302_v45, %v20714_v3  ;;  %v17304_v42 = vpop.eup %17303  ;;  %v20898_v45 = vld [vmem:[%s22153_s11 + $0x60] ss:$16 sps:$4 sm:$0xff]  }
0x1ae5   :  { %v20760_v5 = vadd.f32 %v9589_v38, %v9588_v2  ;;  %v20903_v38 = vld [vmem:[%s22153_s11 + $0x68] ss:$16 sps:$4 sm:$0xff]   ;;  %v20917_v2 = vld [vmem:[%s22153_s11 + $0x8c] ss:$16 sps:$4 sm:$0xff]  }
0x1ae7   :  { %17305 = vtanh.f32 %v20760_v5 }
0x1af1   :  { %v17306_v17 = vpop.eup %17305 }
0x1af2   :  { %v20763_v52 = vmul.f32 %v17306_v17, %v17304_v42  ;;  %v20927_v42 = vld [vmem:[%s22153_s11 + $0x88] ss:$16 sps:$4 sm:$0xff]   ;;  %v20934_v17 = vld [vmem:[%s22153_s11 + $0xa4] ss:$16 sps:$4 sm:$0xff]  }
0x1af4   :  { %v9594_v29 = vpack.c.bf16 %v20763_v52, %v20763_v52 }
0x1af6   :  { %9820 = vmatmul.mubr.bf16.vlgmr.msra.gmra.mrb[140].mxu0 %v9594_v29  ;;  %9861 = vmatmul.mubr.bf16.vlgmr.msra.gmra.mrb[172].mxu1 %v9594_v29  ;;  %v20941_v29 = vld [vmem:[%s22153_s11 + $0xa0] ss:$16 sps:$4 sm:$0xff]  }
0x1af7   :  { %10092 = vmatpush1.bf16.msra.mxu0 %v20478_v53  ;;  %10133 = vmatpush1.bf16.msra.mxu1 %v20483_v28 }
0x1af8   :  { %10093 = vmatprep.subr.bf16.mxu0 %v20488_v13  ;;  %10134 = vmatprep.subr.bf16.mxu1 %v20493_v9 }
0x1af9   :  { %10123 = vmatprep.mubr.bf16.mxu0 %v22201_v24  ;;  %10164 = vmatprep.mubr.bf16.mxu1 %v22201_v24 }
0x1afb   :  { %10094 = vmatpush1.bf16.msra.mxu0 %v20500_v49  ;;  %10135 = vmatpush1.bf16.msra.mxu1 %v20505_v48 }
0x1afc   :  { %10095 = vmatprep.subr.bf16.mxu0 %v20512_v27  ;;  %10136 = vmatprep.subr.bf16.mxu1 %v20517_v11 }
0x1aff   :  { %10096 = vmatpush1.bf16.msra.mxu0 %v20526_v59  ;;  %10137 = vmatpush1.bf16.msra.mxu1 %v20531_v37 }
0x1b00   :  { %10097 = vmatprep.subr.bf16.mxu0 %v20538_v41  ;;  %10138 = vmatprep.subr.bf16.mxu1 %v20543_v60 }
0x1b03   :  { %10098 = vmatpush1.bf16.msra.mxu0 %v20550_v8  ;;  %10139 = vmatpush1.bf16.msra.mxu1 %v20555_v54 }
0x1b04   :  { %10099 = vmatprep.subr.bf16.mxu0 %v20562_v4  ;;  %10140 = vmatprep.subr.bf16.mxu1 %v20567_v36 }
0x1b07   :  { %10100 = vmatpush1.bf16.msra.mxu0 %v20574_v16  ;;  %10141 = vmatpush1.bf16.msra.mxu1 %v20579_v23 }
0x1b08   :  { %10101 = vmatprep.subr.bf16.mxu0 %v20586_v20  ;;  %10142 = vmatprep.subr.bf16.mxu1 %v20591_v19 }
0x1b0b   :  { %10102 = vmatpush1.bf16.msra.mxu0 %v20598_v15  ;;  %10143 = vmatpush1.bf16.msra.mxu1 %v20603_v10 }
0x1b0c   :  { %10103 = vmatprep.subr.bf16.mxu0 %v20610_v35  ;;  %10144 = vmatprep.subr.bf16.mxu1 %v20615_v18 }
0x1b0f   :  { %10104 = vmatpush1.bf16.msra.mxu0 %v20622_v47  ;;  %10145 = vmatpush1.bf16.msra.mxu1 %v20627_v33 }
0x1b10   :  { %10105 = vmatprep.subr.bf16.mxu0 %v20634_v61  ;;  %10146 = vmatprep.subr.bf16.mxu1 %v20639_v62 }
0x1b13   :  { %10106 = vmatpush1.bf16.msra.mxu0 %v20646_v63  ;;  %10147 = vmatpush1.bf16.msra.mxu1 %v20651_v0 }
0x1b14   :  { %10395 = vmatprep.subr.bf16.mxu0 %v20816_v55  ;;  %10436 = vmatprep.subr.bf16.mxu1 %v20821_v56 }
0x1bc9   :  { %v9821_v53 = vpop.f32.mrb[140].mxu0  ;;  %v9862_v28 = vpop.f32.mrb[172].mxu1 }
0x1bca   :  { %v9869_v13 = vadd.f32 %v9821_v53, %v20700_v51  ;;  %v9823_v9 = vpop.f32.mrb[141].mxu0  ;;  %v9864_v49 = vpop.f32.mrb[173].mxu1  ;;  %v9871_v4 = vadd.f32 %v9862_v28, %v20711_v32  ;;  %v20946_v53 = vld [vmem:[%s22153_s11 + $0xa8] ss:$16 sps:$4 sm:$0xff]   ;;  %v20951_v28 = vld [vmem:[%s22153_s11 + $0xac] ss:$16 sps:$4 sm:$0xff]  }
0x1bcb   :  { %v9870_v48 = vadd.f32 %v9823_v9, %v20702_v25  ;;  %v9825_v27 = vpop.f32.mrb[142].mxu0  ;;  %v9866_v11 = vpop.f32.mrb[174].mxu1  ;;  %v9872_v8 = vadd.f32 %v9864_v49, %v20707_v30  ;;  %v20962_v9 = vld [vmem:[%s22153_s11 + $0xcc] ss:$16 sps:$4 sm:$0xff]   ;;  %v20970_v49 = vld [vmem:[%s22153_s11 + $0xc0] ss:$16 sps:$4 sm:$0xff]  }
0x1bcc   :  { %v15599_v59 = vmul.f32 -1.442695, %v9869_v13  ;;  %v9826_v37 = vpop.f32.mrb[143].mxu0  ;;  %v9867_v41 = vpop.f32.mrb[175].mxu1  ;;  %v20957_v13 = vld [vmem:[%s22153_s11 + $0xc4] ss:$16 sps:$4 sm:$0xff]  }
0x1bcd   :  { %v15600_v60 = vmul.f32 -1.442695, %v9870_v48  ;;  %v15601_v54 = vmul.f32 -1.442695, %v9872_v8  ;;  %v20975_v48 = vld [vmem:[%s22153_s11 + $0xc8] ss:$16 sps:$4 sm:$0xff]  }
0x1bce   :  { %17307 = vpow2.f32 %v15599_v59  ;;  %v20982_v27 = vld [vmem:[%s22153_s11 + $0xe4] ss:$16 sps:$4 sm:$0xff]   ;;  %v20987_v11 = vld [vmem:[%s22153_s11 + $0xec] ss:$16 sps:$4 sm:$0xff]   ;;  %v20994_v59 = vld [vmem:[%s22153_s11 + $0xe0] ss:$16 sps:$4 sm:$0xff]  }
0x1bcf   :  { %17309 = vpow2.f32 %v15600_v60  ;;  %v20999_v37 = vld [vmem:[%s22153_s11 + $0xe8] ss:$16 sps:$4 sm:$0xff]  }
0x1bd0   :  { %17311 = vpow2.f32 %v15601_v54 }
0x1bd1   :  { %17313 = vtanh.f32 %v9871_v4 }
0x1bd8   :  { %v17308_v36 = vpop.eup %17307 }
0x1bd9   :  { %v17310_v16 = vpop.eup %17309  ;;  %v9876_v23 = vadd.f32 1.0, %v17308_v36 }
0x1bda   :  { %v9882_v20 = vadd.f32 1.0, %v17310_v16  ;;  %v17312_v19 = vpop.eup %17311 }
0x1bdb   :  { %17315 = vrcp.f32 %v9876_v23  ;;  %v17314_v15 = vpop.eup %17313  ;;  %v9889_v47 = vadd.f32 1.0, %v17312_v19 }
0x1bdc   :  { %17317 = vrcp.f32 %v9882_v20 }
0x1bdd   :  { %17319 = vrcp.f32 %v9889_v47 }
0x1be5   :  { %v17316_v10 = vpop.eup %17315 }
0x1be6   :  { %v17318_v35 = vpop.eup %17317  ;;  %v9893_v18 = vmul.f32 %v17316_v10, %v17314_v15 }
0x1be7   :  { %v9892_v33 = vmul.f32 %v17318_v35, %v20760_v5  ;;  %v17320_v62 = vpop.eup %17319  ;;  %v20922_v5 = vld [vmem:[%s22153_s11 + $0x80] ss:$16 sps:$4 sm:$0xff]  }
0x1be9   :  { %v20804_v61 = vadd.f32 %v9893_v18, %v9892_v33 }
0x1beb   :  { %17321 = vtanh.f32 %v20804_v61 }
0x1bf5   :  { %v17322_v63 = vpop.eup %17321 }
0x1bf6   :  { %v20807_v0 = vmul.f32 %v17322_v63, %v17320_v62 }
0x1bf8   :  { %v9898_v3 = vpack.c.bf16 %v20807_v0, %v20807_v0 }
0x1bfa   :  { %10124 = vmatmul.mubr.bf16.vlgmr.msra.gmra.mrb[144].mxu0 %v9898_v3  ;;  %10165 = vmatmul.mubr.bf16.vlgmr.msra.gmra.mrb[176].mxu1 %v9898_v3 }
0x1bfb   :  { %10427 = vmatprep.mubr.bf16.mxu0 %v22201_v24  ;;  %10468 = vmatprep.mubr.bf16.mxu1 %v22201_v24 }
0x1bfc   :  { %10396 = vmatpush1.bf16.msra.mxu0 %v20826_v34  ;;  %10437 = vmatpush1.bf16.msra.mxu1 %v20831_v6 }
0x1bfd   :  { %10397 = vmatprep.subr.bf16.mxu0 %v20840_v44  ;;  %10438 = vmatprep.subr.bf16.mxu1 %v20845_v1 }
0x1c00   :  { %10398 = vmatpush1.bf16.msra.mxu0 %v20850_v50  ;;  %10439 = vmatpush1.bf16.msra.mxu1 %v20855_v21 }
0x1c01   :  { %10399 = vmatprep.subr.bf16.mxu0 %v20864_v39  ;;  %10440 = vmatprep.subr.bf16.mxu1 %v20869_v31 }
0x1c04   :  { %10400 = vmatpush1.bf16.msra.mxu0 %v20874_v40  ;;  %10441 = vmatpush1.bf16.msra.mxu1 %v20879_v58 }
0x1c05   :  { %10401 = vmatprep.subr.bf16.mxu0 %v20888_v14  ;;  %10442 = vmatprep.subr.bf16.mxu1 %v20893_v12 }
0x1c08   :  { %10402 = vmatpush1.bf16.msra.mxu0 %v20898_v45  ;;  %10443 = vmatpush1.bf16.msra.mxu1 %v20903_v38 }
0x1c09   :  { %10403 = vmatprep.subr.bf16.mxu0 %v20912_v43  ;;  %10444 = vmatprep.subr.bf16.mxu1 %v20917_v2 }
0x1c0c   :  { %10404 = vmatpush1.bf16.msra.mxu0 %v20922_v5  ;;  %10445 = vmatpush1.bf16.msra.mxu1 %v20927_v42 }
0x1c0d   :  { %10405 = vmatprep.subr.bf16.mxu0 %v20934_v17  ;;  %10446 = vmatprep.subr.bf16.mxu1 %v20951_v28 }
0x1c10   :  { %10406 = vmatpush1.bf16.msra.mxu0 %v20941_v29  ;;  %10447 = vmatpush1.bf16.msra.mxu1 %v20946_v53 }
0x1c11   :  { %10407 = vmatprep.subr.bf16.mxu0 %v20957_v13  ;;  %10448 = vmatprep.subr.bf16.mxu1 %v20962_v9 }
0x1c14   :  { %10408 = vmatpush1.bf16.msra.mxu0 %v20970_v49  ;;  %10449 = vmatpush1.bf16.msra.mxu1 %v20975_v48 }
0x1c15   :  { %10409 = vmatprep.subr.bf16.mxu0 %v20982_v27  ;;  %10450 = vmatprep.subr.bf16.mxu1 %v20987_v11 }
0x1c18   :  { %10410 = vmatpush1.bf16.msra.mxu0 %v20994_v59  ;;  %10451 = vmatpush1.bf16.msra.mxu1 %v20999_v37 }
0x1c19   :  { %10699 = vmatprep.subr.bf16.mxu0 %v20816_v55  ;;  %10740 = vmatprep.subr.bf16.mxu1 %v20821_v56 }
0x1ccd   :  { %v10125_v41 = vpop.f32.mrb[144].mxu0  ;;  %v10166_v60 = vpop.f32.mrb[176].mxu1 }
0x1cce   :  { %v10173_v8 = vadd.f32 %v10125_v41, %v20700_v51  ;;  %v10127_v54 = vpop.f32.mrb[145].mxu0  ;;  %v10168_v4 = vpop.f32.mrb[177].mxu1  ;;  %v10175_v47 = vadd.f32 %v10166_v60, %v20711_v32 }
0x1ccf   :  { %v10174_v36 = vadd.f32 %v10127_v54, %v20702_v25  ;;  %v10129_v16 = vpop.f32.mrb[146].mxu0  ;;  %v10170_v23 = vpop.f32.mrb[178].mxu1  ;;  %v10176_v35 = vadd.f32 %v10168_v4, %v20707_v30 }
0x1cd0   :  { %v15634_v20 = vmul.f32 -1.442695, %v10173_v8  ;;  %v10130_v19 = vpop.f32.mrb[147].mxu0  ;;  %v10171_v15 = vpop.f32.mrb[179].mxu1 }
0x1cd1   :  { %v15635_v10 = vmul.f32 -1.442695, %v10174_v36  ;;  %v15636_v18 = vmul.f32 -1.442695, %v10176_v35 }
0x1cd2   :  { %17323 = vpow2.f32 %v15634_v20 }
0x1cd3   :  { %17325 = vpow2.f32 %v15635_v10 }
0x1cd4   :  { %17327 = vpow2.f32 %v15636_v18 }
0x1cd5   :  { %17329 = vtanh.f32 %v10175_v47 }
0x1cdc   :  { %v17324_v33 = vpop.eup %17323 }
0x1cdd   :  { %v17326_v62 = vpop.eup %17325  ;;  %v10180_v63 = vadd.f32 1.0, %v17324_v33 }
0x1cde   :  { %v10186_v3 = vadd.f32 1.0, %v17326_v62  ;;  %v17328_v41 = vpop.eup %17327 }
0x1cdf   :  { %17331 = vrcp.f32 %v10180_v63  ;;  %v17330_v8 = vpop.eup %17329  ;;  %v10193_v23 = vadd.f32 1.0, %v17328_v41 }
0x1ce0   :  { %17333 = vrcp.f32 %v10186_v3 }
0x1ce1   :  { %17335 = vrcp.f32 %v10193_v23 }
0x1ce9   :  { %v17332_v54 = vpop.eup %17331 }
0x1cea   :  { %v17334_v16 = vpop.eup %17333  ;;  %v10197_v36 = vmul.f32 %v17332_v54, %v17330_v8 }
0x1ceb   :  { %v10196_v20 = vmul.f32 %v17334_v16, %v20804_v61  ;;  %v17336_v60 = vpop.eup %17335 }
0x1ced   :  { %v21012_v4 = vadd.f32 %v10197_v36, %v10196_v20 }
0x1cef   :  { %17337 = vtanh.f32 %v21012_v4 }
0x1cf9   :  { %v17338_v19 = vpop.eup %17337 }
0x1cfa   :  { %v21015_v15 = vmul.f32 %v17338_v19, %v17336_v60 }
0x1cfc   :  { %v10202_v10 = vpack.c.bf16 %v21015_v15, %v21015_v15 }
0x1cfe   :  { %10428 = vmatmul.mubr.bf16.vlgmr.msra.gmra.mrb[148].mxu0 %v10202_v10  ;;  %10469 = vmatmul.mubr.bf16.vlgmr.msra.gmra.mrb[180].mxu1 %v10202_v10 }
0x1cff   :  { %10700 = vmatpush1.bf16.msra.mxu0 %v20826_v34  ;;  %10741 = vmatpush1.bf16.msra.mxu1 %v20831_v6 }
0x1d00   :  { %10701 = vmatprep.subr.bf16.mxu0 %v20840_v44  ;;  %10742 = vmatprep.subr.bf16.mxu1 %v20845_v1 }
0x1d01   :  { %10731 = vmatprep.mubr.bf16.mxu0 %v22201_v24  ;;  %10772 = vmatprep.mubr.bf16.mxu1 %v22201_v24 }
0x1d03   :  { %10702 = vmatpush1.bf16.msra.mxu0 %v20850_v50  ;;  %10743 = vmatpush1.bf16.msra.mxu1 %v20855_v21 }
0x1d04   :  { %10703 = vmatprep.subr.bf16.mxu0 %v20864_v39  ;;  %10744 = vmatprep.subr.bf16.mxu1 %v20869_v31 }
0x1d07   :  { %10704 = vmatpush1.bf16.msra.mxu0 %v20874_v40  ;;  %10745 = vmatpush1.bf16.msra.mxu1 %v20879_v58 }
0x1d08   :  { %10705 = vmatprep.subr.bf16.mxu0 %v20888_v14  ;;  %10746 = vmatprep.subr.bf16.mxu1 %v20893_v12 }
0x1d0b   :  { %10706 = vmatpush1.bf16.msra.mxu0 %v20898_v45  ;;  %10747 = vmatpush1.bf16.msra.mxu1 %v20903_v38 }
0x1d0c   :  { %10707 = vmatprep.subr.bf16.mxu0 %v20912_v43  ;;  %10748 = vmatprep.subr.bf16.mxu1 %v20917_v2 }
0x1d0f   :  { %10708 = vmatpush1.bf16.msra.mxu0 %v20922_v5  ;;  %10749 = vmatpush1.bf16.msra.mxu1 %v20927_v42 }
0x1d10   :  { %10709 = vmatprep.subr.bf16.mxu0 %v20934_v17  ;;  %10750 = vmatprep.subr.bf16.mxu1 %v20951_v28 }
0x1d13   :  { %10710 = vmatpush1.bf16.msra.mxu0 %v20941_v29  ;;  %10751 = vmatpush1.bf16.msra.mxu1 %v20946_v53 }
0x1d14   :  { %10711 = vmatprep.subr.bf16.mxu0 %v20957_v13  ;;  %10752 = vmatprep.subr.bf16.mxu1 %v20962_v9 }
0x1d17   :  { %10712 = vmatpush1.bf16.msra.mxu0 %v20970_v49  ;;  %10753 = vmatpush1.bf16.msra.mxu1 %v20975_v48 }
0x1d18   :  { %10713 = vmatprep.subr.bf16.mxu0 %v20982_v27  ;;  %10754 = vmatprep.subr.bf16.mxu1 %v20987_v11 }
0x1d1b   :  { %10714 = vmatpush1.bf16.msra.mxu0 %v20994_v59  ;;  %10755 = vmatpush1.bf16.msra.mxu1 %v20999_v37 }
0x1d1c   :  { %11003 = vmatprep.subr.bf16.mxu0 %v20816_v55  ;;  %11044 = vmatprep.subr.bf16.mxu1 %v20821_v56 }
0x1dd1   :  { %v10429_v61 = vpop.f32.mrb[148].mxu0  ;;  %v10470_v35 = vpop.f32.mrb[180].mxu1 }
0x1dd2   :  { %v10477_v18 = vadd.f32 %v10429_v61, %v20700_v51  ;;  %v10431_v47 = vpop.f32.mrb[149].mxu0  ;;  %v10472_v33 = vpop.f32.mrb[181].mxu1  ;;  %v10479_v20 = vadd.f32 %v10470_v35, %v20711_v32 }
0x1dd3   :  { %v10478_v62 = vadd.f32 %v10431_v47, %v20702_v25  ;;  %v10433_v63 = vpop.f32.mrb[150].mxu0  ;;  %v10474_v3 = vpop.f32.mrb[182].mxu1  ;;  %v10480_v36 = vadd.f32 %v10472_v33, %v20707_v30 }
0x1dd4   :  { %v15669_v41 = vmul.f32 -1.442695, %v10477_v18  ;;  %v10434_v8 = vpop.f32.mrb[151].mxu0  ;;  %v10475_v54 = vpop.f32.mrb[183].mxu1 }
0x1dd5   :  { %v15670_v16 = vmul.f32 -1.442695, %v10478_v62  ;;  %v15671_v23 = vmul.f32 -1.442695, %v10480_v36 }
0x1dd6   :  { %17339 = vpow2.f32 %v15669_v41 }
0x1dd7   :  { %17341 = vpow2.f32 %v15670_v16 }
0x1dd8   :  { %17343 = vpow2.f32 %v15671_v23 }
0x1dd9   :  { %17345 = vtanh.f32 %v10479_v20 }
0x1de0   :  { %v17340_v60 = vpop.eup %17339 }
0x1de1   :  { %v17342_v19 = vpop.eup %17341  ;;  %v10484_v10 = vadd.f32 1.0, %v17340_v60 }
0x1de2   :  { %v10490_v61 = vadd.f32 1.0, %v17342_v19  ;;  %v17344_v47 = vpop.eup %17343 }
0x1de3   :  { %17347 = vrcp.f32 %v10484_v10  ;;  %v17346_v18 = vpop.eup %17345  ;;  %v10497_v41 = vadd.f32 1.0, %v17344_v47 }
0x1de4   :  { %17349 = vrcp.f32 %v10490_v61 }
0x1de5   :  { %17351 = vrcp.f32 %v10497_v41 }
0x1ded   :  { %v17348_v63 = vpop.eup %17347 }
0x1dee   :  { %v17350_v3 = vpop.eup %17349  ;;  %v10501_v62 = vmul.f32 %v17348_v63, %v17346_v18 }
0x1def   :  { %v10500_v8 = vmul.f32 %v17350_v3, %v21012_v4  ;;  %v17352_v35 = vpop.eup %17351 }
0x1df1   :  { %v21058_v33 = vadd.f32 %v10501_v62, %v10500_v8 }
0x1df3   :  { %17353 = vtanh.f32 %v21058_v33 }
0x1dfd   :  { %v17354_v54 = vpop.eup %17353 }
0x1dfe   :  { %v21061_v16 = vmul.f32 %v17354_v54, %v17352_v35 }
0x1e00   :  { %v10506_v36 = vpack.c.bf16 %v21061_v16, %v21061_v16 }
0x1e02   :  { %10732 = vmatmul.mubr.bf16.vlgmr.msra.gmra.mrb[152].mxu0 %v10506_v36  ;;  %10773 = vmatmul.mubr.bf16.vlgmr.msra.gmra.mrb[184].mxu1 %v10506_v36 }
0x1e03   :  { %11004 = vmatpush1.bf16.msra.mxu0 %v20826_v34  ;;  %11045 = vmatpush1.bf16.msra.mxu1 %v20831_v6 }
0x1e04   :  { %11005 = vmatprep.subr.bf16.mxu0 %v20840_v44  ;;  %11046 = vmatprep.subr.bf16.mxu1 %v20845_v1 }
0x1e05   :  { %11035 = vmatprep.mubr.bf16.mxu0 %v22201_v24  ;;  %11076 = vmatprep.mubr.bf16.mxu1 %v22201_v24 }
0x1e07   :  { %11006 = vmatpush1.bf16.msra.mxu0 %v20850_v50  ;;  %11047 = vmatpush1.bf16.msra.mxu1 %v20855_v21 }
0x1e08   :  { %11007 = vmatprep.subr.bf16.mxu0 %v20864_v39  ;;  %11048 = vmatprep.subr.bf16.mxu1 %v20869_v31 }
0x1e0b   :  { %11008 = vmatpush1.bf16.msra.mxu0 %v20874_v40  ;;  %11049 = vmatpush1.bf16.msra.mxu1 %v20879_v58 }
0x1e0c   :  { %11009 = vmatprep.subr.bf16.mxu0 %v20888_v14  ;;  %11050 = vmatprep.subr.bf16.mxu1 %v20893_v12 }
0x1e0f   :  { %11010 = vmatpush1.bf16.msra.mxu0 %v20898_v45  ;;  %11051 = vmatpush1.bf16.msra.mxu1 %v20903_v38 }
0x1e10   :  { %11011 = vmatprep.subr.bf16.mxu0 %v20912_v43  ;;  %11052 = vmatprep.subr.bf16.mxu1 %v20917_v2 }
0x1e13   :  { %11012 = vmatpush1.bf16.msra.mxu0 %v20922_v5  ;;  %11053 = vmatpush1.bf16.msra.mxu1 %v20927_v42 }
0x1e14   :  { %11013 = vmatprep.subr.bf16.mxu0 %v20934_v17  ;;  %11054 = vmatprep.subr.bf16.mxu1 %v20951_v28 }
0x1e17   :  { %11014 = vmatpush1.bf16.msra.mxu0 %v20941_v29  ;;  %11055 = vmatpush1.bf16.msra.mxu1 %v20946_v53 }
0x1e18   :  { %11015 = vmatprep.subr.bf16.mxu0 %v20957_v13  ;;  %11056 = vmatprep.subr.bf16.mxu1 %v20962_v9 }
0x1e1b   :  { %11016 = vmatpush1.bf16.msra.mxu0 %v20970_v49  ;;  %11057 = vmatpush1.bf16.msra.mxu1 %v20975_v48 }
0x1e1c   :  { %11017 = vmatprep.subr.bf16.mxu0 %v20982_v27  ;;  %11058 = vmatprep.subr.bf16.mxu1 %v20987_v11 }
0x1e1f   :  { %11018 = vmatpush1.bf16.msra.mxu0 %v20994_v59  ;;  %11059 = vmatpush1.bf16.msra.mxu1 %v20999_v37 }
0x1e20   :  { %11307 = vmatprep.subr.bf16.mxu0 %v20816_v55  ;;  %11348 = vmatprep.subr.bf16.mxu1 %v20821_v56 }
0x1ed5   :  { %v10733_v4 = vpop.f32.mrb[152].mxu0  ;;  %v10774_v23 = vpop.f32.mrb[184].mxu1 }
0x1ed6   :  { %v10781_v20 = vadd.f32 %v10733_v4, %v20700_v51  ;;  %v10735_v60 = vpop.f32.mrb[153].mxu0  ;;  %v10776_v19 = vpop.f32.mrb[185].mxu1  ;;  %v10783_v56 = vadd.f32 %v10774_v23, %v20711_v32 }
0x1ed7   :  { %v10782_v10 = vadd.f32 %v10735_v60, %v20702_v25  ;;  %v10737_v61 = vpop.f32.mrb[154].mxu0  ;;  %v10778_v47 = vpop.f32.mrb[186].mxu1  ;;  %v10784_v55 = vadd.f32 %v10776_v19, %v20707_v30 }
0x1ed8   :  { %v15704_v18 = vmul.f32 -1.442695, %v10781_v20  ;;  %v10738_v63 = vpop.f32.mrb[155].mxu0  ;;  %v10779_v3 = vpop.f32.mrb[187].mxu1 }
0x1ed9   :  { %v15705_v62 = vmul.f32 -1.442695, %v10782_v10  ;;  %v15706_v41 = vmul.f32 -1.442695, %v10784_v55 }
0x1eda   :  { %17355 = vpow2.f32 %v15704_v18 }
0x1edb   :  { %17357 = vpow2.f32 %v15705_v62 }
0x1edc   :  { %17359 = vpow2.f32 %v15706_v41  ;;  %v16739_v41 = vld [vmem:[%s22155_s13] ss:$16 sps:$4 sm:$0xff]  }
0x1edd   :  { %17361 = vtanh.f32 %v10783_v56  ;;  %v16742_v56 = vld [vmem:[%s22155_s13 + $0x8] ss:$16 sps:$4 sm:$0xff]  }
0x1ee4   :  { %v17356_v8 = vpop.eup %17355 }
0x1ee5   :  { %v17358_v35 = vpop.eup %17357  ;;  %v10788_v54 = vadd.f32 1.0, %v17356_v8 }
0x1ee6   :  { %v10794_v36 = vadd.f32 1.0, %v17358_v35  ;;  %v17360_v4 = vpop.eup %17359  ;;  %v16747_v35 = vld [vmem:[%s22155_s13 + $0x24] ss:$16 sps:$4 sm:$0xff]  }
0x1ee7   :  { %17363 = vrcp.f32 %v10788_v54  ;;  %v17362_v20 = vpop.eup %17361  ;;  %v10801_v47 = vadd.f32 1.0, %v17360_v4  ;;  %v16750_v54 = vld [vmem:[%s22155_s13 + $0x2c] ss:$16 sps:$4 sm:$0xff]   ;;  %v16748_v4 = vld [vmem:[%s22155_s13 + $0x28] ss:$16 sps:$4 sm:$0xff]  }
0x1ee8   :  { %17365 = vrcp.f32 %v10794_v36  ;;  %v16745_v36 = vld [vmem:[%s22155_s13 + $0x20] ss:$16 sps:$4 sm:$0xff]  }
0x1ee9   :  { %17367 = vrcp.f32 %v10801_v47  ;;  %v16759_v47 = vld [vmem:[%s22155_s13 + $0x64] ss:$16 sps:$4 sm:$0xff]  }
0x1ef1   :  { %v17364_v60 = vpop.eup %17363 }
0x1ef2   :  { %v17366_v61 = vpop.eup %17365  ;;  %v10805_v10 = vmul.f32 %v17364_v60, %v17362_v20  ;;  %v16753_v20 = vld [vmem:[%s22155_s13 + $0x44] ss:$16 sps:$4 sm:$0xff]   ;;  %v16756_v60 = vld [vmem:[%s22155_s13 + $0x4c] ss:$16 sps:$4 sm:$0xff]  }
0x1ef3   :  { %v10804_v18 = vmul.f32 %v17366_v61, %v21058_v33  ;;  %v17368_v23 = vpop.eup %17367  ;;  %v16751_v61 = vld [vmem:[%s22155_s13 + $0x40] ss:$16 sps:$4 sm:$0xff]  }
0x1ef5   :  { %v21104_v19 = vadd.f32 %v10805_v10, %v10804_v18  ;;  %v16754_v10 = vld [vmem:[%s22155_s13 + $0x48] ss:$16 sps:$4 sm:$0xff]   ;;  %v16762_v18 = vld [vmem:[%s22155_s13 + $0x6c] ss:$16 sps:$4 sm:$0xff]  }
0x1ef7   :  { %17369 = vtanh.f32 %v21104_v19 }
0x1f01   :  { %v17370_v63 = vpop.eup %17369 }
0x1f02   :  { %v21107_v3 = vmul.f32 %v17370_v63, %v17368_v23  ;;  %v16760_v23 = vld [vmem:[%s22155_s13 + $0x68] ss:$16 sps:$4 sm:$0xff]   ;;  %v16765_v63 = vld [vmem:[%s22155_s13 + $0x84] ss:$16 sps:$4 sm:$0xff]  }
0x1f04   :  { %v10810_v62 = vpack.c.bf16 %v21107_v3, %v21107_v3 }
0x1f06   :  { %11036 = vmatmul.mubr.bf16.vlgmr.msra.gmra.mrb[156].mxu0 %v10810_v62  ;;  %11077 = vmatmul.mubr.bf16.vlgmr.msra.gmra.mrb[188].mxu1 %v10810_v62  ;;  %v16768_v62 = vld [vmem:[%s22155_s13 + $0x8c] ss:$16 sps:$4 sm:$0xff]  }
0x1f07   :  { %11308 = vmatpush1.bf16.msra.mxu0 %v20826_v34  ;;  %11349 = vmatpush1.bf16.msra.mxu1 %v20831_v6  ;;  %v16741_v34 = vld [vmem:[%s22155_s13 + $0x4] ss:$16 sps:$4 sm:$0xff]   ;;  %v16744_v6 = vld [vmem:[%s22155_s13 + $0xc] ss:$16 sps:$4 sm:$0xff]  }
0x1f08   :  { %11309 = vmatprep.subr.bf16.mxu0 %v20840_v44  ;;  %11350 = vmatprep.subr.bf16.mxu1 %v20845_v1 }
0x1f09   :  { %11339 = vmatprep.mubr.bf16.mxu0 %v22201_v24  ;;  %11380 = vmatprep.mubr.bf16.mxu1 %v22201_v24 }
0x1f0b   :  { %11310 = vmatpush1.bf16.msra.mxu0 %v20850_v50  ;;  %11351 = vmatpush1.bf16.msra.mxu1 %v20855_v21 }
0x1f0c   :  { %11311 = vmatprep.subr.bf16.mxu0 %v20864_v39  ;;  %11352 = vmatprep.subr.bf16.mxu1 %v20869_v31 }
0x1f0f   :  { %11312 = vmatpush1.bf16.msra.mxu0 %v20874_v40  ;;  %11353 = vmatpush1.bf16.msra.mxu1 %v20879_v58 }
0x1f10   :  { %11313 = vmatprep.subr.bf16.mxu0 %v20888_v14  ;;  %11354 = vmatprep.subr.bf16.mxu1 %v20893_v12 }
0x1f13   :  { %11314 = vmatpush1.bf16.msra.mxu0 %v20898_v45  ;;  %11355 = vmatpush1.bf16.msra.mxu1 %v20903_v38 }
0x1f14   :  { %11315 = vmatprep.subr.bf16.mxu0 %v20912_v43  ;;  %11356 = vmatprep.subr.bf16.mxu1 %v20917_v2 }
0x1f17   :  { %11316 = vmatpush1.bf16.msra.mxu0 %v20922_v5  ;;  %11357 = vmatpush1.bf16.msra.mxu1 %v20927_v42 }
0x1f18   :  { %11317 = vmatprep.subr.bf16.mxu0 %v20934_v17  ;;  %11358 = vmatprep.subr.bf16.mxu1 %v20951_v28 }
0x1f1b   :  { %11318 = vmatpush1.bf16.msra.mxu0 %v20941_v29  ;;  %11359 = vmatpush1.bf16.msra.mxu1 %v20946_v53 }
0x1f1c   :  { %11319 = vmatprep.subr.bf16.mxu0 %v20957_v13  ;;  %11360 = vmatprep.subr.bf16.mxu1 %v20962_v9 }
0x1f1f   :  { %11320 = vmatpush1.bf16.msra.mxu0 %v20970_v49  ;;  %11361 = vmatpush1.bf16.msra.mxu1 %v20975_v48 }
0x1f20   :  { %11321 = vmatprep.subr.bf16.mxu0 %v20982_v27  ;;  %11362 = vmatprep.subr.bf16.mxu1 %v20987_v11 }
0x1f23   :  { %11322 = vmatpush1.bf16.msra.mxu0 %v20994_v59  ;;  %11363 = vmatpush1.bf16.msra.mxu1 %v20999_v37 }
0x1f24   :  { %11644 = vmatprep.subr.bf16.mxu0 %v16741_v34  ;;  %11717 = vmatprep.subr.bf16.mxu1 %v16744_v6  ;;  %v16763_v34 = vld [vmem:[%s22155_s13 + $0x80] ss:$16 sps:$4 sm:$0xff]   ;;  %v16766_v6 = vld [vmem:[%s22155_s13 + $0x88] ss:$16 sps:$4 sm:$0xff]  }
0x1fd9   :  { %v11037_v44 = vpop.f32.mrb[156].mxu0  ;;  %v11078_v1 = vpop.f32.mrb[188].mxu1 }
0x1fda   :  { %v11085_v50 = vadd.f32 %v11037_v44, %v20700_v51  ;;  %v11039_v21 = vpop.f32.mrb[157].mxu0  ;;  %v11080_v39 = vpop.f32.mrb[189].mxu1  ;;  %v11087_v5 = vadd.f32 %v11078_v1, %v20711_v32  ;;  %v16771_v44 = vld [vmem:[%s22155_s13 + $0xa4] ss:$16 sps:$4 sm:$0xff]   ;;  %v16774_v1 = vld [vmem:[%s22155_s13 + $0xac] ss:$16 sps:$4 sm:$0xff]  }
0x1fdb   :  { %v11086_v31 = vadd.f32 %v11039_v21, %v20702_v25  ;;  %v11041_v40 = vpop.f32.mrb[158].mxu0  ;;  %v11082_v58 = vpop.f32.mrb[190].mxu1  ;;  %v11088_v43 = vadd.f32 %v11080_v39, %v20707_v30  ;;  %v16772_v21 = vld [vmem:[%s22155_s13 + $0xa8] ss:$16 sps:$4 sm:$0xff]   ;;  %v16777_v39 = vld [vmem:[%s22155_s13 + $0xc4] ss:$16 sps:$4 sm:$0xff]  }
0x1fdc   :  { %v15739_v14 = vmul.f32 -1.442695, %v11085_v50  ;;  %v11042_v12 = vpop.f32.mrb[159].mxu0  ;;  %v11083_v45 = vpop.f32.mrb[191].mxu1  ;;  %v16769_v50 = vld [vmem:[%s22155_s13 + $0xa0] ss:$16 sps:$4 sm:$0xff]  }
0x1fdd   :  { %v15740_v38 = vmul.f32 -1.442695, %v11086_v31  ;;  %v15741_v2 = vmul.f32 -1.442695, %v11088_v43  ;;  %v16780_v31 = vld [vmem:[%s22155_s13 + $0xcc] ss:$16 sps:$4 sm:$0xff]   ;;  %v11426_v43 = vpack.c.bf16 %v20763_v52, %v20717_v26 }
0x1fde   :  { %17371 = vpow2.f32 %v15739_v14  ;;  %v16775_v40 = vld [vmem:[%s22155_s13 + $0xc0] ss:$16 sps:$4 sm:$0xff]   ;;  %v16778_v58 = vld [vmem:[%s22155_s13 + $0xc8] ss:$16 sps:$4 sm:$0xff]   ;;  %v16783_v14 = vld [vmem:[%s22155_s13 + $0xe4] ss:$16 sps:$4 sm:$0xff]  }
0x1fdf   :  { %17373 = vpow2.f32 %v15740_v38  ;;  %v16786_v12 = vld [vmem:[%s22155_s13 + $0xec] ss:$16 sps:$4 sm:$0xff]   ;;  %v16781_v45 = vld [vmem:[%s22155_s13 + $0xe0] ss:$16 sps:$4 sm:$0xff]   ;;  %v16784_v38 = vld [vmem:[%s22155_s13 + $0xe8] ss:$16 sps:$4 sm:$0xff]  }
0x1fe0   :  { %17375 = vpow2.f32 %v15741_v2  ;;  %v11427_v2 = vpack.c.bf16 %v21015_v15, %v20807_v0  ;;  %v21268_v26 = vld [vmem:[%s22156_s14 + $0x4] ss:$16 sps:$4 sm:$0xff]   ;;  %v21273_v52 = vld [vmem:[%s22156_s14] ss:$16 sps:$4 sm:$0xff]   ;;  %v21279_v0 = vld [vmem:[%s22156_s14 + $0x8] ss:$16 sps:$4 sm:$0xff]  }
0x1fe1   :  { %17377 = vtanh.f32 %v11087_v5  ;;  %v11428_v5 = vpack.c.bf16 %v21107_v3, %v21061_v16  ;;  %v21284_v15 = vld [vmem:[%s22156_s14 + $0xc] ss:$16 sps:$4 sm:$0xff]   ;;  %v21291_v16 = vld [vmem:[%s22156_s14 + $0x24] ss:$16 sps:$4 sm:$0xff]  }
0x1fe2   :  { %v21296_v3 = vld [vmem:[%s22156_s14 + $0x2c] ss:$16 sps:$4 sm:$0xff]  }
0x1fe8   :  { %v17372_v42 = vpop.eup %17371 }
0x1fe9   :  { %v17374_v17 = vpop.eup %17373  ;;  %v11092_v29 = vadd.f32 1.0, %v17372_v42  ;;  %v21302_v42 = vld [vmem:[%s22156_s14 + $0x20] ss:$16 sps:$4 sm:$0xff]  }
0x1fea   :  { %v11098_v53 = vadd.f32 1.0, %v17374_v17  ;;  %v17376_v28 = vpop.eup %17375  ;;  %v21307_v17 = vld [vmem:[%s22156_s14 + $0x28] ss:$16 sps:$4 sm:$0xff]  }
0x1feb   :  { %17379 = vrcp.f32 %v11092_v29  ;;  %v17378_v13 = vpop.eup %17377  ;;  %v11105_v27 = vadd.f32 1.0, %v17376_v28  ;;  %v21315_v29 = vld [vmem:[%s22156_s14 + $0x44] ss:$16 sps:$4 sm:$0xff]   ;;  %v21326_v28 = vld [vmem:[%s22156_s14 + $0x40] ss:$16 sps:$4 sm:$0xff]  }
0x1fec   :  { %17381 = vrcp.f32 %v11098_v53  ;;  %v21320_v53 = vld [vmem:[%s22156_s14 + $0x4c] ss:$16 sps:$4 sm:$0xff]  }
0x1fed   :  { %17383 = vrcp.f32 %v11105_v27  ;;  %v21355_v27 = vld [vmem:[%s22156_s14 + $0x6c] ss:$16 sps:$4 sm:$0xff]  }
0x1ff5   :  { %v17380_v9 = vpop.eup %17379 }
0x1ff6   :  { %v17382_v49 = vpop.eup %17381  ;;  %v11109_v48 = vmul.f32 %v17380_v9, %v17378_v13  ;;  %v21331_v13 = vld [vmem:[%s22156_s14 + $0x48] ss:$16 sps:$4 sm:$0xff]   ;;  %v21339_v9 = vld [vmem:[%s22156_s14 + $0x60] ss:$16 sps:$4 sm:$0xff]  }
0x1ff7   :  { %v11108_v11 = vmul.f32 %v17382_v49, %v21104_v19  ;;  %v17384_v37 = vpop.eup %17383  ;;  %v16757_v19 = vld [vmem:[%s22155_s13 + $0x60] ss:$16 sps:$4 sm:$0xff]   ;;  %v21344_v49 = vld [vmem:[%s22156_s14 + $0x64] ss:$16 sps:$4 sm:$0xff]  }
0x1ff9   :  { %v21154_v59 = vadd.f32 %v11109_v48, %v11108_v11  ;;  %v21349_v48 = vld [vmem:[%s22156_s14 + $0x68] ss:$16 sps:$4 sm:$0xff]   ;;  %v21363_v11 = vld [vmem:[%s22156_s14 + $0x84] ss:$16 sps:$4 sm:$0xff]  }
0x1ffb   :  { %17385 = vtanh.f32 %v21154_v59 }
0x2005   :  { %v17386_v33 = vpop.eup %17385 }
0x2006   :  { %v21157_v55 = vmul.f32 %v17386_v33, %v17384_v37  ;;  %v21368_v37 = vld [vmem:[%s22156_s14 + $0x8c] ss:$16 sps:$4 sm:$0xff]   ;;  %v21374_v33 = vld [vmem:[%s22156_s14 + $0x80] ss:$16 sps:$4 sm:$0xff]  }
0x2008   :  { %v11114_v8 = vpack.c.bf16 %v21157_v55, %v21157_v55 }
0x200a   :  { %11340 = vmatmul.mubr.bf16.vlgmr.msra.gmra.mrb[160].mxu0 %v11114_v8  ;;  %11381 = vmatmul.mubr.bf16.vlgmr.msra.gmra.mrb[192].mxu1 %v11114_v8  ;;  %v21392_v8 = vld [vmem:[%s22156_s14 + $0xa4] ss:$16 sps:$4 sm:$0xff]  }
0x200b   :  { %11645 = vmatpush1.bf16.msra.mxu0 %v16739_v41  ;;  %11718 = vmatpush1.bf16.msra.mxu1 %v16742_v56  ;;  %v21379_v41 = vld [vmem:[%s22156_s14 + $0x88] ss:$16 sps:$4 sm:$0xff]   ;;  %v21387_v56 = vld [vmem:[%s22156_s14 + $0xa0] ss:$16 sps:$4 sm:$0xff]  }
0x200c   :  { %11646 = vmatprep.subr.bf16.mxu0 %v16747_v35  ;;  %11719 = vmatprep.subr.bf16.mxu1 %v16750_v54  ;;  %v21397_v35 = vld [vmem:[%s22156_s14 + $0xa8] ss:$16 sps:$4 sm:$0xff]   ;;  %v21403_v54 = vld [vmem:[%s22156_s14 + $0xac] ss:$16 sps:$4 sm:$0xff]  }
0x200d   :  { %11676 = vmatprep.mubr.bf16.mxu0 %v22201_v24  ;;  %11749 = vmatprep.mubr.bf16.mxu1 %v22201_v24 }
0x200f   :  { %11647 = vmatpush1.bf16.msra.mxu0 %v16745_v36  ;;  %11720 = vmatpush1.bf16.msra.mxu1 %v16748_v4  ;;  %v21411_v36 = vld [vmem:[%s22156_s14 + $0xc4] ss:$16 sps:$4 sm:$0xff]   ;;  %v21416_v4 = vld [vmem:[%s22156_s14 + $0xcc] ss:$16 sps:$4 sm:$0xff]  }
0x2010   :  { %11648 = vmatprep.subr.bf16.mxu0 %v16753_v20  ;;  %11721 = vmatprep.subr.bf16.mxu1 %v16756_v60  ;;  %v21422_v20 = vld [vmem:[%s22156_s14 + $0xc0] ss:$16 sps:$4 sm:$0xff]   ;;  %v21427_v60 = vld [vmem:[%s22156_s14 + $0xc8] ss:$16 sps:$4 sm:$0xff]  }
0x2013   :  { %11649 = vmatpush1.bf16.msra.mxu0 %v16751_v61  ;;  %11722 = vmatpush1.bf16.msra.mxu1 %v16754_v10  ;;  %v21435_v61 = vld [vmem:[%s22156_s14 + $0xe0] ss:$16 sps:$4 sm:$0xff]   ;;  %v21440_v10 = vld [vmem:[%s22156_s14 + $0xe4] ss:$16 sps:$4 sm:$0xff]  }
0x2014   :  { %11650 = vmatprep.subr.bf16.mxu0 %v16759_v47  ;;  %11723 = vmatprep.subr.bf16.mxu1 %v16762_v18  ;;  %v21445_v47 = vld [vmem:[%s22156_s14 + $0xe8] ss:$16 sps:$4 sm:$0xff]   ;;  %v21451_v18 = vld [vmem:[%s22156_s14 + $0xec] ss:$16 sps:$4 sm:$0xff]  }
0x2017   :  { %11651 = vmatpush1.bf16.msra.mxu0 %v16757_v19  ;;  %11724 = vmatpush1.bf16.msra.mxu1 %v16760_v23 }
0x2018   :  { %11652 = vmatprep.subr.bf16.mxu0 %v16765_v63  ;;  %11725 = vmatprep.subr.bf16.mxu1 %v16768_v62 }
0x201b   :  { %11653 = vmatpush1.bf16.msra.mxu0 %v16763_v34  ;;  %11726 = vmatpush1.bf16.msra.mxu1 %v16766_v6 }
0x201c   :  { %11654 = vmatprep.subr.bf16.mxu0 %v16771_v44  ;;  %11727 = vmatprep.subr.bf16.mxu1 %v16774_v1 }
0x201f   :  { %11655 = vmatpush1.bf16.msra.mxu0 %v16769_v50  ;;  %11728 = vmatpush1.bf16.msra.mxu1 %v16772_v21 }
0x2020   :  { %11656 = vmatprep.subr.bf16.mxu0 %v16777_v39  ;;  %11729 = vmatprep.subr.bf16.mxu1 %v16780_v31 }
0x2023   :  { %11657 = vmatpush1.bf16.msra.mxu0 %v16775_v40  ;;  %11730 = vmatpush1.bf16.msra.mxu1 %v16778_v58 }
0x2024   :  { %11658 = vmatprep.subr.bf16.mxu0 %v16783_v14  ;;  %11731 = vmatprep.subr.bf16.mxu1 %v16786_v12 }
0x2027   :  { %11659 = vmatpush1.bf16.msra.mxu0 %v16781_v45  ;;  %11732 = vmatpush1.bf16.msra.mxu1 %v16784_v38 }
0x2028   :  { %12018 = vmatprep.subr.bf16.mxu0 %v21268_v26  ;;  %12059 = vmatprep.subr.bf16.mxu1 %v21284_v15 }
0x202a   :  { %11677 = vmatmul.mubr.bf16.vlgmr.msra.gmra.mrb[164].mxu0 %v11426_v43  ;;  %11750 = vmatmul.mubr.bf16.vlgmr.msra.gmra.mrb[196].mxu1 %v11426_v43 }
0x202b   :  { %11686 = vmatprep.mubr.bf16.mxu0 %v22201_v24  ;;  %11759 = vmatprep.mubr.bf16.mxu1 %v22201_v24 }
0x202c   :  { %12019 = vmatpush1.bf16.msra.mxu0 %v21273_v52  ;;  %12060 = vmatpush1.bf16.msra.mxu1 %v21279_v0 }
0x202d   :  { %12020 = vmatprep.subr.bf16.mxu0 %v21291_v16  ;;  %12061 = vmatprep.subr.bf16.mxu1 %v21296_v3 }
0x2030   :  { %12021 = vmatpush1.bf16.msra.mxu0 %v21302_v42  ;;  %12062 = vmatpush1.bf16.msra.mxu1 %v21307_v17 }
0x2031   :  { %12022 = vmatprep.subr.bf16.mxu0 %v21315_v29  ;;  %12063 = vmatprep.subr.bf16.mxu1 %v21320_v53 }
0x2032   :  { %11687 = vmatmul.mubr.bf16.gmra.mrb[168].mxu0 %v11427_v2  ;;  %11760 = vmatmul.mubr.bf16.gmra.mrb[200].mxu1 %v11427_v2 }
0x2033   :  { %11696 = vmatprep.mubr.bf16.mxu0 %v22201_v24  ;;  %11769 = vmatprep.mubr.bf16.mxu1 %v22201_v24 }
0x2034   :  { %12023 = vmatpush1.bf16.msra.mxu0 %v21326_v28  ;;  %12064 = vmatpush1.bf16.msra.mxu1 %v21331_v13 }
0x2035   :  { %12024 = vmatprep.subr.bf16.mxu0 %v21344_v49  ;;  %12065 = vmatprep.subr.bf16.mxu1 %v21355_v27 }
0x2038   :  { %12025 = vmatpush1.bf16.msra.mxu0 %v21339_v9  ;;  %12066 = vmatpush1.bf16.msra.mxu1 %v21349_v48 }
0x2039   :  { %12026 = vmatprep.subr.bf16.mxu0 %v21363_v11  ;;  %12067 = vmatprep.subr.bf16.mxu1 %v21368_v37 }
0x203a   :  { %11697 = vmatmul.mubr.bf16.gmra.mrb[172].mxu0 %v11428_v5  ;;  %11770 = vmatmul.mubr.bf16.gmra.mrb[204].mxu1 %v11428_v5 }
0x203b   :  { %11706 = vmatprep.mubr.bf16.mxu0 %v22201_v24  ;;  %11779 = vmatprep.mubr.bf16.mxu1 %v22201_v24 }
0x203c   :  { %12027 = vmatpush1.bf16.msra.mxu0 %v21374_v33  ;;  %12068 = vmatpush1.bf16.msra.mxu1 %v21379_v41 }
0x203d   :  { %12028 = vmatprep.subr.bf16.mxu0 %v21392_v8  ;;  %12069 = vmatprep.subr.bf16.mxu1 %v21403_v54 }
0x2040   :  { %12029 = vmatpush1.bf16.msra.mxu0 %v21387_v56  ;;  %12070 = vmatpush1.bf16.msra.mxu1 %v21397_v35 }
0x2041   :  { %12030 = vmatprep.subr.bf16.mxu0 %v21411_v36  ;;  %12071 = vmatprep.subr.bf16.mxu1 %v21416_v4 }
0x2044   :  { %12031 = vmatpush1.bf16.msra.mxu0 %v21422_v20  ;;  %12072 = vmatpush1.bf16.msra.mxu1 %v21427_v60 }
0x2045   :  { %12032 = vmatprep.subr.bf16.mxu0 %v21440_v10  ;;  %12073 = vmatprep.subr.bf16.mxu1 %v21451_v18 }
0x2048   :  { %12033 = vmatpush1.bf16.msra.mxu0 %v21435_v61  ;;  %12074 = vmatpush1.bf16.msra.mxu1 %v21445_v47 }
0x2049   :  { %12326 = vmatprep.subr.bf16.mxu0 %v21268_v26  ;;  %12367 = vmatprep.subr.bf16.mxu1 %v21284_v15 }
0x20dd   :  { %v11341_v19 = vpop.f32.mrb[160].mxu0  ;;  %v11382_v23 = vpop.f32.mrb[192].mxu1 }
0x20de   :  { %v11389_v63 = vadd.f32 %v11341_v19, %v20700_v51  ;;  %v11343_v62 = vpop.f32.mrb[161].mxu0  ;;  %v11384_v34 = vpop.f32.mrb[193].mxu1  ;;  %v11391_v14 = vadd.f32 %v11382_v23, %v20711_v32 }
0x20df   :  { %v11390_v6 = vadd.f32 %v11343_v62, %v20702_v25  ;;  %v11345_v44 = vpop.f32.mrb[162].mxu0  ;;  %v11386_v1 = vpop.f32.mrb[194].mxu1  ;;  %v11392_v40 = vadd.f32 %v11384_v34, %v20707_v30 }
0x20e0   :  { %v15774_v50 = vmul.f32 -1.442695, %v11389_v63  ;;  %v11346_v21 = vpop.f32.mrb[163].mxu0  ;;  %v11387_v39 = vpop.f32.mrb[195].mxu1 }
0x20e1   :  { %v15775_v31 = vmul.f32 -1.442695, %v11390_v6  ;;  %v15776_v58 = vmul.f32 -1.442695, %v11392_v40 }
0x20e2   :  { %17387 = vpow2.f32 %v15774_v50 }
0x20e3   :  { %17389 = vpow2.f32 %v15775_v31 }
0x20e4   :  { %17391 = vpow2.f32 %v15776_v58 }
0x20e5   :  { %17393 = vtanh.f32 %v11391_v14 }
0x20ec   :  { %v17388_v12 = vpop.eup %17387 }
0x20ed   :  { %v17390_v45 = vpop.eup %17389  ;;  %v11396_v51 = vadd.f32 1.0, %v17388_v12 }
0x20ee   :  { %v11402_v38 = vadd.f32 1.0, %v17390_v45  ;;  %v17392_v25 = vpop.eup %17391 }
0x20ef   :  { %17395 = vrcp.f32 %v11396_v51  ;;  %v17394_v43 = vpop.eup %17393  ;;  %v11409_v63 = vadd.f32 1.0, %v17392_v25 }
0x20f0   :  { %17397 = vrcp.f32 %v11402_v38 }
0x20f1   :  { %17399 = vrcp.f32 %v11409_v63 }
0x20f9   :  { %v17396_v2 = vpop.eup %17395 }
0x20fa   :  { %v17398_v5 = vpop.eup %17397  ;;  %v11413_v19 = vmul.f32 %v17396_v2, %v17394_v43 }
0x20fb   :  { %v11412_v62 = vmul.f32 %v17398_v5, %v21154_v59  ;;  %v17400_v12 = vpop.eup %17399 }
0x20fd   :  { %v21464_v30 = vpop.f32.mrb[164].mxu0  ;;  %v21466_v34 = vpop.f32.mrb[196].mxu1  ;;  %v11414_v32 = vadd.f32 %v11413_v19, %v11412_v62 }
0x20fe   :  { %v21468_v23 = vpop.f32.mrb[165].mxu0  ;;  %v21470_v6 = vpop.f32.mrb[197].mxu1 }
0x20ff   :  { %v21472_v44 = vpop.f32.mrb[166].mxu0  ;;  %v21474_v1 = vpop.f32.mrb[198].mxu1  ;;  %17401 = vtanh.f32 %v11414_v32 }
0x2100   :  { %v21476_v50 = vpop.f32.mrb[167].mxu0  ;;  %v21478_v21 = vpop.f32.mrb[199].mxu1 }
0x2105   :  { %v21480_v59 = vpop.f32.mrb[168].mxu0  ;;  %v21482_v39 = vpop.f32.mrb[200].mxu1 }
0x2106   :  { %22323 = vst [vmem:[#allocation16_spill] sm:$0xff] %v21482_v39  ;;  %v21484_v31 = vpop.f32.mrb[169].mxu0  ;;  %v21486_v40 = vpop.f32.mrb[201].mxu1 }
0x2107   :  { %22324 = vst [vmem:[#allocation6_spill] sm:$0xff] %v21484_v31  ;;  %22325 = vst [vmem:[#allocation17_spill] sm:$0xff] %v21486_v40  ;;  %v21488_v58 = vpop.f32.mrb[170].mxu0  ;;  %v21490_v14 = vpop.f32.mrb[202].mxu1 }
0x2108   :  { %22326 = vst [vmem:[#allocation7_spill] sm:$0xff] %v21488_v58  ;;  %22327 = vst [vmem:[#allocation18_spill] sm:$0xff] %v21490_v14  ;;  %v21492_v45 = vpop.f32.mrb[171].mxu0  ;;  %v21494_v51 = vpop.f32.mrb[203].mxu1 }
0x2109   :  { %22328 = vst [vmem:[#allocation8_spill] sm:$0xff] %v21492_v45  ;;  %22329 = vst [vmem:[#allocation19_spill] sm:$0xff] %v21494_v51  ;;  %v17402_v38 = vpop.eup %17401 }
0x210a   :  { %v11416_v25 = vmul.f32 %v17402_v38, %v17400_v12  ;;  %v11462_v38 = vld [vmem:[%s22157_s15] sm:$0xf] }
0x210c   :  { %v11429_v43 = vpack.c.bf16 %v11416_v25, %v21157_v55 }
0x210d   :  { %v21497_v2 = vpop.f32.mrb[172].mxu0  ;;  %v21499_v5 = vpop.f32.mrb[204].mxu1 }
0x210e   :  { %22330 = vst [vmem:[#allocation9_spill] sm:$0xff] %v21497_v2  ;;  %22331 = vst [vmem:[#allocation20_spill] sm:$0xff] %v21499_v5  ;;  %v21501_v19 = vpop.f32.mrb[173].mxu0  ;;  %v21503_v63 = vpop.f32.mrb[205].mxu1  ;;  %11707 = vmatmul.mubr.bf16.gmra.mrb[176].mxu0 %v11429_v43  ;;  %11780 = vmatmul.mubr.bf16.gmra.mrb[208].mxu1 %v11429_v43 }
0x210f   :  { %22332 = vst [vmem:[#allocation10_spill] sm:$0xff] %v21501_v19  ;;  %22333 = vst [vmem:[#allocation21_spill] sm:$0xff] %v21503_v63  ;;  %v21505_v62 = vpop.f32.mrb[174].mxu0  ;;  %v21507_v32 = vpop.f32.mrb[206].mxu1  ;;  %12050 = vmatprep.mubr.bf16.mxu0 %v22201_v24  ;;  %12091 = vmatprep.mubr.bf16.mxu1 %v22201_v24  ;;  %v21567_v63 = vrot.slane %v11462_v38, %v22319_v57  ;;  %v21570_v19 = vrot.slane %v11462_v38, %v22322_v46 }
0x2110   :  { %22334 = vst [vmem:[#allocation11_spill] sm:$0xff] %v21505_v62  ;;  %22335 = vst [vmem:[#allocation22_spill] sm:$0xff] %v21507_v32  ;;  %v21511_v12 = vpop.f32.mrb[175].mxu0  ;;  %v21513_v55 = vpop.f32.mrb[207].mxu1 }
0x2111   :  { %22336 = vst [vmem:[#allocation12_spill] sm:$0xff] %v21511_v12  ;;  %22337 = vst [vmem:[#allocation23_spill] sm:$0xff] %v21513_v55  ;;  %v11752_v57 = vadd.f32 %v21466_v34, %v21570_v19 }
0x2116   :  { %12051 = vmatmul.mubr.bf16.vlgmr.msra.gmra.mrb[180].mxu0 %v22201_v24  ;;  %12092 = vmatmul.mubr.bf16.vlgmr.msra.gmra.mrb[212].mxu1 %v22201_v24 }
0x2117   :  { %12327 = vmatpush1.bf16.msra.mxu0 %v21273_v52  ;;  %12368 = vmatpush1.bf16.msra.mxu1 %v21279_v0 }
0x2118   :  { %12328 = vmatprep.subr.bf16.mxu0 %v21291_v16  ;;  %12369 = vmatprep.subr.bf16.mxu1 %v21296_v3 }
0x2119   :  { %12358 = vmatprep.mubr.bf16.mxu0 %v22201_v24  ;;  %12399 = vmatprep.mubr.bf16.mxu1 %v22201_v24 }
0x211b   :  { %12329 = vmatpush1.bf16.msra.mxu0 %v21302_v42  ;;  %12370 = vmatpush1.bf16.msra.mxu1 %v21307_v17 }
0x211c   :  { %12330 = vmatprep.subr.bf16.mxu0 %v21315_v29  ;;  %12371 = vmatprep.subr.bf16.mxu1 %v21320_v53 }
0x211f   :  { %12331 = vmatpush1.bf16.msra.mxu0 %v21326_v28  ;;  %12372 = vmatpush1.bf16.msra.mxu1 %v21331_v13 }
0x2120   :  { %12332 = vmatprep.subr.bf16.mxu0 %v21344_v49  ;;  %12373 = vmatprep.subr.bf16.mxu1 %v21355_v27 }
0x2123   :  { %12333 = vmatpush1.bf16.msra.mxu0 %v21339_v9  ;;  %12374 = vmatpush1.bf16.msra.mxu1 %v21349_v48 }
0x2124   :  { %12334 = vmatprep.subr.bf16.mxu0 %v21363_v11  ;;  %12375 = vmatprep.subr.bf16.mxu1 %v21368_v37 }
0x2127   :  { %12335 = vmatpush1.bf16.msra.mxu0 %v21374_v33  ;;  %12376 = vmatpush1.bf16.msra.mxu1 %v21379_v41 }
0x2128   :  { %12336 = vmatprep.subr.bf16.mxu0 %v21392_v8  ;;  %12377 = vmatprep.subr.bf16.mxu1 %v21403_v54 }
0x212b   :  { %12337 = vmatpush1.bf16.msra.mxu0 %v21387_v56  ;;  %12378 = vmatpush1.bf16.msra.mxu1 %v21397_v35 }
0x212c   :  { %12338 = vmatprep.subr.bf16.mxu0 %v21411_v36  ;;  %12379 = vmatprep.subr.bf16.mxu1 %v21416_v4 }
0x212f   :  { %12339 = vmatpush1.bf16.msra.mxu0 %v21422_v20  ;;  %12380 = vmatpush1.bf16.msra.mxu1 %v21427_v60 }
0x2130   :  { %12340 = vmatprep.subr.bf16.mxu0 %v21440_v10  ;;  %12381 = vmatprep.subr.bf16.mxu1 %v21451_v18 }
0x2133   :  { %12341 = vmatpush1.bf16.msra.mxu0 %v21435_v61  ;;  %12382 = vmatpush1.bf16.msra.mxu1 %v21445_v47 }
0x2134   :  { %12634 = vmatprep.subr.bf16.mxu0 %v21268_v26  ;;  %12675 = vmatprep.subr.bf16.mxu1 %v21284_v15 }
0x21e1   :  { %v21554_v25 = vpop.f32.mrb[176].mxu0  ;;  %v21556_v43 = vpop.f32.mrb[208].mxu1 }
0x21e2   :  { %22338 = vst [vmem:[#allocation13_spill] sm:$0xff] %v21554_v25  ;;  %22339 = vst [vmem:[#allocation24_spill] sm:$0xff] %v21556_v43  ;;  %v21558_v55 = vpop.f32.mrb[177].mxu0  ;;  %v21560_v12 = vpop.f32.mrb[209].mxu1  ;;  %v21577_v43 = vrot.slane %v11462_v38, %v22320_v7 }
0x21e3   :  { %22340 = vst [vmem:[#allocation25_spill] sm:$0xff] %v21558_v55  ;;  %22341 = vst [vmem:[#allocation26_spill] sm:$0xff] %v21560_v12  ;;  %v21562_v32 = vpop.f32.mrb[178].mxu0  ;;  %v21564_v62 = vpop.f32.mrb[210].mxu1  ;;  %v21580_v55 = vrot.slane %v11462_v38, %v22321_v22 }
0x21e4   :  { %22342 = vst [vmem:[#allocation27_spill] sm:$0xff] %v21562_v32  ;;  %22343 = vst [vmem:[#allocation28_spill] sm:$0xff] %v21564_v62  ;;  %v21572_v5 = vpop.f32.mrb[179].mxu0  ;;  %v21574_v2 = vpop.f32.mrb[211].mxu1  ;;  %v11679_v32 = vadd.f32 %v21464_v30, %v21567_v63  ;;  %v11681_v46 = vadd.f32 %v21468_v23, %v21577_v43 }
0x21e5   :  { %22344 = vst [vmem:[#allocation29_spill] sm:$0xff] %v21572_v5  ;;  %22345 = vst [vmem:[#allocation30_spill] sm:$0xff] %v21574_v2  ;;  %v11754_v5 = vadd.f32 %v21470_v6, %v21580_v55 }
0x21e9   :  { %v12052_v62 = vpop.f32.mrb[180].mxu0  ;;  %v12093_v2 = vpop.f32.mrb[212].mxu1 }
0x21ea   :  { %v12100_v12 = vadd.f32 %v12052_v62, %v11679_v32  ;;  %v12102_v7 = vadd.f32 %v12093_v2, %v11752_v57  ;;  %v12054_v25 = vpop.f32.mrb[181].mxu0  ;;  %v12095_v51 = vpop.f32.mrb[213].mxu1  ;;  %v11683_v57 = vadd.f32 %v21472_v44, %v21567_v63 }
0x21eb   :  { %v12101_v22 = vadd.f32 %v12054_v25, %v11681_v46  ;;  %v12103_v38 = vadd.f32 %v12095_v51, %v11754_v5  ;;  %v12056_v45 = vpop.f32.mrb[182].mxu0  ;;  %v12097_v14 = vpop.f32.mrb[214].mxu1  ;;  %v11756_v46 = vadd.f32 %v21474_v1, %v21570_v19 }
0x21ec   :  { %v15841_v30 = vmul.f32 -1.442695, %v12100_v12  ;;  %v12057_v58 = vpop.f32.mrb[183].mxu0  ;;  %v12098_v40 = vpop.f32.mrb[215].mxu1 }
0x21ed   :  { %v15842_v34 = vmul.f32 -1.442695, %v12101_v22  ;;  %v15843_v23 = vmul.f32 -1.442695, %v12103_v38  ;;  %v11758_v22 = vadd.f32 %v21478_v21, %v21580_v55 }
0x21ee   :  { %17403 = vpow2.f32 %v15841_v30 }
0x21ef   :  { %17405 = vpow2.f32 %v15842_v34 }
0x21f0   :  { %17407 = vpow2.f32 %v15843_v23 }
0x21f1   :  { %17409 = vtanh.f32 %v12102_v7  ;;  %v11685_v7 = vadd.f32 %v21476_v50, %v21577_v43 }
0x21f8   :  { %v17404_v31 = vpop.eup %17403 }
0x21f9   :  { %v17406_v39 = vpop.eup %17405  ;;  %v12107_v6 = vadd.f32 1.0, %v17404_v31 }
0x21fa   :  { %v12113_v62 = vadd.f32 1.0, %v17406_v39  ;;  %v17408_v2 = vpop.eup %17407 }
0x21fb   :  { %17411 = vrcp.f32 %v12107_v6  ;;  %v17410_v32 = vpop.eup %17409  ;;  %v12120_v5 = vadd.f32 1.0, %v17408_v2 }
0x21fc   :  { %17413 = vrcp.f32 %v12113_v62 }
0x21fd   :  { %17415 = vrcp.f32 %v12120_v5 }
0x2205   :  { %v17412_v51 = vpop.eup %17411 }
0x2206   :  { %v17414_v45 = vpop.eup %17413  ;;  %v12124_v14 = vmul.f32 %v17412_v51, %v17410_v32 }
0x2207   :  { %v12123_v58 = vmul.f32 0.0, %v17414_v45  ;;  %v17416_v12 = vpop.eup %17415 }
0x2209   :  { %v21590_v40 = vadd.f32 %v12124_v14, %v12123_v58 }
0x220b   :  { %17417 = vtanh.f32 %v21590_v40 }
0x2215   :  { %v17418_v25 = vpop.eup %17417 }
0x2216   :  { %v21593_v31 = vmul.f32 %v17418_v25, %v17416_v12 }
0x2218   :  { %v12133_v39 = vpack.c.bf16 %v21593_v31, %v21593_v31 }
0x221a   :  { %12359 = vmatmul.mubr.bf16.vlgmr.msra.gmra.mrb[184].mxu0 %v12133_v39  ;;  %12400 = vmatmul.mubr.bf16.vlgmr.msra.gmra.mrb[216].mxu1 %v12133_v39 }
0x221b   :  { %12635 = vmatpush1.bf16.msra.mxu0 %v21273_v52  ;;  %12676 = vmatpush1.bf16.msra.mxu1 %v21279_v0 }
0x221c   :  { %12636 = vmatprep.subr.bf16.mxu0 %v21291_v16  ;;  %12677 = vmatprep.subr.bf16.mxu1 %v21296_v3 }
0x221d   :  { %12666 = vmatprep.mubr.bf16.mxu0 %v22201_v24  ;;  %12707 = vmatprep.mubr.bf16.mxu1 %v22201_v24 }
0x221f   :  { %12637 = vmatpush1.bf16.msra.mxu0 %v21302_v42  ;;  %12678 = vmatpush1.bf16.msra.mxu1 %v21307_v17 }
0x2220   :  { %12638 = vmatprep.subr.bf16.mxu0 %v21315_v29  ;;  %12679 = vmatprep.subr.bf16.mxu1 %v21320_v53 }
0x2223   :  { %12639 = vmatpush1.bf16.msra.mxu0 %v21326_v28  ;;  %12680 = vmatpush1.bf16.msra.mxu1 %v21331_v13 }
0x2224   :  { %12640 = vmatprep.subr.bf16.mxu0 %v21344_v49  ;;  %12681 = vmatprep.subr.bf16.mxu1 %v21355_v27 }
0x2227   :  { %12641 = vmatpush1.bf16.msra.mxu0 %v21339_v9  ;;  %12682 = vmatpush1.bf16.msra.mxu1 %v21349_v48 }
0x2228   :  { %12642 = vmatprep.subr.bf16.mxu0 %v21363_v11  ;;  %12683 = vmatprep.subr.bf16.mxu1 %v21368_v37 }
0x222b   :  { %12643 = vmatpush1.bf16.msra.mxu0 %v21374_v33  ;;  %12684 = vmatpush1.bf16.msra.mxu1 %v21379_v41 }
0x222c   :  { %12644 = vmatprep.subr.bf16.mxu0 %v21392_v8  ;;  %12685 = vmatprep.subr.bf16.mxu1 %v21403_v54 }
0x222f   :  { %12645 = vmatpush1.bf16.msra.mxu0 %v21387_v56  ;;  %12686 = vmatpush1.bf16.msra.mxu1 %v21397_v35 }
0x2230   :  { %12646 = vmatprep.subr.bf16.mxu0 %v21411_v36  ;;  %12687 = vmatprep.subr.bf16.mxu1 %v21416_v4 }
0x2233   :  { %12647 = vmatpush1.bf16.msra.mxu0 %v21422_v20  ;;  %12688 = vmatpush1.bf16.msra.mxu1 %v21427_v60 }
0x2234   :  { %12648 = vmatprep.subr.bf16.mxu0 %v21440_v10  ;;  %12689 = vmatprep.subr.bf16.mxu1 %v21451_v18 }
0x2237   :  { %12649 = vmatpush1.bf16.msra.mxu0 %v21435_v61  ;;  %12690 = vmatpush1.bf16.msra.mxu1 %v21445_v47 }
0x2238   :  { %12942 = vmatprep.subr.bf16.mxu0 %v21268_v26  ;;  %12983 = vmatprep.subr.bf16.mxu1 %v21284_v15 }
0x22ed   :  { %v12360_v38 = vpop.f32.mrb[184].mxu0  ;;  %v12401_v30 = vpop.f32.mrb[216].mxu1 }
0x22ee   :  { %v12408_v34 = vadd.f32 %v12360_v38, %v11683_v57  ;;  %v12410_v23 = vadd.f32 %v12401_v30, %v11756_v46  ;;  %v12362_v6 = vpop.f32.mrb[185].mxu0  ;;  %v12403_v26 = vpop.f32.mrb[217].mxu1 }
0x22ef   :  { %v12409_v62 = vadd.f32 %v12362_v6, %v11685_v7  ;;  %v12411_v15 = vadd.f32 %v12403_v26, %v11758_v22  ;;  %v12364_v2 = vpop.f32.mrb[186].mxu0  ;;  %v12405_v32 = vpop.f32.mrb[218].mxu1 }
0x22f0   :  { %v15876_v44 = vmul.f32 -1.442695, %v12408_v34  ;;  %v12365_v51 = vpop.f32.mrb[187].mxu0  ;;  %v12406_v45 = vpop.f32.mrb[219].mxu1 }
0x22f1   :  { %v15877_v1 = vmul.f32 -1.442695, %v12409_v62  ;;  %v15878_v50 = vmul.f32 -1.442695, %v12411_v15  ;;  %v21700_v51 = vld [vmem:[%s22156_s14 + $0x4] ss:$16 sps:$4 sm:$0xff]  }
0x22f2   :  { %17419 = vpow2.f32 %v15876_v44  ;;  %v21705_v45 = vld [vmem:[%s22156_s14 + $0xc] ss:$16 sps:$4 sm:$0xff]  }
0x22f3   :  { %17421 = vpow2.f32 %v15877_v1  ;;  %v21710_v1 = vld [vmem:[%s22156_s14] ss:$16 sps:$4 sm:$0xff]  }
0x22f4   :  { %17423 = vpow2.f32 %v15878_v50  ;;  %v21715_v50 = vld [vmem:[%s22156_s14 + $0x8] ss:$16 sps:$4 sm:$0xff]  }
0x22f5   :  { %17425 = vtanh.f32 %v12410_v23 }
0x22fc   :  { %v17420_v14 = vpop.eup %17419 }
0x22fd   :  { %v17422_v5 = vpop.eup %17421  ;;  %v12415_v21 = vadd.f32 1.0, %v17420_v14  ;;  %v21724_v14 = vld [vmem:[%s22156_s14 + $0x24] ss:$16 sps:$4 sm:$0xff]  }
0x22fe   :  { %v12421_v58 = vadd.f32 1.0, %v17422_v5  ;;  %v17424_v12 = vpop.eup %17423  ;;  %v21729_v5 = vld [vmem:[%s22156_s14 + $0x2c] ss:$16 sps:$4 sm:$0xff]  }
0x22ff   :  { %17427 = vrcp.f32 %v12415_v21  ;;  %v17426_v25 = vpop.eup %17425  ;;  %v12428_v7 = vadd.f32 1.0, %v17424_v12  ;;  %v21734_v21 = vld [vmem:[%s22156_s14 + $0x20] ss:$16 sps:$4 sm:$0xff]   ;;  %v21748_v12 = vld [vmem:[%s22156_s14 + $0x44] ss:$16 sps:$4 sm:$0xff]  }
0x2300   :  { %17429 = vrcp.f32 %v12421_v58  ;;  %v21739_v58 = vld [vmem:[%s22156_s14 + $0x28] ss:$16 sps:$4 sm:$0xff]  }
0x2301   :  { %17431 = vrcp.f32 %v12428_v7  ;;  %v21777_v7 = vld [vmem:[%s22156_s14 + $0x6c] ss:$16 sps:$4 sm:$0xff]  }
0x2309   :  { %v17428_v39 = vpop.eup %17427 }
0x230a   :  { %v17430_v57 = vpop.eup %17429  ;;  %v12432_v46 = vmul.f32 %v17428_v39, %v17426_v25  ;;  %v21753_v25 = vld [vmem:[%s22156_s14 + $0x4c] ss:$16 sps:$4 sm:$0xff]   ;;  %v21758_v39 = vld [vmem:[%s22156_s14 + $0x40] ss:$16 sps:$4 sm:$0xff]  }
0x230b   :  { %v12431_v22 = vmul.f32 %v17430_v57, %v21590_v40  ;;  %v17432_v30 = vpop.eup %17431  ;;  %v21763_v57 = vld [vmem:[%s22156_s14 + $0x48] ss:$16 sps:$4 sm:$0xff]  }
0x230d   :  { %v21640_v38 = vadd.f32 %v12432_v46, %v12431_v22  ;;  %v21772_v46 = vld [vmem:[%s22156_s14 + $0x64] ss:$16 sps:$4 sm:$0xff]   ;;  %v21782_v22 = vld [vmem:[%s22156_s14 + $0x60] ss:$16 sps:$4 sm:$0xff]  }
0x230f   :  { %17433 = vtanh.f32 %v21640_v38 }
0x2319   :  { %v17434_v34 = vpop.eup %17433 }
0x231a   :  { %v21643_v6 = vmul.f32 %v17434_v34, %v17432_v30  ;;  %v21796_v30 = vld [vmem:[%s22156_s14 + $0x84] ss:$16 sps:$4 sm:$0xff]   ;;  %v21801_v34 = vld [vmem:[%s22156_s14 + $0x8c] ss:$16 sps:$4 sm:$0xff]  }
0x231c   :  { %v12441_v23 = vpack.c.bf16 %v21643_v6, %v21643_v6 }
0x231e   :  { %12667 = vmatmul.mubr.bf16.vlgmr.msra.gmra.mrb[188].mxu0 %v12441_v23  ;;  %12708 = vmatmul.mubr.bf16.vlgmr.msra.gmra.mrb[220].mxu1 %v12441_v23  ;;  %v21806_v23 = vld [vmem:[%s22156_s14 + $0x80] ss:$16 sps:$4 sm:$0xff]  }
0x231f   :  { %12943 = vmatpush1.bf16.msra.mxu0 %v21273_v52  ;;  %12984 = vmatpush1.bf16.msra.mxu1 %v21279_v0  ;;  %v11689_v52 = vadd.f32 %v21480_v59, %v21567_v63  ;;  %v22346_v0 = vld [vmem:[#allocation16_spill] sm:$0xff] }
0x2320   :  { %12944 = vmatprep.subr.bf16.mxu0 %v21291_v16  ;;  %12985 = vmatprep.subr.bf16.mxu1 %v21296_v3  ;;  %v11762_v16 = vadd.f32 %v22346_v0, %v21570_v19  ;;  %v22347_v3 = vld [vmem:[#allocation6_spill] sm:$0xff] }
0x2321   :  { %12974 = vmatprep.mubr.bf16.mxu0 %v22201_v24  ;;  %13015 = vmatprep.mubr.bf16.mxu1 %v22201_v24  ;;  %v21818_v0 = vld [vmem:[%s22156_s14 + $0xa4] ss:$16 sps:$4 sm:$0xff]  }
0x2323   :  { %12945 = vmatpush1.bf16.msra.mxu0 %v21302_v42  ;;  %12986 = vmatpush1.bf16.msra.mxu1 %v21307_v17  ;;  %v11691_v42 = vadd.f32 %v22347_v3, %v21577_v43  ;;  %v22348_v17 = vld [vmem:[#allocation17_spill] sm:$0xff] }
0x2324   :  { %12946 = vmatprep.subr.bf16.mxu0 %v21315_v29  ;;  %12987 = vmatprep.subr.bf16.mxu1 %v21320_v53  ;;  %v11764_v29 = vadd.f32 %v22348_v17, %v21580_v55  ;;  %v21830_v3 = vld [vmem:[%s22156_s14 + $0xa8] ss:$16 sps:$4 sm:$0xff]   ;;  %v21841_v17 = vld [vmem:[%s22156_s14 + $0xc4] ss:$16 sps:$4 sm:$0xff]  }
0x2327   :  { %12947 = vmatpush1.bf16.msra.mxu0 %v21326_v28  ;;  %12988 = vmatpush1.bf16.msra.mxu1 %v21331_v13 }
0x2328   :  { %12948 = vmatprep.subr.bf16.mxu0 %v21344_v49  ;;  %12989 = vmatprep.subr.bf16.mxu1 %v21355_v27 }
0x232b   :  { %12949 = vmatpush1.bf16.msra.mxu0 %v21339_v9  ;;  %12990 = vmatpush1.bf16.msra.mxu1 %v21349_v48 }
0x232c   :  { %12950 = vmatprep.subr.bf16.mxu0 %v21363_v11  ;;  %12991 = vmatprep.subr.bf16.mxu1 %v21368_v37 }
0x232f   :  { %12951 = vmatpush1.bf16.msra.mxu0 %v21374_v33  ;;  %12992 = vmatpush1.bf16.msra.mxu1 %v21379_v41 }
0x2330   :  { %12952 = vmatprep.subr.bf16.mxu0 %v21392_v8  ;;  %12993 = vmatprep.subr.bf16.mxu1 %v21403_v54 }
0x2333   :  { %12953 = vmatpush1.bf16.msra.mxu0 %v21387_v56  ;;  %12994 = vmatpush1.bf16.msra.mxu1 %v21397_v35 }
0x2334   :  { %12954 = vmatprep.subr.bf16.mxu0 %v21411_v36  ;;  %12995 = vmatprep.subr.bf16.mxu1 %v21416_v4 }
0x2337   :  { %12955 = vmatpush1.bf16.msra.mxu0 %v21422_v20  ;;  %12996 = vmatpush1.bf16.msra.mxu1 %v21427_v60 }
0x2338   :  { %12956 = vmatprep.subr.bf16.mxu0 %v21440_v10  ;;  %12997 = vmatprep.subr.bf16.mxu1 %v21451_v18 }
0x233b   :  { %12957 = vmatpush1.bf16.msra.mxu0 %v21435_v61  ;;  %12998 = vmatpush1.bf16.msra.mxu1 %v21445_v47 }
0x233c   :  { %13250 = vmatprep.subr.bf16.mxu0 %v21700_v51  ;;  %13291 = vmatprep.subr.bf16.mxu1 %v21705_v45 }
0x23f1   :  { %v12668_v53 = vpop.f32.mrb[188].mxu0  ;;  %v12709_v28 = vpop.f32.mrb[220].mxu1 }
0x23f2   :  { %v12716_v13 = vadd.f32 %v12668_v53, %v11689_v52  ;;  %v12718_v9 = vadd.f32 %v12709_v28, %v11762_v16  ;;  %v12670_v49 = vpop.f32.mrb[189].mxu0  ;;  %v12711_v48 = vpop.f32.mrb[221].mxu1  ;;  %v21811_v52 = vld [vmem:[%s22156_s14 + $0x88] ss:$16 sps:$4 sm:$0xff]   ;;  %v21825_v16 = vld [vmem:[%s22156_s14 + $0xa0] ss:$16 sps:$4 sm:$0xff]  }
0x23f3   :  { %v12717_v27 = vadd.f32 %v12670_v49, %v11691_v42  ;;  %v12719_v11 = vadd.f32 %v12711_v48, %v11764_v29  ;;  %v12672_v37 = vpop.f32.mrb[190].mxu0  ;;  %v12713_v33 = vpop.f32.mrb[222].mxu1  ;;  %v21835_v42 = vld [vmem:[%s22156_s14 + $0xac] ss:$16 sps:$4 sm:$0xff]   ;;  %v21854_v53 = vld [vmem:[%s22156_s14 + $0xc0] ss:$16 sps:$4 sm:$0xff]  }
0x23f4   :  { %v15911_v41 = vmul.f32 -1.442695, %v12716_v13  ;;  %v12673_v56 = vpop.f32.mrb[191].mxu0  ;;  %v12714_v8 = vpop.f32.mrb[223].mxu1  ;;  %v21846_v29 = vld [vmem:[%s22156_s14 + $0xcc] ss:$16 sps:$4 sm:$0xff]  }
0x23f5   :  { %v15912_v35 = vmul.f32 -1.442695, %v12717_v27  ;;  %v15913_v54 = vmul.f32 -1.442695, %v12719_v11  ;;  %v21859_v28 = vld [vmem:[%s22156_s14 + $0xc8] ss:$16 sps:$4 sm:$0xff]  }
0x23f6   :  { %17435 = vpow2.f32 %v15911_v41  ;;  %v21866_v13 = vld [vmem:[%s22156_s14 + $0xe4] ss:$16 sps:$4 sm:$0xff]   ;;  %v21878_v49 = vld [vmem:[%s22156_s14 + $0xe0] ss:$16 sps:$4 sm:$0xff]   ;;  %v21883_v48 = vld [vmem:[%s22156_s14 + $0xe8] ss:$16 sps:$4 sm:$0xff]  }
0x23f7   :  { %17437 = vpow2.f32 %v15912_v35  ;;  %v22349_v27 = vld [vmem:[#allocation7_spill] sm:$0xff]  ;;  %v22350_v37 = vld [vmem:[#allocation18_spill] sm:$0xff]  ;;  %v22351_v41 = vld [vmem:[#allocation8_spill] sm:$0xff] }
0x23f8   :  { %17439 = vpow2.f32 %v15913_v54  ;;  %v11693_v11 = vadd.f32 %v22349_v27, %v21567_v63  ;;  %v11766_v33 = vadd.f32 %v22350_v37, %v21570_v19  ;;  %v11695_v56 = vadd.f32 %v22351_v41, %v21577_v43  ;;  %v22352_v8 = vld [vmem:[#allocation19_spill] sm:$0xff] }
0x23f9   :  { %17441 = vtanh.f32 %v12718_v9  ;;  %v21871_v9 = vld [vmem:[%s22156_s14 + $0xec] ss:$16 sps:$4 sm:$0xff]   ;;  %v11768_v35 = vadd.f32 %v22352_v8, %v21580_v55 }
0x2400   :  { %v17436_v36 = vpop.eup %17435 }
0x2401   :  { %v17438_v4 = vpop.eup %17437  ;;  %v12723_v20 = vadd.f32 1.0, %v17436_v36 }
0x2402   :  { %v12729_v60 = vadd.f32 1.0, %v17438_v4  ;;  %v17440_v61 = vpop.eup %17439 }
0x2403   :  { %17443 = vrcp.f32 %v12723_v20  ;;  %v17442_v10 = vpop.eup %17441  ;;  %v12736_v40 = vadd.f32 1.0, %v17440_v61 }
0x2404   :  { %17445 = vrcp.f32 %v12729_v60 }
0x2405   :  { %17447 = vrcp.f32 %v12736_v40 }
0x240d   :  { %v17444_v47 = vpop.eup %17443 }
0x240e   :  { %v17446_v18 = vpop.eup %17445  ;;  %v12740_v59 = vmul.f32 %v17444_v47, %v17442_v10 }
0x240f   :  { %v12739_v26 = vmul.f32 %v17446_v18, %v21640_v38  ;;  %v17448_v15 = vpop.eup %17447  ;;  %v21787_v38 = vld [vmem:[%s22156_s14 + $0x68] ss:$16 sps:$4 sm:$0xff]  }
0x2411   :  { %v21688_v62 = vadd.f32 %v12740_v59, %v12739_v26 }
0x2413   :  { %17449 = vtanh.f32 %v21688_v62 }
0x241d   :  { %v17450_v2 = vpop.eup %17449 }
0x241e   :  { %v21691_v32 = vmul.f32 %v17450_v2, %v17448_v15 }
0x2420   :  { %v12749_v44 = vpack.c.bf16 %v21691_v32, %v21691_v32 }
0x2422   :  { %12975 = vmatmul.mubr.bf16.vlgmr.msra.gmra.mrb[192].mxu0 %v12749_v44  ;;  %13016 = vmatmul.mubr.bf16.vlgmr.msra.gmra.mrb[224].mxu1 %v12749_v44 }
0x2423   :  { %13282 = vmatprep.mubr.bf16.mxu0 %v22201_v24  ;;  %13323 = vmatprep.mubr.bf16.mxu1 %v22201_v24 }
0x2424   :  { %13251 = vmatpush1.bf16.msra.mxu0 %v21710_v1  ;;  %13292 = vmatpush1.bf16.msra.mxu1 %v21715_v50 }
0x2425   :  { %13252 = vmatprep.subr.bf16.mxu0 %v21724_v14  ;;  %13293 = vmatprep.subr.bf16.mxu1 %v21729_v5 }
0x2428   :  { %13253 = vmatpush1.bf16.msra.mxu0 %v21734_v21  ;;  %13294 = vmatpush1.bf16.msra.mxu1 %v21739_v58 }
0x2429   :  { %13254 = vmatprep.subr.bf16.mxu0 %v21748_v12  ;;  %13295 = vmatprep.subr.bf16.mxu1 %v21753_v25 }
0x242c   :  { %13255 = vmatpush1.bf16.msra.mxu0 %v21758_v39  ;;  %13296 = vmatpush1.bf16.msra.mxu1 %v21763_v57 }
0x242d   :  { %13256 = vmatprep.subr.bf16.mxu0 %v21772_v46  ;;  %13297 = vmatprep.subr.bf16.mxu1 %v21777_v7 }
0x2430   :  { %13257 = vmatpush1.bf16.msra.mxu0 %v21782_v22  ;;  %13298 = vmatpush1.bf16.msra.mxu1 %v21787_v38 }
0x2431   :  { %13258 = vmatprep.subr.bf16.mxu0 %v21796_v30  ;;  %13299 = vmatprep.subr.bf16.mxu1 %v21801_v34 }
0x2434   :  { %13259 = vmatpush1.bf16.msra.mxu0 %v21806_v23  ;;  %13300 = vmatpush1.bf16.msra.mxu1 %v21811_v52 }
0x2435   :  { %13260 = vmatprep.subr.bf16.mxu0 %v21818_v0  ;;  %13301 = vmatprep.subr.bf16.mxu1 %v21835_v42 }
0x2438   :  { %13261 = vmatpush1.bf16.msra.mxu0 %v21825_v16  ;;  %13302 = vmatpush1.bf16.msra.mxu1 %v21830_v3 }
0x2439   :  { %13262 = vmatprep.subr.bf16.mxu0 %v21841_v17  ;;  %13303 = vmatprep.subr.bf16.mxu1 %v21846_v29 }
0x243c   :  { %13263 = vmatpush1.bf16.msra.mxu0 %v21854_v53  ;;  %13304 = vmatpush1.bf16.msra.mxu1 %v21859_v28 }
0x243d   :  { %13264 = vmatprep.subr.bf16.mxu0 %v21866_v13  ;;  %13305 = vmatprep.subr.bf16.mxu1 %v21871_v9 }
0x2440   :  { %13265 = vmatpush1.bf16.msra.mxu0 %v21878_v49  ;;  %13306 = vmatpush1.bf16.msra.mxu1 %v21883_v48 }
0x2441   :  { %13558 = vmatprep.subr.bf16.mxu0 %v21700_v51  ;;  %13599 = vmatprep.subr.bf16.mxu1 %v21705_v45 }
0x24f5   :  { %v12976_v54 = vpop.f32.mrb[192].mxu0  ;;  %v13017_v36 = vpop.f32.mrb[224].mxu1 }
0x24f6   :  { %v13024_v4 = vadd.f32 %v12976_v54, %v11693_v11  ;;  %v13026_v20 = vadd.f32 %v13017_v36, %v11766_v33  ;;  %v12978_v60 = vpop.f32.mrb[193].mxu0  ;;  %v13019_v61 = vpop.f32.mrb[225].mxu1 }
0x24f7   :  { %v13025_v10 = vadd.f32 %v12978_v60, %v11695_v56  ;;  %v13027_v47 = vadd.f32 %v13019_v61, %v11768_v35  ;;  %v12980_v18 = vpop.f32.mrb[194].mxu0  ;;  %v13021_v59 = vpop.f32.mrb[226].mxu1 }
0x24f8   :  { %v15946_v40 = vmul.f32 -1.442695, %v13024_v4  ;;  %v12981_v26 = vpop.f32.mrb[195].mxu0  ;;  %v13022_v15 = vpop.f32.mrb[227].mxu1  ;;  %v22354_v59 = vld [vmem:[#allocation20_spill] sm:$0xff] }
0x24f9   :  { %v15947_v2 = vmul.f32 -1.442695, %v13025_v10  ;;  %v15948_v44 = vmul.f32 -1.442695, %v13027_v47  ;;  %v22355_v26 = vld [vmem:[#allocation10_spill] sm:$0xff] }
0x24fa   :  { %17451 = vpow2.f32 %v15946_v40  ;;  %v11772_v40 = vadd.f32 %v22354_v59, %v21570_v19  ;;  %v11701_v15 = vadd.f32 %v22355_v26, %v21577_v43 }
0x24fb   :  { %17453 = vpow2.f32 %v15947_v2  ;;  %v22356_v2 = vld [vmem:[#allocation21_spill] sm:$0xff] }
0x24fc   :  { %17455 = vpow2.f32 %v15948_v44  ;;  %v11774_v44 = vadd.f32 %v22356_v2, %v21580_v55 }
0x24fd   :  { %17457 = vtanh.f32 %v13026_v20 }
0x2504   :  { %v17452_v27 = vpop.eup %17451 }
0x2505   :  { %v17454_v37 = vpop.eup %17453  ;;  %v13031_v41 = vadd.f32 1.0, %v17452_v27 }
0x2506   :  { %v13037_v11 = vadd.f32 1.0, %v17454_v37  ;;  %v17456_v33 = vpop.eup %17455 }
0x2507   :  { %17459 = vrcp.f32 %v13031_v41  ;;  %v17458_v56 = vpop.eup %17457  ;;  %v13044_v36 = vadd.f32 1.0, %v17456_v33 }
0x2508   :  { %17461 = vrcp.f32 %v13037_v11 }
0x2509   :  { %17463 = vrcp.f32 %v13044_v36 }
0x2511   :  { %v17460_v8 = vpop.eup %17459 }
0x2512   :  { %v17462_v35 = vpop.eup %17461  ;;  %v13048_v54 = vmul.f32 %v17460_v8, %v17458_v56 }
0x2513   :  { %v13047_v4 = vmul.f32 %v17462_v35, %v21688_v62  ;;  %v17464_v61 = vpop.eup %17463  ;;  %v22353_v62 = vld [vmem:[#allocation9_spill] sm:$0xff] }
0x2514   :  { %v11699_v18 = vadd.f32 %v22353_v62, %v21567_v63 }
0x2515   :  { %v21900_v60 = vadd.f32 %v13048_v54, %v13047_v4 }
0x2517   :  { %17465 = vtanh.f32 %v21900_v60 }
0x2521   :  { %v17466_v10 = vpop.eup %17465 }
0x2522   :  { %v21903_v47 = vmul.f32 %v17466_v10, %v17464_v61 }
0x2524   :  { %v13057_v20 = vpack.c.bf16 %v21903_v47, %v21903_v47 }
0x2526   :  { %13283 = vmatmul.mubr.bf16.vlgmr.msra.gmra.mrb[196].mxu0 %v13057_v20  ;;  %13324 = vmatmul.mubr.bf16.vlgmr.msra.gmra.mrb[228].mxu1 %v13057_v20 }
0x2527   :  { %13559 = vmatpush1.bf16.msra.mxu0 %v21710_v1  ;;  %13600 = vmatpush1.bf16.msra.mxu1 %v21715_v50 }
0x2528   :  { %13560 = vmatprep.subr.bf16.mxu0 %v21724_v14  ;;  %13601 = vmatprep.subr.bf16.mxu1 %v21729_v5 }
0x2529   :  { %13590 = vmatprep.mubr.bf16.mxu0 %v22201_v24  ;;  %13631 = vmatprep.mubr.bf16.mxu1 %v22201_v24 }
0x252b   :  { %13561 = vmatpush1.bf16.msra.mxu0 %v21734_v21  ;;  %13602 = vmatpush1.bf16.msra.mxu1 %v21739_v58 }
0x252c   :  { %13562 = vmatprep.subr.bf16.mxu0 %v21748_v12  ;;  %13603 = vmatprep.subr.bf16.mxu1 %v21753_v25 }
0x252f   :  { %13563 = vmatpush1.bf16.msra.mxu0 %v21758_v39  ;;  %13604 = vmatpush1.bf16.msra.mxu1 %v21763_v57 }
0x2530   :  { %13564 = vmatprep.subr.bf16.mxu0 %v21772_v46  ;;  %13605 = vmatprep.subr.bf16.mxu1 %v21777_v7 }
0x2533   :  { %13565 = vmatpush1.bf16.msra.mxu0 %v21782_v22  ;;  %13606 = vmatpush1.bf16.msra.mxu1 %v21787_v38 }
0x2534   :  { %13566 = vmatprep.subr.bf16.mxu0 %v21796_v30  ;;  %13607 = vmatprep.subr.bf16.mxu1 %v21801_v34 }
0x2537   :  { %13567 = vmatpush1.bf16.msra.mxu0 %v21806_v23  ;;  %13608 = vmatpush1.bf16.msra.mxu1 %v21811_v52 }
0x2538   :  { %13568 = vmatprep.subr.bf16.mxu0 %v21818_v0  ;;  %13609 = vmatprep.subr.bf16.mxu1 %v21835_v42 }
0x253b   :  { %13569 = vmatpush1.bf16.msra.mxu0 %v21825_v16  ;;  %13610 = vmatpush1.bf16.msra.mxu1 %v21830_v3 }
0x253c   :  { %13570 = vmatprep.subr.bf16.mxu0 %v21841_v17  ;;  %13611 = vmatprep.subr.bf16.mxu1 %v21846_v29 }
0x253f   :  { %13571 = vmatpush1.bf16.msra.mxu0 %v21854_v53  ;;  %13612 = vmatpush1.bf16.msra.mxu1 %v21859_v28 }
0x2540   :  { %13572 = vmatprep.subr.bf16.mxu0 %v21866_v13  ;;  %13613 = vmatprep.subr.bf16.mxu1 %v21871_v9 }
0x2543   :  { %13573 = vmatpush1.bf16.msra.mxu0 %v21878_v49  ;;  %13614 = vmatpush1.bf16.msra.mxu1 %v21883_v48 }
0x2544   :  { %13866 = vmatprep.subr.bf16.mxu0 %v21700_v51  ;;  %13907 = vmatprep.subr.bf16.mxu1 %v21705_v45 }
0x25f9   :  { %v13284_v27 = vpop.f32.mrb[196].mxu0  ;;  %v13325_v37 = vpop.f32.mrb[228].mxu1 }
0x25fa   :  { %v13332_v41 = vadd.f32 %v13284_v27, %v11699_v18  ;;  %v13334_v11 = vadd.f32 %v13325_v37, %v11772_v40  ;;  %v13286_v33 = vpop.f32.mrb[197].mxu0  ;;  %v13327_v56 = vpop.f32.mrb[229].mxu1 }
0x25fb   :  { %v13333_v8 = vadd.f32 %v13286_v33, %v11701_v15  ;;  %v13335_v35 = vadd.f32 %v13327_v56, %v11774_v44  ;;  %v13288_v54 = vpop.f32.mrb[198].mxu0  ;;  %v13329_v36 = vpop.f32.mrb[230].mxu1 }
0x25fc   :  { %v15981_v4 = vmul.f32 -1.442695, %v13332_v41  ;;  %v13289_v61 = vpop.f32.mrb[199].mxu0  ;;  %v13330_v10 = vpop.f32.mrb[231].mxu1 }
0x25fd   :  { %v15982_v20 = vmul.f32 -1.442695, %v13333_v8  ;;  %v15983_v62 = vmul.f32 -1.442695, %v13335_v35  ;;  %v22359_v10 = vld [vmem:[#allocation12_spill] sm:$0xff] }
0x25fe   :  { %17467 = vpow2.f32 %v15981_v4  ;;  %v22358_v4 = vld [vmem:[#allocation22_spill] sm:$0xff] }
0x25ff   :  { %17469 = vpow2.f32 %v15982_v20  ;;  %v11776_v61 = vadd.f32 %v22358_v4, %v21570_v19  ;;  %v11705_v20 = vadd.f32 %v22359_v10, %v21577_v43 }
0x2600   :  { %17471 = vpow2.f32 %v15983_v62  ;;  %v22360_v62 = vld [vmem:[#allocation23_spill] sm:$0xff] }
0x2601   :  { %17473 = vtanh.f32 %v13334_v11 }
0x2608   :  { %v17468_v59 = vpop.eup %17467 }
0x2609   :  { %v17470_v26 = vpop.eup %17469  ;;  %v13339_v2 = vadd.f32 1.0, %v17468_v59  ;;  %v11778_v59 = vadd.f32 %v22360_v62, %v21580_v55 }
0x260a   :  { %v13345_v18 = vadd.f32 1.0, %v17470_v26  ;;  %v17472_v40 = vpop.eup %17471 }
0x260b   :  { %17475 = vrcp.f32 %v13339_v2  ;;  %v17474_v15 = vpop.eup %17473  ;;  %v13352_v41 = vadd.f32 1.0, %v17472_v40 }
0x260c   :  { %17477 = vrcp.f32 %v13345_v18 }
0x260d   :  { %17479 = vrcp.f32 %v13352_v41 }
0x2615   :  { %v17476_v44 = vpop.eup %17475 }
0x2616   :  { %v17478_v27 = vpop.eup %17477  ;;  %v13356_v37 = vmul.f32 %v17476_v44, %v17474_v15 }
0x2617   :  { %v13355_v33 = vmul.f32 %v17478_v27, %v21900_v60  ;;  %v17480_v8 = vpop.eup %17479  ;;  %v22357_v60 = vld [vmem:[#allocation11_spill] sm:$0xff] }
0x2618   :  { %v11703_v36 = vadd.f32 %v22357_v60, %v21567_v63 }
0x2619   :  { %v21950_v56 = vadd.f32 %v13356_v37, %v13355_v33 }
0x261b   :  { %17481 = vtanh.f32 %v21950_v56 }
0x2625   :  { %v17482_v35 = vpop.eup %17481 }
0x2626   :  { %v21953_v54 = vmul.f32 %v17482_v35, %v17480_v8 }
0x2628   :  { %v13365_v11 = vpack.c.bf16 %v21953_v54, %v21953_v54 }
0x262a   :  { %13591 = vmatmul.mubr.bf16.vlgmr.msra.gmra.mrb[200].mxu0 %v13365_v11  ;;  %13632 = vmatmul.mubr.bf16.vlgmr.msra.gmra.mrb[232].mxu1 %v13365_v11 }
0x262b   :  { %13867 = vmatpush1.bf16.msra.mxu0 %v21710_v1  ;;  %13908 = vmatpush1.bf16.msra.mxu1 %v21715_v50 }
0x262c   :  { %13868 = vmatprep.subr.bf16.mxu0 %v21724_v14  ;;  %13909 = vmatprep.subr.bf16.mxu1 %v21729_v5 }
0x262d   :  { %13898 = vmatprep.mubr.bf16.mxu0 %v22201_v24  ;;  %13939 = vmatprep.mubr.bf16.mxu1 %v22201_v24 }
0x262f   :  { %13869 = vmatpush1.bf16.msra.mxu0 %v21734_v21  ;;  %13910 = vmatpush1.bf16.msra.mxu1 %v21739_v58 }
0x2630   :  { %13870 = vmatprep.subr.bf16.mxu0 %v21748_v12  ;;  %13911 = vmatprep.subr.bf16.mxu1 %v21753_v25 }
0x2633   :  { %13871 = vmatpush1.bf16.msra.mxu0 %v21758_v39  ;;  %13912 = vmatpush1.bf16.msra.mxu1 %v21763_v57 }
0x2634   :  { %13872 = vmatprep.subr.bf16.mxu0 %v21772_v46  ;;  %13913 = vmatprep.subr.bf16.mxu1 %v21777_v7 }
0x2637   :  { %13873 = vmatpush1.bf16.msra.mxu0 %v21782_v22  ;;  %13914 = vmatpush1.bf16.msra.mxu1 %v21787_v38 }
0x2638   :  { %13874 = vmatprep.subr.bf16.mxu0 %v21796_v30  ;;  %13915 = vmatprep.subr.bf16.mxu1 %v21801_v34 }
0x263b   :  { %13875 = vmatpush1.bf16.msra.mxu0 %v21806_v23  ;;  %13916 = vmatpush1.bf16.msra.mxu1 %v21811_v52 }
0x263c   :  { %13876 = vmatprep.subr.bf16.mxu0 %v21818_v0  ;;  %13917 = vmatprep.subr.bf16.mxu1 %v21835_v42 }
0x263f   :  { %13877 = vmatpush1.bf16.msra.mxu0 %v21825_v16  ;;  %13918 = vmatpush1.bf16.msra.mxu1 %v21830_v3 }
0x2640   :  { %13878 = vmatprep.subr.bf16.mxu0 %v21841_v17  ;;  %13919 = vmatprep.subr.bf16.mxu1 %v21846_v29 }
0x2643   :  { %13879 = vmatpush1.bf16.msra.mxu0 %v21854_v53  ;;  %13920 = vmatpush1.bf16.msra.mxu1 %v21859_v28 }
0x2644   :  { %13880 = vmatprep.subr.bf16.mxu0 %v21866_v13  ;;  %13921 = vmatprep.subr.bf16.mxu1 %v21871_v9 }
0x2647   :  { %13881 = vmatpush1.bf16.msra.mxu0 %v21878_v49  ;;  %13922 = vmatpush1.bf16.msra.mxu1 %v21883_v48 }
0x2648   :  { %14174 = vmatprep.subr.bf16.mxu0 %v21700_v51  ;;  %14215 = vmatprep.subr.bf16.mxu1 %v21705_v45 }
0x26fd   :  { %v13592_v26 = vpop.f32.mrb[200].mxu0  ;;  %v13633_v2 = vpop.f32.mrb[232].mxu1 }
0x26fe   :  { %v13640_v18 = vadd.f32 %v13592_v26, %v11703_v36  ;;  %v13642_v40 = vadd.f32 %v13633_v2, %v11776_v61  ;;  %v13594_v15 = vpop.f32.mrb[201].mxu0  ;;  %v13635_v51 = vpop.f32.mrb[233].mxu1 }
0x26ff   :  { %v13641_v44 = vadd.f32 %v13594_v15, %v11705_v20  ;;  %v13643_v45 = vadd.f32 %v13635_v51, %v11778_v59  ;;  %v13596_v27 = vpop.f32.mrb[202].mxu0  ;;  %v13637_v37 = vpop.f32.mrb[234].mxu1 }
0x2700   :  { %v16016_v41 = vmul.f32 -1.442695, %v13640_v18  ;;  %v13597_v33 = vpop.f32.mrb[203].mxu0  ;;  %v13638_v8 = vpop.f32.mrb[235].mxu1 }
0x2701   :  { %v16017_v35 = vmul.f32 -1.442695, %v13641_v44  ;;  %v16018_v11 = vmul.f32 -1.442695, %v13643_v45 }
0x2702   :  { %17483 = vpow2.f32 %v16016_v41 }
0x2703   :  { %17485 = vpow2.f32 %v16017_v35 }
0x2704   :  { %17487 = vpow2.f32 %v16018_v11 }
0x2705   :  { %17489 = vtanh.f32 %v13642_v40 }
0x270c   :  { %v17484_v60 = vpop.eup %17483 }
0x270d   :  { %v17486_v4 = vpop.eup %17485  ;;  %v13647_v10 = vadd.f32 1.0, %v17484_v60 }
0x270e   :  { %v13653_v36 = vadd.f32 1.0, %v17486_v4  ;;  %v17488_v61 = vpop.eup %17487  ;;  %v16884_v4 = vld [vmem:[%s22158_s16 + $0x8] sm:$0xff]  }
0x270f   :  { %17491 = vrcp.f32 %v13647_v10  ;;  %v17490_v20 = vpop.eup %17489  ;;  %v13660_v2 = vadd.f32 1.0, %v17488_v61  ;;  %v14293_v10 = vpack.c.bf16 %v21643_v6, %v21593_v31  ;;  %v16886_v61 = vld [vmem:[%s22158_s16 + $0x18] sm:$0xff]   ;;  %v16887_v31 = vld [vmem:[%s22158_s16 + $0x20] sm:$0xff]   ;;  %v16888_v6 = vld [vmem:[%s22158_s16 + $0x28] sm:$0xff]  }
0x2710   :  { %17493 = vrcp.f32 %v13653_v36  ;;  %v16885_v36 = vld [vmem:[%s22158_s16 + $0x10] sm:$0xff]  }
0x2711   :  { %17495 = vrcp.f32 %v13660_v2  ;;  %v22365_v2 = vld [vmem:[#allocation27_spill] sm:$0xff] }
0x2719   :  { %v17492_v62 = vpop.eup %17491 }
0x271a   :  { %v17494_v59 = vpop.eup %17493  ;;  %v13664_v26 = vmul.f32 %v17492_v62, %v17490_v20  ;;  %v16889_v20 = vld [vmem:[%s22158_s16 + $0x30] sm:$0xff]   ;;  %v16890_v62 = vld [vmem:[%s22158_s16 + $0x38] sm:$0xff]  }
0x271b   :  { %v13663_v18 = vmul.f32 %v17494_v59, %v21950_v56  ;;  %v17496_v51 = vpop.eup %17495  ;;  %v14294_v59 = vpack.c.bf16 %v21903_v47, %v21691_v32 }
0x271d   :  { %v22000_v15 = vadd.f32 %v13664_v26, %v13663_v18  ;;  %v11713_v18 = vadd.f32 %v22365_v2, %v21567_v63 }
0x271f   :  { %17497 = vtanh.f32 %v22000_v15 }
0x2729   :  { %v17498_v44 = vpop.eup %17497 }
0x272a   :  { %v22003_v45 = vmul.f32 %v17498_v44, %v17496_v51  ;;  %v22367_v44 = vld [vmem:[#allocation29_spill] sm:$0xff] }
0x272c   :  { %v13673_v40 = vpack.c.bf16 %v22003_v45, %v22003_v45  ;;  %v14295_v26 = vpack.c.bf16 %v22003_v45, %v21953_v54 }
0x272e   :  { %13899 = vmatmul.mubr.bf16.vlgmr.msra.gmra.mrb[204].mxu0 %v13673_v40  ;;  %13940 = vmatmul.mubr.bf16.vlgmr.msra.gmra.mrb[236].mxu1 %v13673_v40  ;;  %v11715_v40 = vadd.f32 %v22367_v44, %v21577_v43 }
0x272f   :  { %14175 = vmatpush1.bf16.msra.mxu0 %v21710_v1  ;;  %14216 = vmatpush1.bf16.msra.mxu1 %v21715_v50  ;;  %v22361_v1 = vld [vmem:[#allocation13_spill] sm:$0xff] }
0x2730   :  { %14176 = vmatprep.subr.bf16.mxu0 %v21724_v14  ;;  %14217 = vmatprep.subr.bf16.mxu1 %v21729_v5  ;;  %v11709_v50 = vadd.f32 %v22361_v1, %v21567_v63  ;;  %v22362_v14 = vld [vmem:[#allocation24_spill] sm:$0xff] }
0x2731   :  { %14206 = vmatprep.mubr.bf16.mxu0 %v22201_v24  ;;  %14247 = vmatprep.mubr.bf16.mxu1 %v22201_v24  ;;  %v16883_v24 = vld [vmem:[%s22158_s16] sm:$0xff]   ;;  %v11782_v5 = vadd.f32 %v22362_v14, %v21570_v19 }
0x2733   :  { %14177 = vmatpush1.bf16.msra.mxu0 %v21734_v21  ;;  %14218 = vmatpush1.bf16.msra.mxu1 %v21739_v58  ;;  %v22363_v21 = vld [vmem:[#allocation25_spill] sm:$0xff] }
0x2734   :  { %14178 = vmatprep.subr.bf16.mxu0 %v21748_v12  ;;  %14219 = vmatprep.subr.bf16.mxu1 %v21753_v25  ;;  %v11711_v58 = vadd.f32 %v22363_v21, %v21577_v43  ;;  %v22364_v12 = vld [vmem:[#allocation26_spill] sm:$0xff] }
0x2735   :  { %v11784_v25 = vadd.f32 %v22364_v12, %v21580_v55 }
0x2737   :  { %14179 = vmatpush1.bf16.msra.mxu0 %v21758_v39  ;;  %14220 = vmatpush1.bf16.msra.mxu1 %v21763_v57 }
0x2738   :  { %14180 = vmatprep.subr.bf16.mxu0 %v21772_v46  ;;  %14221 = vmatprep.subr.bf16.mxu1 %v21777_v7 }
0x273b   :  { %14181 = vmatpush1.bf16.msra.mxu0 %v21782_v22  ;;  %14222 = vmatpush1.bf16.msra.mxu1 %v21787_v38 }
0x273c   :  { %14182 = vmatprep.subr.bf16.mxu0 %v21796_v30  ;;  %14223 = vmatprep.subr.bf16.mxu1 %v21801_v34 }
0x273f   :  { %14183 = vmatpush1.bf16.msra.mxu0 %v21806_v23  ;;  %14224 = vmatpush1.bf16.msra.mxu1 %v21811_v52 }
0x2740   :  { %14184 = vmatprep.subr.bf16.mxu0 %v21818_v0  ;;  %14225 = vmatprep.subr.bf16.mxu1 %v21835_v42 }
0x2743   :  { %14185 = vmatpush1.bf16.msra.mxu0 %v21825_v16  ;;  %14226 = vmatpush1.bf16.msra.mxu1 %v21830_v3 }
0x2744   :  { %14186 = vmatprep.subr.bf16.mxu0 %v21841_v17  ;;  %14227 = vmatprep.subr.bf16.mxu1 %v21846_v29 }
0x2747   :  { %14187 = vmatpush1.bf16.msra.mxu0 %v21854_v53  ;;  %14228 = vmatpush1.bf16.msra.mxu1 %v21859_v28 }
0x2748   :  { %14188 = vmatprep.subr.bf16.mxu0 %v21866_v13  ;;  %14229 = vmatprep.subr.bf16.mxu1 %v21871_v9 }
0x274b   :  { %14189 = vmatpush1.bf16.msra.mxu0 %v21878_v49  ;;  %14230 = vmatpush1.bf16.msra.mxu1 %v21883_v48 }
0x274c   :  { %16110 = vmatprep.subr.bf16.mxu0 %v16883_v24 }
0x2801   :  { %v13900_v39 = vpop.f32.mrb[204].mxu0  ;;  %v13941_v57 = vpop.f32.mrb[236].mxu1 }
0x2802   :  { %v13948_v46 = vadd.f32 %v13900_v39, %v11709_v50  ;;  %v13950_v7 = vadd.f32 %v13941_v57, %v11782_v5  ;;  %v13902_v22 = vpop.f32.mrb[205].mxu0  ;;  %v13943_v38 = vpop.f32.mrb[237].mxu1 }
0x2803   :  { %v13949_v30 = vadd.f32 %v13902_v22, %v11711_v58  ;;  %v13951_v34 = vadd.f32 %v13943_v38, %v11784_v25  ;;  %v13904_v23 = vpop.f32.mrb[206].mxu0  ;;  %v13945_v52 = vpop.f32.mrb[238].mxu1 }
0x2804   :  { %v16051_v0 = vmul.f32 -1.442695, %v13948_v46  ;;  %v13905_v16 = vpop.f32.mrb[207].mxu0  ;;  %v13946_v3 = vpop.f32.mrb[239].mxu1 }
0x2805   :  { %v16052_v42 = vmul.f32 -1.442695, %v13949_v30  ;;  %v16053_v17 = vmul.f32 -1.442695, %v13951_v34  ;;  %v16089_v16 = vld [vmem:[%s22159_s17] ss:$0 sm:$0xff] }
0x2806   :  { %17499 = vpow2.f32 %v16051_v0 }
0x2807   :  { %17501 = vpow2.f32 %v16052_v42 }
0x2808   :  { %17503 = vpow2.f32 %v16053_v17 }
0x2809   :  { %17505 = vtanh.f32 %v13950_v7 }
0x2810   :  { %v17500_v29 = vpop.eup %17499 }
0x2811   :  { %v17502_v53 = vpop.eup %17501  ;;  %v13955_v28 = vadd.f32 1.0, %v17500_v29 }
0x2812   :  { %v13961_v13 = vadd.f32 1.0, %v17502_v53  ;;  %v17504_v9 = vpop.eup %17503 }
0x2813   :  { %17507 = vrcp.f32 %v13955_v28  ;;  %v17506_v49 = vpop.eup %17505  ;;  %v13968_v37 = vadd.f32 1.0, %v17504_v9 }
0x2814   :  { %17509 = vrcp.f32 %v13961_v13 }
0x2815   :  { %17511 = vrcp.f32 %v13968_v37 }
0x281d   :  { %v17508_v48 = vpop.eup %17507 }
0x281e   :  { %v17510_v56 = vpop.eup %17509  ;;  %v13972_v27 = vmul.f32 %v17508_v48, %v17506_v49 }
0x281f   :  { %v13971_v41 = vmul.f32 %v17510_v56, %v22000_v15  ;;  %v17512_v8 = vpop.eup %17511  ;;  %v22366_v15 = vld [vmem:[#allocation28_spill] sm:$0xff] }
0x2820   :  { %v11786_v51 = vadd.f32 %v22366_v15, %v21570_v19 }
0x2821   :  { %v22051_v33 = vadd.f32 %v13972_v27, %v13971_v41 }
0x2823   :  { %17513 = vtanh.f32 %v22051_v33 }
0x282d   :  { %v17514_v35 = vpop.eup %17513 }
0x282e   :  { %v22054_v11 = vmul.f32 %v17514_v35, %v17512_v8 }
0x2830   :  { %v13981_v60 = vpack.c.bf16 %v22054_v11, %v22054_v11 }
0x2832   :  { %14207 = vmatmul.mubr.bf16.vlgmr.msra.gmra.mrb[208].mxu0 %v13981_v60  ;;  %14248 = vmatmul.mubr.bf16.vlgmr.msra.gmra.mrb[240].mxu1 %v13981_v60 }
0x2833   :  { %16111 = vmatpush3.bf16.msra.mxu0 %v16883_v24  ;;  %16126 = vmatprep.mubr.bf16.mxu0 %v14293_v10  ;;  %v22368_v24 = vld [vmem:[#allocation30_spill] sm:$0xff] }
0x2834   :  { %16112 = vmatprep.subr.bf16.mxu0 %v16884_v4  ;;  %v11788_v1 = vadd.f32 %v22368_v24, %v21580_v55 }
0x2837   :  { %16113 = vmatpush3.bf16.msra.mxu0 %v16884_v4 }
0x2838   :  { %16114 = vmatprep.subr.bf16.mxu0 %v16885_v36 }
0x283b   :  { %16115 = vmatpush3.bf16.msra.mxu0 %v16885_v36 }
0x283c   :  { %16116 = vmatprep.subr.bf16.mxu0 %v16886_v61 }
0x283f   :  { %16117 = vmatpush3.bf16.msra.mxu0 %v16886_v61 }
0x2840   :  { %16118 = vmatprep.subr.bf16.mxu0 %v16887_v31 }
0x2843   :  { %16119 = vmatpush3.bf16.msra.mxu0 %v16887_v31 }
0x2844   :  { %16120 = vmatprep.subr.bf16.mxu0 %v16888_v6 }
0x2847   :  { %16121 = vmatpush3.bf16.msra.mxu0 %v16888_v6 }
0x2848   :  { %16122 = vmatprep.subr.bf16.mxu0 %v16889_v20 }
0x284b   :  { %16123 = vmatpush3.bf16.msra.mxu0 %v16889_v20 }
0x284c   :  { %16124 = vmatprep.subr.bf16.mxu0 %v16890_v62 }
0x284f   :  { %16125 = vmatpush3.bf16.msra.mxu0 %v16890_v62 }
0x2852   :  { %16127 = vmatmul.mubr.bf16.vlgmr.msra.gmra.mrb[212].mxu0 %v14294_v59 }
0x2853   :  { %16130 = vmatprep.mubr.bf16.mxu0 %v14295_v26 }
0x2905   :  { %v14208_v50 = vpop.f32.mrb[208].mxu0  ;;  %v14249_v14 = vpop.f32.mrb[240].mxu1 }
0x2906   :  { %v14256_v32 = vadd.f32 %v14208_v50, %v11713_v18  ;;  %v14258_v47 = vadd.f32 %v14249_v14, %v11786_v51  ;;  %v14210_v5 = vpop.f32.mrb[209].mxu0  ;;  %v14251_v54 = vpop.f32.mrb[241].mxu1 }
0x2907   :  { %v14257_v45 = vadd.f32 %v14210_v5, %v11715_v40  ;;  %v14259_v21 = vadd.f32 %v14251_v54, %v11788_v1  ;;  %v14212_v58 = vpop.f32.mrb[210].mxu0  ;;  %v14253_v12 = vpop.f32.mrb[242].mxu1 }
0x2908   :  { %v16086_v63 = vmul.f32 -1.442695, %v14256_v32  ;;  %v14213_v25 = vpop.f32.mrb[211].mxu0  ;;  %v14254_v39 = vpop.f32.mrb[243].mxu1 }
0x2909   :  { %v16087_v19 = vmul.f32 -1.442695, %v14257_v45  ;;  %v16088_v43 = vmul.f32 -1.442695, %v14259_v21 }
0x290a   :  { %17515 = vpow2.f32 %v16086_v63 }
0x290b   :  { %17517 = vpow2.f32 %v16087_v19 }
0x290c   :  { %17519 = vpow2.f32 %v16088_v43 }
0x290d   :  { %17521 = vtanh.f32 %v14258_v47 }
0x2914   :  { %v17516_v57 = vpop.eup %17515 }
0x2915   :  { %v17518_v46 = vpop.eup %17517  ;;  %v14263_v55 = vadd.f32 1.0, %v17516_v57 }
0x2916   :  { %v14269_v7 = vadd.f32 1.0, %v17518_v46  ;;  %v17520_v22 = vpop.eup %17519 }
0x2917   :  { %17523 = vrcp.f32 %v14263_v55  ;;  %v17522_v38 = vpop.eup %17521  ;;  %v14276_v52 = vadd.f32 1.0, %v17520_v22 }
0x2918   :  { %17525 = vrcp.f32 %v14269_v7 }
0x2919   :  { %17527 = vrcp.f32 %v14276_v52 }
0x2921   :  { %v17524_v30 = vpop.eup %17523 }
0x2922   :  { %v17526_v34 = vpop.eup %17525  ;;  %v14280_v23 = vmul.f32 %v17524_v30, %v17522_v38 }
0x2923   :  { %v14279_v0 = vmul.f32 %v17526_v34, %v22051_v33  ;;  %v17528_v48 = vpop.eup %17527 }
0x2925   :  { %v16128_v3 = vpop.f32.mrb[212].mxu0  ;;  %v14281_v42 = vadd.f32 %v14280_v23, %v14279_v0 }
0x2926   :  { %v14411_v17 = vadd.f32 %v16128_v3, %v16089_v16  ;;  %v14402_v29 = vpop.f32.mrb[213].mxu0 }
0x2927   :  { %v14403_v53 = vadd.f32 %v16089_v16, %v14402_v29  ;;  %v16129_v28 = vpop.f32.mrb[214].mxu0  ;;  %17529 = vtanh.f32 %v14281_v42 }
0x2928   :  { %14437 = vmax.xlane.f32.xlu1 %v14411_v17  ;;  %v14405_v13 = vpop.f32.mrb[215].mxu0  ;;  %v14414_v9 = vadd.f32 %v16129_v28, %v16089_v16 }
0x2929   :  { %14433 = vmax.xlane.f32.xlu0 %v14403_v53  ;;  %v14406_v49 = vadd.f32 %v16089_v16, %v14405_v13 }
0x292c   :  { %14439 = vmax.xlane.f32.xlu1 %v14414_v9 }
0x292d   :  { %14435 = vmax.xlane.f32.xlu0 %v14406_v49 }
0x2931   :  { %v17530_v56 = vpop.eup %17529 }
0x2932   :  { %v14283_v27 = vmul.f32 %v17530_v56, %v17528_v48 }
0x2934   :  { %v14296_v37 = vpack.c.bf16 %v14283_v27, %v22054_v11 }
0x2936   :  { %16131 = vmatmul.mubr.bf16.gmra.mrb[216].mxu0 %v14296_v37 }
0x29b5   :  { %v14438_v33 = vpop.xlane.xlu1 %14437 }
0x29b6   :  { %v14434_v41 = vpop.xlane.xlu0 %14433  ;;  %v22102_v10 = vsub.f32 %v14411_v17, %v14438_v33 }
0x29b7   :  { %v22098_v35 = vsub.f32 %v14403_v53, %v14434_v41 }
0x29b8   :  { %v14461_v11 = vmul.f32 1.442695, %v22102_v10 }
0x29b9   :  { %v14440_v4 = vpop.xlane.xlu1 %14439  ;;  %v14457_v36 = vmul.f32 1.442695, %v22098_v35 }
0x29ba   :  { %v14436_v8 = vpop.xlane.xlu0 %14435  ;;  %v22105_v61 = vsub.f32 %v14414_v9, %v14440_v4 }
0x29bb   :  { %v22100_v60 = vsub.f32 %v14406_v49, %v14436_v8  ;;  %17531 = vpow2.f32 %v14457_v36 }
0x29bc   :  { %v14463_v26 = vmul.f32 1.442695, %v22105_v61 }
0x29bd   :  { %v14459_v31 = vmul.f32 1.442695, %v22100_v60 }
0x29bf   :  { %17533 = vpow2.f32 %v14459_v31 }
0x29c0   :  { %17535 = vpow2.f32 %v14461_v11 }
0x29c1   :  { %17537 = vpow2.f32 %v14463_v26 }
0x29c5   :  { %v17532_v44 = vpop.eup %17531 }
0x29c9   :  { %v17534_v40 = vpop.eup %17533 }
0x29ca   :  { %v17536_v24 = vpop.eup %17535 }
0x29cb   :  { %v17538_v1 = vpop.eup %17537 }
0x2a09   :  { %v16132_v6 = vpop.f32.mrb[216].mxu0 }
0x2a0a   :  { %v14418_v20 = vpop.f32.mrb[217].mxu0  ;;  %v14427_v15 = vadd.f32 %v16132_v6, %v16089_v16 }
0x2a0b   :  { %v14419_v62 = vadd.f32 %v16089_v16, %v14418_v20  ;;  %v16133_v59 = vpop.f32.mrb[218].mxu0 }
0x2a0c   :  { %v14421_v2 = vpop.f32.mrb[219].mxu0  ;;  %v14430_v51 = vadd.f32 %v16133_v59, %v16089_v16 }
0x2a0d   :  { %v14422_v18 = vadd.f32 %v16089_v16, %v14421_v2  ;;  %14441 = vmax.xlane.f32.xlu0 %v14419_v62 }
0x2a0f   :  { %14443 = vmax.xlane.f32.xlu1 %v14422_v18 }
0x2a11   :  { %14445 = vmax.xlane.f32.xlu0 %v14427_v15 }
0x2a13   :  { %14447 = vmax.xlane.f32.xlu1 %v14430_v51 }
0x2a15   :  { %14473 = vadd.xlane.f32.xlu0 %v17532_v44 }
0x2a17   :  { %14475 = vadd.xlane.f32.xlu1 %v17534_v40 }
0x2a19   :  { %14477 = vadd.xlane.f32.xlu0 %v17536_v24 }
0x2a1b   :  { %14479 = vadd.xlane.f32.xlu1 %v17538_v1 }
0x2a9a   :  { %v14442_v50 = vpop.xlane.xlu0 %14441 }
0x2a9b   :  { %v14453_v14 = vsub.f32 %v14419_v62, %v14442_v50 }
0x2a9c   :  { %v14444_v32 = vpop.xlane.xlu1 %14443 }
0x2a9d   :  { %v14465_v47 = vmul.f32 1.442695, %v14453_v14  ;;  %v22110_v5 = vsub.f32 %v14422_v18, %v14444_v32 }
0x2a9e   :  { %v14446_v54 = vpop.xlane.xlu0 %14445 }
0x2a9f   :  { %17539 = vpow2.f32 %v14465_v47  ;;  %v14467_v45 = vmul.f32 1.442695, %v22110_v5  ;;  %v14455_v21 = vsub.f32 %v14427_v15, %v14446_v54 }
0x2aa0   :  { %v14448_v58 = vpop.xlane.xlu1 %14447 }
0x2aa1   :  { %17541 = vpow2.f32 %v14467_v45  ;;  %v14469_v12 = vmul.f32 1.442695, %v14455_v21  ;;  %v14456_v63 = vsub.f32 %v14430_v51, %v14448_v58 }
0x2aa2   :  { %v14474_v25 = vpop.xlane.xlu0 %14473 }
0x2aa3   :  { %17543 = vpow2.f32 %v14469_v12  ;;  %v14471_v39 = vmul.f32 1.442695, %v14456_v63 }
0x2aa4   :  { %17545 = vlog2.f32 %v14474_v25  ;;  %v14476_v19 = vpop.xlane.xlu1 %14475 }
0x2aa5   :  { %17547 = vpow2.f32 %v14471_v39 }
0x2aa6   :  { %17549 = vlog2.f32 %v14476_v19  ;;  %v14478_v43 = vpop.xlane.xlu0 %14477 }
0x2aa7   :  { %17551 = vlog2.f32 %v14478_v43 }
0x2aa8   :  { %v14480_v57 = vpop.xlane.xlu1 %14479 }
0x2aa9   :  { %v17540_v46 = vpop.eup %17539  ;;  %17553 = vlog2.f32 %v14480_v57 }
0x2aaa   :  { %14481 = vadd.xlane.f32.xlu0 %v17540_v46 }
0x2aab   :  { %v17542_v55 = vpop.eup %17541 }
0x2aac   :  { %14483 = vadd.xlane.f32.xlu1 %v17542_v55 }
0x2aad   :  { %v17544_v7 = vpop.eup %17543 }
0x2aae   :  { %v17546_v22 = vpop.eup %17545  ;;  %14485 = vadd.xlane.f32.xlu0 %v17544_v7 }
0x2aaf   :  { %v17548_v38 = vpop.eup %17547  ;;  %v14490_v30 = vmul.f32 0.6931472, %v17546_v22 }
0x2ab0   :  { %v17550_v34 = vpop.eup %17549  ;;  %14487 = vadd.xlane.f32.xlu1 %v17548_v38 }
0x2ab1   :  { %v17552_v23 = vpop.eup %17551  ;;  %v14505_v52 = vsub.f32 %v22098_v35, %v14490_v30  ;;  %v14492_v0 = vmul.f32 0.6931472, %v17550_v34 }
0x2ab2   :  { %v14494_v16 = vmul.f32 0.6931472, %v17552_v23 }
0x2ab3   :  { %v17554_v3 = vpop.eup %17553  ;;  %14513 = vst [vmem:[%s22160_s18] sm:$0xff] %v14505_v52  ;;  %v14506_v42 = vsub.f32 %v22100_v60, %v14492_v0 }
0x2ab4   :  { %v14507_v17 = vsub.f32 %v22102_v10, %v14494_v16  ;;  %v14496_v29 = vmul.f32 0.6931472, %v17554_v3 }
0x2ab5   :  { %14514 = vst [vmem:[%s22160_s18 + $0x8] sm:$0xff] %v14506_v42 }
0x2ab6   :  { %14515 = vst [vmem:[%s22160_s18 + $0x10] sm:$0xff] %v14507_v17  ;;  %v14508_v53 = vsub.f32 %v22105_v61, %v14496_v29 }
0x2ab8   :  { %14516 = vst [vmem:[%s22160_s18 + $0x18] sm:$0xff] %v14508_v53 }
0x2b37   :  { %v14482_v28 = vpop.xlane.xlu0 %14481 }
0x2b38   :  { %17555 = vlog2.f32 %v14482_v28 }
0x2b39   :  { %v14484_v13 = vpop.xlane.xlu1 %14483 }
0x2b3a   :  { %17557 = vlog2.f32 %v14484_v13 }
0x2b3b   :  { %v14486_v9 = vpop.xlane.xlu0 %14485 }
0x2b3c   :  { %17559 = vlog2.f32 %v14486_v9 }
0x2b3d   :  { %v14488_v49 = vpop.xlane.xlu1 %14487 }
0x2b3e   :  { %17561 = vlog2.f32 %v14488_v49 }
0x2b42   :  { %v17556_v48 = vpop.eup %17555 }
0x2b43   :  { %v14498_v56 = vmul.f32 0.6931472, %v17556_v48 }
0x2b44   :  { %v17558_v27 = vpop.eup %17557 }
0x2b45   :  { %v14509_v37 = vsub.f32 %v14453_v14, %v14498_v56  ;;  %v14500_v41 = vmul.f32 0.6931472, %v17558_v27 }
0x2b46   :  { %v17560_v33 = vpop.eup %17559 }
0x2b47   :  { %14517 = vst [vmem:[%s22160_s18 + $0x20] sm:$0xff] %v14509_v37  ;;  %v14510_v8 = vsub.f32 %v22110_v5, %v14500_v41  ;;  %v14502_v35 = vmul.f32 0.6931472, %v17560_v33 }
0x2b48   :  { %v17562_v60 = vpop.eup %17561 }
0x2b49   :  { %14518 = vst [vmem:[%s22160_s18 + $0x28] sm:$0xff] %v14510_v8  ;;  %v14511_v4 = vsub.f32 %v14455_v21, %v14502_v35  ;;  %v14504_v10 = vmul.f32 0.6931472, %v17562_v60 }
0x2b4b   :  { %14519 = vst [vmem:[%s22160_s18 + $0x30] sm:$0xff] %v14511_v4  ;;  %v14512_v36 = vsub.f32 %v14456_v63, %v14504_v10 }
0x2b4d   :  { %14520 = vst [vmem:[%s22160_s18 + $0x38] sm:$0xff] %v14512_v36 }

</bundles_post_ra>
